<compile_context>
chip_gen: v5e
topology: v5e:2x2
jax: 0.10.0
libtpu: 0.0.40
codegen_flags: <defaults>
</compile_context>

<pallas_src>
import jax
import jax.numpy as jnp
from jax.experimental import pallas as pl
from jax.experimental.pallas import tpu as pltpu

LANE = 128
SUBLANE = 8
VMEM_LIMIT = 32 * 1024 * 1024  # raise v5e's 16 MiB scoped default; safe on all parts


def _round_up(x, m):
    return (x + m - 1) // m * m


# ----------------------------- in-kernel helpers ---------------------------- #

def _interior_mask(Pp, H, W):
    """(Pp, 1) f32 mask of interior-pixel rows of the fat layout, built in-kernel.

    Fat row p = a*(W+2)+b holds pixel (a-1, b-1); interior iff 1<=a<=H, 1<=b<=W.
    Uses an exact float floor-division (+0.5 trick); all values < 2^24 so the
    f32 math cannot mis-round. Pure VPU work, hidden under the MXU.
    """
    Wp2 = W + 2
    ri = jax.lax.broadcasted_iota(jnp.int32, (Pp, 1), 0).astype(jnp.float32)
    a = jnp.floor((ri + 0.5) * (1.0 / Wp2))
    b = ri - a * Wp2
    inside = (a >= 1.0) & (a <= float(H)) & (b >= 1.0) & (b <= float(W))
    return jnp.where(inside, 1.0, 0.0).astype(jnp.float32)


# ------------------------------- Pallas kernels ----------------------------- #

def _make_conv_kernel(H, W, Pp, n_taps, fuse_input_bn_relu):
    """3x3 conv over the flattened zero-padded "fat" image, fused BN statistics.

    n_taps == 1: stage-1 packed path; the 9 taps live along the lane axis of the
    input (host-side channel-axis im2col, 9*Cin <= 128) -> a single MXU matmul.
    n_taps == 9: generic path; 9 MXU matmuls whose f32 results are aligned with
    pltpu.roll (wrap rows land only on masked padding rows).
    """
    Wp2 = W + 2
    taps = [(ki, kj) for ki in range(3) for kj in range(3)]

    def kernel(*refs):
        if fuse_input_bn_relu:
            x_ref, scale_ref, shift_ref, w_ref, y_ref, s_ref, q_ref = refs
        else:
            x_ref, w_ref, y_ref, s_ref, q_ref = refs

        maskf = _interior_mask(Pp, H, W)                       # (Pp, 1) f32

        if fuse_input_bn_relu:
            # Producer BN + ReLU fused on the input path, then re-zero the
            # padding ring so the shifted matmuls see proper zero padding.
            xin = x_ref[0].astype(jnp.float32) * scale_ref[0] + shift_ref[0]
            xb = (jnp.maximum(xin, 0.0) * maskf).astype(jnp.bfloat16)
        else:
            xb = x_ref[0]                                      # bf16, zero-padded

        if n_taps == 1:
            acc = jnp.dot(xb, w_ref[0], preferred_element_type=jnp.float32)
        else:
            # Center tap first (off == 0): no zero-fill sweep of the accumulator.
            acc = jnp.dot(xb, w_ref[4], preferred_element_type=jnp.float32)
            for t, (ki, kj) in enumerate(taps):
                if t == 4:
                    continue
                off = (ki - 1) * Wp2 + (kj - 1)      # acc[p] += x[p + off] @ w_tap
                d = jnp.dot(xb, w_ref[t], preferred_element_type=jnp.float32)
                # TODO(synk): roll the bf16 input instead of the f32 result once
                # packed-dtype sublane rotate support is confirmed.
                acc = acc + pltpu.roll(d, (-off) % Pp, axis=0)

        acc = acc * maskf                            # zero the non-pixel rows
        y_ref[0] = acc.astype(y_ref.dtype)

        # Fused BatchNorm statistics on the MXU (ones-vector matmuls) instead of
        # axis-0 XLU reductions contending with rolls / matmul pushes.
        ones = jnp.ones((SUBLANE, Pp), jnp.float32)
        s_ref[0] = jnp.dot(ones, acc, preferred_element_type=jnp.float32)[0:1, :]
        q_ref[0] = jnp.dot(ones, acc * acc, preferred_element_type=jnp.float32)[0:1, :]

    return kernel


def _make_bn_relu_unpack_kernel(H, W):
    """Fused BN2 + ReLU + fat->interior unpack to a lane-dense (H*W, C) slab."""
    Wp2 = W + 2

    def kernel(y_ref, scale_ref, shift_ref, o_ref):
        scale = scale_ref[0]                                   # (1, Cp)
        shift = shift_ref[0]
        for a in range(H):                                     # H static row-strip copies
            s = (a + 1) * Wp2 + 1
            row = y_ref[0, s:s + W, :]                         # (W, Cp) f32
            o_ref[0, a * W:(a + 1) * W, :] = jnp.maximum(row * scale + shift, 0.0)

    return kernel


# ------------------------------ Pallas wrappers ----------------------------- #

def _conv3x3_bn_stats(x_fat, w_taps, H, W, *, out_dtype, scale=None, shift=None):
    """One fused conv stage: optional producer BN+ReLU on the input path,
    3x3 conv on the MXU, and a BN-statistics epilogue (per-image partials)."""
    N, Pp, Kp = x_fat.shape
    n_taps, _, Cout_p = w_taps.shape
    fuse = scale is not None
    kernel = _make_conv_kernel(H, W, Pp, n_taps, fuse)

    in_specs = [pl.BlockSpec((1, Pp, Kp), lambda n: (n, 0, 0))]
    args = [x_fat]
    if fuse:
        in_specs += [
            pl.BlockSpec((1, 1, Kp), lambda n: (0, 0, 0)),
            pl.BlockSpec((1, 1, Kp), lambda n: (0, 0, 0)),
        ]
        args += [scale.reshape(1, 1, Kp), shift.reshape(1, 1, Kp)]
    # TODO(synk): pipeline_mode=pl.Buffered(1) on these grid-invariant blocks at
    # production channel counts to drop their never-used second VMEM buffer.
    in_specs.append(pl.BlockSpec((n_taps, Kp, Cout_p), lambda n: (0, 0, 0)))
    args.append(w_taps)

    out_shape = (
        jax.ShapeDtypeStruct((N, Pp, Cout_p), out_dtype),      # conv output (fat layout)
        jax.ShapeDtypeStruct((N, 1, Cout_p), jnp.float32),     # per-image sum
        jax.ShapeDtypeStruct((N, 1, Cout_p), jnp.float32),     # per-image sum of squares
    )
    out_specs = [
        pl.BlockSpec((1, Pp, Cout_p), lambda n: (n, 0, 0)),
        pl.BlockSpec((1, 1, Cout_p), lambda n: (n, 0, 0)),
        pl.BlockSpec((1, 1, Cout_p), lambda n: (n, 0, 0)),
    ]
    return pl.pallas_call(
        kernel,
        out_shape=out_shape,
        grid_spec=pltpu.PrefetchScalarGridSpec(
            num_scalar_prefetch=0,
            grid=(N,),
            in_specs=in_specs,
            out_specs=out_specs,
        ),
        compiler_params=pltpu.CompilerParams(
            dimension_semantics=("parallel",),
            vmem_limit_bytes=VMEM_LIMIT,
        ),
    )(*args)


def _bn_relu_unpack(y_fat, scale, shift, H, W):
    N, Pp, Cp = y_fat.shape
    HWp = _round_up(H * W, SUBLANE)
    kernel = _make_bn_relu_unpack_kernel(H, W)
    return pl.pallas_call(
        kernel,
        out_shape=jax.ShapeDtypeStruct((N, HWp, Cp), jnp.float32),
        grid_spec=pltpu.PrefetchScalarGridSpec(
            num_scalar_prefetch=0,
            grid=(N,),
            in_specs=[
                pl.BlockSpec((1, Pp, Cp), lambda n: (n, 0, 0)),
                pl.BlockSpec((1, 1, Cp), lambda n: (0, 0, 0)),
                pl.BlockSpec((1, 1, Cp), lambda n: (0, 0, 0)),
            ],
            out_specs=pl.BlockSpec((1, HWp, Cp), lambda n: (n, 0, 0)),
        ),
        compiler_params=pltpu.CompilerParams(
            dimension_semantics=("parallel",),
            vmem_limit_bytes=VMEM_LIMIT,
        ),
    )(y_fat, scale.reshape(1, 1, Cp), shift.reshape(1, 1, Cp))


# --------------------------- layer-level glue (JAX) ------------------------- #

def _bn_scale_shift(psum, psq, gamma_p, beta_p, count, eps=1e-5):
    """Training-mode BatchNorm2d affine from fused partial sums (biased var)."""
    s = jnp.sum(psum, axis=0)          # (1, Cp)
    q = jnp.sum(psq, axis=0)           # (1, Cp)
    mean = s / count
    # TODO(synk): switch to a per-image (count, mean, M2) Welford combine before
    # scaling to production N*H*W (f32 E[x^2]-E[x]^2 cancels catastrophically).
    var = jnp.maximum(q / count - mean * mean, 0.0)
    scale = gamma_p.reshape(1, -1) * jax.lax.rsqrt(var + eps)
    shift = beta_p.reshape(1, -1) - mean * scale
    return scale, shift


@jax.jit
def double_conv(x_nchw, params):
    """DoubleConv forward; NCHW float32 in/out, training-mode BatchNorm."""
    w1, b1, g1, be1, w2, b2, g2, be2 = params
    del b1, b2  # conv bias is cancelled exactly by training-mode BatchNorm
    N, Cin, H, W = x_nchw.shape
    Cout = w1.shape[0]
    Cout_p = _round_up(Cout, LANE)
    P = (H + 2) * (W + 2)
    Pp = _round_up(P, SUBLANE)
    # Roll wrap-around invariant: wrapped rows must land on masked padding rows.
    assert Pp >= P and W + 3 <= (W + 2) + 1

    x_nhwc = jnp.transpose(x_nchw, (0, 2, 3, 1))                  # NHWC

    if 9 * Cin <= LANE:
        # Stage-1 packed path: taps folded along the lane axis -> 1 matmul, 0 rolls.
        K1 = 9 * Cin
        K1p = _round_up(K1, LANE)
        xpad2 = jnp.pad(x_nhwc, ((0, 0), (2, 2), (2, 2), (0, 0)))  # (N,H+4,W+4,Cin)
        taps = [xpad2[:, ki:ki + H + 2, kj:kj + W + 2, :]
                for ki in range(3) for kj in range(3)]
        x1 = jnp.stack(taps, axis=-2).reshape(N, P, K1)            # lane = tap*Cin + c
        x1 = jnp.pad(x1, ((0, 0), (0, Pp - P), (0, K1p - K1))).astype(jnp.bfloat16)
        w1t = jnp.transpose(w1, (2, 3, 1, 0)).reshape(1, K1, Cout)
        w1p = jnp.pad(w1t, ((0, 0), (0, K1p - K1), (0, Cout_p - Cout))).astype(jnp.bfloat16)
    else:
        # Generic fallback: zero-padded fat layout + 9 shifted MXU matmuls.
        Cin_p = _round_up(Cin, LANE)
        x1 = jnp.pad(x_nhwc, ((0, 0), (1, 1), (1, 1), (0, Cin_p - Cin)))
        x1 = x1.reshape(N, P, Cin_p)
        x1 = jnp.pad(x1, ((0, 0), (0, Pp - P), (0, 0))).astype(jnp.bfloat16)
        w1t = jnp.transpose(w1, (2, 3, 1, 0)).reshape(9, Cin, Cout)
        w1p = jnp.pad(w1t, ((0, 0), (0, Cin_p - Cin), (0, Cout_p - Cout))).astype(jnp.bfloat16)

    w2t = jnp.transpose(w2, (2, 3, 1, 0)).reshape(9, Cout, Cout)
    w2p = jnp.pad(w2t, ((0, 0), (0, Cout_p - Cout), (0, Cout_p - Cout))).astype(jnp.bfloat16)

    pad_c = (0, Cout_p - Cout)
    g1p, be1p = jnp.pad(g1, pad_c), jnp.pad(be1, pad_c)
    g2p, be2p = jnp.pad(g2, pad_c), jnp.pad(be2, pad_c)

    count = float(N * H * W)

    # --- stage 1: conv1 + fused BN statistics; y1 stored as bf16 --------------
    y1, s1, q1 = _conv3x3_bn_stats(x1, w1p, H, W, out_dtype=jnp.bfloat16)
    sc1, sh1 = _bn_scale_shift(s1, q1, g1p, be1p, count)

    # --- stage 2: (BN1 + ReLU1 fused on input) conv2 + fused BN statistics ----
    y2, s2, q2 = _conv3x3_bn_stats(y1, w2p, H, W, out_dtype=jnp.float32,
                                   scale=sc1, shift=sh1)
    sc2, sh2 = _bn_scale_shift(s2, q2, g2p, be2p, count)

    # --- BN2 + ReLU2 fused with the fat -> interior unpack ---------------------
    out_packed = _bn_relu_unpack(y2, sc2, sh2, H, W)               # (N, HWp, Cout_p)

    out = out_packed[:, :H * W, :Cout].reshape(N, H, W, Cout)
    return jnp.transpose(out, (0, 3, 1, 2))


# ------------------------------ pure-JAX reference -------------------------- #

def _ref_double_conv(x, params, eps=1e-5):
    """Reference with the same bf16-operand / f32-accumulate convs as the kernel."""
    w1, b1, g1, be1, w2, b2, g2, be2 = params

    def conv(x, w, b):
        y = jax.lax.conv_general_dilated(
            x.astype(jnp.bfloat16), w.astype(jnp.bfloat16),
            window_strides=(1, 1), padding="SAME",
            dimension_numbers=("NCHW", "OIHW", "NCHW"),
            preferred_element_type=jnp.float32)
        return y + b[None, :, None, None]

    def bn_relu(y, g, bta):
        mean = y.mean(axis=(0, 2, 3), keepdims=True)
        var = y.var(axis=(0, 2, 3), keepdims=True)
        yn = (y - mean) * jax.lax.rsqrt(var + eps)
        return jnp.maximum(yn * g[None, :, None, None] + bta[None, :, None, None], 0.0)

    return bn_relu(conv(bn_relu(conv(x, w1, b1), g1, be1), w2, b2), g2, be2)


# ------------------------------------ main ---------------------------------- #

if __name__ == "__main__":
    key = jax.random.PRNGKey(0)
    k_x, k_w1, k_b1, k_w2, k_b2 = jax.random.split(key, 5)

    N, Cin, Cout, H, W = 2, 4, 8, 16, 16
    x = jax.random.normal(k_x, (N, Cin, H, W), dtype=jnp.float32)

    # Shapes match nn.Conv2d / nn.BatchNorm2d parameters.
    w1 = jax.random.normal(k_w1, (Cout, Cin, 3, 3), dtype=jnp.float32) * 0.1
    b1 = jax.random.normal(k_b1, (Cout,), dtype=jnp.float32) * 0.1
    g1 = jnp.ones((Cout,), jnp.float32)     # BatchNorm weight init
    be1 = jnp.zeros((Cout,), jnp.float32)   # BatchNorm bias init
    w2 = jax.random.normal(k_w2, (Cout, Cout, 3, 3), dtype=jnp.float32) * 0.1
    b2 = jax.random.normal(k_b2, (Cout,), dtype=jnp.float32) * 0.1
    g2 = jnp.ones((Cout,), jnp.float32)
    be2 = jnp.zeros((Cout,), jnp.float32)

    params = (w1, b1, g1, be1, w2, b2, g2, be2)

    out = jax.block_until_ready(double_conv(x, params))
    assert out.shape == (N, Cout, H, W), out.shape

    ref = jax.block_until_ready(_ref_double_conv(x, params))
    err = float(jnp.max(jnp.abs(out - ref)))
    # Tolerance sized for bf16 MXU operands on both paths PLUS the bf16 storage
    # of the intermediate activation y1 in the kernel path.
    assert jnp.allclose(out, ref, atol=2e-2, rtol=2e-2), err

    print("KERNEL_OK")
</pallas_src>

<mosaic_0001>
module attributes {stable_mosaic.version = 11 : i64} {
  func.func @kernel(%arg0: i32, %arg1: memref<1x328x128xbf16, #tpu.memory_space<vmem>>, %arg2: memref<1x128x128xbf16, #tpu.memory_space<vmem>>, %arg3: memref<1x328x128xbf16, #tpu.memory_space<vmem>>, %arg4: memref<1x1x128xf32, #tpu.memory_space<vmem>>, %arg5: memref<1x1x128xf32, #tpu.memory_space<vmem>>) attributes {dimension_semantics = [#tpu.dimension_semantics<parallel>], iteration_bounds = array<i64: 2>, scalar_prefetch = 0 : i64, scratch_operands = 0 : i64, tpu.core_type = #tpu.core_type<tc>, window_params = [{transform_indices = @transform_0, window_bounds = array<i64: 1, 328, 128>}, {pipeline_mode = #tpu.pipeline_mode<synchronous>, transform_indices = @transform_1, window_bounds = array<i64: 1, 128, 128>}, {transform_indices = @transform_2, window_bounds = array<i64: 1, 328, 128>}, {transform_indices = @transform_3, window_bounds = array<i64: 1, 1, 128>}, {transform_indices = @transform_4, window_bounds = array<i64: 1, 1, 128>}]} {
    %0 = tpu.iota {dimensions = array<i32: 0>} : vector<328x1xi32>
    %1 = arith.sitofp %0 : vector<328x1xi32> to vector<328x1xf32>
    %cst = arith.constant 5.000000e-01 : f32
    %2 = vector.broadcast %cst : f32 to vector<328x1xf32>
    %3 = arith.addf %1, %2 : vector<328x1xf32>
    %cst_0 = arith.constant 0.055555556 : f32
    %4 = vector.broadcast %cst_0 : f32 to vector<328x1xf32>
    %5 = arith.mulf %3, %4 : vector<328x1xf32>
    %6 = math.floor %5 : vector<328x1xf32>
    %cst_1 = arith.constant 1.800000e+01 : f32
    %7 = vector.broadcast %cst_1 : f32 to vector<328x1xf32>
    %8 = arith.mulf %6, %7 : vector<328x1xf32>
    %9 = arith.subf %1, %8 : vector<328x1xf32>
    %cst_2 = arith.constant 1.000000e+00 : f32
    %10 = vector.broadcast %cst_2 : f32 to vector<328x1xf32>
    %11 = arith.cmpf oge, %6, %10 : vector<328x1xf32>
    %cst_3 = arith.constant 1.600000e+01 : f32
    %12 = vector.broadcast %cst_3 : f32 to vector<328x1xf32>
    %13 = arith.cmpf ole, %6, %12 : vector<328x1xf32>
    %14 = arith.andi %11, %13 : vector<328x1xi1>
    %cst_4 = arith.constant 1.000000e+00 : f32
    %15 = vector.broadcast %cst_4 : f32 to vector<328x1xf32>
    %16 = arith.cmpf oge, %9, %15 : vector<328x1xf32>
    %17 = arith.andi %14, %16 : vector<328x1xi1>
    %cst_5 = arith.constant 1.600000e+01 : f32
    %18 = vector.broadcast %cst_5 : f32 to vector<328x1xf32>
    %19 = arith.cmpf ole, %9, %18 : vector<328x1xf32>
    %20 = arith.andi %17, %19 : vector<328x1xi1>
    %cst_6 = arith.constant 1.000000e+00 : f32
    %cst_7 = arith.constant 0.000000e+00 : f32
    %21 = vector.broadcast %cst_6 : f32 to vector<328x1xf32>
    %22 = vector.broadcast %cst_7 : f32 to vector<328x1xf32>
    %23 = arith.select %20, %21, %22 : vector<328x1xi1>, vector<328x1xf32>
    %c0 = arith.constant 0 : index
    %c0_8 = arith.constant 0 : index
    %c0_9 = arith.constant 0 : index
    %24 = vector.load %arg1[%c0, %c0_8, %c0_9] : memref<1x328x128xbf16, #tpu.memory_space<vmem>>, vector<1x328x128xbf16>
    %25 = vector.shape_cast %24 : vector<1x328x128xbf16> to vector<328x128xbf16>
    %c0_10 = arith.constant 0 : index
    %c0_11 = arith.constant 0 : index
    %c0_12 = arith.constant 0 : index
    %26 = vector.load %arg2[%c0_10, %c0_11, %c0_12] : memref<1x128x128xbf16, #tpu.memory_space<vmem>>, vector<1x128x128xbf16>
    %27 = vector.shape_cast %26 : vector<1x128x128xbf16> to vector<128x128xbf16>
    %cst_13 = arith.constant dense<0.000000e+00> : vector<328x128xf32>
    %28 = tpu.matmul %25, %27, %cst_13 {dimension_numbers = #tpu.dot_dimension_numbers<[1], [0], [0], [1], [0, 0, 1, 1], [], []>} : vector<328x128xbf16>, vector<128x128xbf16>, vector<328x128xf32> -> vector<328x128xf32>
    %29 = vector.broadcast %23 : vector<328x1xf32> to vector<328x128xf32>
    %30 = arith.mulf %28, %29 : vector<328x128xf32>
    %31 = arith.truncf %30 : vector<328x128xf32> to vector<328x128xbf16>
    %c0_14 = arith.constant 0 : index
    %c0_15 = arith.constant 0 : index
    %c0_16 = arith.constant 0 : index
    %32 = vector.load %arg3[%c0_14, %c0_15, %c0_16] : memref<1x328x128xbf16, #tpu.memory_space<vmem>>, vector<1x328x128xbf16>
    %33 = vector.shape_cast %32 : vector<1x328x128xbf16> to vector<328x128xbf16>
    %34 = vector.shape_cast %31 : vector<328x128xbf16> to vector<1x328x128xbf16>
    tpu.vector_store %arg3[%c0_14, %c0_15, %c0_16], %34 {strides = array<i32>} : memref<1x328x128xbf16, #tpu.memory_space<vmem>>, vector<1x328x128xbf16>,
    %cst_17 = arith.constant 1.000000e+00 : f32
    %35 = vector.broadcast %cst_17 : f32 to vector<8x328xf32>
    %cst_18 = arith.constant dense<0.000000e+00> : vector<8x128xf32>
    %36 = tpu.matmul %35, %30, %cst_18 {dimension_numbers = #tpu.dot_dimension_numbers<[1], [0], [0], [1], [0, 0, 1, 1], [], []>} : vector<8x328xf32>, vector<328x128xf32>, vector<8x128xf32> -> vector<8x128xf32>
    %37 = vector.extract_strided_slice %36 {offsets = [0, 0], sizes = [1, 128], strides = [1, 1]} : vector<8x128xf32> to vector<1x128xf32>
    %c0_19 = arith.constant 0 : index
    %c0_20 = arith.constant 0 : index
    %c0_21 = arith.constant 0 : index
    %38 = vector.load %arg4[%c0_19, %c0_20, %c0_21] : memref<1x1x128xf32, #tpu.memory_space<vmem>>, vector<1x1x128xf32>
    %39 = vector.shape_cast %38 : vector<1x1x128xf32> to vector<1x128xf32>
    %40 = vector.shape_cast %37 : vector<1x128xf32> to vector<1x1x128xf32>
    tpu.vector_store %arg4[%c0_19, %c0_20, %c0_21], %40 {strides = array<i32>} : memref<1x1x128xf32, #tpu.memory_space<vmem>>, vector<1x1x128xf32>,
    %41 = arith.mulf %30, %30 : vector<328x128xf32>
    %cst_22 = arith.constant dense<0.000000e+00> : vector<8x128xf32>
    %42 = tpu.matmul %35, %41, %cst_22 {dimension_numbers = #tpu.dot_dimension_numbers<[1], [0], [0], [1], [0, 0, 1, 1], [], []>} : vector<8x328xf32>, vector<328x128xf32>, vector<8x128xf32> -> vector<8x128xf32>
    %43 = vector.extract_strided_slice %42 {offsets = [0, 0], sizes = [1, 128], strides = [1, 1]} : vector<8x128xf32> to vector<1x128xf32>
    %c0_23 = arith.constant 0 : index
    %c0_24 = arith.constant 0 : index
    %c0_25 = arith.constant 0 : index
    %44 = vector.load %arg5[%c0_23, %c0_24, %c0_25] : memref<1x1x128xf32, #tpu.memory_space<vmem>>, vector<1x1x128xf32>
    %45 = vector.shape_cast %44 : vector<1x1x128xf32> to vector<1x128xf32>
    %46 = vector.shape_cast %43 : vector<1x128xf32> to vector<1x1x128xf32>
    tpu.vector_store %arg5[%c0_23, %c0_24, %c0_25], %46 {strides = array<i32>} : memref<1x1x128xf32, #tpu.memory_space<vmem>>, vector<1x1x128xf32>,
    return
  }
  func.func @transform_0(%arg0: i32) -> (i32, i32, i32) {
    %c0_i32 = arith.constant 0 : i32
    %c0_i32_0 = arith.constant 0 : i32
    %c0_i32_1 = arith.constant 0 : i32
    return %arg0, %c0_i32, %c0_i32_0 : i32, i32, i32
  }
  func.func @transform_1(%arg0: i32) -> (i32, i32, i32) {
    %c0_i32 = arith.constant 0 : i32
    %c0_i32_0 = arith.constant 0 : i32
    %c0_i32_1 = arith.constant 0 : i32
    %c0_i32_2 = arith.constant 0 : i32
    return %c0_i32, %c0_i32_0, %c0_i32_1 : i32, i32, i32
  }
  func.func @transform_2(%arg0: i32) -> (i32, i32, i32) {
    %c0_i32 = arith.constant 0 : i32
    %c0_i32_0 = arith.constant 0 : i32
    %c0_i32_1 = arith.constant 0 : i32
    return %arg0, %c0_i32, %c0_i32_0 : i32, i32, i32
  }
  func.func @transform_3(%arg0: i32) -> (i32, i32, i32) {
    %c0_i32 = arith.constant 0 : i32
    %c0_i32_0 = arith.constant 0 : i32
    %c0_i32_1 = arith.constant 0 : i32
    return %arg0, %c0_i32, %c0_i32_0 : i32, i32, i32
  }
  func.func @transform_4(%arg0: i32) -> (i32, i32, i32) {
    %c0_i32 = arith.constant 0 : i32
    %c0_i32_0 = arith.constant 0 : i32
    %c0_i32_1 = arith.constant 0 : i32
    return %arg0, %c0_i32, %c0_i32_0 : i32, i32, i32
  }
}

module attributes {stable_mosaic.version = 11 : i64} {
  func.func @kernel(%arg0: i32, %arg1: memref<1x328x128xbf16, #tpu.memory_space<vmem>>, %arg2: memref<1x1x128xf32, #tpu.memory_space<vmem>>, %arg3: memref<1x1x128xf32, #tpu.memory_space<vmem>>, %arg4: memref<9x128x128xbf16, #tpu.memory_space<vmem>>, %arg5: memref<1x328x128xf32, #tpu.memory_space<vmem>>, %arg6: memref<1x1x128xf32, #tpu.memory_space<vmem>>, %arg7: memref<1x1x128xf32, #tpu.memory_space<vmem>>) attributes {dimension_semantics = [#tpu.dimension_semantics<parallel>], iteration_bounds = array<i64: 2>, scalar_prefetch = 0 : i64, scratch_operands = 0 : i64, tpu.core_type = #tpu.core_type<tc>, window_params = [{transform_indices = @transform_0, window_bounds = array<i64: 1, 328, 128>}, {pipeline_mode = #tpu.pipeline_mode<synchronous>, transform_indices = @transform_1, window_bounds = array<i64: 1, 1, 128>}, {pipeline_mode = #tpu.pipeline_mode<synchronous>, transform_indices = @transform_2, window_bounds = array<i64: 1, 1, 128>}, {pipeline_mode = #tpu.pipeline_mode<synchronous>, transform_indices = @transform_3, window_bounds = array<i64: 9, 128, 128>}, {transform_indices = @transform_4, window_bounds = array<i64: 1, 328, 128>}, {transform_indices = @transform_5, window_bounds = array<i64: 1, 1, 128>}, {transform_indices = @transform_6, window_bounds = array<i64: 1, 1, 128>}]} {
    %0 = tpu.iota {dimensions = array<i32: 0>} : vector<328x1xi32>
    %1 = arith.sitofp %0 : vector<328x1xi32> to vector<328x1xf32>
    %cst = arith.constant 5.000000e-01 : f32
    %2 = vector.broadcast %cst : f32 to vector<328x1xf32>
    %3 = arith.addf %1, %2 : vector<328x1xf32>
    %cst_0 = arith.constant 0.055555556 : f32
    %4 = vector.broadcast %cst_0 : f32 to vector<328x1xf32>
    %5 = arith.mulf %3, %4 : vector<328x1xf32>
    %6 = math.floor %5 : vector<328x1xf32>
    %cst_1 = arith.constant 1.800000e+01 : f32
    %7 = vector.broadcast %cst_1 : f32 to vector<328x1xf32>
    %8 = arith.mulf %6, %7 : vector<328x1xf32>
    %9 = arith.subf %1, %8 : vector<328x1xf32>
    %cst_2 = arith.constant 1.000000e+00 : f32
    %10 = vector.broadcast %cst_2 : f32 to vector<328x1xf32>
    %11 = arith.cmpf oge, %6, %10 : vector<328x1xf32>
    %cst_3 = arith.constant 1.600000e+01 : f32
    %12 = vector.broadcast %cst_3 : f32 to vector<328x1xf32>
    %13 = arith.cmpf ole, %6, %12 : vector<328x1xf32>
    %14 = arith.andi %11, %13 : vector<328x1xi1>
    %cst_4 = arith.constant 1.000000e+00 : f32
    %15 = vector.broadcast %cst_4 : f32 to vector<328x1xf32>
    %16 = arith.cmpf oge, %9, %15 : vector<328x1xf32>
    %17 = arith.andi %14, %16 : vector<328x1xi1>
    %cst_5 = arith.constant 1.600000e+01 : f32
    %18 = vector.broadcast %cst_5 : f32 to vector<328x1xf32>
    %19 = arith.cmpf ole, %9, %18 : vector<328x1xf32>
    %20 = arith.andi %17, %19 : vector<328x1xi1>
    %cst_6 = arith.constant 1.000000e+00 : f32
    %cst_7 = arith.constant 0.000000e+00 : f32
    %21 = vector.broadcast %cst_6 : f32 to vector<328x1xf32>
    %22 = vector.broadcast %cst_7 : f32 to vector<328x1xf32>
    %23 = arith.select %20, %21, %22 : vector<328x1xi1>, vector<328x1xf32>
    %c0 = arith.constant 0 : index
    %c0_8 = arith.constant 0 : index
    %c0_9 = arith.constant 0 : index
    %24 = vector.load %arg1[%c0, %c0_8, %c0_9] : memref<1x328x128xbf16, #tpu.memory_space<vmem>>, vector<1x328x128xbf16>
    %25 = vector.shape_cast %24 : vector<1x328x128xbf16> to vector<328x128xbf16>
    %26 = arith.extf %25 : vector<328x128xbf16> to vector<328x128xf32>
    %c0_10 = arith.constant 0 : index
    %c0_11 = arith.constant 0 : index
    %c0_12 = arith.constant 0 : index
    %27 = vector.load %arg2[%c0_10, %c0_11, %c0_12] : memref<1x1x128xf32, #tpu.memory_space<vmem>>, vector<1x1x128xf32>
    %28 = vector.shape_cast %27 : vector<1x1x128xf32> to vector<1x128xf32>
    %29 = vector.broadcast %28 : vector<1x128xf32> to vector<328x128xf32>
    %30 = arith.mulf %26, %29 : vector<328x128xf32>
    %c0_13 = arith.constant 0 : index
    %c0_14 = arith.constant 0 : index
    %c0_15 = arith.constant 0 : index
    %31 = vector.load %arg3[%c0_13, %c0_14, %c0_15] : memref<1x1x128xf32, #tpu.memory_space<vmem>>, vector<1x1x128xf32>
    %32 = vector.shape_cast %31 : vector<1x1x128xf32> to vector<1x128xf32>
    %33 = vector.broadcast %32 : vector<1x128xf32> to vector<328x128xf32>
    %34 = arith.addf %30, %33 : vector<328x128xf32>
    %cst_16 = arith.constant 0.000000e+00 : f32
    %35 = vector.broadcast %cst_16 : f32 to vector<328x128xf32>
    %36 = arith.maximumf %34, %35 : vector<328x128xf32>
    %37 = vector.broadcast %23 : vector<328x1xf32> to vector<328x128xf32>
    %38 = arith.mulf %36, %37 : vector<328x128xf32>
    %39 = arith.truncf %38 : vector<328x128xf32> to vector<328x128xbf16>
    %c4 = arith.constant 4 : index
    %c0_17 = arith.constant 0 : index
    %c0_18 = arith.constant 0 : index
    %40 = vector.load %arg4[%c4, %c0_17, %c0_18] : memref<9x128x128xbf16, #tpu.memory_space<vmem>>, vector<1x128x128xbf16>
    %41 = vector.shape_cast %40 : vector<1x128x128xbf16> to vector<128x128xbf16>
    %cst_19 = arith.constant dense<0.000000e+00> : vector<328x128xf32>
    %42 = tpu.matmul %39, %41, %cst_19 {dimension_numbers = #tpu.dot_dimension_numbers<[1], [0], [0], [1], [0, 0, 1, 1], [], []>} : vector<328x128xbf16>, vector<128x128xbf16>, vector<328x128xf32> -> vector<328x128xf32>
    %c0_20 = arith.constant 0 : index
    %c0_21 = arith.constant 0 : index
    %c0_22 = arith.constant 0 : index
    %43 = vector.load %arg4[%c0_20, %c0_21, %c0_22] : memref<9x128x128xbf16, #tpu.memory_space<vmem>>, vector<1x128x128xbf16>
    %44 = vector.shape_cast %43 : vector<1x128x128xbf16> to vector<128x128xbf16>
    %cst_23 = arith.constant dense<0.000000e+00> : vector<328x128xf32>
    %45 = tpu.matmul %39, %44, %cst_23 {dimension_numbers = #tpu.dot_dimension_numbers<[1], [0], [0], [1], [0, 0, 1, 1], [], []>} : vector<328x128xbf16>, vector<128x128xbf16>, vector<328x128xf32> -> vector<328x128xf32>
    %c19_i32 = arith.constant 19 : i32
    %46 = tpu.dynamic_rotate %45 by %c19_i32 dim 0 : vector<328x128xf32>, i32 -> vector<328x128xf32>
    %47 = arith.addf %42, %46 : vector<328x128xf32>
    %c1 = arith.constant 1 : index
    %c0_24 = arith.constant 0 : index
    %c0_25 = arith.constant 0 : index
    %48 = vector.load %arg4[%c1, %c0_24, %c0_25] : memref<9x128x128xbf16, #tpu.memory_space<vmem>>, vector<1x128x128xbf16>
    %49 = vector.shape_cast %48 : vector<1x128x128xbf16> to vector<128x128xbf16>
    %cst_26 = arith.constant dense<0.000000e+00> : vector<328x128xf32>
    %50 = tpu.matmul %39, %49, %cst_26 {dimension_numbers = #tpu.dot_dimension_numbers<[1], [0], [0], [1], [0, 0, 1, 1], [], []>} : vector<328x128xbf16>, vector<128x128xbf16>, vector<328x128xf32> -> vector<328x128xf32>
    %c18_i32 = arith.constant 18 : i32
    %51 = tpu.dynamic_rotate %50 by %c18_i32 dim 0 : vector<328x128xf32>, i32 -> vector<328x128xf32>
    %52 = arith.addf %47, %51 : vector<328x128xf32>
    %c2 = arith.constant 2 : index
    %c0_27 = arith.constant 0 : index
    %c0_28 = arith.constant 0 : index
    %53 = vector.load %arg4[%c2, %c0_27, %c0_28] : memref<9x128x128xbf16, #tpu.memory_space<vmem>>, vector<1x128x128xbf16>
    %54 = vector.shape_cast %53 : vector<1x128x128xbf16> to vector<128x128xbf16>
    %cst_29 = arith.constant dense<0.000000e+00> : vector<328x128xf32>
    %55 = tpu.matmul %39, %54, %cst_29 {dimension_numbers = #tpu.dot_dimension_numbers<[1], [0], [0], [1], [0, 0, 1, 1], [], []>} : vector<328x128xbf16>, vector<128x128xbf16>, vector<328x128xf32> -> vector<328x128xf32>
    %c17_i32 = arith.constant 17 : i32
    %56 = tpu.dynamic_rotate %55 by %c17_i32 dim 0 : vector<328x128xf32>, i32 -> vector<328x128xf32>
    %57 = arith.addf %52, %56 : vector<328x128xf32>
    %c3 = arith.constant 3 : index
    %c0_30 = arith.constant 0 : index
    %c0_31 = arith.constant 0 : index
    %58 = vector.load %arg4[%c3, %c0_30, %c0_31] : memref<9x128x128xbf16, #tpu.memory_space<vmem>>, vector<1x128x128xbf16>
    %59 = vector.shape_cast %58 : vector<1x128x128xbf16> to vector<128x128xbf16>
    %cst_32 = arith.constant dense<0.000000e+00> : vector<328x128xf32>
    %60 = tpu.matmul %39, %59, %cst_32 {dimension_numbers = #tpu.dot_dimension_numbers<[1], [0], [0], [1], [0, 0, 1, 1], [], []>} : vector<328x128xbf16>, vector<128x128xbf16>, vector<328x128xf32> -> vector<328x128xf32>
    %c1_i32 = arith.constant 1 : i32
    %61 = tpu.dynamic_rotate %60 by %c1_i32 dim 0 : vector<328x128xf32>, i32 -> vector<328x128xf32>
    %62 = arith.addf %57, %61 : vector<328x128xf32>
    %c5 = arith.constant 5 : index
    %c0_33 = arith.constant 0 : index
    %c0_34 = arith.constant 0 : index
    %63 = vector.load %arg4[%c5, %c0_33, %c0_34] : memref<9x128x128xbf16, #tpu.memory_space<vmem>>, vector<1x128x128xbf16>
    %64 = vector.shape_cast %63 : vector<1x128x128xbf16> to vector<128x128xbf16>
    %cst_35 = arith.constant dense<0.000000e+00> : vector<328x128xf32>
    %65 = tpu.matmul %39, %64, %cst_35 {dimension_numbers = #tpu.dot_dimension_numbers<[1], [0], [0], [1], [0, 0, 1, 1], [], []>} : vector<328x128xbf16>, vector<128x128xbf16>, vector<328x128xf32> -> vector<328x128xf32>
    %c327_i32 = arith.constant 327 : i32
    %66 = tpu.dynamic_rotate %65 by %c327_i32 dim 0 : vector<328x128xf32>, i32 -> vector<328x128xf32>
    %67 = arith.addf %62, %66 : vector<328x128xf32>
    %c6 = arith.constant 6 : index
    %c0_36 = arith.constant 0 : index
    %c0_37 = arith.constant 0 : index
    %68 = vector.load %arg4[%c6, %c0_36, %c0_37] : memref<9x128x128xbf16, #tpu.memory_space<vmem>>, vector<1x128x128xbf16>
    %69 = vector.shape_cast %68 : vector<1x128x128xbf16> to vector<128x128xbf16>
    %cst_38 = arith.constant dense<0.000000e+00> : vector<328x128xf32>
    %70 = tpu.matmul %39, %69, %cst_38 {dimension_numbers = #tpu.dot_dimension_numbers<[1], [0], [0], [1], [0, 0, 1, 1], [], []>} : vector<328x128xbf16>, vector<128x128xbf16>, vector<328x128xf32> -> vector<328x128xf32>
    %c311_i32 = arith.constant 311 : i32
    %71 = tpu.dynamic_rotate %70 by %c311_i32 dim 0 : vector<328x128xf32>, i32 -> vector<328x128xf32>
    %72 = arith.addf %67, %71 : vector<328x128xf32>
    %c7 = arith.constant 7 : index
    %c0_39 = arith.constant 0 : index
    %c0_40 = arith.constant 0 : index
    %73 = vector.load %arg4[%c7, %c0_39, %c0_40] : memref<9x128x128xbf16, #tpu.memory_space<vmem>>, vector<1x128x128xbf16>
    %74 = vector.shape_cast %73 : vector<1x128x128xbf16> to vector<128x128xbf16>
    %cst_41 = arith.constant dense<0.000000e+00> : vector<328x128xf32>
    %75 = tpu.matmul %39, %74, %cst_41 {dimension_numbers = #tpu.dot_dimension_numbers<[1], [0], [0], [1], [0, 0, 1, 1], [], []>} : vector<328x128xbf16>, vector<128x128xbf16>, vector<328x128xf32> -> vector<328x128xf32>
    %c310_i32 = arith.constant 310 : i32
    %76 = tpu.dynamic_rotate %75 by %c310_i32 dim 0 : vector<328x128xf32>, i32 -> vector<328x128xf32>
    %77 = arith.addf %72, %76 : vector<328x128xf32>
    %c8 = arith.constant 8 : index
    %c0_42 = arith.constant 0 : index
    %c0_43 = arith.constant 0 : index
    %78 = vector.load %arg4[%c8, %c0_42, %c0_43] : memref<9x128x128xbf16, #tpu.memory_space<vmem>>, vector<1x128x128xbf16>
    %79 = vector.shape_cast %78 : vector<1x128x128xbf16> to vector<128x128xbf16>
    %cst_44 = arith.constant dense<0.000000e+00> : vector<328x128xf32>
    %80 = tpu.matmul %39, %79, %cst_44 {dimension_numbers = #tpu.dot_dimension_numbers<[1], [0], [0], [1], [0, 0, 1, 1], [], []>} : vector<328x128xbf16>, vector<128x128xbf16>, vector<328x128xf32> -> vector<328x128xf32>
    %c309_i32 = arith.constant 309 : i32
    %81 = tpu.dynamic_rotate %80 by %c309_i32 dim 0 : vector<328x128xf32>, i32 -> vector<328x128xf32>
    %82 = arith.addf %77, %81 : vector<328x128xf32>
    %83 = vector.broadcast %23 : vector<328x1xf32> to vector<328x128xf32>
    %84 = arith.mulf %82, %83 : vector<328x128xf32>
    %c0_45 = arith.constant 0 : index
    %c0_46 = arith.constant 0 : index
    %c0_47 = arith.constant 0 : index
    %85 = vector.load %arg5[%c0_45, %c0_46, %c0_47] : memref<1x328x128xf32, #tpu.memory_space<vmem>>, vector<1x328x128xf32>
    %86 = vector.shape_cast %85 : vector<1x328x128xf32> to vector<328x128xf32>
    %87 = vector.shape_cast %84 : vector<328x128xf32> to vector<1x328x128xf32>
    tpu.vector_store %arg5[%c0_45, %c0_46, %c0_47], %87 {strides = array<i32>} : memref<1x328x128xf32, #tpu.memory_space<vmem>>, vector<1x328x128xf32>,
    %cst_48 = arith.constant 1.000000e+00 : f32
    %88 = vector.broadcast %cst_48 : f32 to vector<8x328xf32>
    %cst_49 = arith.constant dense<0.000000e+00> : vector<8x128xf32>
    %89 = tpu.matmul %88, %84, %cst_49 {dimension_numbers = #tpu.dot_dimension_numbers<[1], [0], [0], [1], [0, 0, 1, 1], [], []>} : vector<8x328xf32>, vector<328x128xf32>, vector<8x128xf32> -> vector<8x128xf32>
    %90 = vector.extract_strided_slice %89 {offsets = [0, 0], sizes = [1, 128], strides = [1, 1]} : vector<8x128xf32> to vector<1x128xf32>
    %c0_50 = arith.constant 0 : index
    %c0_51 = arith.constant 0 : index
    %c0_52 = arith.constant 0 : index
    %91 = vector.load %arg6[%c0_50, %c0_51, %c0_52] : memref<1x1x128xf32, #tpu.memory_space<vmem>>, vector<1x1x128xf32>
    %92 = vector.shape_cast %91 : vector<1x1x128xf32> to vector<1x128xf32>
    %93 = vector.shape_cast %90 : vector<1x128xf32> to vector<1x1x128xf32>
    tpu.vector_store %arg6[%c0_50, %c0_51, %c0_52], %93 {strides = array<i32>} : memref<1x1x128xf32, #tpu.memory_space<vmem>>, vector<1x1x128xf32>,
    %94 = arith.mulf %84, %84 : vector<328x128xf32>
    %cst_53 = arith.constant dense<0.000000e+00> : vector<8x128xf32>
    %95 = tpu.matmul %88, %94, %cst_53 {dimension_numbers = #tpu.dot_dimension_numbers<[1], [0], [0], [1], [0, 0, 1, 1], [], []>} : vector<8x328xf32>, vector<328x128xf32>, vector<8x128xf32> -> vector<8x128xf32>
    %96 = vector.extract_strided_slice %95 {offsets = [0, 0], sizes = [1, 128], strides = [1, 1]} : vector<8x128xf32> to vector<1x128xf32>
    %c0_54 = arith.constant 0 : index
    %c0_55 = arith.constant 0 : index
    %c0_56 = arith.constant 0 : index
    %97 = vector.load %arg7[%c0_54, %c0_55, %c0_56] : memref<1x1x128xf32, #tpu.memory_space<vmem>>, vector<1x1x128xf32>
    %98 = vector.shape_cast %97 : vector<1x1x128xf32> to vector<1x128xf32>
    %99 = vector.shape_cast %96 : vector<1x128xf32> to vector<1x1x128xf32>
    tpu.vector_store %arg7[%c0_54, %c0_55, %c0_56], %99 {strides = array<i32>} : memref<1x1x128xf32, #tpu.memory_space<vmem>>, vector<1x1x128xf32>,
    return
  }
  func.func @transform_0(%arg0: i32) -> (i32, i32, i32) {
    %c0_i32 = arith.constant 0 : i32
    %c0_i32_0 = arith.constant 0 : i32
    %c0_i32_1 = arith.constant 0 : i32
    return %arg0, %c0_i32, %c0_i32_0 : i32, i32, i32
  }
  func.func @transform_1(%arg0: i32) -> (i32, i32, i32) {
    %c0_i32 = arith.constant 0 : i32
    %c0_i32_0 = arith.constant 0 : i32
    %c0_i32_1 = arith.constant 0 : i32
    %c0_i32_2 = arith.constant 0 : i32
    return %c0_i32, %c0_i32_0, %c0_i32_1 : i32, i32, i32
  }
  func.func @transform_2(%arg0: i32) -> (i32, i32, i32) {
    %c0_i32 = arith.constant 0 : i32
    %c0_i32_0 = arith.constant 0 : i32
    %c0_i32_1 = arith.constant 0 : i32
    %c0_i32_2 = arith.constant 0 : i32
    return %c0_i32, %c0_i32_0, %c0_i32_1 : i32, i32, i32
  }
  func.func @transform_3(%arg0: i32) -> (i32, i32, i32) {
    %c0_i32 = arith.constant 0 : i32
    %c0_i32_0 = arith.constant 0 : i32
    %c0_i32_1 = arith.constant 0 : i32
    %c0_i32_2 = arith.constant 0 : i32
    return %c0_i32, %c0_i32_0, %c0_i32_1 : i32, i32, i32
  }
  func.func @transform_4(%arg0: i32) -> (i32, i32, i32) {
    %c0_i32 = arith.constant 0 : i32
    %c0_i32_0 = arith.constant 0 : i32
    %c0_i32_1 = arith.constant 0 : i32
    return %arg0, %c0_i32, %c0_i32_0 : i32, i32, i32
  }
  func.func @transform_5(%arg0: i32) -> (i32, i32, i32) {
    %c0_i32 = arith.constant 0 : i32
    %c0_i32_0 = arith.constant 0 : i32
    %c0_i32_1 = arith.constant 0 : i32
    return %arg0, %c0_i32, %c0_i32_0 : i32, i32, i32
  }
  func.func @transform_6(%arg0: i32) -> (i32, i32, i32) {
    %c0_i32 = arith.constant 0 : i32
    %c0_i32_0 = arith.constant 0 : i32
    %c0_i32_1 = arith.constant 0 : i32
    return %arg0, %c0_i32, %c0_i32_0 : i32, i32, i32
  }
}

module attributes {stable_mosaic.version = 11 : i64} {
  func.func @kernel(%arg0: i32, %arg1: memref<1x328x128xf32, #tpu.memory_space<vmem>>, %arg2: memref<1x1x128xf32, #tpu.memory_space<vmem>>, %arg3: memref<1x1x128xf32, #tpu.memory_space<vmem>>, %arg4: memref<1x256x128xf32, #tpu.memory_space<vmem>>) attributes {dimension_semantics = [#tpu.dimension_semantics<parallel>], iteration_bounds = array<i64: 2>, scalar_prefetch = 0 : i64, scratch_operands = 0 : i64, tpu.core_type = #tpu.core_type<tc>, window_params = [{transform_indices = @transform_0, window_bounds = array<i64: 1, 328, 128>}, {pipeline_mode = #tpu.pipeline_mode<synchronous>, transform_indices = @transform_1, window_bounds = array<i64: 1, 1, 128>}, {pipeline_mode = #tpu.pipeline_mode<synchronous>, transform_indices = @transform_2, window_bounds = array<i64: 1, 1, 128>}, {transform_indices = @transform_3, window_bounds = array<i64: 1, 256, 128>}]} {
    %c0 = arith.constant 0 : index
    %c0_0 = arith.constant 0 : index
    %c0_1 = arith.constant 0 : index
    %0 = vector.load %arg2[%c0, %c0_0, %c0_1] : memref<1x1x128xf32, #tpu.memory_space<vmem>>, vector<1x1x128xf32>
    %1 = vector.shape_cast %0 : vector<1x1x128xf32> to vector<1x128xf32>
    %c0_2 = arith.constant 0 : index
    %c0_3 = arith.constant 0 : index
    %c0_4 = arith.constant 0 : index
    %2 = vector.load %arg3[%c0_2, %c0_3, %c0_4] : memref<1x1x128xf32, #tpu.memory_space<vmem>>, vector<1x1x128xf32>
    %3 = vector.shape_cast %2 : vector<1x1x128xf32> to vector<1x128xf32>
    %c0_5 = arith.constant 0 : index
    %c19 = arith.constant 19 : index
    %c0_6 = arith.constant 0 : index
    %4 = vector.load %arg1[%c0_5, %c19, %c0_6] : memref<1x328x128xf32, #tpu.memory_space<vmem>>, vector<1x16x128xf32>
    %5 = vector.shape_cast %4 : vector<1x16x128xf32> to vector<16x128xf32>
    %6 = vector.broadcast %1 : vector<1x128xf32> to vector<16x128xf32>
    %7 = arith.mulf %5, %6 : vector<16x128xf32>
    %8 = vector.broadcast %3 : vector<1x128xf32> to vector<16x128xf32>
    %9 = arith.addf %7, %8 : vector<16x128xf32>
    %cst = arith.constant 0.000000e+00 : f32
    %10 = vector.broadcast %cst : f32 to vector<16x128xf32>
    %11 = arith.maximumf %9, %10 : vector<16x128xf32>
    %c0_7 = arith.constant 0 : index
    %c0_8 = arith.constant 0 : index
    %c0_9 = arith.constant 0 : index
    %12 = vector.load %arg4[%c0_7, %c0_8, %c0_9] : memref<1x256x128xf32, #tpu.memory_space<vmem>>, vector<1x16x128xf32>
    %13 = vector.shape_cast %12 : vector<1x16x128xf32> to vector<16x128xf32>
    %14 = vector.shape_cast %11 : vector<16x128xf32> to vector<1x16x128xf32>
    tpu.vector_store %arg4[%c0_7, %c0_8, %c0_9], %14 {strides = array<i32>} : memref<1x256x128xf32, #tpu.memory_space<vmem>>, vector<1x16x128xf32>,
    %c0_10 = arith.constant 0 : index
    %c37 = arith.constant 37 : index
    %c0_11 = arith.constant 0 : index
    %15 = vector.load %arg1[%c0_10, %c37, %c0_11] : memref<1x328x128xf32, #tpu.memory_space<vmem>>, vector<1x16x128xf32>
    %16 = vector.shape_cast %15 : vector<1x16x128xf32> to vector<16x128xf32>
    %17 = vector.broadcast %1 : vector<1x128xf32> to vector<16x128xf32>
    %18 = arith.mulf %16, %17 : vector<16x128xf32>
    %19 = vector.broadcast %3 : vector<1x128xf32> to vector<16x128xf32>
    %20 = arith.addf %18, %19 : vector<16x128xf32>
    %cst_12 = arith.constant 0.000000e+00 : f32
    %21 = vector.broadcast %cst_12 : f32 to vector<16x128xf32>
    %22 = arith.maximumf %20, %21 : vector<16x128xf32>
    %c0_13 = arith.constant 0 : index
    %c16 = arith.constant 16 : index
    %c0_14 = arith.constant 0 : index
    %23 = vector.load %arg4[%c0_13, %c16, %c0_14] : memref<1x256x128xf32, #tpu.memory_space<vmem>>, vector<1x16x128xf32>
    %24 = vector.shape_cast %23 : vector<1x16x128xf32> to vector<16x128xf32>
    %25 = vector.shape_cast %22 : vector<16x128xf32> to vector<1x16x128xf32>
    tpu.vector_store %arg4[%c0_13, %c16, %c0_14], %25 {strides = array<i32>} : memref<1x256x128xf32, #tpu.memory_space<vmem>>, vector<1x16x128xf32>,
    %c0_15 = arith.constant 0 : index
    %c55 = arith.constant 55 : index
    %c0_16 = arith.constant 0 : index
    %26 = vector.load %arg1[%c0_15, %c55, %c0_16] : memref<1x328x128xf32, #tpu.memory_space<vmem>>, vector<1x16x128xf32>
    %27 = vector.shape_cast %26 : vector<1x16x128xf32> to vector<16x128xf32>
    %28 = vector.broadcast %1 : vector<1x128xf32> to vector<16x128xf32>
    %29 = arith.mulf %27, %28 : vector<16x128xf32>
    %30 = vector.broadcast %3 : vector<1x128xf32> to vector<16x128xf32>
    %31 = arith.addf %29, %30 : vector<16x128xf32>
    %cst_17 = arith.constant 0.000000e+00 : f32
    %32 = vector.broadcast %cst_17 : f32 to vector<16x128xf32>
    %33 = arith.maximumf %31, %32 : vector<16x128xf32>
    %c0_18 = arith.constant 0 : index
    %c32 = arith.constant 32 : index
    %c0_19 = arith.constant 0 : index
    %34 = vector.load %arg4[%c0_18, %c32, %c0_19] : memref<1x256x128xf32, #tpu.memory_space<vmem>>, vector<1x16x128xf32>
    %35 = vector.shape_cast %34 : vector<1x16x128xf32> to vector<16x128xf32>
    %36 = vector.shape_cast %33 : vector<16x128xf32> to vector<1x16x128xf32>
    tpu.vector_store %arg4[%c0_18, %c32, %c0_19], %36 {strides = array<i32>} : memref<1x256x128xf32, #tpu.memory_space<vmem>>, vector<1x16x128xf32>,
    %c0_20 = arith.constant 0 : index
    %c73 = arith.constant 73 : index
    %c0_21 = arith.constant 0 : index
    %37 = vector.load %arg1[%c0_20, %c73, %c0_21] : memref<1x328x128xf32, #tpu.memory_space<vmem>>, vector<1x16x128xf32>
    %38 = vector.shape_cast %37 : vector<1x16x128xf32> to vector<16x128xf32>
    %39 = vector.broadcast %1 : vector<1x128xf32> to vector<16x128xf32>
    %40 = arith.mulf %38, %39 : vector<16x128xf32>
    %41 = vector.broadcast %3 : vector<1x128xf32> to vector<16x128xf32>
    %42 = arith.addf %40, %41 : vector<16x128xf32>
    %cst_22 = arith.constant 0.000000e+00 : f32
    %43 = vector.broadcast %cst_22 : f32 to vector<16x128xf32>
    %44 = arith.maximumf %42, %43 : vector<16x128xf32>
    %c0_23 = arith.constant 0 : index
    %c48 = arith.constant 48 : index
    %c0_24 = arith.constant 0 : index
    %45 = vector.load %arg4[%c0_23, %c48, %c0_24] : memref<1x256x128xf32, #tpu.memory_space<vmem>>, vector<1x16x128xf32>
    %46 = vector.shape_cast %45 : vector<1x16x128xf32> to vector<16x128xf32>
    %47 = vector.shape_cast %44 : vector<16x128xf32> to vector<1x16x128xf32>
    tpu.vector_store %arg4[%c0_23, %c48, %c0_24], %47 {strides = array<i32>} : memref<1x256x128xf32, #tpu.memory_space<vmem>>, vector<1x16x128xf32>,
    %c0_25 = arith.constant 0 : index
    %c91 = arith.constant 91 : index
    %c0_26 = arith.constant 0 : index
    %48 = vector.load %arg1[%c0_25, %c91, %c0_26] : memref<1x328x128xf32, #tpu.memory_space<vmem>>, vector<1x16x128xf32>
    %49 = vector.shape_cast %48 : vector<1x16x128xf32> to vector<16x128xf32>
    %50 = vector.broadcast %1 : vector<1x128xf32> to vector<16x128xf32>
    %51 = arith.mulf %49, %50 : vector<16x128xf32>
    %52 = vector.broadcast %3 : vector<1x128xf32> to vector<16x128xf32>
    %53 = arith.addf %51, %52 : vector<16x128xf32>
    %cst_27 = arith.constant 0.000000e+00 : f32
    %54 = vector.broadcast %cst_27 : f32 to vector<16x128xf32>
    %55 = arith.maximumf %53, %54 : vector<16x128xf32>
    %c0_28 = arith.constant 0 : index
    %c64 = arith.constant 64 : index
    %c0_29 = arith.constant 0 : index
    %56 = vector.load %arg4[%c0_28, %c64, %c0_29] : memref<1x256x128xf32, #tpu.memory_space<vmem>>, vector<1x16x128xf32>
    %57 = vector.shape_cast %56 : vector<1x16x128xf32> to vector<16x128xf32>
    %58 = vector.shape_cast %55 : vector<16x128xf32> to vector<1x16x128xf32>
    tpu.vector_store %arg4[%c0_28, %c64, %c0_29], %58 {strides = array<i32>} : memref<1x256x128xf32, #tpu.memory_space<vmem>>, vector<1x16x128xf32>,
    %c0_30 = arith.constant 0 : index
    %c109 = arith.constant 109 : index
    %c0_31 = arith.constant 0 : index
    %59 = vector.load %arg1[%c0_30, %c109, %c0_31] : memref<1x328x128xf32, #tpu.memory_space<vmem>>, vector<1x16x128xf32>
    %60 = vector.shape_cast %59 : vector<1x16x128xf32> to vector<16x128xf32>
    %61 = vector.broadcast %1 : vector<1x128xf32> to vector<16x128xf32>
    %62 = arith.mulf %60, %61 : vector<16x128xf32>
    %63 = vector.broadcast %3 : vector<1x128xf32> to vector<16x128xf32>
    %64 = arith.addf %62, %63 : vector<16x128xf32>
    %cst_32 = arith.constant 0.000000e+00 : f32
    %65 = vector.broadcast %cst_32 : f32 to vector<16x128xf32>
    %66 = arith.maximumf %64, %65 : vector<16x128xf32>
    %c0_33 = arith.constant 0 : index
    %c80 = arith.constant 80 : index
    %c0_34 = arith.constant 0 : index
    %67 = vector.load %arg4[%c0_33, %c80, %c0_34] : memref<1x256x128xf32, #tpu.memory_space<vmem>>, vector<1x16x128xf32>
    %68 = vector.shape_cast %67 : vector<1x16x128xf32> to vector<16x128xf32>
    %69 = vector.shape_cast %66 : vector<16x128xf32> to vector<1x16x128xf32>
    tpu.vector_store %arg4[%c0_33, %c80, %c0_34], %69 {strides = array<i32>} : memref<1x256x128xf32, #tpu.memory_space<vmem>>, vector<1x16x128xf32>,
    %c0_35 = arith.constant 0 : index
    %c127 = arith.constant 127 : index
    %c0_36 = arith.constant 0 : index
    %70 = vector.load %arg1[%c0_35, %c127, %c0_36] : memref<1x328x128xf32, #tpu.memory_space<vmem>>, vector<1x16x128xf32>
    %71 = vector.shape_cast %70 : vector<1x16x128xf32> to vector<16x128xf32>
    %72 = vector.broadcast %1 : vector<1x128xf32> to vector<16x128xf32>
    %73 = arith.mulf %71, %72 : vector<16x128xf32>
    %74 = vector.broadcast %3 : vector<1x128xf32> to vector<16x128xf32>
    %75 = arith.addf %73, %74 : vector<16x128xf32>
    %cst_37 = arith.constant 0.000000e+00 : f32
    %76 = vector.broadcast %cst_37 : f32 to vector<16x128xf32>
    %77 = arith.maximumf %75, %76 : vector<16x128xf32>
    %c0_38 = arith.constant 0 : index
    %c96 = arith.constant 96 : index
    %c0_39 = arith.constant 0 : index
    %78 = vector.load %arg4[%c0_38, %c96, %c0_39] : memref<1x256x128xf32, #tpu.memory_space<vmem>>, vector<1x16x128xf32>
    %79 = vector.shape_cast %78 : vector<1x16x128xf32> to vector<16x128xf32>
    %80 = vector.shape_cast %77 : vector<16x128xf32> to vector<1x16x128xf32>
    tpu.vector_store %arg4[%c0_38, %c96, %c0_39], %80 {strides = array<i32>} : memref<1x256x128xf32, #tpu.memory_space<vmem>>, vector<1x16x128xf32>,
    %c0_40 = arith.constant 0 : index
    %c145 = arith.constant 145 : index
    %c0_41 = arith.constant 0 : index
    %81 = vector.load %arg1[%c0_40, %c145, %c0_41] : memref<1x328x128xf32, #tpu.memory_space<vmem>>, vector<1x16x128xf32>
    %82 = vector.shape_cast %81 : vector<1x16x128xf32> to vector<16x128xf32>
    %83 = vector.broadcast %1 : vector<1x128xf32> to vector<16x128xf32>
    %84 = arith.mulf %82, %83 : vector<16x128xf32>
    %85 = vector.broadcast %3 : vector<1x128xf32> to vector<16x128xf32>
    %86 = arith.addf %84, %85 : vector<16x128xf32>
    %cst_42 = arith.constant 0.000000e+00 : f32
    %87 = vector.broadcast %cst_42 : f32 to vector<16x128xf32>
    %88 = arith.maximumf %86, %87 : vector<16x128xf32>
    %c0_43 = arith.constant 0 : index
    %c112 = arith.constant 112 : index
    %c0_44 = arith.constant 0 : index
    %89 = vector.load %arg4[%c0_43, %c112, %c0_44] : memref<1x256x128xf32, #tpu.memory_space<vmem>>, vector<1x16x128xf32>
    %90 = vector.shape_cast %89 : vector<1x16x128xf32> to vector<16x128xf32>
    %91 = vector.shape_cast %88 : vector<16x128xf32> to vector<1x16x128xf32>
    tpu.vector_store %arg4[%c0_43, %c112, %c0_44], %91 {strides = array<i32>} : memref<1x256x128xf32, #tpu.memory_space<vmem>>, vector<1x16x128xf32>,
    %c0_45 = arith.constant 0 : index
    %c163 = arith.constant 163 : index
    %c0_46 = arith.constant 0 : index
    %92 = vector.load %arg1[%c0_45, %c163, %c0_46] : memref<1x328x128xf32, #tpu.memory_space<vmem>>, vector<1x16x128xf32>
    %93 = vector.shape_cast %92 : vector<1x16x128xf32> to vector<16x128xf32>
    %94 = vector.broadcast %1 : vector<1x128xf32> to vector<16x128xf32>
    %95 = arith.mulf %93, %94 : vector<16x128xf32>
    %96 = vector.broadcast %3 : vector<1x128xf32> to vector<16x128xf32>
    %97 = arith.addf %95, %96 : vector<16x128xf32>
    %cst_47 = arith.constant 0.000000e+00 : f32
    %98 = vector.broadcast %cst_47 : f32 to vector<16x128xf32>
    %99 = arith.maximumf %97, %98 : vector<16x128xf32>
    %c0_48 = arith.constant 0 : index
    %c128 = arith.constant 128 : index
    %c0_49 = arith.constant 0 : index
    %100 = vector.load %arg4[%c0_48, %c128, %c0_49] : memref<1x256x128xf32, #tpu.memory_space<vmem>>, vector<1x16x128xf32>
    %101 = vector.shape_cast %100 : vector<1x16x128xf32> to vector<16x128xf32>
    %102 = vector.shape_cast %99 : vector<16x128xf32> to vector<1x16x128xf32>
    tpu.vector_store %arg4[%c0_48, %c128, %c0_49], %102 {strides = array<i32>} : memref<1x256x128xf32, #tpu.memory_space<vmem>>, vector<1x16x128xf32>,
    %c0_50 = arith.constant 0 : index
    %c181 = arith.constant 181 : index
    %c0_51 = arith.constant 0 : index
    %103 = vector.load %arg1[%c0_50, %c181, %c0_51] : memref<1x328x128xf32, #tpu.memory_space<vmem>>, vector<1x16x128xf32>
    %104 = vector.shape_cast %103 : vector<1x16x128xf32> to vector<16x128xf32>
    %105 = vector.broadcast %1 : vector<1x128xf32> to vector<16x128xf32>
    %106 = arith.mulf %104, %105 : vector<16x128xf32>
    %107 = vector.broadcast %3 : vector<1x128xf32> to vector<16x128xf32>
    %108 = arith.addf %106, %107 : vector<16x128xf32>
    %cst_52 = arith.constant 0.000000e+00 : f32
    %109 = vector.broadcast %cst_52 : f32 to vector<16x128xf32>
    %110 = arith.maximumf %108, %109 : vector<16x128xf32>
    %c0_53 = arith.constant 0 : index
    %c144 = arith.constant 144 : index
    %c0_54 = arith.constant 0 : index
    %111 = vector.load %arg4[%c0_53, %c144, %c0_54] : memref<1x256x128xf32, #tpu.memory_space<vmem>>, vector<1x16x128xf32>
    %112 = vector.shape_cast %111 : vector<1x16x128xf32> to vector<16x128xf32>
    %113 = vector.shape_cast %110 : vector<16x128xf32> to vector<1x16x128xf32>
    tpu.vector_store %arg4[%c0_53, %c144, %c0_54], %113 {strides = array<i32>} : memref<1x256x128xf32, #tpu.memory_space<vmem>>, vector<1x16x128xf32>,
    %c0_55 = arith.constant 0 : index
    %c199 = arith.constant 199 : index
    %c0_56 = arith.constant 0 : index
    %114 = vector.load %arg1[%c0_55, %c199, %c0_56] : memref<1x328x128xf32, #tpu.memory_space<vmem>>, vector<1x16x128xf32>
    %115 = vector.shape_cast %114 : vector<1x16x128xf32> to vector<16x128xf32>
    %116 = vector.broadcast %1 : vector<1x128xf32> to vector<16x128xf32>
    %117 = arith.mulf %115, %116 : vector<16x128xf32>
    %118 = vector.broadcast %3 : vector<1x128xf32> to vector<16x128xf32>
    %119 = arith.addf %117, %118 : vector<16x128xf32>
    %cst_57 = arith.constant 0.000000e+00 : f32
    %120 = vector.broadcast %cst_57 : f32 to vector<16x128xf32>
    %121 = arith.maximumf %119, %120 : vector<16x128xf32>
    %c0_58 = arith.constant 0 : index
    %c160 = arith.constant 160 : index
    %c0_59 = arith.constant 0 : index
    %122 = vector.load %arg4[%c0_58, %c160, %c0_59] : memref<1x256x128xf32, #tpu.memory_space<vmem>>, vector<1x16x128xf32>
    %123 = vector.shape_cast %122 : vector<1x16x128xf32> to vector<16x128xf32>
    %124 = vector.shape_cast %121 : vector<16x128xf32> to vector<1x16x128xf32>
    tpu.vector_store %arg4[%c0_58, %c160, %c0_59], %124 {strides = array<i32>} : memref<1x256x128xf32, #tpu.memory_space<vmem>>, vector<1x16x128xf32>,
    %c0_60 = arith.constant 0 : index
    %c217 = arith.constant 217 : index
    %c0_61 = arith.constant 0 : index
    %125 = vector.load %arg1[%c0_60, %c217, %c0_61] : memref<1x328x128xf32, #tpu.memory_space<vmem>>, vector<1x16x128xf32>
    %126 = vector.shape_cast %125 : vector<1x16x128xf32> to vector<16x128xf32>
    %127 = vector.broadcast %1 : vector<1x128xf32> to vector<16x128xf32>
    %128 = arith.mulf %126, %127 : vector<16x128xf32>
    %129 = vector.broadcast %3 : vector<1x128xf32> to vector<16x128xf32>
    %130 = arith.addf %128, %129 : vector<16x128xf32>
    %cst_62 = arith.constant 0.000000e+00 : f32
    %131 = vector.broadcast %cst_62 : f32 to vector<16x128xf32>
    %132 = arith.maximumf %130, %131 : vector<16x128xf32>
    %c0_63 = arith.constant 0 : index
    %c176 = arith.constant 176 : index
    %c0_64 = arith.constant 0 : index
    %133 = vector.load %arg4[%c0_63, %c176, %c0_64] : memref<1x256x128xf32, #tpu.memory_space<vmem>>, vector<1x16x128xf32>
    %134 = vector.shape_cast %133 : vector<1x16x128xf32> to vector<16x128xf32>
    %135 = vector.shape_cast %132 : vector<16x128xf32> to vector<1x16x128xf32>
    tpu.vector_store %arg4[%c0_63, %c176, %c0_64], %135 {strides = array<i32>} : memref<1x256x128xf32, #tpu.memory_space<vmem>>, vector<1x16x128xf32>,
    %c0_65 = arith.constant 0 : index
    %c235 = arith.constant 235 : index
    %c0_66 = arith.constant 0 : index
    %136 = vector.load %arg1[%c0_65, %c235, %c0_66] : memref<1x328x128xf32, #tpu.memory_space<vmem>>, vector<1x16x128xf32>
    %137 = vector.shape_cast %136 : vector<1x16x128xf32> to vector<16x128xf32>
    %138 = vector.broadcast %1 : vector<1x128xf32> to vector<16x128xf32>
    %139 = arith.mulf %137, %138 : vector<16x128xf32>
    %140 = vector.broadcast %3 : vector<1x128xf32> to vector<16x128xf32>
    %141 = arith.addf %139, %140 : vector<16x128xf32>
    %cst_67 = arith.constant 0.000000e+00 : f32
    %142 = vector.broadcast %cst_67 : f32 to vector<16x128xf32>
    %143 = arith.maximumf %141, %142 : vector<16x128xf32>
    %c0_68 = arith.constant 0 : index
    %c192 = arith.constant 192 : index
    %c0_69 = arith.constant 0 : index
    %144 = vector.load %arg4[%c0_68, %c192, %c0_69] : memref<1x256x128xf32, #tpu.memory_space<vmem>>, vector<1x16x128xf32>
    %145 = vector.shape_cast %144 : vector<1x16x128xf32> to vector<16x128xf32>
    %146 = vector.shape_cast %143 : vector<16x128xf32> to vector<1x16x128xf32>
    tpu.vector_store %arg4[%c0_68, %c192, %c0_69], %146 {strides = array<i32>} : memref<1x256x128xf32, #tpu.memory_space<vmem>>, vector<1x16x128xf32>,
    %c0_70 = arith.constant 0 : index
    %c253 = arith.constant 253 : index
    %c0_71 = arith.constant 0 : index
    %147 = vector.load %arg1[%c0_70, %c253, %c0_71] : memref<1x328x128xf32, #tpu.memory_space<vmem>>, vector<1x16x128xf32>
    %148 = vector.shape_cast %147 : vector<1x16x128xf32> to vector<16x128xf32>
    %149 = vector.broadcast %1 : vector<1x128xf32> to vector<16x128xf32>
    %150 = arith.mulf %148, %149 : vector<16x128xf32>
    %151 = vector.broadcast %3 : vector<1x128xf32> to vector<16x128xf32>
    %152 = arith.addf %150, %151 : vector<16x128xf32>
    %cst_72 = arith.constant 0.000000e+00 : f32
    %153 = vector.broadcast %cst_72 : f32 to vector<16x128xf32>
    %154 = arith.maximumf %152, %153 : vector<16x128xf32>
    %c0_73 = arith.constant 0 : index
    %c208 = arith.constant 208 : index
    %c0_74 = arith.constant 0 : index
    %155 = vector.load %arg4[%c0_73, %c208, %c0_74] : memref<1x256x128xf32, #tpu.memory_space<vmem>>, vector<1x16x128xf32>
    %156 = vector.shape_cast %155 : vector<1x16x128xf32> to vector<16x128xf32>
    %157 = vector.shape_cast %154 : vector<16x128xf32> to vector<1x16x128xf32>
    tpu.vector_store %arg4[%c0_73, %c208, %c0_74], %157 {strides = array<i32>} : memref<1x256x128xf32, #tpu.memory_space<vmem>>, vector<1x16x128xf32>,
    %c0_75 = arith.constant 0 : index
    %c271 = arith.constant 271 : index
    %c0_76 = arith.constant 0 : index
    %158 = vector.load %arg1[%c0_75, %c271, %c0_76] : memref<1x328x128xf32, #tpu.memory_space<vmem>>, vector<1x16x128xf32>
    %159 = vector.shape_cast %158 : vector<1x16x128xf32> to vector<16x128xf32>
    %160 = vector.broadcast %1 : vector<1x128xf32> to vector<16x128xf32>
    %161 = arith.mulf %159, %160 : vector<16x128xf32>
    %162 = vector.broadcast %3 : vector<1x128xf32> to vector<16x128xf32>
    %163 = arith.addf %161, %162 : vector<16x128xf32>
    %cst_77 = arith.constant 0.000000e+00 : f32
    %164 = vector.broadcast %cst_77 : f32 to vector<16x128xf32>
    %165 = arith.maximumf %163, %164 : vector<16x128xf32>
    %c0_78 = arith.constant 0 : index
    %c224 = arith.constant 224 : index
    %c0_79 = arith.constant 0 : index
    %166 = vector.load %arg4[%c0_78, %c224, %c0_79] : memref<1x256x128xf32, #tpu.memory_space<vmem>>, vector<1x16x128xf32>
    %167 = vector.shape_cast %166 : vector<1x16x128xf32> to vector<16x128xf32>
    %168 = vector.shape_cast %165 : vector<16x128xf32> to vector<1x16x128xf32>
    tpu.vector_store %arg4[%c0_78, %c224, %c0_79], %168 {strides = array<i32>} : memref<1x256x128xf32, #tpu.memory_space<vmem>>, vector<1x16x128xf32>,
    %c0_80 = arith.constant 0 : index
    %c289 = arith.constant 289 : index
    %c0_81 = arith.constant 0 : index
    %169 = vector.load %arg1[%c0_80, %c289, %c0_81] : memref<1x328x128xf32, #tpu.memory_space<vmem>>, vector<1x16x128xf32>
    %170 = vector.shape_cast %169 : vector<1x16x128xf32> to vector<16x128xf32>
    %171 = vector.broadcast %1 : vector<1x128xf32> to vector<16x128xf32>
    %172 = arith.mulf %170, %171 : vector<16x128xf32>
    %173 = vector.broadcast %3 : vector<1x128xf32> to vector<16x128xf32>
    %174 = arith.addf %172, %173 : vector<16x128xf32>
    %cst_82 = arith.constant 0.000000e+00 : f32
    %175 = vector.broadcast %cst_82 : f32 to vector<16x128xf32>
    %176 = arith.maximumf %174, %175 : vector<16x128xf32>
    %c0_83 = arith.constant 0 : index
    %c240 = arith.constant 240 : index
    %c0_84 = arith.constant 0 : index
    %177 = vector.load %arg4[%c0_83, %c240, %c0_84] : memref<1x256x128xf32, #tpu.memory_space<vmem>>, vector<1x16x128xf32>
    %178 = vector.shape_cast %177 : vector<1x16x128xf32> to vector<16x128xf32>
    %179 = vector.shape_cast %176 : vector<16x128xf32> to vector<1x16x128xf32>
    tpu.vector_store %arg4[%c0_83, %c240, %c0_84], %179 {strides = array<i32>} : memref<1x256x128xf32, #tpu.memory_space<vmem>>, vector<1x16x128xf32>,
    return
  }
  func.func @transform_0(%arg0: i32) -> (i32, i32, i32) {
    %c0_i32 = arith.constant 0 : i32
    %c0_i32_0 = arith.constant 0 : i32
    %c0_i32_1 = arith.constant 0 : i32
    return %arg0, %c0_i32, %c0_i32_0 : i32, i32, i32
  }
  func.func @transform_1(%arg0: i32) -> (i32, i32, i32) {
    %c0_i32 = arith.constant 0 : i32
    %c0_i32_0 = arith.constant 0 : i32
    %c0_i32_1 = arith.constant 0 : i32
    %c0_i32_2 = arith.constant 0 : i32
    return %c0_i32, %c0_i32_0, %c0_i32_1 : i32, i32, i32
  }
  func.func @transform_2(%arg0: i32) -> (i32, i32, i32) {
    %c0_i32 = arith.constant 0 : i32
    %c0_i32_0 = arith.constant 0 : i32
    %c0_i32_1 = arith.constant 0 : i32
    %c0_i32_2 = arith.constant 0 : i32
    return %c0_i32, %c0_i32_0, %c0_i32_1 : i32, i32, i32
  }
  func.func @transform_3(%arg0: i32) -> (i32, i32, i32) {
    %c0_i32 = arith.constant 0 : i32
    %c0_i32_0 = arith.constant 0 : i32
    %c0_i32_1 = arith.constant 0 : i32
    return %arg0, %c0_i32, %c0_i32_0 : i32, i32, i32
  }
}

</mosaic_0001>

<bundles_post_ra>
// kernel: double_conv.5
= control target key start
LH: loop header
LB: loop body
LE: loop exit
PB: predicated region body
PF: predicated region fallthrough
CT: control target
= control target key end

     0   :  { %s444_s12 = smov 0   ;;  %s603_s0 = inlined_call_operand.vmem [shape: f32[2,328,128], index: 0, kind: input, shape index: {}]   ;;  %s604_s1 = inlined_call_operand.vmem [shape: f32[1,1,128], index: 1, kind: input, shape index: {}]   ;;  %s605_s2 = inlined_call_operand.vmem [shape: f32[1,1,128], index: 2, kind: input, shape index: {}]   ;;  %s606_s3 = inlined_call_operand.vmem [shape: f32[2,256,128], index: 3, kind: output, shape index: {}]  }
   0x1 LB: > { %s394_s13 = sadd.s32 4294967295, %s422_s12   ;;  %p398_p0 = scmp.ge.s32.totalorder %s422_s12, 1  ;;  %s422_s12 = sphi %s444_s12, %s13_s12  }
   0x2   : > { %p137_p1 = scmp.lt.s32.totalorder %s422_s12, 3 }
   0x4   : > { %p138_p2 = pnand %p398_p0, %p137_p1 }
   0x5   : > { %p161_p3 = scmp.lt.s32.totalorder (!%p138_p2), %s394_s13, 1 }
   0x6   : > { %141 = sbr.rel (%p138_p2) target bundleno = 54 (0x36), region = 32 }
   0xb   : > { %s608_s13 = smov (!%p161_p3, %s394_s13), 1  ;;  %v455_v0 = vld [vmem:[%s604_s1] ss:$0 sm:$0xff] }
   0xc   : > { %s405_s14 = smul.u32 328, %s608_s13  ;;  %v465_v1 = vld [vmem:[%s605_s2] ss:$0 sm:$0xff]  ;;  %s404_s22 = sshll.u32 %s608_s13, 8 }
   0xd   : > { %s488_s25 = scalar_lea.vmem %s606_s3, %s404_s22 }
   0xe   : > { %s460_s19 = scalar_lea.vmem %s603_s0, %s405_s14 }
   0xf   : > { %v173_v2 = vld [vmem:[%s460_s19 + $0x13] sm:$0xff]  ;;  %v174_v3 = vld [vmem:[%s460_s19 + $0x1b] sm:$0xff]  ;;  %v189_v4 = vld [vmem:[%s460_s19 + $0x25] sm:$0xff] }
  0x10   : > { %v178_v5 = vmul.f32 %v455_v0, %v173_v2  ;;  %v179_v6 = vmul.f32 %v455_v0, %v174_v3  ;;  %v191_v7 = vmul.f32 %v455_v0, %v189_v4  ;;  %v190_v8 = vld [vmem:[%s460_s19 + $0x2d] sm:$0xff]  ;;  %v199_v9 = vld [vmem:[%s460_s19 + $0x37] sm:$0xff]  ;;  %v200_v10 = vld [vmem:[%s460_s19 + $0x3f] sm:$0xff] }
  0x11   : > { %v192_v11 = vmul.f32 %v455_v0, %v190_v8  ;;  %v201_v12 = vmul.f32 %v455_v0, %v199_v9  ;;  %v202_v13 = vmul.f32 %v455_v0, %v200_v10  ;;  %v209_v14 = vld [vmem:[%s460_s19 + $0x49] sm:$0xff]  ;;  %v210_v15 = vld [vmem:[%s460_s19 + $0x51] sm:$0xff]  ;;  %v219_v24 = vld [vmem:[%s460_s19 + $0x5b] sm:$0xff] }
  0x12   : > { %v183_v16 = vadd.f32 %v465_v1, %v178_v5  ;;  %v184_v17 = vadd.f32 %v465_v1, %v179_v6  ;;  %v193_v18 = vadd.f32 %v465_v1, %v191_v7  ;;  %v211_v19 = vmul.f32 %v455_v0, %v209_v14  ;;  %v220_v25 = vld [vmem:[%s460_s19 + $0x63] sm:$0xff]  ;;  %v229_v26 = vld [vmem:[%s460_s19 + $0x6d] sm:$0xff]  ;;  %v230_v31 = vld [vmem:[%s460_s19 + $0x75] sm:$0xff] }
  0x13   : > { %v194_v20 = vadd.f32 %v465_v1, %v192_v11  ;;  %v203_v21 = vadd.f32 %v465_v1, %v201_v12  ;;  %v204_v22 = vadd.f32 %v465_v1, %v202_v13  ;;  %v212_v23 = vmul.f32 %v455_v0, %v210_v15  ;;  %v239_v32 = vld [vmem:[%s460_s19 + $0x7f] sm:$0xff]  ;;  %v240_v33 = vld [vmem:[%s460_s19 + $0x87] sm:$0xff]  ;;  %v249_v37 = vld [vmem:[%s460_s19 + $0x91] sm:$0xff] }
  0x14   : > { %v185_v27 = vmax.f32 %v183_v16, 0.0  ;;  %v186_v28 = vmax.f32 %v184_v17, 0.0  ;;  %v195_v29 = vmax.f32 %v193_v18, 0.0  ;;  %v213_v30 = vadd.f32 %v465_v1, %v211_v19  ;;  %v250_v42 = vld [vmem:[%s460_s19 + $0x99] sm:$0xff]  ;;  %v259_v54 = vld [vmem:[%s460_s19 + $0xa3] sm:$0xff]  ;;  %v260_v55 = vld [vmem:[%s460_s19 + $0xab] sm:$0xff] }
  0x15   : > { %v196_v34 = vmax.f32 %v194_v20, 0.0  ;;  %v205_v35 = vmax.f32 %v203_v21, 0.0  ;;  %v214_v36 = vadd.f32 %v465_v1, %v212_v23  ;;  %v206_v38 = vmax.f32 %v204_v22, 0.0  ;;  %v269_v56 = vld [vmem:[%s460_s19 + $0xb5] sm:$0xff]  ;;  %v270_v59 = vld [vmem:[%s460_s19 + $0xbd] sm:$0xff]  ;;  %v279_v63 = vld [vmem:[%s460_s19 + $0xc7] sm:$0xff] }
  0x16   : > { %187 = vst [vmem:[%s488_s25] sm:$0xff] %v185_v27  ;;  %v221_v39 = vmul.f32 %v455_v0, %v219_v24  ;;  %v222_v40 = vmul.f32 %v455_v0, %v220_v25  ;;  %v231_v41 = vmul.f32 %v455_v0, %v229_v26  ;;  %v215_v43 = vmax.f32 %v213_v30, 0.0  ;;  %v280_v6 = vld [vmem:[%s460_s19 + $0xcf] sm:$0xff]  ;;  %v289_v10 = vld [vmem:[%s460_s19 + $0xd9] sm:$0xff]  ;;  %v290_v14 = vld [vmem:[%s460_s19 + $0xe1] sm:$0xff] }
  0x17   : > { %188 = vst [vmem:[%s488_s25 + $0x8] sm:$0xff] %v186_v28  ;;  %v232_v44 = vmul.f32 %v455_v0, %v230_v31  ;;  %v241_v45 = vmul.f32 %v455_v0, %v239_v32  ;;  %v242_v46 = vmul.f32 %v455_v0, %v240_v33  ;;  %v251_v50 = vmul.f32 %v455_v0, %v249_v37  ;;  %v299_v18 = vld [vmem:[%s460_s19 + $0xeb] sm:$0xff]  ;;  %v300_v22 = vld [vmem:[%s460_s19 + $0xf3] sm:$0xff]  ;;  %v309_v26 = vld [vmem:[%s460_s19 + $0xfd] sm:$0xff] }
  0x18   : > { %197 = vst [vmem:[%s488_s25 + $0x10] sm:$0xff] %v195_v29  ;;  %v223_v47 = vadd.f32 %v465_v1, %v221_v39  ;;  %v224_v48 = vadd.f32 %v465_v1, %v222_v40  ;;  %v233_v49 = vadd.f32 %v465_v1, %v231_v41  ;;  %v216_v51 = vmax.f32 %v214_v36, 0.0  ;;  %v310_v30 = vld [vmem:[%s460_s19 + $0x105] sm:$0xff] }
  0x19   : > { %198 = vst [vmem:[%s488_s25 + $0x18] sm:$0xff] %v196_v34  ;;  %v234_v52 = vadd.f32 %v465_v1, %v232_v44  ;;  %v252_v53 = vmul.f32 %v455_v0, %v250_v42  ;;  %v243_v58 = vadd.f32 %v465_v1, %v241_v45  ;;  %v244_v62 = vadd.f32 %v465_v1, %v242_v46  ;;  %v319_v34 = vld [vmem:[%s460_s19 + $0x10f] sm:$0xff]  ;;  %v329_v42 = vld [vmem:[%s460_s19 + $0x121] sm:$0xff] }
  0x1a   : > { %207 = vst [vmem:[%s488_s25 + $0x20] sm:$0xff] %v205_v35  ;;  %v225_v57 = vmax.f32 %v223_v47, 0.0  ;;  %v226_v60 = vmax.f32 %v224_v48, 0.0  ;;  %v235_v61 = vmax.f32 %v233_v49, 0.0  ;;  %v253_v2 = vadd.f32 %v465_v1, %v251_v50  ;;  %v330_v46 = vld [vmem:[%s460_s19 + $0x129] sm:$0xff] }
  0x1b   : > { %208 = vst [vmem:[%s488_s25 + $0x28] sm:$0xff] %v206_v38  ;;  %v261_v3 = vmul.f32 %v455_v0, %v259_v54  ;;  %v262_v4 = vmul.f32 %v455_v0, %v260_v55  ;;  %v271_v5 = vmul.f32 %v455_v0, %v269_v56  ;;  %v236_v7 = vmax.f32 %v234_v52, 0.0  ;;  %v320_v38 = vld [vmem:[%s460_s19 + $0x117] sm:$0xff] }
  0x1c   : > { %217 = vst [vmem:[%s488_s25 + $0x30] sm:$0xff] %v215_v43  ;;  %v254_v8 = vadd.f32 %v465_v1, %v252_v53  ;;  %v272_v9 = vmul.f32 %v455_v0, %v270_v59  ;;  %v245_v11 = vmax.f32 %v243_v58, 0.0  ;;  %v281_v13 = vmul.f32 %v455_v0, %v279_v63 }
  0x1d   : > { %218 = vst [vmem:[%s488_s25 + $0x38] sm:$0xff] %v216_v51  ;;  %v263_v12 = vadd.f32 %v465_v1, %v261_v3  ;;  %v246_v15 = vmax.f32 %v244_v62, 0.0  ;;  %v264_v16 = vadd.f32 %v465_v1, %v262_v4  ;;  %v282_v17 = vmul.f32 %v455_v0, %v280_v6 }
  0x1e   : > { %227 = vst [vmem:[%s488_s25 + $0x40] sm:$0xff] %v225_v57  ;;  %v255_v19 = vmax.f32 %v253_v2, 0.0  ;;  %v273_v20 = vadd.f32 %v465_v1, %v271_v5  ;;  %v291_v21 = vmul.f32 %v455_v0, %v289_v10  ;;  %v256_v23 = vmax.f32 %v254_v8, 0.0 }
  0x1f   : > { %228 = vst [vmem:[%s488_s25 + $0x48] sm:$0xff] %v226_v60  ;;  %v274_v24 = vadd.f32 %v465_v1, %v272_v9  ;;  %v292_v25 = vmul.f32 %v455_v0, %v290_v14  ;;  %v265_v27 = vmax.f32 %v263_v12, 0.0  ;;  %v283_v28 = vadd.f32 %v465_v1, %v281_v13 }
  0x20   : > { %237 = vst [vmem:[%s488_s25 + $0x50] sm:$0xff] %v235_v61  ;;  %v301_v29 = vmul.f32 %v455_v0, %v299_v18  ;;  %v266_v31 = vmax.f32 %v264_v16, 0.0  ;;  %v284_v32 = vadd.f32 %v465_v1, %v282_v17  ;;  %v302_v33 = vmul.f32 %v455_v0, %v300_v22 }
  0x21   : > { %238 = vst [vmem:[%s488_s25 + $0x58] sm:$0xff] %v236_v7  ;;  %v275_v35 = vmax.f32 %v273_v20, 0.0  ;;  %v293_v36 = vadd.f32 %v465_v1, %v291_v21  ;;  %v311_v37 = vmul.f32 %v455_v0, %v309_v26  ;;  %v276_v39 = vmax.f32 %v274_v24, 0.0 }
  0x22   : > { %247 = vst [vmem:[%s488_s25 + $0x60] sm:$0xff] %v245_v11  ;;  %v294_v40 = vadd.f32 %v465_v1, %v292_v25  ;;  %v312_v41 = vmul.f32 %v455_v0, %v310_v30  ;;  %v285_v43 = vmax.f32 %v283_v28, 0.0  ;;  %v303_v44 = vadd.f32 %v465_v1, %v301_v29 }
  0x23   : > { %248 = vst [vmem:[%s488_s25 + $0x68] sm:$0xff] %v246_v15  ;;  %v321_v45 = vmul.f32 %v455_v0, %v319_v34  ;;  %v286_v47 = vmax.f32 %v284_v32, 0.0  ;;  %v304_v48 = vadd.f32 %v465_v1, %v302_v33  ;;  %v322_v49 = vmul.f32 %v455_v0, %v320_v38 }
  0x24   : > { %257 = vst [vmem:[%s488_s25 + $0x70] sm:$0xff] %v255_v19  ;;  %v295_v50 = vmax.f32 %v293_v36, 0.0  ;;  %v313_v51 = vadd.f32 %v465_v1, %v311_v37  ;;  %v331_v52 = vmul.f32 %v455_v0, %v329_v42  ;;  %v296_v53 = vmax.f32 %v294_v40, 0.0 }
  0x25   : > { %258 = vst [vmem:[%s488_s25 + $0x78] sm:$0xff] %v256_v23  ;;  %v314_v54 = vadd.f32 %v465_v1, %v312_v41  ;;  %v332_v55 = vmul.f32 %v455_v0, %v330_v46  ;;  %v305_v56 = vmax.f32 %v303_v44, 0.0  ;;  %v323_v57 = vadd.f32 %v465_v1, %v321_v45 }
  0x26   : > { %267 = vst [vmem:[%s488_s25 + $0x80] sm:$0xff] %v265_v27  ;;  %v306_v58 = vmax.f32 %v304_v48, 0.0  ;;  %v324_v59 = vadd.f32 %v465_v1, %v322_v49  ;;  %v315_v60 = vmax.f32 %v313_v51, 0.0  ;;  %v333_v61 = vadd.f32 %v465_v1, %v331_v52 }
  0x27   : > { %268 = vst [vmem:[%s488_s25 + $0x88] sm:$0xff] %v266_v31  ;;  %v316_v0 = vmax.f32 %v314_v54, 0.0  ;;  %v334_v62 = vadd.f32 %v465_v1, %v332_v55  ;;  %v325_v63 = vmax.f32 %v323_v57, 0.0 }
  0x28   : > { %277 = vst [vmem:[%s488_s25 + $0x90] sm:$0xff] %v275_v35  ;;  %v326_v2 = vmax.f32 %v324_v59, 0.0  ;;  %v335_v3 = vmax.f32 %v333_v61, 0.0 }
  0x29   : > { %278 = vst [vmem:[%s488_s25 + $0x98] sm:$0xff] %v276_v39  ;;  %v336_v4 = vmax.f32 %v334_v62, 0.0 }
  0x2a   : > { %287 = vst [vmem:[%s488_s25 + $0xa0] sm:$0xff] %v285_v43 }
  0x2b   : > { %288 = vst [vmem:[%s488_s25 + $0xa8] sm:$0xff] %v286_v47 }
  0x2c   : > { %297 = vst [vmem:[%s488_s25 + $0xb0] sm:$0xff] %v295_v50 }
  0x2d   : > { %298 = vst [vmem:[%s488_s25 + $0xb8] sm:$0xff] %v296_v53 }
  0x2e   : > { %307 = vst [vmem:[%s488_s25 + $0xc0] sm:$0xff] %v305_v56 }
  0x2f   : > { %308 = vst [vmem:[%s488_s25 + $0xc8] sm:$0xff] %v306_v58 }
  0x30   : > { %317 = vst [vmem:[%s488_s25 + $0xd0] sm:$0xff] %v315_v60 }
  0x31   : > { %318 = vst [vmem:[%s488_s25 + $0xd8] sm:$0xff] %v316_v0 }
  0x32   : > { %327 = vst [vmem:[%s488_s25 + $0xe0] sm:$0xff] %v325_v63 }
  0x33   : > { %328 = vst [vmem:[%s488_s25 + $0xe8] sm:$0xff] %v326_v2 }
  0x34   : > { %337 = vst [vmem:[%s488_s25 + $0xf0] sm:$0xff] %v335_v3 }
  0x35   : > { %338 = vst [vmem:[%s488_s25 + $0xf8] sm:$0xff] %v336_v4 }
  0x36 PF: > { %s13_s12 = sadd.s32 1, %s422_s12  }
  0x37   : > { %p10_p4 = scmp.ge.s32.totalorder %s13_s12, 4  }
  0x39   :  { %12 = sbr.rel (!%p10_p4) target bundleno = 1 (0x1), region = 62 }

// kernel: double_conv.3
= control target key start
LH: loop header
LB: loop body
LE: loop exit
PB: predicated region body
PF: predicated region fallthrough
CT: control target
= control target key end

     0   :  { %s1908_s15 = smov 0   ;;  %s2880_s0 = inlined_call_operand.vmem [shape: bf16[2,328,128], index: 0, kind: input, shape index: {}]   ;;  %s2881_s1 = inlined_call_operand.vmem [shape: bf16[1,128,128], index: 1, kind: input, shape index: {}]   ;;  %s2882_s2 = inlined_call_operand.vmem [shape: bf16[2,328,128], index: 2, kind: output, shape index: {0}]   ;;  %s2883_s3 = inlined_call_operand.vmem [shape: f32[2,1,128], index: 3, kind: output, shape index: {1}]   ;;  %s2884_s4 = inlined_call_operand.vmem [shape: f32[2,1,128], index: 4, kind: output, shape index: {2}]  }
   0x1 LB: > { %s1568_s16 = sadd.s32 4294967295, %s1879_s15   ;;  %p1572_p0 = scmp.ge.s32.totalorder %s1879_s15, 1  ;;  %s1879_s15 = sphi %s1908_s15, %s15_s15  }
   0x2   : > { %p167_p1 = scmp.lt.s32.totalorder %s1879_s15, 3 }
   0x4   : > { %p168_p2 = pnand %p1572_p0, %p167_p1 }
   0x5   : > { %p199_p3 = scmp.lt.s32.totalorder (!%p168_p2), %s1568_s16, 1 }
   0x6   : > { %171 = sbr.rel (%p168_p2) target bundleno = 481 (0x1e1), region = 28 }
   0xb   : > { %v1718_v0 = vld [vmem:[%s2881_s1 + $0x38] sm:$0xff]  ;;  %v1717_v1 = vld [vmem:[%s2881_s1 + $0x30] sm:$0xff]  ;;  %v1716_v2 = vld [vmem:[%s2881_s1 + $0x28] sm:$0xff]  ;;  %s2988_s16 = smov (!%p199_p3, %s1568_s16), 1  ;;  %v215_v27 = vlaneseq }
   0xc   : > { %1060 = vmatpush.bf16.msra.mxu0 %v1718_v0  ;;  %1839 = vmatpush.bf16.msra.mxu2 %v1718_v0  ;;  %v1715_v3 = vld [vmem:[%s2881_s1 + $0x20] sm:$0xff]  ;;  %v1714_v4 = vld [vmem:[%s2881_s1 + $0x18] sm:$0xff]  ;;  %v1713_v5 = vld [vmem:[%s2881_s1 + $0x10] sm:$0xff]  ;;  %s1862_s5 = smul.u32 164, %s2988_s16  ;;  %s211_s18 = scalar_lea.vmem %s2883_s3, %s2988_s16 }
   0xd   : > { %1840 = vmatpush.bf16.msra.mxu3 %v1718_v0  ;;  %1838 = vmatpush.bf16.msra.mxu1 %v1718_v0  ;;  %v1712_v6 = vld [vmem:[%s2881_s1 + $0x8] sm:$0xff]  ;;  %v1711_v7 = vld [vmem:[%s2881_s1] sm:$0xff]  ;;  %v1971_v28 = vshrl.u32 %v215_v27, 7  ;;  %s214_s21 = scalar_lea.vmem %s2884_s4, %s2988_s16 }
   0xe   : > { %s1952_s10 = scalar_lea.vmem %s2880_s0, %s1862_s5  ;;  %s2165_s13 = scalar_lea.vmem %s2882_s2, %s1862_s5 }
   0xf   : > { %v1691_v8 = vld [vmem:[%s1952_s10] sm:$0xff]  ;;  %v1701_v9 = vld [vmem:[%s1952_s10 + $0x50] sm:$0xff]  ;;  %v1692_v11 = vld [vmem:[%s1952_s10 + $0x8] sm:$0xff]  ;;  %v257_v31 = vcvt.s32.f32 %v1971_v28  ;;  %v217_v35 = vadd.s32 8, %v1971_v28  ;;  %v218_v43 = vadd.s32 16, %v1971_v28  ;;  %v236_v44 = vadd.s32 160, %v1971_v28 }
  0x10   : > { %1061 = vmatpush.bf16.msra.mxu0 %v1717_v1  ;;  %1842 = vmatpush.bf16.msra.mxu2 %v1717_v1  ;;  %v1707_v10 = vld [vmem:[%s1952_s10 + $0x80] sm:$0xff]  ;;  %v1702_v12 = vld [vmem:[%s1952_s10 + $0x58] sm:$0xff]  ;;  %v1708_v13 = vld [vmem:[%s1952_s10 + $0x88] sm:$0xff]  ;;  %v248_v53 = vadd.s32 256, %v1971_v28  ;;  %v219_v56 = vadd.s32 24, %v1971_v28 }
  0x11   : > { %1843 = vmatpush.bf16.msra.mxu3 %v1717_v1  ;;  %1841 = vmatpush.bf16.msra.mxu1 %v1717_v1  ;;  %v1693_v14 = vld [vmem:[%s1952_s10 + $0x10] sm:$0xff]  ;;  %v1703_v15 = vld [vmem:[%s1952_s10 + $0x60] sm:$0xff]  ;;  %v1694_v17 = vld [vmem:[%s1952_s10 + $0x18] sm:$0xff]  ;;  %v298_v32 = vadd.f32 0.5, %v257_v31  ;;  %v258_v36 = vcvt.s32.f32 %v217_v35  ;;  %v259_v45 = vcvt.s32.f32 %v218_v43  ;;  %v277_v47 = vcvt.s32.f32 %v236_v44 }
  0x12   : > { %v1709_v16 = vld [vmem:[%s1952_s10 + $0x90] sm:$0xff]  ;;  %v1704_v18 = vld [vmem:[%s1952_s10 + $0x68] sm:$0xff]  ;;  %v1710_v19 = vld [vmem:[%s1952_s10 + $0x98] sm:$0xff]  ;;  %v289_v58 = vcvt.s32.f32 %v248_v53  ;;  %v260_v60 = vcvt.s32.f32 %v219_v56  ;;  %v2049_v44 = vadd.s32 40, %v1971_v28 }
  0x13   : > { %v1698_v20 = vld [vmem:[%s1952_s10 + $0x38] sm:$0xff]  ;;  %v871_v21 = vld [vmem:[%s1952_s10 + $0xa0] sm:$0xf]  ;;  %v1705_v24 = vld [vmem:[%s1952_s10 + $0x70] sm:$0xff]  ;;  %v339_v34 = vmul.f32 0.055555556, %v298_v32 }
  0x14   : > { %1062 = vmatpush.bf16.msra.mxu0 %v1716_v2  ;;  %1845 = vmatpush.bf16.msra.mxu2 %v1716_v2  ;;  %v969_v22 = vunpack.c.l.b16 %v871_v21  ;;  %v1695_v23 = vld [vmem:[%s1952_s10 + $0x20] sm:$0xff]  ;;  %v1696_v29 = vld [vmem:[%s1952_s10 + $0x28] sm:$0xff]  ;;  %v1706_v30 = vld [vmem:[%s1952_s10 + $0x78] sm:$0xff]  ;;  %v299_v38 = vadd.f32 0.5, %v258_v36  ;;  %v300_v49 = vadd.f32 0.5, %v259_v45  ;;  %v318_v50 = vadd.f32 0.5, %v277_v47 }
  0x15   : > { %1846 = vmatpush.bf16.msra.mxu3 %v1716_v2  ;;  %1844 = vmatpush.bf16.msra.mxu1 %v1716_v2  ;;  %v1699_v26 = vld [vmem:[%s1952_s10 + $0x40] sm:$0xff]  ;;  %v1700_v33 = vld [vmem:[%s1952_s10 + $0x48] sm:$0xff]  ;;  %v380_v37 = vfloor.f32 %v339_v34  ;;  %v1697_v40 = vld [vmem:[%s1952_s10 + $0x30] sm:$0xff]  ;;  %v330_v62 = vadd.f32 0.5, %v289_v58  ;;  %v301_v0 = vadd.f32 0.5, %v260_v60  ;;  %v2153_v34 = vadd.s32 288, %v1971_v28 }
  0x16   : > { %v990_v25 = vpack.c.b16 %v969_v22, %v969_v22  ;;  %v340_v39 = vmul.f32 0.055555556, %v299_v38  ;;  %v341_v51 = vmul.f32 0.055555556, %v300_v49  ;;  %v359_v52 = vmul.f32 0.055555556, %v318_v50 }
  0x17   : > { %v421_v41 = vmul.f32 18.0, %v380_v37  ;;  %vm503_vm0 = vcmp.ge.f32.partialorder %v380_v37, 1.0  ;;  %vm544_vm1 = vcmp.le.f32.partialorder %v380_v37, 16.0 }
  0x18   : > { %1063 = vmatpush.bf16.msra.mxu0 %v1715_v3  ;;  %1848 = vmatpush.bf16.msra.mxu2 %v1715_v3  ;;  %v381_v42 = vfloor.f32 %v340_v39  ;;  %vm585_vm2 = vmand %vm503_vm0, %vm544_vm1  ;;  %v382_v55 = vfloor.f32 %v341_v51  ;;  %v400_v57 = vfloor.f32 %v359_v52  ;;  %v262_v51 = vcvt.s32.f32 %v2049_v44 }
  0x19   : > { %1849 = vmatpush.bf16.msra.mxu3 %v1715_v3  ;;  %1847 = vmatpush.bf16.msra.mxu1 %v1715_v3  ;;  %v462_v46 = vsub.f32 %v257_v31, %v421_v41  ;;  %v371_v3 = vmul.f32 0.055555556, %v330_v62 }
  0x1a   : > { %v422_v48 = vmul.f32 18.0, %v381_v42  ;;  %vm504_vm4 = vcmp.ge.f32.partialorder %v381_v42, 1.0  ;;  %vm545_vm5 = vcmp.le.f32.partialorder %v381_v42, 16.0  ;;  %v423_v59 = vmul.f32 18.0, %v382_v55 }
  0x1b   : > { %vm626_vm3 = vcmp.ge.f32.partialorder %v462_v46, 1.0  ;;  %vm708_vm7 = vcmp.le.f32.partialorder %v462_v46, 16.0  ;;  %v441_v61 = vmul.f32 18.0, %v400_v57  ;;  %vm586_vm8 = vmand %vm504_vm4, %vm545_vm5  ;;  %vm523_vm10 = vcmp.ge.f32.partialorder %v400_v57, 1.0 }
  0x1c   : > { %1064 = vmatpush.bf16.msra.mxu0 %v1714_v4  ;;  %1851 = vmatpush.bf16.msra.mxu2 %v1714_v4  ;;  %v463_v54 = vsub.f32 %v258_v36, %v422_v48  ;;  %vm667_vm6 = vmand %vm585_vm2, %vm626_vm3  ;;  %vm564_vm11 = vcmp.le.f32.partialorder %v400_v57, 16.0  ;;  %v464_v63 = vsub.f32 %v259_v45, %v423_v59  ;;  %vm505_vm13 = vcmp.ge.f32.partialorder %v382_v55, 1.0 }
  0x1d   : > { %1852 = vmatpush.bf16.msra.mxu3 %v1714_v4  ;;  %1850 = vmatpush.bf16.msra.mxu1 %v1714_v4  ;;  %vm1983_vm12 = vmand %vm667_vm6, %vm708_vm7  ;;  %v482_v2 = vsub.f32 %v277_v47, %v441_v61  ;;  %v237_v4 = vadd.s32 168, %v1971_v28  ;;  %vm546_vm0 = vcmp.le.f32.partialorder %v382_v55, 16.0  ;;  %v2035_v36 = vadd.s32 272, %v1971_v28 }
  0x1e   : > { %vm627_vm9 = vcmp.ge.f32.partialorder %v463_v54, 1.0  ;;  %vm709_vm15 = vcmp.le.f32.partialorder %v463_v54, 16.0  ;;  %vm605_vm1 = vmand %vm523_vm10, %vm564_vm11  ;;  %vm628_vm4 = vcmp.ge.f32.partialorder %v464_v63, 1.0  ;;  %vm710_vm11 = vcmp.le.f32.partialorder %v464_v63, 16.0 }
  0x1f   : > { %vm1988_vm14 = vmand %vm586_vm8, %vm627_vm9  ;;  %vm646_vm2 = vcmp.ge.f32.partialorder %v482_v2, 1.0  ;;  %vm728_vm9 = vcmp.le.f32.partialorder %v482_v2, 16.0  ;;  %v291_v42 = vcvt.s32.f32 %v2035_v36  ;;  %v2074_v54 = vadd.s32 184, %v1971_v28 }
  0x20   : > { %1065 = vmatpush.bf16.msra.mxu0 %v1713_v5  ;;  %1854 = vmatpush.bf16.msra.mxu2 %v1713_v5  ;;  %vm1992_vm3 = vmand %vm505_vm13, %vm546_vm0 }
  0x21   : > { %1855 = vmatpush.bf16.msra.mxu3 %v1713_v5  ;;  %1853 = vmatpush.bf16.msra.mxu1 %v1713_v5  ;;  %vm2001_vm7 = vmand %vm1988_vm14, %vm709_vm15  ;;  %v332_v50 = vadd.f32 0.5, %v291_v42  ;;  %v280_v61 = vcvt.s32.f32 %v2074_v54  ;;  %v303_v5 = vadd.f32 0.5, %v262_v51 }
  0x22   : > { %vm687_vm8 = vmand %vm605_vm1, %vm646_vm2 }
  0x23   : > { %vm669_vm10 = vmand %vm1992_vm3, %vm628_vm4 }
  0x24   : > { %1066 = vmatpush.bf16.msra.mxu0 %v1712_v6  ;;  %1857 = vmatpush.bf16.msra.mxu2 %v1712_v6  ;;  %vm2011_vm14 = vmand %vm687_vm8, %vm728_vm9 }
  0x25   : > { %1858 = vmatpush.bf16.msra.mxu3 %v1712_v6  ;;  %1856 = vmatpush.bf16.msra.mxu1 %v1712_v6  ;;  %v342_v6 = vmul.f32 0.055555556, %v301_v0  ;;  %vm2022_vm0 = vmand %vm669_vm10, %vm710_vm11 }
  0x28   : > { %1067 = vmatpush.bf16.msra.mxu0 %v1711_v7  ;;  %1860 = vmatpush.bf16.msra.mxu2 %v1711_v7 }
  0x29   : > { %1861 = vmatpush.bf16.msra.mxu3 %v1711_v7  ;;  %1859 = vmatpush.bf16.msra.mxu1 %v1711_v7  ;;  %v412_v7 = vfloor.f32 %v371_v3 }
  0x2b   : > { %1068 = vmatmul.bf16.vlgmr.msra.gmra.mxu0 %v1691_v8  ;;  %1118 = vmatmul.bf16.vlgmr.msra.gmra.mxu2 %v1701_v9  ;;  %v278_v8 = vcvt.s32.f32 %v237_v4  ;;  %vm535_vm5 = vcmp.ge.f32.partialorder %v412_v7, 1.0  ;;  %vm576_vm6 = vcmp.le.f32.partialorder %v412_v7, 16.0 }
  0x2c   : > { %1148 = vmatmul.bf16.vlgmr.msra.gmra.mxu3 %v1707_v10  ;;  %1103 = vmatmul.bf16.vlgmr.msra.gmra.mxu1 %v1698_v20  ;;  %v383_v10 = vfloor.f32 %v342_v6  ;;  %vm617_vm13 = vmand %vm535_vm5, %vm576_vm6  ;;  %v238_v20 = vadd.s32 176, %v1971_v28  ;;  %v321_v6 = vadd.f32 0.5, %v280_v61 }
  0x2e   : > { %vm506_vm1 = vcmp.ge.f32.partialorder %v383_v10, 1.0  ;;  %vm547_vm2 = vcmp.le.f32.partialorder %v383_v10, 16.0 }
  0x2f   : > { %vm588_vm9 = vmand %vm506_vm1, %vm547_vm2 }
  0x3b   : > { %1073 = vmatmul.bf16.gmra.mxu0 %v1692_v11  ;;  %1123 = vmatmul.bf16.gmra.mxu2 %v1702_v12  ;;  %v1997_v11 = vadd.s32 32, %v1971_v28  ;;  %v453_v12 = vmul.f32 18.0, %v412_v7 }
  0x3c   : > { %1153 = vmatmul.bf16.gmra.mxu3 %v1708_v13  ;;  %1108 = vmatmul.bf16.gmra.mxu1 %v1699_v26  ;;  %v1881_v26 = vmov 0.0   ;;  %v362_v13 = vmul.f32 0.055555556, %v321_v6 }
  0x3d   : > { %v2020_v27 = vsel %vm1983_vm12, 1.0, %v1881_v26  ;;  %v2040_v37 = vsel %vm2001_vm7, 1.0, %v1881_v26  ;;  %v2061_v48 = vsel %vm2011_vm14, 1.0, %v1881_v26  ;;  %v2083_v56 = vsel %vm2022_vm0, 1.0, %v1881_v26 }
  0x4b   : > { %1078 = vmatmul.bf16.gmra.mxu0 %v1693_v14  ;;  %1128 = vmatmul.bf16.gmra.mxu2 %v1703_v15  ;;  %v319_v14 = vadd.f32 0.5, %v278_v8  ;;  %v424_v15 = vmul.f32 18.0, %v383_v10  ;;  %v2112_v10 = vadd.s32 280, %v1971_v28 }
  0x4c   : > { %1158 = vmatmul.bf16.gmra.mxu3 %v1709_v16  ;;  %1113 = vmatmul.bf16.gmra.mxu1 %v1700_v33  ;;  %v261_v16 = vcvt.s32.f32 %v1997_v11 }
  0x4d   : > { %v465_v21 = vsub.f32 %v260_v60, %v424_v15  ;;  %v373_v60 = vmul.f32 0.055555556, %v332_v50 }
  0x4f   : > { %vm629_vm12 = vcmp.ge.f32.partialorder %v465_v21, 1.0  ;;  %vm711_vm11 = vcmp.le.f32.partialorder %v465_v21, 16.0  ;;  %v414_v3 = vfloor.f32 %v373_v60  ;;  %v344_v21 = vmul.f32 0.055555556, %v303_v5 }
  0x50   : > { %vm2044_vm10 = vmand %vm588_vm9, %vm629_vm12 }
  0x51   : > { %v455_v9 = vmul.f32 18.0, %v414_v3 }
  0x53   : > { %v496_v15 = vsub.f32 %v291_v42, %v455_v9  ;;  %v293_v42 = vcvt.s32.f32 %v2153_v34  ;;  %v2272_v34 = vadd.s32 304, %v1971_v28 }
  0x5b   : > { %1083 = vmatmul.bf16.gmra.mxu0 %v1694_v17  ;;  %1133 = vmatmul.bf16.gmra.mxu2 %v1704_v18  ;;  %v494_v17 = vsub.f32 %v289_v58, %v453_v12  ;;  %v360_v18 = vmul.f32 0.055555556, %v319_v14 }
  0x5c   : > { %1163 = vmatmul.bf16.gmra.mxu3 %v1710_v19  ;;  %v249_v19 = vadd.s32 264, %v1971_v28 }
  0x5d   : > { %vm658_vm15 = vcmp.ge.f32.partialorder %v494_v17, 1.0  ;;  %vm740_vm6 = vcmp.le.f32.partialorder %v494_v17, 16.0  ;;  %v2129_v17 = vadd.s32 192, %v1971_v28 }
  0x5e   : > { %vm2026_vm3 = vmand %vm617_vm13, %vm658_vm15 }
  0x5f   : > { %vm2054_vm7 = vmand %vm2026_vm3, %vm740_vm6 }
  0x60   : > { %v822_v0 = vsel %vm2054_vm7, 1.0, %v1881_v26 }
  0x6b   : > { %1088 = vmatmul.bf16.gmra.mxu0 %v1695_v23  ;;  %1138 = vmatmul.bf16.gmra.mxu2 %v1705_v24  ;;  %v401_v23 = vfloor.f32 %v360_v18  ;;  %v290_v24 = vcvt.s32.f32 %v249_v19 }
  0x6c   : > { %1168 = vmatmul.bf16.gmra.mxu3 %v990_v25  ;;  %v302_v25 = vadd.f32 0.5, %v261_v16 }
  0x6d   : > { %v442_v32 = vmul.f32 18.0, %v401_v23  ;;  %vm524_vm4 = vcmp.ge.f32.partialorder %v401_v23, 1.0  ;;  %vm565_vm5 = vcmp.le.f32.partialorder %v401_v23, 16.0  ;;  %v331_v33 = vadd.f32 0.5, %v290_v24 }
  0x6e   : > { %vm2030_vm8 = vmand %vm524_vm4, %vm565_vm5 }
  0x6f   : > { %v483_v38 = vsub.f32 %v278_v8, %v442_v32  ;;  %v372_v39 = vmul.f32 0.055555556, %v331_v33  ;;  %vm2069_vm4 = vmand %vm2044_vm10, %vm711_vm11  ;;  %v281_v33 = vcvt.s32.f32 %v2129_v17  ;;  %v2230_v8 = vadd.s32 296, %v1971_v28 }
  0x70   : > { %v2122_v11 = vsel %vm2069_vm4, 1.0, %v1881_v26 }
  0x71   : > { %vm647_vm13 = vcmp.ge.f32.partialorder %v483_v38, 1.0  ;;  %vm729_vm15 = vcmp.le.f32.partialorder %v483_v38, 16.0  ;;  %v413_v46 = vfloor.f32 %v372_v39  ;;  %v385_v38 = vfloor.f32 %v344_v21 }
  0x72   : > { %vm688_vm1 = vmand %vm2030_vm8, %vm647_vm13 }
  0x73   : > { %v454_v52 = vmul.f32 18.0, %v413_v46  ;;  %vm536_vm2 = vcmp.ge.f32.partialorder %v413_v46, 1.0  ;;  %vm577_vm3 = vcmp.le.f32.partialorder %v413_v46, 16.0  ;;  %vm2076_vm14 = vmand %vm688_vm1, %vm729_vm15  ;;  %v426_v46 = vmul.f32 18.0, %v385_v38 }
  0x74   : > { %vm2085_vm8 = vmand %vm536_vm2, %vm577_vm3  ;;  %vm537_vm3 = vcmp.ge.f32.partialorder %v414_v3, 1.0  ;;  %v811_v12 = vsel %vm2076_vm14, 1.0, %v1881_v26 }
  0x75   : > { %v495_v58 = vsub.f32 %v290_v24, %v454_v52  ;;  %v334_v52 = vadd.f32 0.5, %v293_v42  ;;  %v467_v53 = vsub.f32 %v262_v51, %v426_v46 }
  0x77   : > { %vm659_vm10 = vcmp.ge.f32.partialorder %v495_v58, 1.0  ;;  %vm741_vm11 = vcmp.le.f32.partialorder %v495_v58, 16.0  ;;  %v375_v51 = vmul.f32 0.055555556, %v334_v52 }
  0x78   : > { %vm700_vm7 = vmand %vm2085_vm8, %vm659_vm10 }
  0x79   : > { %vm2107_vm2 = vmand %vm700_vm7, %vm741_vm11  ;;  %v416_v6 = vfloor.f32 %v375_v51 }
  0x7a   : > { %v823_v19 = vsel %vm2107_vm2, 1.0, %v1881_v26 }
  0x7b   : > { %1093 = vmatmul.bf16.gmra.mxu0 %v1696_v29  ;;  %1143 = vmatmul.bf16.gmra.mxu2 %v1706_v30  ;;  %v279_v30 = vcvt.s32.f32 %v238_v20  ;;  %v403_v20 = vfloor.f32 %v362_v13 }
  0x7d   : > { %v320_v35 = vadd.f32 0.5, %v279_v30  ;;  %v444_v29 = vmul.f32 18.0, %v403_v20  ;;  %vm526_vm7 = vcmp.ge.f32.partialorder %v403_v20, 1.0 }
  0x7f   : > { %v361_v41 = vmul.f32 0.055555556, %v320_v35 }
  0x81   : > { %v402_v49 = vfloor.f32 %v361_v41  ;;  %v322_v41 = vadd.f32 0.5, %v281_v33 }
  0x83   : > { %v443_v57 = vmul.f32 18.0, %v402_v49  ;;  %vm525_vm5 = vcmp.ge.f32.partialorder %v402_v49, 1.0  ;;  %vm566_vm6 = vcmp.le.f32.partialorder %v402_v49, 16.0 }
  0x84   : > { %vm2093_vm0 = vmand %vm525_vm5, %vm566_vm6  ;;  %vm578_vm5 = vcmp.le.f32.partialorder %v414_v3, 16.0 }
  0x85   : > { %v484_v1 = vsub.f32 %v279_v30, %v443_v57  ;;  %vm619_vm4 = vmand %vm537_vm3, %vm578_vm5  ;;  %v2146_v30 = vadd.s32 48, %v1971_v28 }
  0x87   : > { %vm648_vm15 = vcmp.ge.f32.partialorder %v484_v1, 1.0  ;;  %vm730_vm1 = vcmp.le.f32.partialorder %v484_v1, 16.0  ;;  %v263_v60 = vcvt.s32.f32 %v2146_v30 }
  0x88   : > { %vm689_vm6 = vmand %vm2093_vm0, %vm648_vm15  ;;  %vm660_vm0 = vcmp.ge.f32.partialorder %v496_v15, 1.0  ;;  %vm567_vm15 = vcmp.le.f32.partialorder %v403_v20, 16.0 }
  0x89   : > { %vm701_vm11 = vmand %vm619_vm4, %vm660_vm0  ;;  %vm549_vm0 = vcmp.le.f32.partialorder %v385_v38, 16.0 }
  0x8b   : > { %1098 = vmatmul.bf16.gmra.mxu0 %v1697_v40  ;;  %v343_v40 = vmul.f32 0.055555556, %v302_v25 }
  0x8d   : > { %v384_v47 = vfloor.f32 %v343_v40 }
  0x8f   : > { %v425_v62 = vmul.f32 18.0, %v384_v47  ;;  %vm507_vm12 = vcmp.ge.f32.partialorder %v384_v47, 1.0  ;;  %vm548_vm9 = vcmp.le.f32.partialorder %v384_v47, 16.0 }
  0x90   : > { %vm2097_vm13 = vmand %vm507_vm12, %vm548_vm9  ;;  %vm742_vm9 = vcmp.le.f32.partialorder %v496_v15, 16.0 }
  0x91   : > { %v466_v7 = vsub.f32 %v261_v16, %v425_v62  ;;  %vm771_vm12 = vmand %vm689_vm6, %vm730_vm1  ;;  %v292_v16 = vcvt.s32.f32 %v2112_v10  ;;  %v2236_v10 = vadd.s32 208, %v1971_v28 }
  0x92   : > { %v2136_v23 = vsel %vm771_vm12, 1.0, %v1881_v26  ;;  %vm783_vm1 = vmand %vm701_vm11, %vm742_vm9  ;;  %vm631_vm11 = vcmp.ge.f32.partialorder %v467_v53, 1.0 }
  0x93   : > { %vm630_vm8 = vcmp.ge.f32.partialorder %v466_v7, 1.0  ;;  %vm712_vm14 = vcmp.le.f32.partialorder %v466_v7, 16.0  ;;  %v333_v24 = vadd.f32 0.5, %v292_v16  ;;  %v2171_v43 = vsel %vm783_vm1, 1.0, %v1881_v26 }
  0x94   : > { %vm2141_vm10 = vmand %vm2097_vm13, %vm630_vm8  ;;  %v2227_v7 = vadd.s32 200, %v1971_v28 }
  0x95   : > { %v374_v32 = vmul.f32 0.055555556, %v333_v24  ;;  %vm608_vm13 = vmand %vm526_vm7, %vm567_vm15 }
  0x96   : > { %vm2176_vm5 = vmand %vm2141_vm10, %vm712_vm14  ;;  %vm508_vm14 = vcmp.ge.f32.partialorder %v385_v38, 1.0  ;;  %v282_v15 = vcvt.s32.f32 %v2227_v7 }
  0x97   : > { %v415_v40 = vfloor.f32 %v374_v32  ;;  %v2201_v44 = vsel %vm2176_vm5, 1.0, %v1881_v26  ;;  %vm590_vm10 = vmand %vm508_vm14, %vm549_vm0 }
  0x98   : > { %vm2210_vm1 = vmand %vm590_vm10, %vm631_vm11  ;;  %v323_v24 = vadd.f32 0.5, %v282_v15 }
  0x99   : > { %v456_v47 = vmul.f32 18.0, %v415_v40  ;;  %vm538_vm8 = vcmp.ge.f32.partialorder %v415_v40, 1.0  ;;  %vm579_vm12 = vcmp.le.f32.partialorder %v415_v40, 16.0 }
  0x9a   : > { %vm2191_vm9 = vmand %vm538_vm8, %vm579_vm12  ;;  %vm539_vm8 = vcmp.ge.f32.partialorder %v416_v6, 1.0  ;;  %vm580_vm12 = vcmp.le.f32.partialorder %v416_v6, 16.0 }
  0x9b   : > { %v497_v57 = vsub.f32 %v292_v16, %v456_v47  ;;  %vm2261_vm10 = vmand %vm539_vm8, %vm580_vm12  ;;  %v295_v47 = vcvt.s32.f32 %v2272_v34 }
  0x9d   : > { %vm661_vm7 = vcmp.ge.f32.partialorder %v497_v57, 1.0  ;;  %vm743_vm15 = vcmp.le.f32.partialorder %v497_v57, 16.0  ;;  %v336_v58 = vadd.f32 0.5, %v295_v47 }
  0xa8   : > { %v1069_v63 = vpop.f32.mrf.mxu0 }
  0xa9   : > { %v2125_v14 = vmul.f32 %v1069_v63, %v2020_v27 }
  0xae   : > { %v1119_v18 = vpop.f32.mrf.mxu2 }
  0xaf   : > { %v1149_v22 = vpop.f32.mrf.mxu3  ;;  %v2156_v35 = vmul.f32 %v1119_v18, %v2061_v48  ;;  %v363_v48 = vmul.f32 0.055555556, %v322_v41  ;;  %v294_v18 = vcvt.s32.f32 %v2230_v8 }
  0xb0   : > { %v1071_v27 = vpop.f32.mrf.mxu0  ;;  %v2158_v36 = vmul.f32 %v1149_v22, %v822_v0 }
  0xb1   : > { %v2149_v31 = vmul.f32 %v1071_v27, %v2040_v37  ;;  %v485_v37 = vsub.f32 %v280_v61, %v444_v29  ;;  %v404_v59 = vfloor.f32 %v363_v48 }
  0xb3   : > { %v1722_v39 = vpack.c.bf16 %v2149_v31, %v2125_v14  ;;  %vm649_vm2 = vcmp.ge.f32.partialorder %v485_v37, 1.0  ;;  %vm731_vm3 = vcmp.le.f32.partialorder %v485_v37, 16.0  ;;  %v445_v4 = vmul.f32 18.0, %v404_v59 }
  0xb4   : > { %vm690_vm6 = vmand %vm608_vm13, %vm649_vm2  ;;  %vm713_vm2 = vcmp.le.f32.partialorder %v467_v53, 16.0  ;;  %vm527_vm5 = vcmp.ge.f32.partialorder %v404_v59, 1.0  ;;  %v283_v37 = vcvt.s32.f32 %v2236_v10  ;;  %v2303_v53 = vadd.s32 312, %v1971_v28 }
  0xb5   : > { %1723 = vst [vmem:[%s2165_s13] sm:$0xff] %v1722_v39   ;;  %vm2181_vm4 = vmand %vm690_vm6, %vm731_vm3  ;;  %v486_v9 = vsub.f32 %v281_v33, %v445_v4  ;;  %vm568_vm6 = vcmp.le.f32.partialorder %v404_v59, 16.0  ;;  %v335_v33 = vadd.f32 0.5, %v294_v18 }
  0xb6   : > { %v1121_v49 = vpop.f32.mrf.mxu2  ;;  %v2208_v0 = vsel %vm2181_vm4, 1.0, %v1881_v26  ;;  %vm702_vm13 = vmand %vm2191_vm9, %vm661_vm7 }
  0xb7   : > { %v2189_v54 = vmul.f32 %v1121_v49, %v811_v12  ;;  %v1151_v55 = vpop.f32.mrf.mxu3  ;;  %vm2222_vm3 = vmand %vm702_vm13, %vm743_vm15  ;;  %v457_v12 = vmul.f32 18.0, %v416_v6  ;;  %vm650_vm14 = vcmp.ge.f32.partialorder %v486_v9, 1.0  ;;  %vm732_vm9 = vcmp.le.f32.partialorder %v486_v9, 16.0 }
  0xb8   : > { %v2196_v61 = vmul.f32 %v1151_v55, %v823_v19  ;;  %v1074_v62 = vpop.f32.mrf.mxu0  ;;  %vm2241_vm4 = vmand %vm2210_vm1, %vm713_vm2  ;;  %v825_v17 = vsel %vm2222_vm3, 1.0, %v1881_v26  ;;  %v2251_v19 = vadd.s32 56, %v1971_v28  ;;  %v376_v45 = vmul.f32 0.055555556, %v335_v33 }
  0xb9   : > { %v1772_v63 = vpack.c.bf16 %v2189_v54, %v2156_v35  ;;  %v2217_v3 = vmul.f32 %v1074_v62, %v2083_v56  ;;  %v304_v56 = vadd.f32 0.5, %v263_v60  ;;  %vm2253_vm0 = vmand %vm527_vm5, %vm568_vm6  ;;  %v498_v22 = vsub.f32 %v293_v42, %v457_v12 }
  0xba   : > { %v1802_v2 = vpack.c.bf16 %v2196_v61, %v2158_v36  ;;  %v2268_v32 = vsel %vm2241_vm4, 1.0, %v1881_v26  ;;  %vm2286_vm7 = vmand %vm2253_vm0, %vm650_vm14  ;;  %v364_v42 = vmul.f32 0.055555556, %v323_v24  ;;  %v264_v48 = vcvt.s32.f32 %v2251_v19 }
  0xbb   : > { %1828 = vst [vmem:[%s2165_s13 + $0x50] sm:$0xff] %v1772_v63   ;;  %v345_v25 = vmul.f32 0.055555556, %v304_v56  ;;  %vm662_vm11 = vcmp.ge.f32.partialorder %v498_v22, 1.0  ;;  %vm744_vm1 = vcmp.le.f32.partialorder %v498_v22, 16.0  ;;  %v417_v50 = vfloor.f32 %v376_v45  ;;  %vm2309_vm13 = vmand %vm2286_vm7, %vm732_vm9 }
  0xbc   : > { %1834 = vst [vmem:[%s2165_s13 + $0x80] sm:$0xff] %v1802_v2   ;;  %vm2296_vm15 = vmand %vm2261_vm10, %vm662_vm11  ;;  %v405_v49 = vfloor.f32 %v364_v42  ;;  %v814_v30 = vsel %vm2309_vm13, 1.0, %v1881_v26  ;;  %v2364_v22 = vadd.s32 64, %v1971_v28  ;;  %v2367_v24 = vadd.s32 224, %v1971_v28 }
  0xbd   : > { %v386_v46 = vfloor.f32 %v345_v25  ;;  %vm2317_vm5 = vmand %vm2296_vm15, %vm744_vm1  ;;  %v458_v63 = vmul.f32 18.0, %v417_v50  ;;  %vm540_vm12 = vcmp.ge.f32.partialorder %v417_v50, 1.0  ;;  %vm581_vm4 = vcmp.le.f32.partialorder %v417_v50, 16.0 }
  0xbe   : > { %v1124_v16 = vpop.f32.mrf.mxu2  ;;  %v446_v51 = vmul.f32 18.0, %v405_v49  ;;  %vm528_vm6 = vcmp.ge.f32.partialorder %v405_v49, 1.0  ;;  %vm569_vm8 = vcmp.le.f32.partialorder %v405_v49, 16.0  ;;  %vm622_vm11 = vmand %vm540_vm12, %vm581_vm4 }
  0xbf   : > { %v1154_v20 = vpop.f32.mrf.mxu3  ;;  %v2275_v38 = vmul.f32 %v1124_v16, %v2136_v23  ;;  %v324_v23 = vadd.f32 0.5, %v283_v37  ;;  %v427_v52 = vmul.f32 18.0, %v386_v46  ;;  %vm509_vm2 = vcmp.ge.f32.partialorder %v386_v46, 1.0  ;;  %vm610_vm14 = vmand %vm528_vm6, %vm569_vm8 }
  0xc0   : > { %v1076_v27 = vpop.f32.mrf.mxu0  ;;  %v2278_v39 = vmul.f32 %v1154_v20, %v2171_v43  ;;  %vm550_vm3 = vcmp.le.f32.partialorder %v386_v46, 16.0  ;;  %v487_v7 = vsub.f32 %v282_v15, %v446_v51  ;;  %v499_v8 = vsub.f32 %v294_v18, %v458_v63 }
  0xc1   : > { %v2281_v40 = vmul.f32 %v1076_v27, %v2122_v11  ;;  %v365_v57 = vmul.f32 0.055555556, %v324_v23  ;;  %v468_v4 = vsub.f32 %v263_v60, %v427_v52  ;;  %v826_v60 = vsel %vm2317_vm5, 1.0, %v1881_v26  ;;  %vm2341_vm0 = vmand %vm509_vm2, %vm550_vm3 }
  0xc2   : > { %vm651_vm9 = vcmp.ge.f32.partialorder %v487_v7, 1.0  ;;  %vm733_vm10 = vcmp.le.f32.partialorder %v487_v7, 16.0  ;;  %vm663_vm7 = vcmp.ge.f32.partialorder %v499_v8, 1.0  ;;  %vm745_vm1 = vcmp.le.f32.partialorder %v499_v8, 16.0 }
  0xc3   : > { %v1727_v43 = vpack.c.bf16 %v2281_v40, %v2217_v3  ;;  %v406_v56 = vfloor.f32 %v365_v57  ;;  %vm692_vm15 = vmand %vm610_vm14, %vm651_vm9  ;;  %vm632_vm13 = vcmp.ge.f32.partialorder %v468_v4, 1.0  ;;  %v377_v16 = vmul.f32 0.055555556, %v336_v58 }
  0xc4   : > { %vm2351_vm2 = vmand %vm692_vm15, %vm733_vm10  ;;  %v2358_v18 = vadd.s32 216, %v1971_v28  ;;  %v296_v20 = vcvt.s32.f32 %v2303_v53  ;;  %vm714_vm4 = vcmp.le.f32.partialorder %v468_v4, 16.0  ;;  %v265_v57 = vcvt.s32.f32 %v2364_v22 }
  0xc5   : > { %1819 = vst [vmem:[%s2165_s13 + $0x8] sm:$0xff] %v1727_v43   ;;  %vm529_vm5 = vcmp.ge.f32.partialorder %v406_v56, 1.0  ;;  %vm704_vm3 = vmand %vm622_vm11, %vm663_vm7  ;;  %vm570_vm6 = vcmp.le.f32.partialorder %v406_v56, 16.0  ;;  %v418_v27 = vfloor.f32 %v377_v16 }
  0xc6   : > { %v1126_v59 = vpop.f32.mrf.mxu2  ;;  %vm786_vm8 = vmand %vm704_vm3, %vm745_vm1  ;;  %v284_v33 = vcvt.s32.f32 %v2358_v18  ;;  %v337_v41 = vadd.f32 0.5, %v296_v20  ;;  %v306_v4 = vadd.f32 0.5, %v265_v57 }
  0xc7   : > { %v2322_v1 = vmul.f32 %v1126_v59, %v2208_v0  ;;  %v1156_v2 = vpop.f32.mrf.mxu3  ;;  %vm673_vm12 = vmand %vm2341_vm0, %vm632_vm13  ;;  %v827_v46 = vsel %vm786_vm8, 1.0, %v1881_v26  ;;  %v459_v23 = vmul.f32 18.0, %v418_v27  ;;  %vm541_vm11 = vcmp.ge.f32.partialorder %v418_v27, 1.0 }
  0xc8   : > { %v2326_v5 = vmul.f32 %v1156_v2, %v825_v17  ;;  %v1079_v6 = vpop.f32.mrf.mxu0  ;;  %v305_v17 = vadd.f32 0.5, %v264_v48  ;;  %vm611_vm9 = vmand %vm529_vm5, %vm570_vm6  ;;  %vm582_vm15 = vcmp.le.f32.partialorder %v418_v27, 16.0  ;;  %v325_v49 = vadd.f32 0.5, %v284_v33 }
  0xc9   : > { %v1777_v9 = vpack.c.bf16 %v2322_v1, %v2275_v38  ;;  %v2331_v0 = vmul.f32 %v1079_v6, %v2201_v44  ;;  %v447_v44 = vmul.f32 18.0, %v406_v56  ;;  %vm2389_vm0 = vmand %vm673_vm12, %vm714_vm4  ;;  %v500_v52 = vsub.f32 %v295_v47, %v459_v23 }
  0xca   : > { %v1807_v13 = vpack.c.bf16 %v2326_v5, %v2278_v39  ;;  %v346_v29 = vmul.f32 0.055555556, %v305_v17  ;;  %v378_v55 = vmul.f32 0.055555556, %v337_v41  ;;  %vm623_vm1 = vmand %vm541_vm11, %vm582_vm15  ;;  %v366_v34 = vmul.f32 0.055555556, %v325_v49 }
  0xcb   : > { %1829 = vst [vmem:[%s2165_s13 + $0x58] sm:$0xff] %v1777_v9   ;;  %v488_v21 = vsub.f32 %v283_v37, %v447_v44  ;;  %v815_v37 = vsel %vm2351_vm2, 1.0, %v1881_v26  ;;  %vm664_vm2 = vcmp.ge.f32.partialorder %v500_v52, 1.0  ;;  %vm746_vm3 = vcmp.le.f32.partialorder %v500_v52, 16.0 }
  0xcc   : > { %1835 = vst [vmem:[%s2165_s13 + $0x88] sm:$0xff] %v1807_v13   ;;  %v387_v11 = vfloor.f32 %v346_v29  ;;  %v796_v47 = vsel %vm2389_vm0, 1.0, %v1881_v26  ;;  %vm705_vm8 = vmand %vm623_vm1, %vm664_vm2  ;;  %v419_v2 = vfloor.f32 %v378_v55  ;;  %v407_v8 = vfloor.f32 %v366_v34 }
  0xcd   : > { %vm652_vm14 = vcmp.ge.f32.partialorder %v488_v21, 1.0  ;;  %vm734_vm10 = vcmp.le.f32.partialorder %v488_v21, 16.0  ;;  %vm2414_vm12 = vmand %vm705_vm8, %vm746_vm3  ;;  %v2421_v9 = vadd.s32 320, %v1971_v28 }
  0xce   : > { %v1129_v25 = vpop.f32.mrf.mxu2  ;;  %vm693_vm7 = vmand %vm611_vm9, %vm652_vm14  ;;  %v428_v62 = vmul.f32 18.0, %v387_v11  ;;  %vm510_vm13 = vcmp.ge.f32.partialorder %v387_v11, 1.0  ;;  %vm551_vm6 = vcmp.le.f32.partialorder %v387_v11, 16.0  ;;  %v448_v44 = vmul.f32 18.0, %v407_v8 }
  0xcf   : > { %v2373_v42 = vmul.f32 %v1129_v25, %v814_v30  ;;  %v1159_v10 = vpop.f32.mrf.mxu3  ;;  %vm2402_vm5 = vmand %vm693_vm7, %vm734_vm10  ;;  %v2424_v30 = vadd.s32 72, %v1971_v28  ;;  %vm530_vm11 = vcmp.ge.f32.partialorder %v407_v8, 1.0  ;;  %vm571_vm7 = vcmp.le.f32.partialorder %v407_v8, 16.0 }
  0xd0   : > { %v1081_v45 = vpop.f32.mrf.mxu0  ;;  %v2397_v58 = vmul.f32 %v1159_v10, %v826_v60  ;;  %v469_v63 = vsub.f32 %v264_v48, %v428_v62  ;;  %vm592_vm4 = vmand %vm510_vm13, %vm551_vm6  ;;  %v2431_v60 = vadd.s32 232, %v1971_v28  ;;  %v816_v16 = vsel %vm2402_vm5, 1.0, %v1881_v26 }
  0xd1   : > { %v2385_v43 = vmul.f32 %v1081_v45, %v2268_v32  ;;  %v285_v32 = vcvt.s32.f32 %v2367_v24  ;;  %v460_v17 = vmul.f32 18.0, %v419_v2  ;;  %vm542_vm15 = vcmp.ge.f32.partialorder %v419_v2, 1.0  ;;  %vm2447_vm0 = vmand %vm530_vm11, %vm571_vm7 }
  0xd2   : > { %vm633_vm14 = vcmp.ge.f32.partialorder %v469_v63, 1.0  ;;  %vm715_vm9 = vcmp.le.f32.partialorder %v469_v63, 16.0  ;;  %v828_v25 = vsel %vm2414_vm12, 1.0, %v1881_v26  ;;  %v489_v27 = vsub.f32 %v284_v33, %v448_v44 }
  0xd3   : > { %v1732_v59 = vpack.c.bf16 %v2385_v43, %v2331_v0  ;;  %v326_v56 = vadd.f32 0.5, %v285_v32  ;;  %vm674_vm10 = vmand %vm592_vm4, %vm633_vm14  ;;  %vm583_vm1 = vcmp.le.f32.partialorder %v419_v2, 16.0  ;;  %v501_v10 = vsub.f32 %v296_v20, %v460_v17 }
  0xd4   : > { %vm2453_vm13 = vmand %vm674_vm10, %vm715_vm9  ;;  %vm653_vm5 = vcmp.ge.f32.partialorder %v489_v27, 1.0  ;;  %vm735_vm2 = vcmp.le.f32.partialorder %v489_v27, 16.0  ;;  %v266_v33 = vcvt.s32.f32 %v2424_v30  ;;  %v286_v23 = vcvt.s32.f32 %v2431_v60 }
  0xd5   : > { %1820 = vst [vmem:[%s2165_s13 + $0x10] sm:$0xff] %v1732_v59   ;;  %v367_v45 = vmul.f32 0.055555556, %v326_v56  ;;  %vm2462_vm3 = vmand %vm542_vm15, %vm583_vm1  ;;  %vm665_vm8 = vcmp.ge.f32.partialorder %v501_v10, 1.0  ;;  %v797_v50 = vsel %vm2453_vm13, 1.0, %v1881_v26  ;;  %vm747_vm14 = vcmp.le.f32.partialorder %v501_v10, 16.0 }
  0xd6   : > { %v1131_v6 = vpop.f32.mrf.mxu2  ;;  %vm694_vm6 = vmand %vm2447_vm0, %vm653_vm5  ;;  %v307_v59 = vadd.f32 0.5, %v266_v33  ;;  %v327_v62 = vadd.f32 0.5, %v286_v23  ;;  %v2492_v63 = vadd.s32 80, %v1971_v28 }
  0xd7   : > { %v2426_v19 = vmul.f32 %v1131_v6, %v815_v37  ;;  %v1161_v48 = vpop.f32.mrf.mxu3  ;;  %v347_v37 = vmul.f32 0.055555556, %v306_v4  ;;  %v408_v20 = vfloor.f32 %v367_v45  ;;  %vm2475_vm12 = vmand %vm694_vm6, %vm735_vm2 }
  0xd8   : > { %v2433_v12 = vmul.f32 %v1161_v48, %v827_v46  ;;  %v1084_v13 = vpop.f32.mrf.mxu0  ;;  %v297_v46 = vcvt.s32.f32 %v2421_v9  ;;  %vm2487_vm4 = vmand %vm2462_vm3, %vm665_vm8  ;;  %v817_v8 = vsel %vm2475_vm12, 1.0, %v1881_v26  ;;  %v267_v22 = vcvt.s32.f32 %v2492_v63 }
  0xd9   : > { %v1782_v15 = vpack.c.bf16 %v2426_v19, %v2373_v42  ;;  %v2468_v11 = vmul.f32 %v1084_v13, %v796_v47  ;;  %v388_v53 = vfloor.f32 %v347_v37  ;;  %v449_v6 = vmul.f32 18.0, %v408_v20  ;;  %vm2505_vm0 = vmand %vm2487_vm4, %vm747_vm14 }
  0xda   : > { %v1812_v21 = vpack.c.bf16 %v2433_v12, %v2397_v58  ;;  %v338_v55 = vadd.f32 0.5, %v297_v46  ;;  %vm531_vm11 = vcmp.ge.f32.partialorder %v408_v20, 1.0  ;;  %vm572_vm15 = vcmp.le.f32.partialorder %v408_v20, 16.0 }
  0xdb   : > { %1830 = vst [vmem:[%s2165_s13 + $0x60] sm:$0xff] %v1782_v15   ;;  %v429_v47 = vmul.f32 18.0, %v388_v53  ;;  %vm511_vm9 = vcmp.ge.f32.partialorder %v388_v53, 1.0  ;;  %vm552_vm10 = vcmp.le.f32.partialorder %v388_v53, 16.0  ;;  %v490_v13 = vsub.f32 %v285_v32, %v449_v6  ;;  %vm613_vm5 = vmand %vm531_vm11, %vm572_vm15 }
  0xdc   : > { %1836 = vst [vmem:[%s2165_s13 + $0x90] sm:$0xff] %v1812_v21   ;;  %vm593_vm7 = vmand %vm511_vm9, %vm552_vm10  ;;  %v379_v44 = vmul.f32 0.055555556, %v338_v55  ;;  %v348_v15 = vmul.f32 0.055555556, %v307_v59  ;;  %v829_v24 = vsel %vm2505_vm0, 1.0, %v1881_v26 }
  0xdd   : > { %v470_v56 = vsub.f32 %v265_v57, %v429_v47  ;;  %vm654_vm3 = vcmp.ge.f32.partialorder %v490_v13, 1.0  ;;  %vm736_vm6 = vcmp.le.f32.partialorder %v490_v13, 16.0  ;;  %v308_v41 = vadd.f32 0.5, %v267_v22 }
  0xde   : > { %v1134_v49 = vpop.f32.mrf.mxu2  ;;  %v420_v57 = vfloor.f32 %v379_v44  ;;  %v389_v21 = vfloor.f32 %v348_v15  ;;  %vm695_vm12 = vmand %vm613_vm5, %vm654_vm3  ;;  %v2537_v55 = vadd.s32 88, %v1971_v28 }
  0xdf   : > { %v1164_v51 = vpop.f32.mrf.mxu3  ;;  %v2494_v2 = vmul.f32 %v1134_v49, %v816_v16  ;;  %v368_v16 = vmul.f32 0.055555556, %v327_v62  ;;  %vm634_vm1 = vcmp.ge.f32.partialorder %v470_v56, 1.0  ;;  %vm716_vm13 = vcmp.le.f32.partialorder %v470_v56, 16.0  ;;  %vm777_vm9 = vmand %vm695_vm12, %vm736_vm6 }
  0xe0   : > { %v1086_v4 = vpop.f32.mrf.mxu0  ;;  %vm675_vm2 = vmand %vm593_vm7, %vm634_vm1  ;;  %v2514_v27 = vmul.f32 %v1164_v51, %v828_v25  ;;  %v461_v37 = vmul.f32 18.0, %v420_v57  ;;  %vm543_vm4 = vcmp.ge.f32.partialorder %v420_v57, 1.0  ;;  %vm584_vm14 = vcmp.le.f32.partialorder %v420_v57, 16.0 }
  0xe1   : > { %v2496_v7 = vmul.f32 %v1086_v4, %v797_v50  ;;  %vm2520_vm8 = vmand %vm675_vm2, %vm716_vm13  ;;  %v409_v29 = vfloor.f32 %v368_v16  ;;  %v2527_v25 = vadd.s32 240, %v1971_v28  ;;  %v430_v53 = vmul.f32 18.0, %v389_v21 }
  0xe2   : > { %vm512_vm10 = vcmp.ge.f32.partialorder %v389_v21, 1.0  ;;  %vm553_vm11 = vcmp.le.f32.partialorder %v389_v21, 16.0  ;;  %v502_v50 = vsub.f32 %v297_v46, %v461_v37  ;;  %vm625_vm7 = vmand %vm543_vm4, %vm584_vm14  ;;  %v798_v62 = vsel %vm2520_vm8, 1.0, %v1881_v26 }
  0xe3   : > { %v1737_v17 = vpack.c.bf16 %v2496_v7, %v2468_v11  ;;  %v450_v52 = vmul.f32 18.0, %v409_v29  ;;  %v2545_v51 = vsel %vm777_vm9, 1.0, %v1881_v26  ;;  %v471_v9 = vsub.f32 %v266_v33, %v430_v53  ;;  %vm2552_vm1 = vmand %vm512_vm10, %vm553_vm11 }
  0xe4   : > { %vm666_vm15 = vcmp.ge.f32.partialorder %v502_v50, 1.0  ;;  %vm748_vm0 = vcmp.le.f32.partialorder %v502_v50, 16.0  ;;  %vm532_vm3 = vcmp.ge.f32.partialorder %v409_v29, 1.0  ;;  %v349_v30 = vmul.f32 0.055555556, %v308_v41 }
  0xe5   : > { %1821 = vst [vmem:[%s2165_s13 + $0x18] sm:$0xff] %v1737_v17   ;;  %v491_v47 = vsub.f32 %v286_v23, %v450_v52  ;;  %vm707_vm13 = vmand %vm625_vm7, %vm666_vm15  ;;  %vm635_vm5 = vcmp.ge.f32.partialorder %v471_v9, 1.0  ;;  %vm717_vm2 = vcmp.le.f32.partialorder %v471_v9, 16.0  ;;  %vm573_vm8 = vcmp.le.f32.partialorder %v409_v29, 16.0 }
  0xe6   : > { %v1136_v10 = vpop.f32.mrf.mxu2  ;;  %vm789_vm6 = vmand %vm707_vm13, %vm748_vm0  ;;  %v287_v33 = vcvt.s32.f32 %v2527_v25  ;;  %v268_v4 = vcvt.s32.f32 %v2537_v55  ;;  %v390_v60 = vfloor.f32 %v349_v30  ;;  %v2566_v23 = vadd.s32 112, %v1971_v28 }
  0xe7   : > { %v2529_v45 = vmul.f32 %v1136_v10, %v817_v8  ;;  %v1166_v18 = vpop.f32.mrf.mxu3  ;;  %vm655_vm12 = vcmp.ge.f32.partialorder %v491_v47, 1.0  ;;  %v830_v6 = vsel %vm789_vm6, 1.0, %v1881_v26  ;;  %vm676_vm4 = vmand %vm2552_vm1, %vm635_vm5  ;;  %v2568_v8 = vpop.f32.mrf.mxu1  ;;  %v2571_v56 = vadd.s32 248, %v1971_v28 }
  0xe8   : > { %v2532_v20 = vmul.f32 %v1166_v18, %v829_v24  ;;  %v1089_v49 = vpop.f32.mrf.mxu0  ;;  %vm758_vm14 = vmand %vm676_vm4, %vm717_vm2  ;;  %vm737_vm9 = vcmp.le.f32.partialorder %v491_v47, 16.0  ;;  %v328_v44 = vadd.f32 0.5, %v287_v33  ;;  %v309_v15 = vadd.f32 0.5, %v268_v4 }
  0xe9   : > { %v1787_v59 = vpack.c.bf16 %v2529_v45, %v2494_v2  ;;  %v2573_v48 = vmul.f32 %v1089_v49, %v798_v62  ;;  %v799_v17 = vsel %vm758_vm14, 1.0, %v1881_v26  ;;  %vm614_vm10 = vmand %vm532_vm3, %vm573_vm8  ;;  %v431_v57 = vmul.f32 18.0, %v390_v60 }
  0xea   : > { %v1817_v46 = vpack.c.bf16 %v2532_v20, %v2514_v27  ;;  %vm513_vm11 = vcmp.ge.f32.partialorder %v390_v60, 1.0  ;;  %v2580_v21 = vadd.s32 96, %v1971_v28  ;;  %vm696_vm7 = vmand %vm614_vm10, %vm655_vm12  ;;  %vm554_vm15 = vcmp.le.f32.partialorder %v390_v60, 16.0 }
  0xeb   : > { %1831 = vst [vmem:[%s2165_s13 + $0x68] sm:$0xff] %v1787_v59   ;;  %v369_v41 = vmul.f32 0.055555556, %v328_v44  ;;  %v350_v10 = vmul.f32 0.055555556, %v309_v15  ;;  %vm778_vm0 = vmand %vm696_vm7, %vm737_vm9  ;;  %v472_v29 = vsub.f32 %v267_v22, %v431_v57  ;;  %v271_v25 = vcvt.s32.f32 %v2566_v23 }
  0xec   : > { %1837 = vst [vmem:[%s2165_s13 + $0x98] sm:$0xff] %v1817_v46   ;;  %v288_v18 = vcvt.s32.f32 %v2571_v56  ;;  %v819_v49 = vsel %vm778_vm0, 1.0, %v1881_v26  ;;  %vm595_vm1 = vmand %vm513_vm11, %vm554_vm15  ;;  %v2598_v52 = vadd.s32 120, %v1971_v28  ;;  %v269_v44 = vcvt.s32.f32 %v2580_v21 }
  0xed   : > { %v410_v50 = vfloor.f32 %v369_v41  ;;  %vm636_vm13 = vcmp.ge.f32.partialorder %v472_v29, 1.0  ;;  %vm718_vm5 = vcmp.le.f32.partialorder %v472_v29, 16.0  ;;  %v391_v22 = vfloor.f32 %v350_v10 }
  0xee   : > { %v1139_v13 = vpop.f32.mrf.mxu2  ;;  %vm2604_vm2 = vmand %vm595_vm1, %vm636_vm13  ;;  %v312_v62 = vadd.f32 0.5, %v271_v25  ;;  %v329_v46 = vadd.f32 0.5, %v288_v18 }
  0xef   : > { %v1169_v16 = vpop.f32.mrf.mxu3  ;;  %v451_v59 = vmul.f32 18.0, %v410_v50  ;;  %vm533_vm3 = vcmp.ge.f32.partialorder %v410_v50, 1.0  ;;  %vm574_vm6 = vcmp.le.f32.partialorder %v410_v50, 16.0  ;;  %v432_v9 = vmul.f32 18.0, %v391_v22  ;;  %vm2627_vm14 = vmand %vm2604_vm2, %vm718_vm5 }
  0xf0   : > { %v2582_v24 = vmul.f32 %v1169_v16, %v830_v6  ;;  %v1091_v32 = vpop.f32.mrf.mxu0  ;;  %vm514_vm8 = vcmp.ge.f32.partialorder %v391_v22, 1.0  ;;  %vm555_vm12 = vcmp.le.f32.partialorder %v391_v22, 16.0  ;;  %v2614_v34 = vmul.f32 %v1139_v13, %v2545_v51  ;;  %vm2617_vm4 = vmand %vm533_vm3, %vm574_vm6 }
  0xf1   : > { %v2585_v37 = vmul.f32 %v1091_v32, %v799_v17  ;;  %v492_v30 = vsub.f32 %v287_v33, %v451_v59  ;;  %v353_v60 = vmul.f32 0.055555556, %v312_v62  ;;  %v473_v51 = vsub.f32 %v268_v4, %v432_v9  ;;  %v2632_v17 = vpop.f32.mrf.mxu1  ;;  %vm2637_vm11 = vmand %vm514_vm8, %vm555_vm12 }
  0xf2   : > { %v1254_v53 = vpack.c.bf16 %v2582_v24, %v2582_v24  ;;  %1347 = vmatpush.msrb.mxu3 %v2582_v24  ;;  %v370_v13 = vmul.f32 0.055555556, %v329_v46  ;;  %v272_v33 = vcvt.s32.f32 %v2598_v52  ;;  %v310_v4 = vadd.f32 0.5, %v269_v44 }
  0xf3   : > { %v1742_v63 = vpack.c.bf16 %v2585_v37, %v2573_v48  ;;  %vm656_vm9 = vcmp.ge.f32.partialorder %v492_v30, 1.0  ;;  %vm738_vm10 = vcmp.le.f32.partialorder %v492_v30, 16.0  ;;  %v394_v10 = vfloor.f32 %v353_v60 }
  0xf4   : > { %1295 = vst [vmem:[%s2165_s13 + $0xa0] sm:$0xf] %v1254_v53  ;;  %1348 = vmatpush.msrb.mxu3 %v2532_v20  ;;  %vm697_vm7 = vmand %vm2617_vm4, %vm656_vm9  ;;  %vm637_vm15 = vcmp.ge.f32.partialorder %v473_v51, 1.0  ;;  %vm719_vm0 = vcmp.le.f32.partialorder %v473_v51, 16.0  ;;  %v411_v50 = vfloor.f32 %v370_v13  ;;  %v351_v22 = vmul.f32 0.055555556, %v310_v4 }
  0xf5   : > { %1822 = vst [vmem:[%s2165_s13 + $0x20] sm:$0xff] %v1742_v63   ;;  %vm2648_vm1 = vmand %vm697_vm7, %vm738_vm10  ;;  %vm517_vm13 = vcmp.ge.f32.partialorder %v394_v10, 1.0  ;;  %vm558_vm5 = vcmp.le.f32.partialorder %v394_v10, 16.0  ;;  %v800_v63 = vsel %vm2627_vm14, 1.0, %v1881_v26  ;;  %v313_v55 = vadd.f32 0.5, %v272_v33 }
  0xf6   : > { %1349 = vmatpush.msrb.mxu3 %v2514_v27  ;;  %v1141_v47 = vpop.f32.mrf.mxu2  ;;  %vm678_vm2 = vmand %vm2637_vm11, %vm637_vm15  ;;  %v2661_v59 = vadd.s32 104, %v1971_v28  ;;  %v452_v9 = vmul.f32 18.0, %v411_v50  ;;  %vm534_vm6 = vcmp.ge.f32.partialorder %v411_v50, 1.0  ;;  %vm575_vm8 = vcmp.le.f32.partialorder %v411_v50, 16.0 }
  0xf7   : > { %v2622_v15 = vmul.f32 %v1141_v47, %v819_v49  ;;  %v1171_v57 = vpop.f32.mrf.mxu3  ;;  %v435_v49 = vmul.f32 18.0, %v394_v10  ;;  %vm760_vm3 = vmand %vm678_vm2, %vm719_vm0  ;;  %v392_v47 = vfloor.f32 %v351_v22  ;;  %v354_v30 = vmul.f32 0.055555556, %v313_v55 }
  0xf8   : > { %1350 = vmatpush.msrb.mxu3 %v2433_v12  ;;  %v1094_v32 = vpop.f32.mrf.mxu0  ;;  %v801_v46 = vsel %vm760_vm3, 1.0, %v1881_v26  ;;  %vm599_vm12 = vmand %vm517_vm13, %vm558_vm5  ;;  %v270_v6 = vcvt.s32.f32 %v2661_v59  ;;  %v493_v23 = vsub.f32 %v288_v18, %v452_v9  ;;  %v2678_v16 = vadd.s32 128, %v1971_v28 }
  0xf9   : > { %v1792_v29 = vpack.c.bf16 %v2622_v15, %v2614_v34  ;;  %v476_v62 = vsub.f32 %v271_v25, %v435_v49  ;;  %vm2673_vm9 = vmand %vm534_vm6, %vm575_vm8  ;;  %v433_v51 = vmul.f32 18.0, %v392_v47  ;;  %vm515_vm11 = vcmp.ge.f32.partialorder %v392_v47, 1.0 }
  0xfa   : > { %1351 = vmatpush.msrb.mxu3 %v2397_v58  ;;  %vm556_vm7 = vcmp.le.f32.partialorder %v392_v47, 16.0  ;;  %vm657_vm0 = vcmp.ge.f32.partialorder %v493_v23, 1.0  ;;  %vm739_vm13 = vcmp.le.f32.partialorder %v493_v23, 16.0  ;;  %v395_v57 = vfloor.f32 %v354_v30 }
  0xfb   : > { %1832 = vst [vmem:[%s2165_s13 + $0x70] sm:$0xff] %v1792_v29   ;;  %vm640_vm4 = vcmp.ge.f32.partialorder %v476_v62, 1.0  ;;  %vm722_vm14 = vcmp.le.f32.partialorder %v476_v62, 16.0  ;;  %v311_v56 = vadd.f32 0.5, %v270_v6  ;;  %v2683_v18 = vmul.f32 %v1094_v32, %v800_v63  ;;  %vm698_vm5 = vmand %vm2673_vm9, %vm657_vm0  ;;  %v2692_v29 = vpop.f32.mrf.mxu1 }
  0xfc   : > { %1352 = vmatpush.msrb.mxu3 %v2326_v5  ;;  %vm681_vm10 = vmand %vm599_vm12, %vm640_vm4  ;;  %v474_v10 = vsub.f32 %v269_v44, %v433_v51  ;;  %v273_v4 = vcvt.s32.f32 %v2678_v16  ;;  %v820_v49 = vsel %vm2648_vm1, 1.0, %v1881_v26  ;;  %v436_v50 = vmul.f32 18.0, %v395_v57 }
  0xfd   : > { %vm763_vm15 = vmand %vm681_vm10, %vm722_vm14  ;;  %vm518_vm3 = vcmp.ge.f32.partialorder %v395_v57, 1.0  ;;  %vm559_vm4 = vcmp.le.f32.partialorder %v395_v57, 16.0  ;;  %v352_v63 = vmul.f32 0.055555556, %v311_v56  ;;  %v2720_v30 = vadd.s32 136, %v1971_v28 }
  0xfe   : > { %1353 = vmatpush.msrb.mxu3 %v2278_v39  ;;  %v1144_v60 = vpop.f32.mrf.mxu2  ;;  %v804_v32 = vsel %vm763_vm15, 1.0, %v1881_v26  ;;  %vm780_vm2 = vmand %vm698_vm5, %vm739_vm13  ;;  %vm638_vm8 = vcmp.ge.f32.partialorder %v474_v10, 1.0  ;;  %vm720_vm12 = vcmp.le.f32.partialorder %v474_v10, 16.0  ;;  %v477_v53 = vsub.f32 %v272_v33, %v436_v50 }
  0xff   : > { %vm597_vm6 = vmand %vm515_vm11, %vm556_vm7  ;;  %v821_v44 = vsel %vm780_vm2, 1.0, %v1881_v26  ;;  %v314_v22 = vadd.f32 0.5, %v273_v4  ;;  %v2713_v62 = vmul.f32 %v1144_v60, %v820_v49  ;;  %v1187_v52 = vmul.f32 %v2568_v8, %v804_v32 }
 0x100   : > { %1354 = vmatpush.msrb.mxu3 %v2196_v61  ;;  %v1096_v13 = vpop.f32.mrf.mxu0  ;;  %vm679_vm1 = vmand %vm597_vm6, %vm638_vm8  ;;  %vm641_vm10 = vcmp.ge.f32.partialorder %v477_v53, 1.0  ;;  %vm723_vm11 = vcmp.le.f32.partialorder %v477_v53, 16.0  ;;  %v274_v10 = vcvt.s32.f32 %v2720_v30  ;;  %v2742_v59 = vadd.s32 144, %v1971_v28 }
 0x101   : > { %v2685_v41 = vmul.f32 %v1096_v13, %v801_v46  ;;  %vm2709_vm14 = vmand %vm679_vm1, %vm720_vm12  ;;  %v393_v46 = vfloor.f32 %v352_v63  ;;  %v355_v47 = vmul.f32 0.055555556, %v314_v22  ;;  %v1375_v32 = vmul.f32 %v1187_v52, %v1187_v52 }
 0x102   : > { %1355 = vmatpush.msrb.mxu3 %v2158_v36  ;;  %vm600_vm9 = vmand %vm518_vm3, %vm559_vm4  ;;  %v802_v49 = vsel %vm2709_vm14, 1.0, %v1881_v26  ;;  %v275_v53 = vcvt.s32.f32 %v2742_v59  ;;  %v235_v30 = vadd.s32 152, %v1971_v28 }
 0x103   : > { %v1747_v21 = vpack.c.bf16 %v2685_v41, %v2683_v18  ;;  %vm682_vm7 = vmand %vm600_vm9, %vm641_vm10  ;;  %v434_v60 = vmul.f32 18.0, %v393_v46  ;;  %vm516_vm0 = vcmp.ge.f32.partialorder %v393_v46, 1.0  ;;  %vm557_vm13 = vcmp.le.f32.partialorder %v393_v46, 16.0 }
 0x104   : > { %vm764_vm15 = vmand %vm682_vm7, %vm723_vm11  ;;  %v396_v56 = vfloor.f32 %v355_v47  ;;  %v316_v47 = vadd.f32 0.5, %v275_v53 }
 0x105   : > { %1823 = vst [vmem:[%s2165_s13 + $0x28] sm:$0xff] %v1747_v21   ;;  %v805_v8 = vsel %vm764_vm15, 1.0, %v1881_v26  ;;  %v475_v13 = vsub.f32 %v270_v6, %v434_v60  ;;  %vm2729_vm5 = vmand %vm516_vm0, %vm557_vm13 }
 0x106   : > { %v1146_v9 = vpop.f32.mrf.mxu2  ;;  %v1188_v51 = vmul.f32 %v2632_v17, %v805_v8  ;;  %v2739_v17 = vpop.f32.mrf.mxu1  ;;  %v437_v21 = vmul.f32 18.0, %v396_v56  ;;  %vm519_vm8 = vcmp.ge.f32.partialorder %v396_v56, 1.0  ;;  %vm560_vm12 = vcmp.le.f32.partialorder %v396_v56, 16.0 }
 0x107   : > { %v2717_v33 = vmul.f32 %v1146_v9, %v821_v44  ;;  %vm639_vm2 = vcmp.ge.f32.partialorder %v475_v13, 1.0  ;;  %vm721_vm3 = vcmp.le.f32.partialorder %v475_v13, 16.0  ;;  %v315_v44 = vadd.f32 0.5, %v274_v10  ;;  %vm601_vm1 = vmand %vm519_vm8, %vm560_vm12 }
 0x108   : > { %v1099_v23 = vpop.f32.mrf.mxu0  ;;  %v1757_v6 = vpack.c.bf16 %v1188_v51, %v1187_v52  ;;  %v1376_v50 = vmul.f32 %v1188_v51, %v1188_v51  ;;  %1300 = vmatpush.msrb.mxu1 %v1188_v51  ;;  %vm680_vm6 = vmand %vm2729_vm5, %vm639_vm2  ;;  %v478_v22 = vsub.f32 %v273_v4, %v437_v21  ;;  %v276_v8 = vcvt.s32.f32 %v235_v30 }
 0x109   : > { %v1797_v25 = vpack.c.bf16 %v2717_v33, %v2713_v62  ;;  %1320 = vmatpush.msrb.mxu2 %v2717_v33  ;;  %vm762_vm4 = vmand %vm680_vm6, %vm721_vm3  ;;  %v356_v55 = vmul.f32 0.055555556, %v315_v44  ;;  %v1185_v9 = vmul.f32 %v1099_v23, %v802_v49 }
 0x10a   : > { %1825 = vst [vmem:[%s2165_s13 + $0x38] sm:$0xff] %v1757_v6   ;;  %1301 = vmatpush.msrb.mxu1 %v1187_v52  ;;  %1402 = vmatpush.msra.mxu3 %v1376_v50  ;;  %v803_v63 = vsel %vm762_vm4, 1.0, %v1881_v26  ;;  %vm642_vm14 = vcmp.ge.f32.partialorder %v478_v22, 1.0  ;;  %vm724_vm9 = vcmp.le.f32.partialorder %v478_v22, 16.0  ;;  %v317_v51 = vadd.f32 0.5, %v276_v8 }
 0x10b   : > { %1833 = vst [vmem:[%s2165_s13 + $0x78] sm:$0xff] %v1797_v25   ;;  %1321 = vmatpush.msrb.mxu2 %v2713_v62  ;;  %v397_v52 = vfloor.f32 %v356_v55  ;;  %vm683_vm10 = vmand %vm601_vm1, %vm642_vm14  ;;  %v357_v25 = vmul.f32 0.055555556, %v316_v47  ;;  %v1373_v13 = vmul.f32 %v1185_v9, %v1185_v9  ;;  %v1369_v55 = vmul.f32 %v2573_v48, %v2573_v48 }
 0x10c   : > { %1403 = vmatpush.msra.mxu3 %v1375_v32  ;;  %vm765_vm11 = vmand %vm683_vm10, %vm724_vm9  ;;  %v358_v59 = vmul.f32 0.055555556, %v317_v51  ;;  %v1367_v47 = vmul.f32 %v2468_v11, %v2468_v11  ;;  %v1397_v51 = vmul.f32 %v2397_v58, %v2397_v58 }
 0x10d   : > { %1322 = vmatpush.msrb.mxu2 %v2622_v15  ;;  %v438_v23 = vmul.f32 18.0, %v397_v52  ;;  %vm520_vm7 = vcmp.ge.f32.partialorder %v397_v52, 1.0  ;;  %vm561_vm15 = vcmp.le.f32.partialorder %v397_v52, 16.0  ;;  %v398_v28 = vfloor.f32 %v357_v25 }
 0x10e   : > { %v806_v57 = vsel %vm765_vm11, 1.0, %v1881_v26  ;;  %vm602_vm0 = vmand %vm520_vm7, %vm561_vm15  ;;  %v1114_v49 = vpop.f32.mrf.mxu1  ;;  %v399_v21 = vfloor.f32 %v358_v59  ;;  %v1366_v52 = vmul.f32 %v2385_v43, %v2385_v43 }
 0x10f   : > { %1323 = vmatpush.msrb.mxu2 %v2614_v34  ;;  %v479_v56 = vsub.f32 %v274_v10, %v438_v23  ;;  %v439_v32 = vmul.f32 18.0, %v398_v28  ;;  %vm521_vm13 = vcmp.ge.f32.partialorder %v398_v28, 1.0  ;;  %vm562_vm5 = vcmp.le.f32.partialorder %v398_v28, 16.0 }
 0x110   : > { %v1101_v46 = vpop.f32.mrf.mxu0  ;;  %vm2761_vm6 = vmand %vm521_vm13, %vm562_vm5  ;;  %v1372_v10 = vmul.f32 %v2685_v41, %v2685_v41  ;;  %v2768_v44 = vmul.f32 %v2692_v29, %v806_v57  ;;  %vm522_vm9 = vcmp.ge.f32.partialorder %v399_v21, 1.0  ;;  %vm563_vm10 = vcmp.le.f32.partialorder %v399_v21, 16.0 }
 0x111   : > { %v1186_v60 = vmul.f32 %v1101_v46, %v803_v63  ;;  %1324 = vmatpush.msrb.mxu2 %v2529_v45  ;;  %vm643_vm2 = vcmp.ge.f32.partialorder %v479_v56, 1.0  ;;  %vm725_vm3 = vcmp.le.f32.partialorder %v479_v56, 16.0  ;;  %v480_v50 = vsub.f32 %v275_v53, %v439_v32  ;;  %vm604_vm7 = vmand %vm522_vm9, %vm563_vm10 }
 0x112   : > { %vm684_vm8 = vmand %vm602_vm0, %vm643_vm2  ;;  %v1371_v63 = vmul.f32 %v2683_v18, %v2683_v18  ;;  %v1368_v46 = vmul.f32 %v2496_v7, %v2496_v7  ;;  %vm1296_vm2 = vcmask 588800   ;;  %v1399_v23 = vmul.f32 %v2514_v27, %v2514_v27 }
 0x113   : > { %v1752_v16 = vpack.c.bf16 %v1186_v60, %v1185_v9  ;;  %1302 = vmatpush.msrb.mxu1 %v1186_v60  ;;  %1325 = vmatpush.msrb.mxu2 %v2494_v2  ;;  %v1374_v4 = vmul.f32 %v1186_v60, %v1186_v60  ;;  %vm766_vm12 = vmand %vm684_vm8, %vm725_vm3  ;;  %vm644_vm4 = vcmp.ge.f32.partialorder %v480_v50, 1.0  ;;  %vm726_vm1 = vcmp.le.f32.partialorder %v480_v50, 16.0 }
 0x114   : > { %v807_v22 = vsel %vm766_vm12, 1.0, %v1881_v26  ;;  %vm685_vm14 = vmand %vm2761_vm6, %vm644_vm4  ;;  %v1398_v28 = vmul.f32 %v2433_v12, %v2433_v12  ;;  %v1394_v27 = vmul.f32 %v2196_v61, %v2196_v61  ;;  %v1393_v12 = vmul.f32 %v2158_v36, %v2158_v36 }
 0x115   : > { %1824 = vst [vmem:[%s2165_s13 + $0x30] sm:$0xff] %v1752_v16   ;;  %1303 = vmatpush.msrb.mxu1 %v1185_v9  ;;  %1326 = vmatpush.msrb.mxu2 %v2426_v19  ;;  %v2778_v29 = vmul.f32 %v2739_v17, %v807_v22  ;;  %vm767_vm11 = vmand %vm685_vm14, %vm726_vm1  ;;  %v1388_v16 = vmul.f32 %v2529_v45, %v2529_v45 }
 0x116   : > { %1404 = vmatpush.msra.mxu3 %v1374_v4  ;;  %v1116_v9 = vpop.f32.mrf.mxu1  ;;  %v1383_v45 = vmul.f32 %v2275_v38, %v2275_v38 }
 0x117   : > { %1304 = vmatpush.msrb.mxu1 %v2685_v41  ;;  %1327 = vmatpush.msrb.mxu2 %v2373_v42  ;;  %v440_v41 = vmul.f32 18.0, %v399_v21  ;;  %v1762_v17 = vpack.c.bf16 %v2778_v29, %v2768_v44 }
 0x118   : > { %1405 = vmatpush.msra.mxu3 %v1373_v13 }
 0x119   : > { %1305 = vmatpush.msrb.mxu1 %v2683_v18  ;;  %1328 = vmatpush.msrb.mxu2 %v2322_v1  ;;  %v1370_v18 = vmul.f32 %v2585_v37, %v2585_v37  ;;  %v481_v53 = vsub.f32 %v276_v8, %v440_v41  ;;  %1826 = vst [vmem:[%s2165_s13 + $0x40] sm:$0xff] %v1762_v17  }
 0x11a   : > { %1406 = vmatpush.msra.mxu3 %v1372_v10  ;;  %v1391_v8 = vmul.f32 %v2713_v62, %v2713_v62  ;;  %v1386_v62 = vmul.f32 %v2426_v19, %v2426_v19  ;;  %v1381_v19 = vmul.f32 %v2156_v35, %v2156_v35 }
 0x11b   : > { %1306 = vmatpush.msrb.mxu1 %v2585_v37  ;;  %1329 = vmatpush.msrb.mxu2 %v2275_v38  ;;  %vm645_vm15 = vcmp.ge.f32.partialorder %v481_v53, 1.0  ;;  %vm727_vm0 = vcmp.le.f32.partialorder %v481_v53, 16.0  ;;  %v808_v37 = vsel %vm767_vm11, 1.0, %v1881_v26  ;;  %v1377_v38 = vmul.f32 %v2768_v44, %v2768_v44 }
 0x11c   : > { %1407 = vmatpush.msra.mxu3 %v1371_v63  ;;  %vm686_vm13 = vmand %vm604_vm7, %vm645_vm15  ;;  %v1191_v30 = vmul.f32 %v1114_v49, %v808_v37 }
 0x11d   : > { %1307 = vmatpush.msrb.mxu1 %v2573_v48  ;;  %1330 = vmatpush.msrb.mxu2 %v2189_v54  ;;  %vm768_vm5 = vmand %vm686_vm13, %vm727_vm0 }
 0x11e   : > { %1408 = vmatpush.msra.mxu3 %v1370_v18  ;;  %v809_v48 = vsel %vm768_vm5, 1.0, %v1881_v26  ;;  %v1365_v26 = vmul.f32 %v2331_v0, %v2331_v0  ;;  %v1379_v4 = vmul.f32 %v1191_v30, %v1191_v30 }
 0x11f   : > { %1308 = vmatpush.msrb.mxu1 %v2496_v7  ;;  %1331 = vmatpush.msrb.mxu2 %v2156_v35  ;;  %v1192_v60 = vmul.f32 %v1116_v9, %v809_v48  ;;  %v1362_v7 = vmul.f32 %v2149_v31, %v2149_v31  ;;  %v1400_v35 = vmul.f32 %v2532_v20, %v2532_v20 }
 0x120   : > { %1409 = vmatpush.msra.mxu3 %v1369_v55  ;;  %v1395_v20 = vmul.f32 %v2278_v39, %v2278_v39 }
 0x121   : > { %1309 = vmatpush.msrb.mxu1 %v2468_v11  ;;  %v1767_v25 = vpack.c.bf16 %v1192_v60, %v1191_v30  ;;  %1332 = vmatpush.msrb.mxu2 %v1192_v60  ;;  %v1364_v11 = vmul.f32 %v2281_v40, %v2281_v40 }
 0x122   : > { %1410 = vmatpush.msra.mxu3 %v1368_v46 }
 0x123   : > { %1310 = vmatpush.msrb.mxu1 %v2385_v43  ;;  %1827 = vst [vmem:[%s2165_s13 + $0x48] sm:$0xff] %v1767_v25   ;;  %1333 = vmatpush.msrb.mxu2 %v1191_v30  ;;  %v1363_v43 = vmul.f32 %v2217_v3, %v2217_v3 }
 0x124   : > { %1411 = vmatpush.msra.mxu3 %v1367_v47 }
 0x125   : > { %1311 = vmatpush.msrb.mxu1 %v2331_v0  ;;  %1334 = vmatpush.msrb.mxu2 %v2778_v29  ;;  %v1392_v0 = vmul.f32 %v2717_v33, %v2717_v33  ;;  %v1390_v33 = vmul.f32 %v2622_v15, %v2622_v15  ;;  %v1385_v15 = vmul.f32 %v2373_v42, %v2373_v42 }
 0x126   : > { %1412 = vmatpush.msra.mxu3 %v1366_v52  ;;  %v1380_v42 = vmul.f32 %v1192_v60, %v1192_v60 }
 0x127   : > { %1312 = vmatpush.msrb.mxu1 %v2281_v40  ;;  %1335 = vmatpush.msrb.mxu2 %v2768_v44  ;;  %v1882_v40 = vmov 1.0  }
 0x128   : > { %1413 = vmatpush.msra.mxu3 %v1365_v26  ;;  %1336 = vmatmul.f32.vlgmr.msrb.gmra.mxu2 %v1882_v40 }
 0x129   : > { %1313 = vmatpush.msrb.mxu1 %v2217_v3  ;;  %v1361_v3 = vmul.f32 %v2125_v14, %v2125_v14  ;;  %1687 = vmatmul.msk.f32.vlgmr.msrb.gmra.mxu3 %vm1296_vm2, %v1882_v40 }
 0x12a   : > { %1414 = vmatpush.msra.mxu3 %v1364_v11 }
 0x12b   : > { %1314 = vmatpush.msrb.mxu1 %v2149_v31  ;;  %v1389_v31 = vmul.f32 %v2614_v34, %v2614_v34  ;;  %v1384_v34 = vmul.f32 %v2322_v1, %v2322_v1  ;;  %v1378_v1 = vmul.f32 %v2778_v29, %v2778_v29 }
 0x12c   : > { %1415 = vmatpush.msra.mxu3 %v1363_v43 }
 0x12d   : > { %1315 = vmatpush.msrb.mxu1 %v2125_v14  ;;  %v1387_v14 = vmul.f32 %v2494_v2, %v2494_v2  ;;  %v1382_v2 = vmul.f32 %v2189_v54, %v2189_v54  ;;  %v1401_v54 = vmul.f32 %v2582_v24, %v2582_v24  ;;  %v1396_v24 = vmul.f32 %v2326_v5, %v2326_v5 }
 0x12e   : > { %1416 = vmatpush.msra.mxu3 %v1362_v7  ;;  %1316 = vmatmul.f32.vlgmr.msrb.gmra.mxu1 %v1882_v40 }
 0x12f   : > { %1422 = vmatpush.msra.mxu1 %v1392_v0 }
 0x130   : > { %1417 = vmatpush.msra.mxu3 %v1361_v3 }
 0x131   : > { %1423 = vmatpush.msra.mxu1 %v1391_v8  ;;  %1418 = vmatmul.f32.vlgmr.msra.gmra.mxu3 %v1882_v40 }
 0x133   : > { %1424 = vmatpush.msra.mxu1 %v1390_v33 }
 0x135   : > { %1425 = vmatpush.msra.mxu1 %v1389_v31 }
 0x137   : > { %1426 = vmatpush.msra.mxu1 %v1388_v16 }
 0x139   : > { %1427 = vmatpush.msra.mxu1 %v1387_v14 }
 0x13b   : > { %1428 = vmatpush.msra.mxu1 %v1386_v62 }
 0x13d   : > { %1429 = vmatpush.msra.mxu1 %v1385_v15 }
 0x13f   : > { %1430 = vmatpush.msra.mxu1 %v1384_v34 }
 0x141   : > { %1431 = vmatpush.msra.mxu1 %v1383_v45 }
 0x143   : > { %1432 = vmatpush.msra.mxu1 %v1382_v2 }
 0x145   : > { %1433 = vmatpush.msra.mxu1 %v1381_v19 }
 0x147   : > { %1434 = vmatpush.msra.mxu1 %v1380_v42 }
 0x149   : > { %1435 = vmatpush.msra.mxu1 %v1379_v4 }
 0x14b   : > { %1436 = vmatpush.msra.mxu1 %v1378_v1 }
 0x14d   : > { %1437 = vmatpush.msra.mxu1 %v1377_v38 }
 0x14e   : > { %1438 = vmatmul.f32.vlgmr.msra.gmra.mxu1 %v1882_v40 }
 0x14f   : > { %1449 = vmatpush.msrb.mxu1 %v1401_v54 }
 0x151   : > { %1450 = vmatpush.msrb.mxu1 %v1400_v35 }
 0x153   : > { %1451 = vmatpush.msrb.mxu1 %v1399_v23 }
 0x155   : > { %1452 = vmatpush.msrb.mxu1 %v1398_v28 }
 0x157   : > { %1453 = vmatpush.msrb.mxu1 %v1397_v51 }
 0x159   : > { %1454 = vmatpush.msrb.mxu1 %v1396_v24 }
 0x15b   : > { %1455 = vmatpush.msrb.mxu1 %v1395_v20 }
 0x15d   : > { %1456 = vmatpush.msrb.mxu1 %v1394_v27 }
 0x15f   : > { %1457 = vmatpush.msrb.mxu1 %v1393_v12 }
 0x160   : > { %1688 = vmatmul.msk.f32.vlgmr.msrb.gmra.mxu1 %vm1296_vm2, %v1882_v40 }
 0x1ab   : > { %v1317_v58 = vpop.f32.mrf.mxu1  ;;  %v1337_v13 = vpop.f32.mrf.mxu2 }
 0x1ac   : > { %v1338_v57 = vadd.f32 %v1337_v13, %v1317_v58  ;;  %v1357_v39 = vpop.f32.mrf.mxu3 }
 0x1ae   : > { %v1358_v5 = vadd.f32 %v1357_v39, %v1338_v57 }
 0x1b0   : > { %1360 = vst [vmem:[%s211_s18] sm:$0x1] %v1358_v5 }
 0x1b4   : > { %v1419_v49 = vpop.f32.mrf.mxu3 }
 0x1cb   : > { %v1439_v56 = vpop.f32.mrf.mxu1 }
 0x1cc   : > { %v1440_v61 = vadd.f32 %v1439_v56, %v1419_v49 }
 0x1dd   : > { %v1459_v36 = vpop.f32.mrf.mxu1 }
 0x1de   : > { %v1460_v32 = vadd.f32 %v1459_v36, %v1440_v61 }
 0x1e0   : > { %1462 = vst [vmem:[%s214_s21] sm:$0x1] %v1460_v32 }
 0x1e1 PF: > { %s15_s15 = sadd.s32 1, %s1879_s15  }
 0x1e2   : > { %p12_p4 = scmp.ge.s32.totalorder %s15_s15, 4  }
 0x1e4   :  { %14 = sbr.rel (!%p12_p4) target bundleno = 1 (0x1), region = 82 }

// kernel: double_conv.4
= control target key start
LH: loop header
LB: loop body
LE: loop exit
PB: predicated region body
PF: predicated region fallthrough
CT: control target
= control target key end

     0   :  { %s4747_s21 = smov 0   ;;  %s7644_s0 = inlined_call_operand.vmem [shape: bf16[2,328,128], index: 0, kind: input, shape index: {}]   ;;  %s7645_s1 = inlined_call_operand.vmem [shape: f32[1,1,128], index: 1, kind: input, shape index: {}]   ;;  %s7646_s2 = inlined_call_operand.vmem [shape: f32[1,1,128], index: 2, kind: input, shape index: {}]   ;;  %s7647_s3 = inlined_call_operand.vmem [shape: bf16[9,128,128], index: 3, kind: input, shape index: {}]   ;;  %s7648_s4 = inlined_call_operand.vmem [shape: f32[2,328,128], index: 4, kind: output, shape index: {0}]   ;;  %s7649_s5 = inlined_call_operand.vmem [shape: f32[2,1,128], index: 5, kind: output, shape index: {1}]   ;;  %s7650_s6 = inlined_call_operand.vmem [shape: f32[2,1,128], index: 6, kind: output, shape index: {2}]  }
   0x1 LB: > { %s4064_s22 = sadd.s32 4294967295, %s4708_s21   ;;  %p4068_p0 = scmp.ge.s32.totalorder %s4708_s21, 1  ;;  %s4708_s21 = sphi %s4747_s21, %s17_s21  }
   0x2   : > { %p217_p1 = scmp.lt.s32.totalorder %s4708_s21, 3 }
   0x4   : > { %p218_p2 = pnand %p4068_p0, %p217_p1 }
   0x6   : > { %221 = sbr.rel (%p218_p2) target bundleno = 1195 (0x4ab), region = 36 }
   0xb   : > { %v4506_v0 = vld [vmem:[%s7647_s3 + $0x38] sm:$0xff]  ;;  %p253_p3 = scmp.lt.s32.totalorder %s4064_s22, 1  ;;  %v269_v1 = vlaneseq  ;;  %v4505_v2 = vld [vmem:[%s7647_s3 + $0x30] sm:$0xff]  ;;  %v4504_v12 = vld [vmem:[%s7647_s3 + $0x28] sm:$0xff]  ;;  %v7651_v62 = vmov 0.0  }
   0xc   : > { %1241 = vmatpush.bf16.msra.mxu0 %v4506_v0  ;;  %4662 = vmatpush.bf16.msra.mxu1 %v4506_v0  ;;  %v4800_v15 = vld [vmem:[%s7645_s1] ss:$0 sm:$0xff]  ;;  %v4502_v48 = vld [vmem:[%s7647_s3 + $0x18] sm:$0xff]  ;;  %v4501_v59 = vld [vmem:[%s7647_s3 + $0x10] sm:$0xff] }
   0xd   : > { %s8005_s22 = smov (!%p253_p3, %s4064_s22), 1  ;;  %v4763_v3 = vshrl.u32 %v269_v1, 7  ;;  %4663 = vmatpush.bf16.msra.mxu2 %v4506_v0  ;;  %4664 = vmatpush.bf16.msra.mxu3 %v4506_v0  ;;  %v4813_v28 = vld [vmem:[%s7646_s2] ss:$0 sm:$0xff] }
   0xe   : > { %s4686_s27 = smul.u32 164, %s8005_s22  ;;  %v4503_v33 = vld [vmem:[%s7647_s3 + $0x20] sm:$0xff]  ;;  %s265_s10 = scalar_lea.vmem %s7649_s5, %s8005_s22 }
   0xf   : > { %v4767_v4 = vadd.s32 8, %v4763_v3  ;;  %v311_v5 = vcvt.s32.f32 %v4763_v3  ;;  %v4771_v6 = vadd.s32 112, %v4763_v3  ;;  %v4774_v7 = vadd.s32 120, %v4763_v3  ;;  %s268_s13 = scalar_lea.vmem %s7650_s6, %s8005_s22 }
  0x10   : > { %v4777_v8 = vadd.s32 192, %v4763_v3  ;;  %v4780_v9 = vadd.s32 200, %v4763_v3  ;;  %v4783_v10 = vadd.s32 240, %v4763_v3  ;;  %v4786_v11 = vadd.s32 248, %v4763_v3  ;;  %1242 = vmatpush.bf16.msra.mxu0 %v4505_v2  ;;  %4665 = vmatpush.bf16.msra.mxu1 %v4505_v2  ;;  %s4794_s8 = scalar_lea.vmem %s7644_s0, %s4686_s27  ;;  %s4687_s27 = smul.u32 328, %s8005_s22 }
  0x11   : > { %v312_v13 = vcvt.s32.f32 %v4767_v4  ;;  %v352_v14 = vadd.f32 0.5, %v311_v5  ;;  %v325_v16 = vcvt.s32.f32 %v4771_v6  ;;  %v326_v17 = vcvt.s32.f32 %v4774_v7  ;;  %4666 = vmatpush.bf16.msra.mxu2 %v4505_v2  ;;  %4667 = vmatpush.bf16.msra.mxu3 %v4505_v2  ;;  %v4564_v18 = vld [vmem:[%s4794_s8] sm:$0xff]   ;;  %v4649_v19 = vld [vmem:[%s4794_s8 + $0x38] sm:$0xff]  }
  0x12   : > { %v335_v20 = vcvt.s32.f32 %v4777_v8  ;;  %v336_v21 = vcvt.s32.f32 %v4780_v9  ;;  %v341_v22 = vcvt.s32.f32 %v4783_v10  ;;  %v342_v23 = vcvt.s32.f32 %v4786_v11  ;;  %v4654_v61 = vld [vmem:[%s4794_s8 + $0x60] sm:$0xff]   ;;  %s6763_s30 = scalar_lea.vmem %s7648_s4, %s4687_s27 }
  0x13   : > { %v353_v24 = vadd.f32 0.5, %v312_v13  ;;  %v393_v25 = vmul.f32 0.055555556, %v352_v14  ;;  %v4565_v26 = vunpack.c.l.bf16 %v4564_v18  ;;  %v4566_v27 = vunpack.c.h.bf16 %v4564_v18  ;;  %v4500_v14 = vld [vmem:[%s7647_s3 + $0x8] sm:$0xff] }
  0x14   : > { %v366_v29 = vadd.f32 0.5, %v325_v16  ;;  %v367_v30 = vadd.f32 0.5, %v326_v17  ;;  %v4593_v31 = vunpack.c.l.bf16 %v4649_v19  ;;  %v4594_v32 = vunpack.c.h.bf16 %v4649_v19  ;;  %1243 = vmatpush.bf16.msra.mxu0 %v4504_v12  ;;  %4668 = vmatpush.bf16.msra.mxu1 %v4504_v12 }
  0x15   : > { %v394_v34 = vmul.f32 0.055555556, %v353_v24  ;;  %v434_v35 = vfloor.f32 %v393_v25  ;;  %v971_v36 = vmul.f32 %v4800_v15, %v4565_v26  ;;  %v972_v37 = vmul.f32 %v4800_v15, %v4566_v27  ;;  %4669 = vmatpush.bf16.msra.mxu2 %v4504_v12  ;;  %4670 = vmatpush.bf16.msra.mxu3 %v4504_v12 }
  0x16   : > { %v407_v38 = vmul.f32 0.055555556, %v366_v29  ;;  %v408_v39 = vmul.f32 0.055555556, %v367_v30  ;;  %v985_v40 = vmul.f32 %v4800_v15, %v4593_v31  ;;  %v986_v41 = vmul.f32 %v4800_v15, %v4594_v32 }
  0x17   : > { %v435_v42 = vfloor.f32 %v394_v34  ;;  %v475_v43 = vmul.f32 18.0, %v434_v35  ;;  %vm557_vm0 = vcmp.ge.f32.partialorder %v434_v35, 1.0  ;;  %vm598_vm1 = vcmp.le.f32.partialorder %v434_v35, 16.0 }
  0x18   : > { %v1016_v44 = vadd.f32 %v4813_v28, %v971_v36  ;;  %v1017_v45 = vadd.f32 %v4813_v28, %v972_v37  ;;  %v448_v46 = vfloor.f32 %v407_v38  ;;  %v449_v47 = vfloor.f32 %v408_v39  ;;  %1244 = vmatpush.bf16.msra.mxu0 %v4503_v33  ;;  %4671 = vmatpush.bf16.msra.mxu1 %v4503_v33  ;;  %vm639_vm4 = vmand %vm557_vm0, %vm598_vm1  ;;  %v4499_v37 = vld [vmem:[%s7647_s3] sm:$0xff] }
  0x19   : > { %v476_v49 = vmul.f32 18.0, %v435_v42  ;;  %v516_v50 = vsub.f32 %v311_v5, %v475_v43  ;;  %vm558_vm2 = vcmp.ge.f32.partialorder %v435_v42, 1.0  ;;  %vm599_vm3 = vcmp.le.f32.partialorder %v435_v42, 16.0  ;;  %4672 = vmatpush.bf16.msra.mxu2 %v4503_v33  ;;  %4673 = vmatpush.bf16.msra.mxu3 %v4503_v33 }
  0x1a   : > { %v1057_v51 = vmax.f32 %v1016_v44, 0.0  ;;  %v1058_v52 = vmax.f32 %v1017_v45, 0.0  ;;  %v489_v53 = vmul.f32 18.0, %v448_v46  ;;  %v490_v54 = vmul.f32 18.0, %v449_v47  ;;  %vm4827_vm5 = vmand %vm558_vm2, %vm599_vm3 }
  0x1b   : > { %v517_v55 = vsub.f32 %v312_v13, %v476_v49  ;;  %vm680_vm6 = vcmp.ge.f32.partialorder %v516_v50, 1.0  ;;  %vm762_vm7 = vcmp.le.f32.partialorder %v516_v50, 16.0  ;;  %vm571_vm8 = vcmp.ge.f32.partialorder %v448_v46, 1.0  ;;  %v4857_v13 = vld [vmem:[%s4794_s8 + $0x78] sm:$0xff]  }
  0x1c   : > { %vm721_vm9 = vmand %vm639_vm4, %vm680_vm6  ;;  %v530_v57 = vsub.f32 %v325_v16, %v489_v53  ;;  %v531_v58 = vsub.f32 %v326_v17, %v490_v54  ;;  %vm572_vm10 = vcmp.ge.f32.partialorder %v449_v47, 1.0  ;;  %vm612_vm11 = vcmp.le.f32.partialorder %v448_v46, 16.0  ;;  %1245 = vmatpush.bf16.msra.mxu0 %v4502_v48  ;;  %4674 = vmatpush.bf16.msra.mxu1 %v4502_v48 }
  0x1d   : > { %vm681_vm12 = vcmp.ge.f32.partialorder %v517_v55, 1.0  ;;  %vm763_vm13 = vcmp.le.f32.partialorder %v517_v55, 16.0  ;;  %vm803_vm14 = vmand %vm721_vm9, %vm762_vm7  ;;  %vm613_vm15 = vcmp.le.f32.partialorder %v449_v47, 16.0  ;;  %v1030_v60 = vadd.f32 %v4813_v28, %v985_v40  ;;  %4675 = vmatpush.bf16.msra.mxu2 %v4502_v48  ;;  %4676 = vmatpush.bf16.msra.mxu3 %v4502_v48 }
  0x1e   : > { %vm722_vm0 = vmand %vm4827_vm5, %vm681_vm12  ;;  %v4839_v63 = vsel %vm803_vm14, 1.0, %v7651_v62  ;;  %vm694_vm1 = vcmp.ge.f32.partialorder %v530_v57, 1.0  ;;  %vm695_vm2 = vcmp.ge.f32.partialorder %v531_v58, 1.0  ;;  %vm776_vm3 = vcmp.le.f32.partialorder %v530_v57, 16.0 }
  0x1f   : > { %7737 = vst [vmem:[#allocation2_spill] sm:$0xff] %v4839_v63  ;;  %vm804_vm4 = vmand %vm722_vm0, %vm763_vm13  ;;  %v1098_v0 = vmul.f32 %v1057_v51, %v4839_v63  ;;  %vm777_vm6 = vcmp.le.f32.partialorder %v531_v58, 16.0  ;;  %v1031_v1 = vadd.f32 %v4813_v28, %v986_v41  ;;  %v1071_v2 = vmax.f32 %v1030_v60, 0.0  ;;  %v4643_v60 = vld [vmem:[%s4794_s8 + $0x8] sm:$0xff]  }
  0x20   : > { %v4844_v4 = vsel %vm804_vm4, 1.0, %v7651_v62  ;;  %vm4848_vm5 = vmand %vm571_vm8, %vm612_vm11  ;;  %v376_v6 = vadd.f32 0.5, %v335_v20  ;;  %v377_v7 = vadd.f32 0.5, %v336_v21  ;;  %v4613_v12 = vunpack.c.l.bf16 %v4654_v61  ;;  %1246 = vmatpush.bf16.msra.mxu0 %v4501_v59  ;;  %4677 = vmatpush.bf16.msra.mxu1 %v4501_v59 }
  0x21   : > { %7738 = vst [vmem:[#allocation3_spill] sm:$0xff] %v4844_v4  ;;  %v1099_v16 = vmul.f32 %v1058_v52, %v4844_v4  ;;  %vm654_vm7 = vmand %vm572_vm10, %vm613_vm15  ;;  %v1072_v17 = vmax.f32 %v1031_v1, 0.0  ;;  %v4614_v18 = vunpack.c.h.bf16 %v4654_v61  ;;  %v382_v19 = vadd.f32 0.5, %v341_v22  ;;  %4678 = vmatpush.bf16.msra.mxu2 %v4501_v59  ;;  %4679 = vmatpush.bf16.msra.mxu3 %v4501_v59  ;;  %v4650_v61 = vld [vmem:[%s4794_s8 + $0x40] sm:$0xff]  }
  0x22   : > { %vm735_vm8 = vmand %vm4848_vm5, %vm694_vm1  ;;  %v417_v24 = vmul.f32 0.055555556, %v376_v6  ;;  %v418_v25 = vmul.f32 0.055555556, %v377_v7  ;;  %v995_v26 = vmul.f32 %v4800_v15, %v4613_v12  ;;  %v383_v27 = vadd.f32 0.5, %v342_v23 }
  0x23   : > { %v4873_v29 = vpack.c.bf16 %v1099_v16, %v1098_v0  ;;  %vm736_vm9 = vmand %vm654_vm7, %vm695_vm2  ;;  %v996_v30 = vmul.f32 %v4800_v15, %v4614_v18  ;;  %v423_v31 = vmul.f32 0.055555556, %v382_v19  ;;  %v4625_v32 = vunpack.c.l.bf16 %v4857_v13 }
  0x24   : > { %vm817_vm10 = vmand %vm735_vm8, %vm776_vm3  ;;  %v458_v33 = vfloor.f32 %v417_v24  ;;  %v459_v34 = vfloor.f32 %v418_v25  ;;  %v4880_v35 = vadd.f32 %v4813_v28, %v995_v26  ;;  %v424_v36 = vmul.f32 0.055555556, %v383_v27  ;;  %1247 = vmatpush.bf16.msra.mxu0 %v4500_v14  ;;  %4680 = vmatpush.bf16.msra.mxu1 %v4500_v14 }
  0x25   : > { %vm818_vm11 = vmand %vm736_vm9, %vm777_vm6  ;;  %v4887_v38 = vsel %vm817_vm10, 1.0, %v7651_v62  ;;  %v1041_v39 = vadd.f32 %v4813_v28, %v996_v30  ;;  %v464_v40 = vfloor.f32 %v423_v31  ;;  %v4626_v41 = vunpack.c.h.bf16 %v4857_v13  ;;  %4681 = vmatpush.bf16.msra.mxu2 %v4500_v14  ;;  %4682 = vmatpush.bf16.msra.mxu3 %v4500_v14 }
  0x26   : > { %7741 = vst [vmem:[#allocation4_spill] sm:$0xff] %v4887_v38  ;;  %v4892_v42 = vsel %vm818_vm11, 1.0, %v7651_v62  ;;  %v1112_v43 = vmul.f32 %v1071_v2, %v4887_v38  ;;  %v499_v44 = vmul.f32 18.0, %v458_v33  ;;  %v500_v45 = vmul.f32 18.0, %v459_v34 }
  0x27   : > { %7742 = vst [vmem:[#allocation5_spill] sm:$0xff] %v4892_v42  ;;  %v1113_v46 = vmul.f32 %v1072_v17, %v4892_v42  ;;  %vm581_vm12 = vcmp.ge.f32.partialorder %v458_v33, 1.0  ;;  %vm582_vm13 = vcmp.ge.f32.partialorder %v459_v34, 1.0  ;;  %vm622_vm14 = vcmp.le.f32.partialorder %v458_v33, 16.0 }
  0x28   : > { %v540_v47 = vsub.f32 %v335_v20, %v499_v44  ;;  %v541_v48 = vsub.f32 %v336_v21, %v500_v45  ;;  %vm623_vm15 = vcmp.le.f32.partialorder %v459_v34, 16.0  ;;  %vm4900_vm0 = vmand %vm581_vm12, %vm622_vm14  ;;  %v1081_v50 = vmax.f32 %v4880_v35, 0.0  ;;  %1248 = vmatpush.bf16.msra.mxu0 %v4499_v37  ;;  %4683 = vmatpush.bf16.msra.mxu1 %v4499_v37 }
  0x29   : > { %v4905_v51 = vpack.c.bf16 %v1113_v46, %v1112_v43  ;;  %vm4907_vm1 = vmand %vm582_vm13, %vm623_vm15  ;;  %v1082_v8 = vmax.f32 %v1041_v39, 0.0  ;;  %v465_v20 = vfloor.f32 %v424_v36  ;;  %v505_v53 = vmul.f32 18.0, %v464_v40  ;;  %4684 = vmatpush.bf16.msra.mxu2 %v4499_v37  ;;  %4685 = vmatpush.bf16.msra.mxu3 %v4499_v37 }
  0x2a   : > { %vm704_vm2 = vcmp.ge.f32.partialorder %v540_v47, 1.0  ;;  %vm705_vm3 = vcmp.ge.f32.partialorder %v541_v48, 1.0  ;;  %vm786_vm4 = vcmp.le.f32.partialorder %v540_v47, 16.0  ;;  %vm787_vm6 = vcmp.le.f32.partialorder %v541_v48, 16.0 }
  0x2b   : > { %7745 = vst [vmem:[#allocation6_spill] sm:$0xff] %v4905_v51  ;;  %vm745_vm5 = vmand %vm4900_vm0, %vm704_vm2  ;;  %v506_v9 = vmul.f32 18.0, %v465_v20  ;;  %v546_v21 = vsub.f32 %v341_v22, %v505_v53  ;;  %vm587_vm7 = vcmp.ge.f32.partialorder %v464_v40, 1.0  ;;  %vm588_vm8 = vcmp.ge.f32.partialorder %v465_v20, 1.0  ;;  %1249 = vmatmul.bf16.vlgmr.msra.gmra.mxu0 %v4873_v29  ;;  %1284 = vmatmul.bf16.vlgmr.msra.gmra.mxu1 %v4905_v51 }
  0x2c   : > { %vm746_vm9 = vmand %vm4907_vm1, %vm705_vm3  ;;  %vm628_vm10 = vcmp.le.f32.partialorder %v464_v40, 16.0  ;;  %vm629_vm11 = vcmp.le.f32.partialorder %v465_v20, 16.0  ;;  %v1001_v54 = vmul.f32 %v4800_v15, %v4625_v32  ;;  %v1002_v55 = vmul.f32 %v4800_v15, %v4626_v41 }
  0x2d   : > { %vm827_vm12 = vmand %vm745_vm5, %vm786_vm4  ;;  %v547_v10 = vsub.f32 %v342_v23, %v506_v9  ;;  %vm710_vm13 = vcmp.ge.f32.partialorder %v546_v21, 1.0  ;;  %vm792_vm14 = vcmp.le.f32.partialorder %v546_v21, 16.0  ;;  %v272_v22 = vadd.s32 16, %v4763_v3 }
  0x2e   : > { %vm828_vm15 = vmand %vm746_vm9, %vm787_vm6  ;;  %v4926_v56 = vsel %vm827_vm12, 1.0, %v7651_v62  ;;  %v1046_v57 = vadd.f32 %v4813_v28, %v1001_v54  ;;  %v1047_v58 = vadd.f32 %v4813_v28, %v1002_v55  ;;  %v273_v59 = vadd.s32 24, %v4763_v3 }
  0x2f   : > { %7748 = vst [vmem:[#allocation7_spill] sm:$0xff] %v4926_v56  ;;  %v4933_v11 = vsel %vm828_vm15, 1.0, %v7651_v62  ;;  %v1122_v23 = vmul.f32 %v1081_v50, %v4926_v56  ;;  %vm669_vm0 = vmand %vm587_vm7, %vm628_vm10  ;;  %vm711_vm1 = vcmp.ge.f32.partialorder %v547_v10, 1.0  ;;  %vm793_vm2 = vcmp.le.f32.partialorder %v547_v10, 16.0 }
  0x30   : > { %7749 = vst [vmem:[#allocation8_spill] sm:$0xff] %v4933_v11  ;;  %v1123_v0 = vmul.f32 %v1082_v8, %v4933_v11  ;;  %vm670_vm3 = vmand %vm588_vm8, %vm629_vm11  ;;  %v1087_v1 = vmax.f32 %v1046_v57, 0.0  ;;  %v1088_v2 = vmax.f32 %v1047_v58, 0.0  ;;  %v313_v5 = vcvt.s32.f32 %v272_v22 }
  0x31   : > { %vm751_vm4 = vmand %vm669_vm0, %vm710_vm13  ;;  %v314_v6 = vcvt.s32.f32 %v273_v59  ;;  %v4569_v7 = vunpack.c.l.bf16 %v4643_v60  ;;  %v4570_v12 = vunpack.c.h.bf16 %v4643_v60  ;;  %v4944_v13 = vadd.s32 128, %v4763_v3  ;;  %v4514_v59 = vld [vmem:[%s7647_s3 + $0x78] sm:$0xff] }
  0x32   : > { %v4946_v14 = vpack.c.bf16 %v1123_v0, %v1122_v23  ;;  %vm752_vm6 = vmand %vm670_vm3, %vm711_vm1  ;;  %v354_v16 = vadd.f32 0.5, %v313_v5  ;;  %v4949_v17 = vadd.s32 136, %v4763_v3  ;;  %v4597_v18 = vunpack.c.l.bf16 %v4650_v61  ;;  %1663 = vmatpush.bf16.msrb.mxu2 %v4514_v59 }
  0x33   : > { %vm833_vm5 = vmand %vm751_vm4, %vm792_vm14  ;;  %v355_v19 = vadd.f32 0.5, %v314_v6  ;;  %v973_v24 = vmul.f32 %v4800_v15, %v4569_v7  ;;  %v974_v25 = vmul.f32 %v4800_v15, %v4570_v12  ;;  %v327_v26 = vcvt.s32.f32 %v4944_v13  ;;  %v5011_v13 = vld [vmem:[%s4794_s8 + $0x80] sm:$0xff]  }
  0x34   : > { %1309 = vmatmul.bf16.vlgmr.msra.gmra.mxu2 %v4946_v14  ;;  %vm834_vm7 = vmand %vm752_vm6, %vm793_vm2  ;;  %v4958_v27 = vsel %vm833_vm5, 1.0, %v7651_v62  ;;  %v395_v30 = vmul.f32 0.055555556, %v354_v16  ;;  %v328_v31 = vcvt.s32.f32 %v4949_v17  ;;  %v4598_v32 = vunpack.c.h.bf16 %v4650_v61  ;;  %v4655_v61 = vld [vmem:[%s4794_s8 + $0x68] sm:$0xff]  }
  0x35   : > { %7750 = vst [vmem:[#allocation9_spill] sm:$0xff] %v4958_v27  ;;  %v4962_v33 = vsel %vm834_vm7, 1.0, %v7651_v62  ;;  %v1128_v34 = vmul.f32 %v1087_v1, %v4958_v27  ;;  %v396_v35 = vmul.f32 0.055555556, %v355_v19  ;;  %v1018_v36 = vadd.f32 %v4813_v28, %v973_v24 }
  0x36   : > { %7751 = vst [vmem:[#allocation10_spill] sm:$0xff] %v4962_v33  ;;  %v1129_v37 = vmul.f32 %v1088_v2, %v4962_v33  ;;  %v436_v39 = vfloor.f32 %v395_v30  ;;  %v1019_v40 = vadd.f32 %v4813_v28, %v974_v25  ;;  %v368_v41 = vadd.f32 0.5, %v327_v26  ;;  %v4513_v2 = vld [vmem:[%s7647_s3 + $0x70] sm:$0xff] }
  0x37   : > { %v437_v43 = vfloor.f32 %v396_v35  ;;  %v1059_v44 = vmax.f32 %v1018_v36, 0.0  ;;  %v369_v45 = vadd.f32 0.5, %v328_v31  ;;  %v987_v46 = vmul.f32 %v4800_v15, %v4597_v18  ;;  %1664 = vmatpush.bf16.msrb.mxu2 %v4513_v2 }
  0x38   : > { %v4971_v47 = vpack.c.bf16 %v1129_v37, %v1128_v34  ;;  %v477_v48 = vmul.f32 18.0, %v436_v39  ;;  %vm559_vm8 = vcmp.ge.f32.partialorder %v436_v39, 1.0  ;;  %vm600_vm9 = vcmp.le.f32.partialorder %v436_v39, 16.0 }
  0x39   : > { %v478_v49 = vmul.f32 18.0, %v437_v43  ;;  %vm560_vm10 = vcmp.ge.f32.partialorder %v437_v43, 1.0  ;;  %vm601_vm11 = vcmp.le.f32.partialorder %v437_v43, 16.0  ;;  %v1060_v50 = vmax.f32 %v1019_v40, 0.0  ;;  %vm641_vm12 = vmand %vm559_vm8, %vm600_vm9 }
  0x3a   : > { %1324 = vmatmul.bf16.vlgmr.msra.gmra.mxu3 %v4971_v47  ;;  %v518_v52 = vsub.f32 %v313_v5, %v477_v48  ;;  %v409_v8 = vmul.f32 0.055555556, %v368_v41  ;;  %v410_v20 = vmul.f32 0.055555556, %v369_v45  ;;  %v988_v53 = vmul.f32 %v4800_v15, %v4598_v32  ;;  %vm642_vm13 = vmand %vm560_vm10, %vm601_vm11 }
  0x3b   : > { %v519_v9 = vsub.f32 %v314_v6, %v478_v49  ;;  %v4976_v21 = vadd.f32 %v4813_v28, %v987_v46  ;;  %v4979_v54 = vadd.s32 208, %v4763_v3  ;;  %v4982_v55 = vadd.s32 216, %v4763_v3 }
  0x3c   : > { %vm682_vm14 = vcmp.ge.f32.partialorder %v518_v52, 1.0  ;;  %vm764_vm15 = vcmp.le.f32.partialorder %v518_v52, 16.0  ;;  %v450_v10 = vfloor.f32 %v409_v8  ;;  %v451_v22 = vfloor.f32 %v410_v20  ;;  %v4511_v8 = vld [vmem:[%s7647_s3 + $0x60] sm:$0xff] }
  0x3d   : > { %vm683_vm0 = vcmp.ge.f32.partialorder %v519_v9, 1.0  ;;  %vm723_vm1 = vmand %vm641_vm12, %vm682_vm14  ;;  %vm765_vm2 = vcmp.le.f32.partialorder %v519_v9, 16.0  ;;  %v1033_v57 = vadd.f32 %v4813_v28, %v988_v53  ;;  %v1073_v58 = vmax.f32 %v4976_v21, 0.0 }
  0x3e   : > { %vm724_vm3 = vmand %vm642_vm13, %vm683_vm0  ;;  %v491_v60 = vmul.f32 18.0, %v450_v10  ;;  %v492_v23 = vmul.f32 18.0, %v451_v22  ;;  %vm573_vm4 = vcmp.ge.f32.partialorder %v450_v10, 1.0  ;;  %vm574_vm6 = vcmp.ge.f32.partialorder %v451_v22, 1.0 }
  0x3f   : > { %vm805_vm5 = vmand %vm723_vm1, %vm764_vm15  ;;  %vm614_vm7 = vcmp.le.f32.partialorder %v450_v10, 16.0  ;;  %vm615_vm8 = vcmp.le.f32.partialorder %v451_v22, 16.0  ;;  %v1074_v0 = vmax.f32 %v1033_v57, 0.0  ;;  %v337_v1 = vcvt.s32.f32 %v4979_v54 }
  0x40   : > { %vm806_vm9 = vmand %vm724_vm3, %vm765_vm2  ;;  %v4997_v5 = vsel %vm805_vm5, 1.0, %v7651_v62  ;;  %v532_v6 = vsub.f32 %v327_v26, %v491_v60  ;;  %v533_v7 = vsub.f32 %v328_v31, %v492_v23  ;;  %v338_v12 = vcvt.s32.f32 %v4982_v55  ;;  %v4512_v31 = vld [vmem:[%s7647_s3 + $0x68] sm:$0xff] }
  0x41   : > { %7752 = vst [vmem:[#allocation11_spill] sm:$0xff] %v4997_v5  ;;  %v5003_v16 = vsel %vm806_vm9, 1.0, %v7651_v62  ;;  %v1100_v17 = vmul.f32 %v1059_v44, %v4997_v5  ;;  %vm655_vm10 = vmand %vm573_vm4, %vm614_vm7  ;;  %v378_v18 = vadd.f32 0.5, %v337_v1  ;;  %v4617_v19 = vunpack.c.l.bf16 %v4655_v61  ;;  %1665 = vmatpush.bf16.msrb.mxu2 %v4512_v31 }
  0x42   : > { %7753 = vst [vmem:[#allocation12_spill] sm:$0xff] %v5003_v16  ;;  %v1101_v24 = vmul.f32 %v1060_v50, %v5003_v16  ;;  %vm656_vm11 = vmand %vm574_vm6, %vm615_vm8  ;;  %vm696_vm12 = vcmp.ge.f32.partialorder %v532_v6, 1.0  ;;  %vm697_vm13 = vcmp.ge.f32.partialorder %v533_v7, 1.0  ;;  %vm778_vm14 = vcmp.le.f32.partialorder %v532_v6, 16.0 }
  0x43   : > { %vm737_vm15 = vmand %vm655_vm10, %vm696_vm12  ;;  %vm779_vm0 = vcmp.le.f32.partialorder %v533_v7, 16.0  ;;  %v379_v25 = vadd.f32 0.5, %v338_v12  ;;  %v419_v26 = vmul.f32 0.055555556, %v378_v18  ;;  %v4618_v30 = vunpack.c.h.bf16 %v4655_v61 }
  0x44   : > { %v5016_v32 = vpack.c.bf16 %v1101_v24, %v1100_v17  ;;  %vm738_vm1 = vmand %vm656_vm11, %vm697_vm13  ;;  %v997_v34 = vmul.f32 %v4800_v15, %v4617_v19  ;;  %v5020_v35 = vadd.s32 256, %v4763_v3  ;;  %v5023_v36 = vadd.s32 264, %v4763_v3 }
  0x45   : > { %vm819_vm2 = vmand %vm737_vm15, %vm778_vm14  ;;  %v420_v37 = vmul.f32 0.055555556, %v379_v25  ;;  %v460_v39 = vfloor.f32 %v419_v26  ;;  %v998_v40 = vmul.f32 %v4800_v15, %v4618_v30  ;;  %v4629_v41 = vunpack.c.l.bf16 %v5011_v13  ;;  %1666 = vmatpush.bf16.msrb.mxu2 %v4511_v8  ;;  %v4644_v30 = vld [vmem:[%s4794_s8 + $0x10] sm:$0xff]  }
  0x46   : > { %1254 = vmatmul.bf16.gmra.mxu0 %v5016_v32  ;;  %vm820_vm3 = vmand %vm738_vm1, %vm779_vm0  ;;  %v5030_v43 = vsel %vm819_vm2, 1.0, %v7651_v62  ;;  %v1042_v44 = vadd.f32 %v4813_v28, %v997_v34  ;;  %v343_v45 = vcvt.s32.f32 %v5020_v35  ;;  %v344_v46 = vcvt.s32.f32 %v5023_v36 }
  0x47   : > { %7754 = vst [vmem:[#allocation13_spill] sm:$0xff] %v5030_v43  ;;  %v5036_v48 = vsel %vm820_vm3, 1.0, %v7651_v62  ;;  %v1114_v49 = vmul.f32 %v1073_v58, %v5030_v43  ;;  %v461_v50 = vfloor.f32 %v420_v37  ;;  %v501_v52 = vmul.f32 18.0, %v460_v39 }
  0x48   : > { %7755 = vst [vmem:[#allocation14_spill] sm:$0xff] %v5036_v48  ;;  %v1115_v20 = vmul.f32 %v1074_v0, %v5036_v48  ;;  %vm583_vm4 = vcmp.ge.f32.partialorder %v460_v39, 1.0  ;;  %vm624_vm6 = vcmp.le.f32.partialorder %v460_v39, 16.0  ;;  %v1043_v53 = vadd.f32 %v4813_v28, %v998_v40 }
  0x49   : > { %v502_v9 = vmul.f32 18.0, %v461_v50  ;;  %v542_v21 = vsub.f32 %v337_v1, %v501_v52  ;;  %vm584_vm5 = vcmp.ge.f32.partialorder %v461_v50, 1.0  ;;  %vm625_vm7 = vcmp.le.f32.partialorder %v461_v50, 16.0  ;;  %vm665_vm8 = vmand %vm583_vm4, %vm624_vm6 }
  0x4a   : > { %v5044_v54 = vpack.c.bf16 %v1115_v20, %v1114_v49  ;;  %v1083_v55 = vmax.f32 %v1042_v44, 0.0  ;;  %v1084_v10 = vmax.f32 %v1043_v53, 0.0  ;;  %v384_v22 = vadd.f32 0.5, %v343_v45  ;;  %vm5046_vm9 = vmand %vm584_vm5, %vm625_vm7  ;;  %v4651_v20 = vld [vmem:[%s4794_s8 + $0x48] sm:$0xff]  }
  0x4b   : > { %v543_v57 = vsub.f32 %v338_v12, %v502_v9  ;;  %vm706_vm10 = vcmp.ge.f32.partialorder %v542_v21, 1.0  ;;  %vm788_vm11 = vcmp.le.f32.partialorder %v542_v21, 16.0  ;;  %v385_v59 = vadd.f32 0.5, %v344_v46 }
  0x4c   : > { %7756 = vst [vmem:[#allocation15_spill] sm:$0xff] %v5044_v54  ;;  %1289 = vmatmul.bf16.gmra.mxu1 %v5044_v54  ;;  %vm747_vm12 = vmand %vm665_vm8, %vm706_vm10  ;;  %v425_v60 = vmul.f32 0.055555556, %v384_v22  ;;  %v4630_v23 = vunpack.c.h.bf16 %v5011_v13  ;;  %v1003_v61 = vmul.f32 %v4800_v15, %v4629_v41  ;;  %v5054_v0 = vadd.s32 32, %v4763_v3 }
  0x4d   : > { %vm707_vm13 = vcmp.ge.f32.partialorder %v543_v57, 1.0  ;;  %vm789_vm14 = vcmp.le.f32.partialorder %v543_v57, 16.0  ;;  %vm829_vm15 = vmand %vm747_vm12, %vm788_vm11  ;;  %v426_v1 = vmul.f32 0.055555556, %v385_v59  ;;  %v5057_v2 = vadd.s32 40, %v4763_v3 }
  0x4e   : > { %vm748_vm0 = vmand %vm5046_vm9, %vm707_vm13  ;;  %v5062_v6 = vsel %vm829_vm15, 1.0, %v7651_v62  ;;  %v466_v7 = vfloor.f32 %v425_v60  ;;  %v1004_v12 = vmul.f32 %v4800_v15, %v4630_v23  ;;  %v1048_v17 = vadd.f32 %v4813_v28, %v1003_v61 }
  0x4f   : > { %7759 = vst [vmem:[#allocation16_spill] sm:$0xff] %v5062_v6  ;;  %vm830_vm1 = vmand %vm748_vm0, %vm789_vm14  ;;  %v1124_v18 = vmul.f32 %v1083_v55, %v5062_v6  ;;  %v467_v19 = vfloor.f32 %v426_v1  ;;  %v315_v24 = vcvt.s32.f32 %v5054_v0  ;;  %v316_v13 = vcvt.s32.f32 %v5057_v2  ;;  %v4529_v6 = vld [vmem:[%s7647_s3 + $0xf0] sm:$0xff] }
  0x50   : > { %v5070_v25 = vsel %vm830_vm1, 1.0, %v7651_v62  ;;  %v507_v26 = vmul.f32 18.0, %v466_v7  ;;  %vm589_vm2 = vcmp.ge.f32.partialorder %v466_v7, 1.0  ;;  %vm630_vm3 = vcmp.le.f32.partialorder %v466_v7, 16.0 }
  0x51   : > { %7760 = vst [vmem:[#allocation17_spill] sm:$0xff] %v5070_v25  ;;  %v1125_v31 = vmul.f32 %v1084_v10, %v5070_v25  ;;  %v508_v34 = vmul.f32 18.0, %v467_v19  ;;  %vm590_vm4 = vcmp.ge.f32.partialorder %v467_v19, 1.0  ;;  %vm631_vm6 = vcmp.le.f32.partialorder %v467_v19, 16.0  ;;  %vm5074_vm5 = vmand %vm589_vm2, %vm630_vm3 }
  0x52   : > { %v548_v35 = vsub.f32 %v343_v45, %v507_v26  ;;  %v1049_v37 = vadd.f32 %v4813_v28, %v1004_v12  ;;  %v1089_v39 = vmax.f32 %v1048_v17, 0.0  ;;  %v356_v40 = vadd.f32 0.5, %v315_v24  ;;  %vm672_vm7 = vmand %vm590_vm4, %vm631_vm6 }
  0x53   : > { %v5079_v41 = vpack.c.bf16 %v1125_v31, %v1124_v18  ;;  %v549_v44 = vsub.f32 %v344_v46, %v508_v34  ;;  %v357_v49 = vadd.f32 0.5, %v316_v13  ;;  %v4573_v50 = vunpack.c.l.bf16 %v4644_v30  ;;  %v4656_v31 = vld [vmem:[%s4794_s8 + $0x70] sm:$0xff]  }
  0x54   : > { %vm712_vm8 = vcmp.ge.f32.partialorder %v548_v35, 1.0  ;;  %vm794_vm9 = vcmp.le.f32.partialorder %v548_v35, 16.0  ;;  %v1090_v52 = vmax.f32 %v1049_v37, 0.0  ;;  %v397_v8 = vmul.f32 0.055555556, %v356_v40 }
  0x55   : > { %1314 = vmatmul.bf16.gmra.mxu2 %v5079_v41  ;;  %vm713_vm10 = vcmp.ge.f32.partialorder %v549_v44, 1.0  ;;  %vm753_vm11 = vmand %vm5074_vm5, %vm712_vm8  ;;  %vm795_vm12 = vcmp.le.f32.partialorder %v549_v44, 16.0  ;;  %v398_v45 = vmul.f32 0.055555556, %v357_v49  ;;  %v4574_v53 = vunpack.c.h.bf16 %v4644_v30 }
  0x56   : > { %vm754_vm13 = vmand %vm672_vm7, %vm713_vm10  ;;  %v438_v9 = vfloor.f32 %v397_v8  ;;  %v975_v46 = vmul.f32 %v4800_v15, %v4573_v50  ;;  %v5087_v21 = vadd.s32 144, %v4763_v3  ;;  %v5090_v55 = vadd.s32 152, %v4763_v3 }
  0x57   : > { %vm835_vm14 = vmand %vm753_vm11, %vm794_vm9  ;;  %v439_v10 = vfloor.f32 %v398_v45  ;;  %v976_v22 = vmul.f32 %v4800_v15, %v4574_v53  ;;  %v4601_v57 = vunpack.c.l.bf16 %v4651_v20  ;;  %v4602_v58 = vunpack.c.h.bf16 %v4651_v20 }
  0x58   : > { %vm836_vm15 = vmand %vm754_vm13, %vm795_vm12  ;;  %v5095_v59 = vsel %vm835_vm14, 1.0, %v7651_v62  ;;  %v479_v60 = vmul.f32 18.0, %v438_v9  ;;  %vm561_vm0 = vcmp.ge.f32.partialorder %v438_v9, 1.0  ;;  %vm602_vm1 = vcmp.le.f32.partialorder %v438_v9, 16.0 }
  0x59   : > { %7763 = vst [vmem:[#allocation18_spill] sm:$0xff] %v5095_v59  ;;  %v5098_v23 = vsel %vm836_vm15, 1.0, %v7651_v62  ;;  %v1130_v61 = vmul.f32 %v1089_v39, %v5095_v59  ;;  %v480_v0 = vmul.f32 18.0, %v439_v10  ;;  %vm562_vm2 = vcmp.ge.f32.partialorder %v439_v10, 1.0  ;;  %vm643_vm4 = vmand %vm561_vm0, %vm602_vm1 }
  0x5a   : > { %7764 = vst [vmem:[#allocation19_spill] sm:$0xff] %v5098_v23  ;;  %v1131_v1 = vmul.f32 %v1090_v52, %v5098_v23  ;;  %v520_v2 = vsub.f32 %v315_v24, %v479_v60  ;;  %vm603_vm3 = vcmp.le.f32.partialorder %v439_v10, 16.0  ;;  %v1020_v7 = vadd.f32 %v4813_v28, %v975_v46 }
  0x5b   : > { %v521_v12 = vsub.f32 %v316_v13, %v480_v0  ;;  %vm5103_vm6 = vmand %vm562_vm2, %vm603_vm3  ;;  %v1021_v18 = vadd.f32 %v4813_v28, %v976_v22  ;;  %v329_v19 = vcvt.s32.f32 %v5087_v21  ;;  %v330_v26 = vcvt.s32.f32 %v5090_v55  ;;  %v4510_v55 = vld [vmem:[%s7647_s3 + $0x58] sm:$0xff]  ;;  %v4509_v0 = vld [vmem:[%s7647_s3 + $0x50] sm:$0xff] }
  0x5c   : > { %v5110_v30 = vpack.c.bf16 %v1131_v1, %v1130_v61  ;;  %vm684_vm5 = vcmp.ge.f32.partialorder %v520_v2, 1.0  ;;  %vm766_vm7 = vcmp.le.f32.partialorder %v520_v2, 16.0  ;;  %v1061_v24 = vmax.f32 %v1020_v7, 0.0  ;;  %1667 = vmatpush.bf16.msrb.mxu2 %v4510_v55 }
  0x5d   : > { %vm685_vm8 = vcmp.ge.f32.partialorder %v521_v12, 1.0  ;;  %vm725_vm9 = vmand %vm643_vm4, %vm684_vm5  ;;  %vm767_vm10 = vcmp.le.f32.partialorder %v521_v12, 16.0  ;;  %v1062_v13 = vmax.f32 %v1021_v18, 0.0  ;;  %v370_v34 = vadd.f32 0.5, %v329_v19 }
  0x5e   : > { %1329 = vmatmul.bf16.gmra.mxu3 %v5110_v30  ;;  %vm726_vm11 = vmand %vm5103_vm6, %vm685_vm8  ;;  %v371_v35 = vadd.f32 0.5, %v330_v26  ;;  %v989_v36 = vmul.f32 %v4800_v15, %v4601_v57  ;;  %v990_v37 = vmul.f32 %v4800_v15, %v4602_v58  ;;  %v5119_v39 = vadd.s32 224, %v4763_v3 }
  0x5f   : > { %vm807_vm12 = vmand %vm725_vm9, %vm766_vm7  ;;  %v411_v40 = vmul.f32 0.055555556, %v370_v34  ;;  %v5122_v44 = vadd.s32 232, %v4763_v3  ;;  %v4621_v49 = vunpack.c.l.bf16 %v4656_v31  ;;  %v4622_v50 = vunpack.c.h.bf16 %v4656_v31 }
  0x60   : > { %vm808_vm13 = vmand %vm726_vm11, %vm767_vm10  ;;  %v5125_v52 = vsel %vm807_vm12, 1.0, %v7651_v62  ;;  %v412_v8 = vmul.f32 0.055555556, %v371_v35  ;;  %v5128_v20 = vadd.f32 %v4813_v28, %v989_v36  ;;  %v5131_v45 = vadd.f32 %v4813_v28, %v990_v37  ;;  %v4659_v36 = vld [vmem:[%s4794_s8 + $0x88] sm:$0xff]   ;;  %1668 = vmatpush.bf16.msrb.mxu2 %v4509_v0  ;;  %v4507_v0 = vld [vmem:[%s7647_s3 + $0x40] sm:$0xff] }
  0x61   : > { %7767 = vst [vmem:[#allocation20_spill] sm:$0xff] %v5125_v52  ;;  %v5134_v53 = vsel %vm808_vm13, 1.0, %v7651_v62  ;;  %v1102_v9 = vmul.f32 %v1061_v24, %v5125_v52  ;;  %v452_v46 = vfloor.f32 %v411_v40  ;;  %v339_v21 = vcvt.s32.f32 %v5119_v39  ;;  %v4508_v37 = vld [vmem:[%s7647_s3 + $0x48] sm:$0xff] }
  0x62   : > { %7768 = vst [vmem:[#allocation21_spill] sm:$0xff] %v5134_v53  ;;  %v1103_v10 = vmul.f32 %v1062_v13, %v5134_v53  ;;  %v453_v22 = vfloor.f32 %v412_v8  ;;  %v1075_v57 = vmax.f32 %v5128_v20, 0.0  ;;  %v1076_v58 = vmax.f32 %v5131_v45, 0.0 }
  0x63   : > { %v493_v60 = vmul.f32 18.0, %v452_v46  ;;  %vm575_vm14 = vcmp.ge.f32.partialorder %v452_v46, 1.0  ;;  %vm616_vm15 = vcmp.le.f32.partialorder %v452_v46, 16.0  ;;  %v340_v61 = vcvt.s32.f32 %v5122_v44 }
  0x64   : > { %v5148_v1 = vpack.c.bf16 %v1103_v10, %v1102_v9  ;;  %v494_v2 = vmul.f32 18.0, %v453_v22  ;;  %vm576_vm0 = vcmp.ge.f32.partialorder %v453_v22, 1.0  ;;  %vm617_vm1 = vcmp.le.f32.partialorder %v453_v22, 16.0  ;;  %vm5150_vm2 = vmand %vm575_vm14, %vm616_vm15  ;;  %1669 = vmatpush.bf16.msrb.mxu2 %v4508_v37 }
  0x65   : > { %v534_v7 = vsub.f32 %v329_v19, %v493_v60  ;;  %v380_v17 = vadd.f32 0.5, %v339_v21  ;;  %v381_v18 = vadd.f32 0.5, %v340_v61  ;;  %v999_v24 = vmul.f32 %v4800_v15, %v4621_v49  ;;  %vm5156_vm3 = vmand %vm576_vm0, %vm617_vm1 }
  0x66   : > { %7769 = vst [vmem:[#allocation22_spill] sm:$0xff] %v5148_v1  ;;  %1259 = vmatmul.bf16.gmra.mxu0 %v5148_v1  ;;  %v535_v31 = vsub.f32 %v330_v26, %v494_v2  ;;  %v1000_v34 = vmul.f32 %v4800_v15, %v4622_v50  ;;  %v5162_v35 = vadd.s32 272, %v4763_v3  ;;  %v5165_v19 = vadd.s32 280, %v4763_v3 }
  0x67   : > { %vm698_vm4 = vcmp.ge.f32.partialorder %v534_v7, 1.0  ;;  %vm780_vm6 = vcmp.le.f32.partialorder %v534_v7, 16.0  ;;  %v421_v26 = vmul.f32 0.055555556, %v380_v17  ;;  %v422_v39 = vmul.f32 0.055555556, %v381_v18 }
  0x68   : > { %vm699_vm5 = vcmp.ge.f32.partialorder %v535_v31, 1.0  ;;  %vm739_vm7 = vmand %vm5150_vm2, %vm698_vm4  ;;  %vm781_vm8 = vcmp.le.f32.partialorder %v535_v31, 16.0  ;;  %v1044_v40 = vadd.f32 %v4813_v28, %v999_v24  ;;  %v5175_v44 = vadd.f32 %v4813_v28, %v1000_v34  ;;  %1670 = vmatpush.bf16.msrb.mxu2 %v4507_v0 }
  0x69   : > { %vm740_vm9 = vmand %vm5156_vm3, %vm699_vm5  ;;  %v462_v49 = vfloor.f32 %v421_v26  ;;  %v463_v50 = vfloor.f32 %v422_v39  ;;  %v345_v8 = vcvt.s32.f32 %v5162_v35  ;;  %v346_v20 = vcvt.s32.f32 %v5165_v19 }
  0x6a   : > { %vm821_vm10 = vmand %vm739_vm7, %vm780_vm6  ;;  %v1085_v45 = vmax.f32 %v1044_v40, 0.0  ;;  %v1086_v9 = vmax.f32 %v5175_v44, 0.0  ;;  %v4633_v46 = vunpack.c.l.bf16 %v4659_v36  ;;  %v4634_v55 = vunpack.c.h.bf16 %v4659_v36  ;;  %v4645_v36 = vld [vmem:[%s4794_s8 + $0x18] sm:$0xff]  }
  0x6b   : > { %vm822_vm11 = vmand %vm740_vm9, %vm781_vm8  ;;  %v5183_v10 = vsel %vm821_vm10, 1.0, %v7651_v62  ;;  %v503_v22 = vmul.f32 18.0, %v462_v49  ;;  %v504_v60 = vmul.f32 18.0, %v463_v50  ;;  %vm585_vm12 = vcmp.ge.f32.partialorder %v462_v49, 1.0 }
  0x6c   : > { %7774 = vst [vmem:[#allocation23_spill] sm:$0xff] %v5183_v10  ;;  %v5189_v2 = vsel %vm822_vm11, 1.0, %v7651_v62  ;;  %v1116_v7 = vmul.f32 %v1075_v57, %v5183_v10  ;;  %vm586_vm13 = vcmp.ge.f32.partialorder %v463_v50, 1.0  ;;  %vm626_vm14 = vcmp.le.f32.partialorder %v462_v49, 16.0 }
  0x6d   : > { %7775 = vst [vmem:[#allocation24_spill] sm:$0xff] %v5189_v2  ;;  %v1117_v12 = vmul.f32 %v1076_v58, %v5189_v2  ;;  %v544_v17 = vsub.f32 %v339_v21, %v503_v22  ;;  %v545_v18 = vsub.f32 %v340_v61, %v504_v60  ;;  %vm627_vm15 = vcmp.le.f32.partialorder %v463_v50, 16.0  ;;  %vm667_vm0 = vmand %vm585_vm12, %vm626_vm14 }
  0x6e   : > { %vm5193_vm1 = vmand %vm586_vm13, %vm627_vm15  ;;  %v386_v31 = vadd.f32 0.5, %v345_v8  ;;  %v387_v13 = vadd.f32 0.5, %v346_v20  ;;  %v1005_v57 = vmul.f32 %v4800_v15, %v4633_v46  ;;  %v1006_v34 = vmul.f32 %v4800_v15, %v4634_v55 }
  0x6f   : > { %v5204_v58 = vpack.c.bf16 %v1117_v12, %v1116_v7  ;;  %vm708_vm2 = vcmp.ge.f32.partialorder %v544_v17, 1.0  ;;  %vm709_vm3 = vcmp.ge.f32.partialorder %v545_v18, 1.0  ;;  %vm790_vm4 = vcmp.le.f32.partialorder %v544_v17, 16.0 }
  0x70   : > { %vm749_vm6 = vmand %vm667_vm0, %vm708_vm2  ;;  %vm791_vm5 = vcmp.le.f32.partialorder %v545_v18, 16.0  ;;  %v427_v21 = vmul.f32 0.055555556, %v386_v31  ;;  %v428_v61 = vmul.f32 0.055555556, %v387_v13  ;;  %v5207_v37 = vadd.f32 %v4813_v28, %v1005_v57 }
  0x71   : > { %1294 = vmatmul.bf16.gmra.mxu1 %v5204_v58  ;;  %vm750_vm7 = vmand %vm5193_vm1, %vm709_vm3  ;;  %v5213_v15 = vadd.f32 %v4813_v28, %v1006_v34  ;;  %v5216_v26 = vadd.s32 48, %v4763_v3  ;;  %v5219_v39 = vadd.s32 56, %v4763_v3  ;;  %v4577_v40 = vunpack.c.l.bf16 %v4645_v36 }
  0x72   : > { %vm831_vm8 = vmand %vm749_vm6, %vm790_vm4  ;;  %v468_v44 = vfloor.f32 %v427_v21  ;;  %v469_v49 = vfloor.f32 %v428_v61  ;;  %v1091_v50 = vmax.f32 %v5207_v37, 0.0  ;;  %v4578_v46 = vunpack.c.h.bf16 %v4645_v36  ;;  %v5256_v21 = vld [vmem:[%s7646_s2] ss:$0 sm:$0xff] }
  0x73   : > { %vm832_vm9 = vmand %vm750_vm7, %vm791_vm5  ;;  %v5224_v55 = vsel %vm831_vm8, 1.0, %v7651_v62  ;;  %v1092_v28 = vmax.f32 %v5213_v15, 0.0  ;;  %v317_v22 = vcvt.s32.f32 %v5216_v26  ;;  %v318_v60 = vcvt.s32.f32 %v5219_v39 }
  0x74   : > { %7778 = vst [vmem:[#allocation25_spill] sm:$0xff] %v5224_v55  ;;  %v5230_v0 = vsel %vm832_vm9, 1.0, %v7651_v62  ;;  %v1126_v7 = vmul.f32 %v1085_v45, %v5224_v55  ;;  %v509_v12 = vmul.f32 18.0, %v468_v44  ;;  %v510_v17 = vmul.f32 18.0, %v469_v49 }
  0x75   : > { %7779 = vst [vmem:[#allocation26_spill] sm:$0xff] %v5230_v0  ;;  %v1127_v18 = vmul.f32 %v1086_v9, %v5230_v0  ;;  %vm591_vm10 = vcmp.ge.f32.partialorder %v468_v44, 1.0  ;;  %vm592_vm11 = vcmp.ge.f32.partialorder %v469_v49, 1.0  ;;  %vm632_vm12 = vcmp.le.f32.partialorder %v468_v44, 16.0  ;;  %v5247_v9 = vld [vmem:[%s7645_s1] ss:$0 sm:$0xff] }
  0x76   : > { %v550_v24 = vsub.f32 %v345_v8, %v509_v12  ;;  %v551_v31 = vsub.f32 %v346_v20, %v510_v17  ;;  %vm633_vm13 = vcmp.le.f32.partialorder %v469_v49, 16.0  ;;  %vm673_vm14 = vmand %vm591_vm10, %vm632_vm12  ;;  %v358_v13 = vadd.f32 0.5, %v317_v22  ;;  %v4652_v8 = vld [vmem:[%s4794_s8 + $0x50] sm:$0xff]   ;;  %v4492_v0 = vld [vmem:[%s7647_s3 + $0x108] sm:$0xff] }
  0x77   : > { %v5238_v57 = vpack.c.bf16 %v1127_v18, %v1126_v7  ;;  %vm5240_vm15 = vmand %vm592_vm11, %vm633_vm13  ;;  %v359_v34 = vadd.f32 0.5, %v318_v60  ;;  %v977_v35 = vmul.f32 %v5247_v9, %v4577_v40  ;;  %v978_v19 = vmul.f32 %v5247_v9, %v4578_v46 }
  0x78   : > { %vm714_vm0 = vcmp.ge.f32.partialorder %v550_v24, 1.0  ;;  %vm715_vm1 = vcmp.ge.f32.partialorder %v551_v31, 1.0  ;;  %vm796_vm2 = vcmp.le.f32.partialorder %v550_v24, 16.0  ;;  %vm797_vm3 = vcmp.le.f32.partialorder %v551_v31, 16.0 }
  0x79   : > { %1319 = vmatmul.bf16.gmra.mxu2 %v5238_v57  ;;  %vm755_vm4 = vmand %vm673_vm14, %vm714_vm0  ;;  %v399_v20 = vmul.f32 0.055555556, %v358_v13  ;;  %v400_v36 = vmul.f32 0.055555556, %v359_v34  ;;  %v5259_v61 = vadd.f32 %v5256_v21, %v977_v35  ;;  %v5262_v37 = vadd.f32 %v5256_v21, %v978_v19  ;;  %v4498_v13 = vld [vmem:[%s7647_s3 + $0x138] sm:$0xff] }
  0x7a   : > { %vm756_vm6 = vmand %vm5240_vm15, %vm715_vm1  ;;  %v5267_v15 = vadd.s32 160, %v4763_v3  ;;  %v5270_v26 = vadd.s32 168, %v4763_v3  ;;  %v4605_v39 = vunpack.c.l.bf16 %v4652_v8  ;;  %v4606_v40 = vunpack.c.h.bf16 %v4652_v8  ;;  %1485 = vmatpush.bf16.msrb.mxu1 %v4498_v13  ;;  %v4497_v8 = vld [vmem:[%s7647_s3 + $0x130] sm:$0xff] }
  0x7b   : > { %vm837_vm5 = vmand %vm755_vm4, %vm796_vm2  ;;  %v440_v44 = vfloor.f32 %v399_v20  ;;  %v441_v49 = vfloor.f32 %v400_v36  ;;  %v1063_v46 = vmax.f32 %v5259_v61, 0.0  ;;  %v1064_v7 = vmax.f32 %v5262_v37, 0.0 }
  0x7c   : > { %vm838_vm7 = vmand %vm756_vm6, %vm797_vm3  ;;  %v5276_v12 = vsel %vm837_vm5, 1.0, %v7651_v62  ;;  %v331_v17 = vcvt.s32.f32 %v5267_v15  ;;  %v332_v18 = vcvt.s32.f32 %v5270_v26  ;;  %v991_v24 = vmul.f32 %v5247_v9, %v4605_v39  ;;  %v4660_v39 = vld [vmem:[%s4794_s8 + $0x90] sm:$0xff]  }
  0x7d   : > { %7782 = vst [vmem:[#allocation27_spill] sm:$0xff] %v5276_v12  ;;  %v5285_v45 = vsel %vm838_vm7, 1.0, %v7651_v62  ;;  %v1132_v34 = vmul.f32 %v1091_v50, %v5276_v12  ;;  %v481_v31 = vmul.f32 18.0, %v440_v44  ;;  %v482_v35 = vmul.f32 18.0, %v441_v49 }
  0x7e   : > { %7783 = vst [vmem:[#allocation28_spill] sm:$0xff] %v5285_v45  ;;  %v1133_v19 = vmul.f32 %v1092_v28, %v5285_v45  ;;  %vm563_vm8 = vcmp.ge.f32.partialorder %v440_v44, 1.0  ;;  %vm564_vm9 = vcmp.ge.f32.partialorder %v441_v49, 1.0  ;;  %vm604_vm10 = vcmp.le.f32.partialorder %v440_v44, 16.0  ;;  %1486 = vmatpush.bf16.msrb.mxu1 %v4497_v8 }
  0x7f   : > { %v522_v20 = vsub.f32 %v317_v22, %v481_v31  ;;  %v523_v36 = vsub.f32 %v318_v60, %v482_v35  ;;  %vm605_vm11 = vcmp.le.f32.partialorder %v441_v49, 16.0  ;;  %vm645_vm12 = vmand %vm563_vm8, %vm604_vm10  ;;  %v372_v61 = vadd.f32 0.5, %v331_v17 }
  0x80   : > { %v5292_v37 = vpack.c.bf16 %v1133_v19, %v1132_v34  ;;  %vm5294_vm13 = vmand %vm564_vm9, %vm605_vm11  ;;  %v373_v28 = vadd.f32 0.5, %v332_v18  ;;  %v992_v15 = vmul.f32 %v5247_v9, %v4606_v40  ;;  %v5300_v26 = vadd.f32 %v5256_v21, %v991_v24  ;;  %v4496_v40 = vld [vmem:[%s7647_s3 + $0x128] sm:$0xff] }
  0x81   : > { %vm686_vm14 = vcmp.ge.f32.partialorder %v522_v20, 1.0  ;;  %vm687_vm15 = vcmp.ge.f32.partialorder %v523_v36, 1.0  ;;  %vm768_vm0 = vcmp.le.f32.partialorder %v522_v20, 16.0  ;;  %vm769_vm1 = vcmp.le.f32.partialorder %v523_v36, 16.0  ;;  %v4495_v36 = vld [vmem:[%s7647_s3 + $0x120] sm:$0xff] }
  0x82   : > { %1334 = vmatmul.bf16.gmra.mxu3 %v5292_v37  ;;  %vm727_vm2 = vmand %vm645_vm12, %vm686_vm14  ;;  %v413_v22 = vmul.f32 0.055555556, %v372_v61  ;;  %v414_v60 = vmul.f32 0.055555556, %v373_v28  ;;  %v5305_v44 = vadd.f32 %v5256_v21, %v992_v15  ;;  %v5314_v24 = vadd.s32 288, %v4763_v3  ;;  %1487 = vmatpush.bf16.msrb.mxu1 %v4496_v40 }
  0x83   : > { %vm728_vm3 = vmand %vm5294_vm13, %vm687_vm15  ;;  %v5317_v13 = vadd.s32 296, %v4763_v3  ;;  %v4637_v34 = vunpack.c.l.bf16 %v4660_v39  ;;  %v4638_v31 = vunpack.c.h.bf16 %v4660_v39  ;;  %v5322_v61 = vadd.s32 64, %v4763_v3 }
  0x84   : > { %vm809_vm4 = vmand %vm727_vm2, %vm768_vm0  ;;  %v454_v35 = vfloor.f32 %v413_v22  ;;  %v455_v19 = vfloor.f32 %v414_v60  ;;  %v1078_v8 = vmax.f32 %v5305_v44, 0.0  ;;  %v347_v28 = vcvt.s32.f32 %v5314_v24 }
  0x85   : > { %vm810_vm6 = vmand %vm728_vm3, %vm769_vm1  ;;  %v5326_v50 = vsel %vm809_vm4, 1.0, %v7651_v62  ;;  %v348_v15 = vcvt.s32.f32 %v5317_v13  ;;  %v1007_v39 = vmul.f32 %v5247_v9, %v4637_v34  ;;  %v7793_v34 = vmov 0.0  }
  0x86   : > { %7786 = vst [vmem:[#allocation29_spill] sm:$0xff] %v5326_v50  ;;  %v5332_v20 = vsel %vm810_vm6, 1.0, %v7651_v62  ;;  %v1104_v22 = vmul.f32 %v1063_v46, %v5326_v50  ;;  %v495_v60 = vmul.f32 18.0, %v454_v35  ;;  %v496_v44 = vmul.f32 18.0, %v455_v19  ;;  %1488 = vmatpush.bf16.msrb.mxu1 %v4495_v36 }
  0x87   : > { %7787 = vst [vmem:[#allocation30_spill] sm:$0xff] %v5332_v20  ;;  %v1105_v49 = vmul.f32 %v1064_v7, %v5332_v20  ;;  %vm577_vm5 = vcmp.ge.f32.partialorder %v454_v35, 1.0  ;;  %vm578_vm7 = vcmp.ge.f32.partialorder %v455_v19, 1.0  ;;  %vm618_vm8 = vcmp.le.f32.partialorder %v454_v35, 16.0 }
  0x88   : > { %v536_v24 = vsub.f32 %v331_v17, %v495_v60  ;;  %v537_v13 = vsub.f32 %v332_v18, %v496_v44  ;;  %vm619_vm9 = vcmp.le.f32.partialorder %v455_v19, 16.0  ;;  %vm5339_vm10 = vmand %vm577_vm5, %vm618_vm8  ;;  %v388_v46 = vadd.f32 0.5, %v347_v28  ;;  %v4646_v17 = vld [vmem:[%s4794_s8 + $0x20] sm:$0xff]  }
  0x89   : > { %v5343_v62 = vpack.c.bf16 %v1105_v49, %v1104_v22  ;;  %vm5345_vm11 = vmand %vm578_vm7, %vm619_vm9  ;;  %v389_v45 = vadd.f32 0.5, %v348_v15  ;;  %v1008_v7 = vmul.f32 %v5247_v9, %v4638_v31  ;;  %v5351_v12 = vadd.f32 %v5256_v21, %v1007_v39  ;;  %1671 = vmatmul.bf16.vlgmr.msrb.gmra.mxu2 %v4873_v29 }
  0x8a   : > { %vm700_vm12 = vcmp.ge.f32.partialorder %v536_v24, 1.0  ;;  %vm701_vm13 = vcmp.ge.f32.partialorder %v537_v13, 1.0  ;;  %vm782_vm14 = vcmp.le.f32.partialorder %v536_v24, 16.0  ;;  %vm783_vm15 = vcmp.le.f32.partialorder %v537_v13, 16.0 }
  0x8b   : > { %7790 = vst [vmem:[#allocation31_spill] sm:$0xff] %v5343_v62  ;;  %1264 = vmatmul.bf16.gmra.mxu0 %v5343_v62  ;;  %vm741_vm0 = vmand %vm5339_vm10, %vm700_vm12  ;;  %v429_v18 = vmul.f32 0.055555556, %v388_v46  ;;  %v430_v49 = vmul.f32 0.055555556, %v389_v45  ;;  %v5359_v31 = vadd.f32 %v5256_v21, %v1008_v7  ;;  %v5365_v19 = vadd.s32 72, %v4763_v3 }
  0x8c   : > { %vm742_vm1 = vmand %vm5345_vm11, %vm701_vm13  ;;  %v319_v39 = vcvt.s32.f32 %v5322_v61  ;;  %v4581_v22 = vunpack.c.l.bf16 %v4646_v17  ;;  %v4582_v60 = vunpack.c.h.bf16 %v4646_v17  ;;  %v5370_v24 = vadd.s32 176, %v4763_v3 }
  0x8d   : > { %vm823_vm2 = vmand %vm741_vm0, %vm782_vm14  ;;  %v470_v44 = vfloor.f32 %v429_v18  ;;  %v471_v36 = vfloor.f32 %v430_v49  ;;  %v1094_v45 = vmax.f32 %v5359_v31, 0.0  ;;  %v7796_v18 = vmax.f32 %v5300_v26, 0.0 }
  0x8e   : > { %vm824_vm3 = vmand %vm742_vm1, %vm783_vm15  ;;  %v5374_v46 = vsel %vm823_vm2, 1.0, %v7793_v34  ;;  %v360_v7 = vadd.f32 0.5, %v319_v39  ;;  %v979_v61 = vmul.f32 %v5247_v9, %v4581_v22  ;;  %v7797_v22 = vcvt.s32.f32 %v5365_v19 }
  0x8f   : > { %7794 = vst [vmem:[#allocation32_spill] sm:$0xff] %v5374_v46  ;;  %v5379_v17 = vsel %vm824_vm3, 1.0, %v7793_v34  ;;  %v1118_v49 = vmul.f32 %v7796_v18, %v5374_v46  ;;  %v511_v31 = vmul.f32 18.0, %v470_v44  ;;  %v512_v35 = vmul.f32 18.0, %v471_v36 }
  0x90   : > { %7795 = vst [vmem:[#allocation33_spill] sm:$0xff] %v5379_v17  ;;  %v1119_v13 = vmul.f32 %v1078_v8, %v5379_v17  ;;  %vm593_vm4 = vcmp.ge.f32.partialorder %v470_v44, 1.0  ;;  %vm594_vm6 = vcmp.ge.f32.partialorder %v471_v36, 1.0  ;;  %vm634_vm5 = vcmp.le.f32.partialorder %v470_v44, 16.0  ;;  %v4653_v44 = vld [vmem:[%s4794_s8 + $0x58] sm:$0xff]  }
  0x91   : > { %v552_v23 = vsub.f32 %v347_v28, %v511_v31  ;;  %v553_v40 = vsub.f32 %v348_v15, %v512_v35  ;;  %vm635_vm7 = vcmp.le.f32.partialorder %v471_v36, 16.0  ;;  %vm675_vm8 = vmand %vm593_vm4, %vm634_vm5  ;;  %v361_v59 = vadd.f32 0.5, %v7797_v22 }
  0x92   : > { %v5387_v33 = vpack.c.bf16 %v1119_v13, %v1118_v49  ;;  %vm5389_vm9 = vmand %vm594_vm6, %vm635_vm7  ;;  %v401_v18 = vmul.f32 0.055555556, %v360_v7  ;;  %v980_v27 = vmul.f32 %v5247_v9, %v4582_v60  ;;  %v5395_v8 = vadd.f32 %v5256_v21, %v979_v61 }
  0x93   : > { %vm716_vm10 = vcmp.ge.f32.partialorder %v552_v23, 1.0  ;;  %vm717_vm11 = vcmp.ge.f32.partialorder %v553_v40, 1.0  ;;  %vm798_vm12 = vcmp.le.f32.partialorder %v552_v23, 16.0  ;;  %vm799_vm13 = vcmp.le.f32.partialorder %v553_v40, 16.0 }
  0x94   : > { %1299 = vmatmul.bf16.gmra.mxu1 %v5387_v33  ;;  %vm757_vm14 = vmand %vm675_vm8, %vm716_vm10  ;;  %v402_v28 = vmul.f32 0.055555556, %v361_v59  ;;  %v442_v15 = vfloor.f32 %v401_v18  ;;  %v5400_v35 = vadd.f32 %v5256_v21, %v980_v27  ;;  %v1065_v36 = vmax.f32 %v5395_v8, 0.0  ;;  %v4494_v27 = vld [vmem:[%s7647_s3 + $0x118] sm:$0xff] }
  0x95   : > { %vm758_vm15 = vmand %vm5389_vm9, %vm717_vm11  ;;  %v5406_v60 = vadd.s32 184, %v4763_v3  ;;  %v7660_v7 = vcvt.s32.f32 %v5370_v24  ;;  %v4609_v23 = vunpack.c.l.bf16 %v4653_v44  ;;  %v4610_v61 = vunpack.c.h.bf16 %v4653_v44  ;;  %v4522_v59 = vld [vmem:[%s7647_s3 + $0xb8] sm:$0xff]  ;;  %1489 = vmatpush.bf16.msrb.mxu1 %v4494_v27 }
  0x96   : > { %vm839_vm0 = vmand %vm757_vm14, %vm798_vm12  ;;  %v443_v49 = vfloor.f32 %v402_v28  ;;  %v483_v31 = vmul.f32 18.0, %v442_v15  ;;  %vm565_vm1 = vcmp.ge.f32.partialorder %v442_v15, 1.0  ;;  %vm606_vm2 = vcmp.le.f32.partialorder %v442_v15, 16.0  ;;  %1965 = vmatpush.bf16.msrb.mxu3 %v4522_v59 }
  0x97   : > { %vm840_vm3 = vmand %vm758_vm15, %vm799_vm13  ;;  %v5417_v13 = vsel %vm839_vm0, 1.0, %v7793_v34  ;;  %v1066_v22 = vmax.f32 %v5400_v35, 0.0  ;;  %v334_v26 = vcvt.s32.f32 %v5406_v60  ;;  %v374_v18 = vadd.f32 0.5, %v7660_v7  ;;  %v4493_v35 = vld [vmem:[%s7647_s3 + $0x110] sm:$0xff] }
  0x98   : > { %7800 = vst [vmem:[#allocation34_spill] sm:$0xff] %v5417_v13  ;;  %v5424_v8 = vsel %vm840_vm3, 1.0, %v7793_v34  ;;  %v7802_v44 = vmax.f32 %v5351_v12, 0.0  ;;  %v484_v15 = vmul.f32 18.0, %v443_v49  ;;  %v524_v40 = vsub.f32 %v319_v39, %v483_v31  ;;  %vm5429_vm4 = vmand %vm565_vm1, %vm606_vm2  ;;  %v4521_v60 = vld [vmem:[%s7647_s3 + $0xb0] sm:$0xff] }
  0x99   : > { %7801 = vst [vmem:[#allocation35_spill] sm:$0xff] %v5424_v8  ;;  %v1135_v7 = vmul.f32 %v1094_v45, %v5424_v8  ;;  %vm566_vm6 = vcmp.ge.f32.partialorder %v443_v49, 1.0  ;;  %vm607_vm5 = vcmp.le.f32.partialorder %v443_v49, 16.0  ;;  %v375_v12 = vadd.f32 0.5, %v334_v26  ;;  %1676 = vmatmul.bf16.gmra.mxu2 %v5016_v32  ;;  %1490 = vmatpush.bf16.msrb.mxu1 %v4493_v35 }
  0x9a   : > { %v1134_v28 = vmul.f32 %v7802_v44, %v5417_v13  ;;  %v7805_v39 = vcvt.s32.f32 %v5365_v19  ;;  %vm5443_vm7 = vmand %vm566_vm6, %vm607_vm5  ;;  %vm688_vm8 = vcmp.ge.f32.partialorder %v524_v40, 1.0  ;;  %vm770_vm9 = vcmp.le.f32.partialorder %v524_v40, 16.0  ;;  %1966 = vmatpush.bf16.msrb.mxu3 %v4521_v60  ;;  %v4661_v60 = vld [vmem:[%s4794_s8 + $0x98] sm:$0xff]  }
  0x9b   : > { %v415_v59 = vmul.f32 0.055555556, %v374_v18  ;;  %vm729_vm10 = vmand %vm5429_vm4, %vm688_vm8  ;;  %v416_v45 = vmul.f32 0.055555556, %v375_v12  ;;  %v993_v49 = vmul.f32 %v5247_v9, %v4609_v23  ;;  %v994_v8 = vmul.f32 %v5247_v9, %v4610_v61 }
  0x9c   : > { %v525_v31 = vsub.f32 %v7805_v39, %v484_v15  ;;  %v5447_v44 = vpack.c.bf16 %v1135_v7, %v1134_v28  ;;  %vm811_vm13 = vmand %vm729_vm10, %vm770_vm9  ;;  %v5454_v15 = vadd.s32 304, %v4763_v3  ;;  %v4520_v7 = vld [vmem:[%s7647_s3 + $0xa8] sm:$0xff]  ;;  %v7810_v27 = vcvt.s32.f32 %v5370_v24 }
  0x9d   : > { %v456_v19 = vfloor.f32 %v415_v59  ;;  %v5466_v23 = vsel %vm811_vm13, 1.0, %v7793_v34  ;;  %v457_v61 = vfloor.f32 %v416_v45  ;;  %v1038_v18 = vadd.f32 %v5256_v21, %v993_v49  ;;  %1491 = vmatpush.bf16.msrb.mxu1 %v4492_v0  ;;  %v4491_v49 = vld [vmem:[%s7647_s3 + $0x100] sm:$0xff] }
  0x9e   : > { %vm689_vm11 = vcmp.ge.f32.partialorder %v525_v31, 1.0  ;;  %vm771_vm12 = vcmp.le.f32.partialorder %v525_v31, 16.0  ;;  %1339 = vmatmul.bf16.gmra.mxu3 %v5447_v44  ;;  %7808 = vst [vmem:[#allocation36_spill] sm:$0xff] %v5466_v23  ;;  %v1039_v28 = vadd.f32 %v5256_v21, %v994_v8  ;;  %v1106_v40 = vmul.f32 %v1065_v36, %v5466_v23  ;;  %v4519_v0 = vld [vmem:[%s7647_s3 + $0xa0] sm:$0xff] }
  0x9f   : > { %vm730_vm14 = vmand %vm5443_vm7, %vm689_vm11  ;;  %v497_v35 = vmul.f32 18.0, %v456_v19  ;;  %vm579_vm0 = vcmp.ge.f32.partialorder %v456_v19, 1.0  ;;  %vm620_vm1 = vcmp.le.f32.partialorder %v456_v19, 16.0  ;;  %v498_v39 = vmul.f32 18.0, %v457_v61  ;;  %1967 = vmatpush.bf16.msrb.mxu3 %v4520_v7 }
  0xa0   : > { %vm812_vm15 = vmand %vm730_vm14, %vm771_vm12  ;;  %vm580_vm2 = vcmp.ge.f32.partialorder %v457_v61, 1.0  ;;  %vm621_vm3 = vcmp.le.f32.partialorder %v457_v61, 16.0  ;;  %v1079_v36 = vmax.f32 %v1038_v18, 0.0  ;;  %v1080_v45 = vmax.f32 %v1039_v28, 0.0 }
  0xa1   : > { %v5473_v12 = vsel %vm812_vm15, 1.0, %v7793_v34  ;;  %v538_v59 = vsub.f32 %v7810_v27, %v497_v35  ;;  %vm5478_vm4 = vmand %vm579_vm0, %vm620_vm1  ;;  %v539_v19 = vsub.f32 %v334_v26, %v498_v39  ;;  %v5490_v24 = vadd.s32 312, %v4763_v3  ;;  %v5499_v26 = vld [vmem:[%s4794_s8 + $0x28] sm:$0xff]   ;;  %1492 = vmatpush.bf16.msrb.mxu1 %v4491_v49 }
  0xa2   : > { %7809 = vst [vmem:[#allocation37_spill] sm:$0xff] %v5473_v12  ;;  %v1107_v31 = vmul.f32 %v1066_v22, %v5473_v12  ;;  %vm5485_vm6 = vmand %vm580_vm2, %vm621_vm3  ;;  %v349_v22 = vcvt.s32.f32 %v5454_v15  ;;  %v4641_v35 = vunpack.c.l.bf16 %v4661_v60  ;;  %v4642_v18 = vunpack.c.h.bf16 %v4661_v60 }
  0xa3   : > { %vm702_vm5 = vcmp.ge.f32.partialorder %v538_v59, 1.0  ;;  %vm784_vm7 = vcmp.le.f32.partialorder %v538_v59, 16.0  ;;  %vm703_vm8 = vcmp.ge.f32.partialorder %v539_v19, 1.0  ;;  %vm785_vm10 = vcmp.le.f32.partialorder %v539_v19, 16.0  ;;  %1968 = vmatpush.bf16.msrb.mxu3 %v4519_v0  ;;  %v4518_v59 = vld [vmem:[%s7647_s3 + $0x98] sm:$0xff] }
  0xa4   : > { %v5496_v7 = vpack.c.bf16 %v1107_v31, %v1106_v40  ;;  %vm743_vm9 = vmand %vm5478_vm4, %vm702_vm5  ;;  %v350_v28 = vcvt.s32.f32 %v5490_v24  ;;  %v390_v15 = vadd.f32 0.5, %v349_v22  ;;  %v1009_v40 = vmul.f32 %v5247_v9, %v4641_v35  ;;  %v4530_v0 = vld [vmem:[%s7647_s3 + $0xf8] sm:$0xff] }
  0xa5   : > { %vm744_vm11 = vmand %vm5485_vm6, %vm703_vm8  ;;  %v1010_v39 = vmul.f32 %v5247_v9, %v4642_v18  ;;  %v5510_v60 = vadd.s32 80, %v4763_v3  ;;  %v5513_v31 = vadd.s32 88, %v4763_v3  ;;  %v4585_v24 = vunpack.c.l.bf16 %v5499_v26  ;;  %2267 = vmatpush.bf16.msrb.mxu0 %v4530_v0 }
  0xa6   : > { %7815 = vst [vmem:[#allocation38_spill] sm:$0xff] %v5496_v7  ;;  %1269 = vmatmul.bf16.gmra.mxu0 %v5496_v7  ;;  %vm825_vm12 = vmand %vm743_vm9, %vm784_vm7  ;;  %v391_v27 = vadd.f32 0.5, %v350_v28  ;;  %v431_v8 = vmul.f32 0.055555556, %v390_v15  ;;  %v5522_v49 = vadd.f32 %v5256_v21, %v1009_v40  ;;  %v4586_v18 = vunpack.c.h.bf16 %v5499_v26 }
  0xa7   : > { %vm826_vm13 = vmand %vm744_vm11, %vm785_vm10  ;;  %v5519_v61 = vsel %vm825_vm12, 1.0, %v7793_v34  ;;  %v5538_v35 = vadd.f32 %v5256_v21, %v1010_v39  ;;  %v322_v25 = vcvt.s32.f32 %v5513_v31  ;;  %1969 = vmatpush.bf16.msrb.mxu3 %v4518_v59  ;;  %v7818_v39 = vcvt.s32.f32 %v5510_v60  ;;  %v925_v59 = vld [vmem:[%s4794_s8 + $0xa0] sm:$0xf] }
  0xa8   : > { %7816 = vst [vmem:[#allocation39_spill] sm:$0xff] %v5519_v61  ;;  %v5533_v19 = vsel %vm826_vm13, 1.0, %v7793_v34  ;;  %v1120_v15 = vmul.f32 %v1079_v36, %v5519_v61  ;;  %v432_v13 = vmul.f32 0.055555556, %v391_v27  ;;  %v472_v40 = vfloor.f32 %v431_v8  ;;  %v4517_v36 = vld [vmem:[%s7647_s3 + $0x90] sm:$0xff] }
  0xa9   : > { %7817 = vst [vmem:[#allocation40_spill] sm:$0xff] %v5533_v19  ;;  %v1121_v55 = vmul.f32 %v1080_v45, %v5533_v19  ;;  %v1095_v26 = vmax.f32 %v5522_v49, 0.0  ;;  %1681 = vmatmul.bf16.gmra.mxu2 %v5148_v1  ;;  %v362_v31 = vadd.f32 0.5, %v7818_v39  ;;  %v363_v27 = vadd.f32 0.5, %v322_v25  ;;  %2268 = vmatpush.bf16.msrb.mxu0 %v4529_v6  ;;  %v4648_v19 = vld [vmem:[%s4794_s8 + $0x30] sm:$0xff]  }
  0xaa   : > { %v473_v11 = vfloor.f32 %v432_v13  ;;  %v513_v56 = vmul.f32 18.0, %v472_v40  ;;  %vm595_vm14 = vcmp.ge.f32.partialorder %v472_v40, 1.0  ;;  %vm636_vm15 = vcmp.le.f32.partialorder %v472_v40, 16.0 }
  0xab   : > { %v5549_v45 = vpack.c.bf16 %v1121_v55, %v1120_v15  ;;  %v981_v8 = vmul.f32 %v5247_v9, %v4585_v24  ;;  %vm5554_vm2 = vmand %vm595_vm14, %vm636_vm15  ;;  %v1096_v55 = vmax.f32 %v5538_v35, 0.0  ;;  %v403_v15 = vmul.f32 0.055555556, %v362_v31  ;;  %v4528_v24 = vld [vmem:[%s7647_s3 + $0xe8] sm:$0xff]  ;;  %1970 = vmatpush.bf16.msrb.mxu3 %v4517_v36 }
  0xac   : > { %v514_v13 = vmul.f32 18.0, %v473_v11  ;;  %v554_v49 = vsub.f32 %v349_v22, %v513_v56  ;;  %vm596_vm0 = vcmp.ge.f32.partialorder %v473_v11, 1.0  ;;  %vm637_vm1 = vcmp.le.f32.partialorder %v473_v11, 16.0  ;;  %v4516_v22 = vld [vmem:[%s7647_s3 + $0x88] sm:$0xff] }
  0xad   : > { %1304 = vmatmul.bf16.gmra.mxu1 %v5549_v45  ;;  %v404_v40 = vmul.f32 0.055555556, %v363_v27  ;;  %vm5564_vm3 = vmand %vm596_vm0, %vm637_vm1  ;;  %v5569_v11 = vadd.s32 320, %v4763_v3  ;;  %v444_v6 = vfloor.f32 %v403_v15  ;;  %v1026_v31 = vadd.f32 %v5256_v21, %v981_v8  ;;  %2269 = vmatpush.bf16.msrb.mxu0 %v4528_v24 }
  0xae   : > { %v555_v39 = vsub.f32 %v350_v28, %v514_v13  ;;  %vm718_vm4 = vcmp.ge.f32.partialorder %v554_v49, 1.0  ;;  %vm800_vm6 = vcmp.le.f32.partialorder %v554_v49, 16.0  ;;  %v982_v28 = vmul.f32 %v5247_v9, %v4586_v18  ;;  %v4527_v18 = vld [vmem:[%s7647_s3 + $0xe0] sm:$0xff] }
  0xaf   : > { %vm759_vm5 = vmand %vm5554_vm2, %vm718_vm4  ;;  %v445_v35 = vfloor.f32 %v404_v40  ;;  %v351_v27 = vcvt.s32.f32 %v5569_v11  ;;  %v966_v13 = vunpack.c.l.bf16 %v925_v59  ;;  %v485_v49 = vmul.f32 18.0, %v444_v6  ;;  %1971 = vmatpush.bf16.msrb.mxu3 %v4516_v22  ;;  %v4515_v59 = vld [vmem:[%s7647_s3 + $0x80] sm:$0xff] }
  0xb0   : > { %vm719_vm7 = vcmp.ge.f32.partialorder %v555_v39, 1.0  ;;  %vm801_vm8 = vcmp.le.f32.partialorder %v555_v39, 16.0  ;;  %vm841_vm9 = vmand %vm759_vm5, %vm800_vm6  ;;  %vm567_vm11 = vcmp.ge.f32.partialorder %v444_v6, 1.0  ;;  %vm608_vm14 = vcmp.le.f32.partialorder %v444_v6, 16.0 }
  0xb1   : > { %vm760_vm10 = vmand %vm5564_vm3, %vm719_vm7  ;;  %v5582_v36 = vsel %vm841_vm9, 1.0, %v7793_v34  ;;  %v486_v0 = vmul.f32 18.0, %v445_v35  ;;  %vm568_vm13 = vcmp.ge.f32.partialorder %v445_v35, 1.0  ;;  %vm609_vm15 = vcmp.le.f32.partialorder %v445_v35, 16.0  ;;  %2270 = vmatpush.bf16.msrb.mxu0 %v4527_v18 }
  0xb2   : > { %7823 = vst [vmem:[#allocation41_spill] sm:$0xff] %v5582_v36  ;;  %vm842_vm12 = vmand %vm760_vm10, %vm801_vm8  ;;  %v1136_v8 = vmul.f32 %v1095_v26, %v5582_v36  ;;  %v7825_v40 = vcvt.s32.f32 %v5510_v60  ;;  %v1027_v56 = vadd.f32 %v5256_v21, %v982_v28  ;;  %v1067_v22 = vmax.f32 %v1026_v31, 0.0 }
  0xb3   : > { %v5592_v15 = vsel %vm842_vm12, 1.0, %v7793_v34  ;;  %v527_v39 = vsub.f32 %v322_v25, %v486_v0  ;;  %vm649_vm0 = vmand %vm567_vm11, %vm608_vm14  ;;  %v392_v35 = vadd.f32 0.5, %v351_v27  ;;  %v5605_v36 = vadd.s32 96, %v4763_v3  ;;  %1972 = vmatpush.bf16.msrb.mxu3 %v4515_v59 }
  0xb4   : > { %7824 = vst [vmem:[#allocation42_spill] sm:$0xff] %v5592_v15  ;;  %v526_v24 = vsub.f32 %v7825_v40, %v485_v49  ;;  %v1137_v26 = vmul.f32 %v1096_v55, %v5592_v15  ;;  %vm5598_vm1 = vmand %vm568_vm13, %vm609_vm15  ;;  %v1011_v25 = vmul.f32 %v5247_v9, %v966_v13  ;;  %v283_v28 = vadd.s32 104, %v4763_v3  ;;  %v4526_v13 = vld [vmem:[%s7647_s3 + $0xd8] sm:$0xff] }
  0xb5   : > { %vm691_vm3 = vcmp.ge.f32.partialorder %v527_v39, 1.0  ;;  %vm773_vm5 = vcmp.le.f32.partialorder %v527_v39, 16.0  ;;  %v433_v55 = vmul.f32 0.055555556, %v392_v35  ;;  %v1068_v31 = vmax.f32 %v1027_v56, 0.0  ;;  %2271 = vmatpush.bf16.msrb.mxu0 %v4526_v13 }
  0xb6   : > { %vm690_vm2 = vcmp.ge.f32.partialorder %v526_v24, 1.0  ;;  %vm772_vm4 = vcmp.le.f32.partialorder %v526_v24, 16.0  ;;  %v5609_v60 = vpack.c.bf16 %v1137_v26, %v1136_v8  ;;  %vm732_vm7 = vmand %vm5598_vm1, %vm691_vm3  ;;  %v323_v49 = vcvt.s32.f32 %v5605_v36  ;;  %v4525_v26 = vld [vmem:[%s7647_s3 + $0xd0] sm:$0xff] }
  0xb7   : > { %vm731_vm6 = vmand %vm649_vm0, %vm690_vm2  ;;  %v4589_v0 = vunpack.c.l.bf16 %v4648_v19  ;;  %v474_v18 = vfloor.f32 %v433_v55  ;;  %v324_v8 = vcvt.s32.f32 %v283_v28  ;;  %v4590_v59 = vunpack.c.h.bf16 %v4648_v19 }
  0xb8   : > { %1344 = vmatmul.bf16.gmra.mxu3 %v5609_v60  ;;  %vm813_vm8 = vmand %vm731_vm6, %vm772_vm4  ;;  %v1056_v39 = vadd.f32 %v5256_v21, %v1011_v25  ;;  %v364_v56 = vadd.f32 0.5, %v323_v49 }
  0xb9   : > { %vm814_vm9 = vmand %vm732_vm7, %vm773_vm5  ;;  %v5621_v40 = vsel %vm813_vm8, 1.0, %v7793_v34  ;;  %v983_v36 = vmul.f32 %v5247_v9, %v4589_v0  ;;  %v515_v19 = vmul.f32 18.0, %v474_v18  ;;  %vm597_vm10 = vcmp.ge.f32.partialorder %v474_v18, 1.0  ;;  %1686 = vmatmul.bf16.gmra.mxu2 %v5343_v62  ;;  %2272 = vmatpush.bf16.msrb.mxu0 %v4525_v26 }
  0xba   : > { %7828 = vst [vmem:[#allocation43_spill] sm:$0xff] %v5621_v40  ;;  %v5629_v24 = vsel %vm814_vm9, 1.0, %v7793_v34  ;;  %v1108_v6 = vmul.f32 %v1067_v22, %v5621_v40  ;;  %vm638_vm11 = vcmp.le.f32.partialorder %v474_v18, 16.0  ;;  %v365_v25 = vadd.f32 0.5, %v324_v8 }
  0xbb   : > { %7829 = vst [vmem:[#allocation44_spill] sm:$0xff] %v5629_v24  ;;  %v1109_v35 = vmul.f32 %v1068_v31, %v5629_v24  ;;  %v405_v55 = vmul.f32 0.055555556, %v364_v56  ;;  %v556_v28 = vsub.f32 %v351_v27, %v515_v19  ;;  %vm679_vm12 = vmand %vm597_vm10, %vm638_vm11  ;;  %v984_v0 = vmul.f32 %v5247_v9, %v4590_v59  ;;  %v4524_v31 = vld [vmem:[%s7647_s3 + $0xc8] sm:$0xff] }
  0xbc   : > { %v406_v22 = vmul.f32 0.055555556, %v365_v25  ;;  %v1097_v18 = vmax.f32 %v1056_v39, 0.0  ;;  %v1028_v11 = vadd.f32 %v5256_v21, %v983_v36  ;;  %v4523_v39 = vld [vmem:[%s7647_s3 + $0xc0] sm:$0xff] }
  0xbd   : > { %v5637_v13 = vpack.c.bf16 %v1109_v35, %v1108_v6  ;;  %1493 = vmatmul.bf16.vlgmr.msrb.gmra.mxu1 %v4873_v29  ;;  %v446_v15 = vfloor.f32 %v405_v55  ;;  %vm720_vm13 = vcmp.ge.f32.partialorder %v556_v28, 1.0  ;;  %vm802_vm14 = vcmp.le.f32.partialorder %v556_v28, 16.0  ;;  %2273 = vmatpush.bf16.msrb.mxu0 %v4524_v31  ;;  %v5674_v31 = vpop.f32.mrf.mxu1 }
  0xbe   : > { %vm761_vm15 = vmand %vm679_vm12, %vm720_vm13  ;;  %v447_v9 = vfloor.f32 %v406_v22  ;;  %v1029_v59 = vadd.f32 %v5256_v21, %v984_v0  ;;  %v1069_v21 = vmax.f32 %v1028_v11, 0.0  ;;  %v5670_v0 = vpop.f32.mrf.mxu0  ;;  %v5672_v22 = vpop.f32.mrf.mxu2 }
  0xbf   : > { %7830 = vst [vmem:[#allocation45_spill] sm:$0xff] %v5637_v13  ;;  %1274 = vmatmul.bf16.gmra.mxu0 %v5637_v13  ;;  %v487_v27 = vmul.f32 18.0, %v446_v15  ;;  %vm569_vm0 = vcmp.ge.f32.partialorder %v446_v15, 1.0  ;;  %vm610_vm1 = vcmp.le.f32.partialorder %v446_v15, 16.0  ;;  %vm843_vm2 = vmand %vm761_vm15, %vm802_vm14  ;;  %vm1395_vm15 = vcmp.lt.s32.totalorder %v4763_v3, 3 }
  0xc0   : > { %v5647_v56 = vsel %vm843_vm2, 1.0, %v7793_v34  ;;  %v488_v26 = vmul.f32 18.0, %v447_v9  ;;  %vm570_vm3 = vcmp.ge.f32.partialorder %v447_v9, 1.0  ;;  %vm651_vm4 = vmand %vm569_vm0, %vm610_vm1  ;;  %vm611_vm6 = vcmp.le.f32.partialorder %v447_v9, 16.0  ;;  %v5683_v9 = vpop.f32.mrf.mxu3 }
  0xc1   : > { %7831 = vst [vmem:[#allocation46_spill] sm:$0xff] %v5647_v56  ;;  %v528_v6 = vsub.f32 %v323_v49, %v487_v27  ;;  %v1138_v36 = vmul.f32 %v1097_v18, %v5647_v56  ;;  %vm652_vm5 = vmand %vm570_vm3, %vm611_vm6  ;;  %v1070_v49 = vmax.f32 %v1029_v59, 0.0  ;;  %2274 = vmatpush.bf16.msrb.mxu0 %v4523_v39  ;;  %v7682_v17 = vrot.slane %v5683_v9, 5 }
  0xc2   : > { %v529_v19 = vsub.f32 %v324_v8, %v488_v26  ;;  %7836 = vst [vmem:[#allocation51_spill] sm:$0xff] %v5683_v9  ;;  %v1378_v42 = vrot.slane %v5672_v22, 5  ;;  %vm1817_vm0 = vcmp.lt.s32.totalorder %v4763_v3, 2  ;;  %vm2119_vm1 = vcmp.lt.s32.totalorder %v4763_v3, 1 }
  0xc3   : > { %vm692_vm7 = vcmp.ge.f32.partialorder %v528_v6, 1.0  ;;  %vm774_vm8 = vcmp.le.f32.partialorder %v528_v6, 16.0  ;;  %v5653_v15 = vpack.c.bf16 %v1138_v36, %v1138_v36  ;;  %vm2722_vm2 = vcmp.lt.s32.totalorder %v4763_v3, 7 }
  0xc4   : > { %vm733_vm9 = vmand %vm651_vm4, %vm692_vm7  ;;  %vm693_vm10 = vcmp.ge.f32.partialorder %v529_v19, 1.0  ;;  %vm775_vm11 = vcmp.le.f32.partialorder %v529_v19, 16.0  ;;  %vm3325_vm3 = vcmp.lt.s32.totalorder %v4763_v3, 6  ;;  %vm3627_vm4 = vcmp.lt.s32.totalorder %v4763_v3, 5 }
  0xc5   : > { %7832 = vst [vmem:[#allocation47_spill] sm:$0xff] %v5653_v15  ;;  %vm815_vm12 = vmand %vm733_vm9, %vm774_vm8  ;;  %v5681_v11 = vpop.f32.mrf.mxu1  ;;  %vm3792_vm6 = vcmask 588800  }
  0xc6   : > { %vm734_vm13 = vmand %vm652_vm5, %vm693_vm10  ;;  %v5656_v35 = vsel %vm815_vm12, 1.0, %v7793_v34  ;;  %v5679_v18 = vpop.f32.mrf.mxu0 }
  0xc7   : > { %7833 = vst [vmem:[#allocation48_spill] sm:$0xff] %v5656_v35  ;;  %vm816_vm14 = vmand %vm734_vm13, %vm775_vm11  ;;  %v1110_v25 = vmul.f32 %v1069_v21, %v5656_v35 }
  0xc8   : > { %1349 = vmatmul.bf16.gmra.mxu3 %v5653_v15  ;;  %v5661_v8 = vsel %vm816_vm14, 1.0, %v7793_v34  ;;  %v1312_v34 = vpop.f32.mrf.mxu2  ;;  %v5693_v6 = vpop.f32.mrf.mxu3 }
  0xc9   : > { %7834 = vst [vmem:[#allocation49_spill] sm:$0xff] %v5661_v8  ;;  %v1111_v55 = vmul.f32 %v1070_v49, %v5661_v8  ;;  %1691 = vmatmul.bf16.gmra.mxu2 %v5496_v7  ;;  %v1379_v38 = vrot.slane %v1312_v34, 5 }
  0xca   : > { %7837 = vst [vmem:[#allocation52_spill] sm:$0xff] %v5693_v6 }
  0xcb   : > { %v5665_v28 = vpack.c.bf16 %v1111_v55, %v1110_v25  ;;  %v5736_v35 = vsel %vm1395_vm15, %v1378_v42, %v1379_v38 }
  0xcc   : > { %7843 = vst [vmem:[#allocation58_spill] sm:$0xff] %v5736_v35 }
  0xcd   : > { %7835 = vst [vmem:[#allocation50_spill] sm:$0xff] %v5665_v28  ;;  %1498 = vmatmul.bf16.gmra.mxu1 %v5016_v32  ;;  %v5690_v26 = vpop.f32.mrf.mxu1 }
  0xce   : > { %v5687_v59 = vpop.f32.mrf.mxu0 }
  0xcf   : > { %1279 = vmatmul.bf16.gmra.mxu0 %v5665_v28 }
  0xd5   : > { %v5698_v19 = vpop.f32.mrf.mxu1 }
  0xd6   : > { %v5695_v36 = vpop.f32.mrf.mxu0 }
  0xd8   : > { %1973 = vmatmul.bf16.vlgmr.msrb.gmra.mxu3 %v4873_v29  ;;  %v1315_v27 = vpop.f32.mrf.mxu2 }
  0xd9   : > { %1696 = vmatmul.bf16.gmra.mxu2 %v5637_v13  ;;  %v1380_v8 = vrot.slane %v1315_v27, 5 }
  0xdb   : > { %v5740_v24 = vsel %vm1395_vm15, %v1379_v38, %v1380_v8 }
  0xdc   : > { %7844 = vst [vmem:[#allocation59_spill] sm:$0xff] %v5740_v24 }
  0xdd   : > { %1503 = vmatmul.bf16.gmra.mxu1 %v5148_v1 }
  0xdf   : > { %2275 = vmatmul.bf16.vlgmr.msrb.gmra.mxu0 %v4873_v29 }
  0xe0   : > { %v1317_v39 = vpop.f32.mrf.mxu2 }
  0xe1   : > { %v5700_v21 = vpop.f32.mrf.mxu3  ;;  %v1381_v27 = vrot.slane %v1317_v39, 5 }
  0xe2   : > { %7838 = vst [vmem:[#allocation53_spill] sm:$0xff] %v5700_v21 }
  0xe3   : > { %v5705_v25 = vpop.f32.mrf.mxu0  ;;  %v5760_v53 = vsel %vm1395_vm15, %v1380_v8, %v1381_v27 }
  0xe4   : > { %7847 = vst [vmem:[#allocation62_spill] sm:$0xff] %v5760_v53 }
  0xe8   : > { %1978 = vmatmul.bf16.gmra.mxu3 %v5016_v32 }
  0xe9   : > { %1701 = vmatmul.bf16.gmra.mxu2 %v5665_v28  ;;  %v5709_v56 = vpop.f32.mrf.mxu3 }
  0xea   : > { %7839 = vst [vmem:[#allocation54_spill] sm:$0xff] %v5709_v56 }
  0xeb   : > { %v5720_v10 = vpop.f32.mrf.mxu0 }
  0xed   : > { %1508 = vmatmul.bf16.gmra.mxu1 %v5343_v62 }
  0xee   : > { %v5707_v55 = vpop.f32.mrf.mxu1 }
  0xef   : > { %2280 = vmatmul.bf16.gmra.mxu0 %v5016_v32 }
  0xf6   : > { %v5723_v48 = vpop.f32.mrf.mxu1 }
  0xf8   : > { %1983 = vmatmul.bf16.gmra.mxu3 %v5148_v1 }
  0xf9   : > { %1706 = vmatmul.bf16.gmra.mxu2 %v4905_v51 }
  0xfc   : > { %v1320_v49 = vpop.f32.mrf.mxu2 }
  0xfd   : > { %1513 = vmatmul.bf16.gmra.mxu1 %v5496_v7  ;;  %v1382_v38 = vrot.slane %v1320_v49, 5 }
  0xff   : > { %2285 = vmatmul.bf16.gmra.mxu0 %v5148_v1  ;;  %v5764_v52 = vsel %vm1395_vm15, %v1381_v27, %v1382_v38 }
 0x100   : > { %7848 = vst [vmem:[#allocation63_spill] sm:$0xff] %v5764_v52 }
 0x104   : > { %v1322_v61 = vpop.f32.mrf.mxu2 }
 0x105   : > { %v1383_v46 = vrot.slane %v1322_v61, 5  ;;  %v5726_v43 = vpop.f32.mrf.mxu3 }
 0x106   : > { %7841 = vst [vmem:[#allocation56_spill] sm:$0xff] %v5726_v43 }
 0x107   : > { %v5718_v2 = vsel %vm1395_vm15, %v1383_v46, %v7682_v17  ;;  %v5790_v21 = vsel %vm1395_vm15, %v1382_v38, %v1383_v46 }
 0x108   : > { %1988 = vmatmul.bf16.gmra.mxu3 %v5343_v62  ;;  %7840 = vst [vmem:[#allocation55_spill] sm:$0xff] %v5718_v2  ;;  %v5732_v17 = vpop.f32.mrf.mxu0 }
 0x109   : > { %1711 = vmatmul.bf16.gmra.mxu2 %v5044_v54  ;;  %7850 = vst [vmem:[#allocation65_spill] sm:$0xff] %v5790_v21 }
 0x10c   : > { %v5728_v61 = vpop.f32.mrf.mxu2 }
 0x10d   : > { %1518 = vmatmul.bf16.gmra.mxu1 %v5637_v13  ;;  %7842 = vst [vmem:[#allocation57_spill] sm:$0xff] %v5728_v61  ;;  %v5744_v23 = vpop.f32.mrf.mxu3 }
 0x10e   : > { %7845 = vst [vmem:[#allocation60_spill] sm:$0xff] %v5744_v23 }
 0x10f   : > { %2290 = vmatmul.bf16.gmra.mxu0 %v5343_v62 }
 0x110   : > { %v5751_v34 = vpop.f32.mrf.mxu0 }
 0x111   : > { %v5742_v12 = vpop.f32.mrf.mxu1 }
 0x114   : > { %v1674_v40 = vpop.f32.mrf.mxu2 }
 0x115   : > { %v1777_v9 = vrot.slane %v1674_v40, 6 }
 0x118   : > { %1993 = vmatmul.bf16.gmra.mxu3 %v5496_v7 }
 0x119   : > { %1716 = vmatmul.bf16.gmra.mxu2 %v5204_v58  ;;  %v5754_v20 = vpop.f32.mrf.mxu1 }
 0x11c   : > { %v5749_v22 = vpop.f32.mrf.mxu2 }
 0x11d   : > { %1523 = vmatmul.bf16.gmra.mxu1 %v5665_v28 }
 0x11f   : > { %2295 = vmatmul.bf16.gmra.mxu0 %v5496_v7 }
 0x121   : > { %v5756_v50 = vpop.f32.mrf.mxu3 }
 0x122   : > { %7846 = vst [vmem:[#allocation61_spill] sm:$0xff] %v5756_v50  ;;  %v7697_v49 = vrot.slane %v5756_v50, 5 }
 0x123   : > { %v5769_v5 = vpop.f32.mrf.mxu0 }
 0x124   : > { %v5766_v16 = vpop.f32.mrf.mxu2 }
 0x128   : > { %1998 = vmatmul.bf16.gmra.mxu3 %v5637_v13 }
 0x129   : > { %v1342_v39 = vpop.f32.mrf.mxu3  ;;  %1721 = vmatmul.bf16.gmra.mxu2 %v5387_v33 }
 0x12a   : > { %v1391_v4 = vrot.slane %v1342_v39, 5  ;;  %v5772_v63 = vpop.f32.mrf.mxu1 }
 0x12b   : > { %v5785_v23 = vpop.f32.mrf.mxu0  ;;  %v7699_v39 = vrot.slane %v5772_v63, 5 }
 0x12c   : > { %v5779_v8 = vsel %vm1395_vm15, %v7697_v49, %v1391_v4  ;;  %v5782_v27 = vpop.f32.mrf.mxu2 }
 0x12d   : > { %7849 = vst [vmem:[#allocation64_spill] sm:$0xff] %v5779_v8  ;;  %1528 = vmatmul.bf16.gmra.mxu1 %v4905_v51 }
 0x12f   : > { %2300 = vmatmul.bf16.gmra.mxu0 %v5637_v13 }
 0x132   : > { %v1307_v43 = vpop.f32.mrf.mxu1 }
 0x133   : > { %v1377_v56 = vrot.slane %v1307_v43, 5  ;;  %v7705_v43 = vrot.slane %v5728_v61, 6 }
 0x134   : > { %v5792_v50 = vpop.f32.mrf.mxu2 }
 0x135   : > { %v5798_v49 = vsel %vm1395_vm15, %v7699_v39, %v1377_v56  ;;  %v5802_v8 = vsel %vm1395_vm15, %v1377_v56, %v1378_v42  ;;  %v1857_v42 = vsel %vm1817_vm0, %v7705_v43, %v1777_v9  ;;  %v1778_v56 = vrot.slane %v5749_v22, 6 }
 0x136   : > { %7851 = vst [vmem:[#allocation66_spill] sm:$0xff] %v5798_v49 }
 0x137   : > { %7852 = vst [vmem:[#allocation67_spill] sm:$0xff] %v5802_v8  ;;  %v1856_v53 = vsel %vm1817_vm0, %v1777_v9, %v1778_v56 }
 0x138   : > { %2003 = vmatmul.bf16.gmra.mxu3 %v5665_v28 }
 0x139   : > { %1726 = vmatmul.bf16.gmra.mxu2 %v5549_v45 }
 0x13a   : > { %v1494_v6 = vpop.f32.mrf.mxu1 }
 0x13b   : > { %v1345_v46 = vpop.f32.mrf.mxu3 }
 0x13c   : > { %v1392_v38 = vrot.slane %v1345_v46, 5  ;;  %v5807_v2 = vpop.f32.mrf.mxu0  ;;  %v5811_v39 = vpop.f32.mrf.mxu2 }
 0x13d   : > { %1533 = vmatmul.bf16.gmra.mxu1 %v5044_v54  ;;  %v7708_v61 = vrot.slane %v5807_v2, 5 }
 0x13e   : > { %v5819_v40 = vsel %vm1395_vm15, %v1391_v4, %v1392_v38 }
 0x13f   : > { %7853 = vst [vmem:[#allocation68_spill] sm:$0xff] %v5819_v40  ;;  %2305 = vmatmul.bf16.gmra.mxu0 %v5665_v28  ;;  %v1354_v40 = vrot.slane %v5670_v0, 5 }
 0x142   : > { %v1496_v46 = vpop.f32.mrf.mxu1 }
 0x143   : > { %v1347_v21 = vpop.f32.mrf.mxu3 }
 0x144   : > { %v1393_v52 = vrot.slane %v1347_v21, 5  ;;  %v1277_v13 = vpop.f32.mrf.mxu0  ;;  %v5826_v7 = vpop.f32.mrf.mxu2 }
 0x145   : > { %v1365_v24 = vrot.slane %v1277_v13, 5  ;;  %v1779_v13 = vrot.slane %v5766_v16, 6 }
 0x146   : > { %v1397_v4 = vsel %vm1395_vm15, %v1392_v38, %v1393_v52 }
 0x147   : > { %v5830_v43 = vadd.f32 %v1494_v6, %v1397_v4  ;;  %v5836_v22 = vsel %vm1395_vm15, %v7708_v61, %v1365_v24  ;;  %v1355_v61 = vrot.slane %v5679_v18, 5  ;;  %v1855_v0 = vsel %vm1817_vm0, %v1778_v56, %v1779_v13 }
 0x148   : > { %2008 = vmatmul.bf16.gmra.mxu3 %v4905_v51  ;;  %v1780_v18 = vrot.slane %v5782_v27, 6 }
 0x149   : > { %7854 = vst [vmem:[#allocation69_spill] sm:$0xff] %v5830_v43  ;;  %1731 = vmatmul.bf16.gmra.mxu2 %v4946_v14 }
 0x14a   : > { %v1499_v21 = vpop.f32.mrf.mxu1 }
 0x14b   : > { %v1350_v9 = vpop.f32.mrf.mxu3 }
 0x14c   : > { %v1394_v28 = vrot.slane %v1350_v9, 5  ;;  %v1280_v38 = vpop.f32.mrf.mxu0  ;;  %v5843_v4 = vpop.f32.mrf.mxu2 }
 0x14d   : > { %v1366_v6 = vrot.slane %v1280_v38, 5  ;;  %1538 = vmatmul.bf16.gmra.mxu1 %v5204_v58 }
 0x14e   : > { %v1396_v43 = vsel %vm1395_vm15, %v1393_v52, %v1394_v28  ;;  %v1436_v35 = vsel %vm1395_vm15, %v1394_v28, %v1354_v40  ;;  %v1435_v52 = vsel %vm1395_vm15, %v1354_v40, %v1355_v61 }
 0x14f   : > { %v5850_v8 = vadd.f32 %v1496_v46, %v1396_v43  ;;  %v5852_v16 = vadd.f32 %v1499_v21, %v1436_v35  ;;  %2310 = vmatmul.bf16.gmra.mxu0 %v4905_v51  ;;  %v5859_v9 = vsel %vm1395_vm15, %v1365_v24, %v1366_v6  ;;  %v1854_v35 = vsel %vm1817_vm0, %v1779_v13, %v1780_v18 }
 0x150   : > { %v7709_v21 = vrot.slane %v5674_v31, 5  ;;  %v1356_v24 = vrot.slane %v5687_v59, 5  ;;  %v1781_v59 = vrot.slane %v5792_v50, 6  ;;  %v1358_v50 = vrot.slane %v5705_v25, 5 }
 0x151   : > { %7855 = vst [vmem:[#allocation70_spill] sm:$0xff] %v5850_v8  ;;  %v1783_v25 = vrot.slane %v5826_v7, 6 }
 0x152   : > { %7856 = vst [vmem:[#allocation71_spill] sm:$0xff] %v5852_v16  ;;  %v1501_v38 = vpop.f32.mrf.mxu1  ;;  %v1434_v13 = vsel %vm1395_vm15, %v1355_v61, %v1356_v24  ;;  %v1853_v61 = vsel %vm1817_vm0, %v1780_v18, %v1781_v59 }
 0x153   : > { %v1352_v28 = vpop.f32.mrf.mxu3  ;;  %v1502_v43 = vadd.f32 %v1501_v38, %v1435_v52 }
 0x154   : > { %v1282_v46 = vpop.f32.mrf.mxu0  ;;  %v5867_v8 = vpop.f32.mrf.mxu2 }
 0x155   : > { %v1367_v16 = vrot.slane %v1282_v46, 5  ;;  %v1862_v56 = vadd.f32 %v1857_v42, %v1502_v43  ;;  %v1357_v43 = vrot.slane %v5695_v36, 5  ;;  %v1782_v46 = vrot.slane %v5811_v39, 6 }
 0x157   : > { %v5872_v27 = vsel %vm1395_vm15, %v1366_v6, %v1367_v16  ;;  %v5878_v40 = vsel %vm1395_vm15, %v1367_v16, %v7709_v21  ;;  %v1852_v36 = vsel %vm1817_vm0, %v1781_v59, %v1782_v46  ;;  %v1851_v7 = vsel %vm1817_vm0, %v1782_v46, %v1783_v25 }
 0x158   : > { %2013 = vmatmul.bf16.gmra.mxu3 %v5044_v54 }
 0x159   : > { %1736 = vmatmul.bf16.gmra.mxu2 %v5079_v41 }
 0x15a   : > { %v1504_v42 = vpop.f32.mrf.mxu1 }
 0x15b   : > { %v5885_v52 = vpop.f32.mrf.mxu3  ;;  %v1505_v6 = vadd.f32 %v1504_v42, %v1434_v13  ;;  %v1433_v13 = vsel %vm1395_vm15, %v1356_v24, %v1357_v43 }
 0x15c   : > { %v5887_v38 = vpop.f32.mrf.mxu0  ;;  %v5890_v16 = vpop.f32.mrf.mxu2  ;;  %v7858_v24 = vrot.slane %v5885_v52, 7 }
 0x15d   : > { %7857 = vst [vmem:[#allocation72_spill] sm:$0xff] %v5887_v38  ;;  %v1863_v28 = vadd.f32 %v1856_v53, %v1505_v6  ;;  %1543 = vmatmul.bf16.gmra.mxu1 %v5387_v33 }
 0x15f   : > { %2315 = vmatmul.bf16.gmra.mxu0 %v5044_v54  ;;  %v7718_v54 = vrot.slane %v5887_v38, 7 }
 0x162   : > { %v1506_v42 = vpop.f32.mrf.mxu1 }
 0x163   : > { %v1976_v53 = vpop.f32.mrf.mxu3  ;;  %v1507_v6 = vadd.f32 %v1506_v42, %v1433_v13 }
 0x164   : > { %v2079_v21 = vrot.slane %v1976_v53, 7  ;;  %v2278_v51 = vpop.f32.mrf.mxu0  ;;  %v5904_v39 = vpop.f32.mrf.mxu2 }
 0x165   : > { %v1864_v18 = vadd.f32 %v1855_v0, %v1507_v6  ;;  %v2381_v62 = vrot.slane %v2278_v51, 7  ;;  %v1432_v51 = vsel %vm1395_vm15, %v1357_v43, %v1358_v50 }
 0x166   : > { %v2159_v49 = vsel %vm2119_vm1, %v7858_v24, %v2079_v21 }
 0x167   : > { %v2164_v1 = vadd.f32 %v2159_v49, %v1862_v56  ;;  %v5915_v13 = vsel %vm2119_vm1, %v7718_v54, %v2381_v62  ;;  %v1359_v54 = vrot.slane %v5720_v10, 5 }
 0x168   : > { %7859 = vst [vmem:[#allocation73_spill] sm:$0xff] %v5915_v13  ;;  %2018 = vmatmul.bf16.gmra.mxu3 %v5204_v58 }
 0x169   : > { %1741 = vmatmul.bf16.gmra.mxu2 %v5238_v57 }
 0x16a   : > { %v1509_v0 = vpop.f32.mrf.mxu1 }
 0x16b   : > { %v1979_v59 = vpop.f32.mrf.mxu3  ;;  %v1510_v42 = vadd.f32 %v1509_v0, %v1432_v51  ;;  %v1431_v51 = vsel %vm1395_vm15, %v1358_v50, %v1359_v54 }
 0x16c   : > { %v2080_v53 = vrot.slane %v1979_v59, 7  ;;  %v2281_v49 = vpop.f32.mrf.mxu0  ;;  %v5923_v24 = vpop.f32.mrf.mxu2 }
 0x16d   : > { %v1865_v56 = vadd.f32 %v1854_v35, %v1510_v42  ;;  %v2382_v6 = vrot.slane %v2281_v49, 7  ;;  %1548 = vmatmul.bf16.gmra.mxu1 %v5549_v45  ;;  %v1784_v35 = vrot.slane %v5843_v4, 6 }
 0x16e   : > { %v2158_v43 = vsel %vm2119_vm1, %v2079_v21, %v2080_v53 }
 0x16f   : > { %v2165_v13 = vadd.f32 %v2158_v43, %v1863_v28  ;;  %v5930_v38 = vsel %vm2119_vm1, %v2381_v62, %v2382_v6  ;;  %2320 = vmatmul.bf16.gmra.mxu0 %v5204_v58  ;;  %v1850_v28 = vsel %vm1817_vm0, %v1783_v25, %v1784_v35 }
 0x170   : > { %7860 = vst [vmem:[#allocation74_spill] sm:$0xff] %v5930_v38  ;;  %v1360_v38 = vrot.slane %v5732_v17, 5 }
 0x172   : > { %v1511_v0 = vpop.f32.mrf.mxu1  ;;  %v1430_v25 = vsel %vm1395_vm15, %v1359_v54, %v1360_v38 }
 0x173   : > { %v1981_v10 = vpop.f32.mrf.mxu3  ;;  %v1512_v59 = vadd.f32 %v1511_v0, %v1431_v51  ;;  %v1785_v0 = vrot.slane %v5867_v8, 6 }
 0x174   : > { %v2081_v42 = vrot.slane %v1981_v10, 7  ;;  %v2283_v21 = vpop.f32.mrf.mxu0  ;;  %v5940_v43 = vpop.f32.mrf.mxu2 }
 0x175   : > { %v1866_v62 = vadd.f32 %v1853_v61, %v1512_v59  ;;  %v2383_v49 = vrot.slane %v2283_v21, 7  ;;  %v1849_v8 = vsel %vm1817_vm0, %v1784_v35, %v1785_v0  ;;  %v1362_v35 = vrot.slane %v5769_v5, 5 }
 0x176   : > { %v2157_v4 = vsel %vm2119_vm1, %v2080_v53, %v2081_v42 }
 0x177   : > { %v2166_v46 = vadd.f32 %v2157_v4, %v1864_v18  ;;  %v2458_v50 = vsel %vm2119_vm1, %v2382_v6, %v2383_v49 }
 0x178   : > { %2023 = vmatmul.bf16.gmra.mxu3 %v5387_v33  ;;  %v5948_v51 = vadd.f32 %v2458_v50, %v2164_v1  ;;  %v1361_v1 = vrot.slane %v5751_v34, 5 }
 0x179   : > { %1746 = vmatmul.bf16.gmra.mxu2 %v4971_v47 }
 0x17a   : > { %7861 = vst [vmem:[#allocation75_spill] sm:$0xff] %v5948_v51  ;;  %v1514_v61 = vpop.f32.mrf.mxu1 }
 0x17b   : > { %v1984_v17 = vpop.f32.mrf.mxu3  ;;  %v1515_v10 = vadd.f32 %v1514_v61, %v1430_v25  ;;  %v1429_v61 = vsel %vm1395_vm15, %v1360_v38, %v1361_v1 }
 0x17c   : > { %v2082_v59 = vrot.slane %v1984_v17, 7  ;;  %v2286_v53 = vpop.f32.mrf.mxu0  ;;  %v5955_v6 = vpop.f32.mrf.mxu2 }
 0x17d   : > { %v1867_v18 = vadd.f32 %v1852_v36, %v1515_v10  ;;  %v2384_v21 = vrot.slane %v2286_v53, 7  ;;  %1553 = vmatmul.bf16.gmra.mxu1 %v4946_v14  ;;  %v1786_v36 = vrot.slane %v5890_v16, 6 }
 0x17e   : > { %v2156_v54 = vsel %vm2119_vm1, %v2081_v42, %v2082_v59 }
 0x17f   : > { %v2167_v4 = vadd.f32 %v2156_v54, %v1865_v56  ;;  %v2457_v50 = vsel %vm2119_vm1, %v2383_v49, %v2384_v21  ;;  %2325 = vmatmul.bf16.gmra.mxu0 %v5387_v33  ;;  %v1848_v49 = vsel %vm1817_vm0, %v1785_v0, %v1786_v36  ;;  %v1428_v0 = vsel %vm1395_vm15, %v1361_v1, %v1362_v35 }
 0x180   : > { %v5966_v25 = vadd.f32 %v2457_v50, %v2165_v13 }
 0x182   : > { %v1516_v34 = vpop.f32.mrf.mxu1 }
 0x183   : > { %v1986_v17 = vpop.f32.mrf.mxu3  ;;  %v1517_v10 = vadd.f32 %v1516_v34, %v1429_v61  ;;  %v1787_v61 = vrot.slane %v5904_v39, 6 }
 0x184   : > { %v2083_v42 = vrot.slane %v1986_v17, 7  ;;  %v2288_v56 = vpop.f32.mrf.mxu0  ;;  %v5972_v51 = vpop.f32.mrf.mxu2 }
 0x185   : > { %v1868_v53 = vadd.f32 %v1851_v7, %v1517_v10  ;;  %v2385_v54 = vrot.slane %v2288_v56, 7  ;;  %v1847_v39 = vsel %vm1817_vm0, %v1786_v36, %v1787_v61 }
 0x186   : > { %v2155_v16 = vsel %vm2119_vm1, %v2082_v59, %v2083_v42 }
 0x187   : > { %v2168_v13 = vadd.f32 %v2155_v16, %v1866_v62  ;;  %v2456_v38 = vsel %vm2119_vm1, %v2384_v21, %v2385_v54 }
 0x188   : > { %2028 = vmatmul.bf16.gmra.mxu3 %v5549_v45  ;;  %v5980_v50 = vadd.f32 %v2456_v38, %v2166_v46  ;;  %v1363_v46 = vrot.slane %v5785_v23, 5 }
 0x189   : > { %1751 = vmatmul.bf16.gmra.mxu2 %v5110_v30 }
 0x18a   : > { %v1519_v7 = vpop.f32.mrf.mxu1 }
 0x18b   : > { %v1989_v5 = vpop.f32.mrf.mxu3  ;;  %v1520_v34 = vadd.f32 %v1519_v7, %v1428_v0  ;;  %v1427_v0 = vsel %vm1395_vm15, %v1362_v35, %v1363_v46 }
 0x18c   : > { %v2084_v17 = vrot.slane %v1989_v5, 7  ;;  %v2291_v59 = vpop.f32.mrf.mxu0  ;;  %v5987_v21 = vpop.f32.mrf.mxu2 }
 0x18d   : > { %v1869_v62 = vadd.f32 %v1850_v28, %v1520_v34  ;;  %v2386_v10 = vrot.slane %v2291_v59, 7  ;;  %1558 = vmatmul.bf16.gmra.mxu1 %v5079_v41  ;;  %v1788_v28 = vrot.slane %v5923_v24, 6 }
 0x18e   : > { %v2154_v1 = vsel %vm2119_vm1, %v2083_v42, %v2084_v17 }
 0x18f   : > { %v2169_v56 = vadd.f32 %v2154_v1, %v1867_v18  ;;  %v2455_v16 = vsel %vm2119_vm1, %v2385_v54, %v2386_v10  ;;  %2330 = vmatmul.bf16.gmra.mxu0 %v5549_v45  ;;  %v1846_v54 = vsel %vm1817_vm0, %v1787_v61, %v1788_v28 }
 0x190   : > { %v5998_v38 = vadd.f32 %v2455_v16, %v2167_v4  ;;  %v7862_v16 = vrot.slane %v5807_v2, 5 }
 0x192   : > { %v1521_v23 = vpop.f32.mrf.mxu1  ;;  %v1426_v61 = vsel %vm1395_vm15, %v1363_v46, %v7862_v16 }
 0x193   : > { %v1991_v7 = vpop.f32.mrf.mxu3  ;;  %v1522_v5 = vadd.f32 %v1521_v23, %v1427_v0  ;;  %v1789_v0 = vrot.slane %v5940_v43, 6 }
 0x194   : > { %v2085_v42 = vrot.slane %v1991_v7, 7  ;;  %v2293_v18 = vpop.f32.mrf.mxu0  ;;  %v6004_v1 = vpop.f32.mrf.mxu2 }
 0x195   : > { %v1870_v34 = vadd.f32 %v1849_v8, %v1522_v5  ;;  %v2387_v59 = vrot.slane %v2293_v18, 7  ;;  %v1845_v43 = vsel %vm1817_vm0, %v1788_v28, %v1789_v0 }
 0x196   : > { %v2153_v24 = vsel %vm2119_vm1, %v2084_v17, %v2085_v42 }
 0x197   : > { %v2170_v4 = vadd.f32 %v2153_v24, %v1868_v53  ;;  %v2454_v36 = vsel %vm2119_vm1, %v2386_v10, %v2387_v59  ;;  %v1790_v24 = vrot.slane %v5955_v6, 6 }
 0x198   : > { %2033 = vmatmul.bf16.gmra.mxu3 %v4946_v14  ;;  %v6011_v35 = vadd.f32 %v2454_v36, %v2168_v13 }
 0x199   : > { %1756 = vmatmul.bf16.gmra.mxu2 %v5292_v37 }
 0x19a   : > { %v1524_v8 = vpop.f32.mrf.mxu1 }
 0x19b   : > { %v1994_v23 = vpop.f32.mrf.mxu3  ;;  %v1525_v17 = vadd.f32 %v1524_v8, %v1426_v61 }
 0x19c   : > { %v2086_v53 = vrot.slane %v1994_v23, 7  ;;  %v2296_v7 = vpop.f32.mrf.mxu0  ;;  %v6020_v13 = vpop.f32.mrf.mxu2 }
 0x19d   : > { %v1871_v5 = vadd.f32 %v1848_v49, %v1525_v17  ;;  %v2388_v10 = vrot.slane %v2296_v7, 7  ;;  %1563 = vmatmul.bf16.gmra.mxu1 %v5238_v57 }
 0x19e   : > { %v2152_v2 = vsel %vm2119_vm1, %v2085_v42, %v2086_v53 }
 0x19f   : > { %v2171_v18 = vadd.f32 %v2152_v2, %v1869_v62  ;;  %v2453_v46 = vsel %vm2119_vm1, %v2387_v59, %v2388_v10  ;;  %2335 = vmatmul.bf16.gmra.mxu0 %v4946_v14  ;;  %v1844_v62 = vsel %vm1817_vm0, %v1789_v0, %v1790_v24  ;;  %v1791_v0 = vrot.slane %v5972_v51, 6 }
 0x1a0   : > { %v6030_v49 = vadd.f32 %v2453_v46, %v2169_v56  ;;  %v1792_v51 = vrot.slane %v5987_v21, 6 }
 0x1a2   : > { %v1526_v36 = vpop.f32.mrf.mxu1 }
 0x1a3   : > { %v1996_v16 = vpop.f32.mrf.mxu3  ;;  %v1527_v61 = vadd.f32 %v1526_v36, %v5836_v22 }
 0x1a4   : > { %v2087_v8 = vrot.slane %v1996_v16, 7  ;;  %v2298_v23 = vpop.f32.mrf.mxu0  ;;  %v6035_v17 = vpop.f32.mrf.mxu2 }
 0x1a5   : > { %v1872_v42 = vadd.f32 %v1847_v39, %v1527_v61  ;;  %v2389_v59 = vrot.slane %v2298_v23, 7 }
 0x1a6   : > { %v2151_v28 = vsel %vm2119_vm1, %v2086_v53, %v2087_v8 }
 0x1a7   : > { %v2172_v7 = vadd.f32 %v2151_v28, %v1870_v34  ;;  %v2452_v6 = vsel %vm2119_vm1, %v2388_v10, %v2389_v59 }
 0x1a8   : > { %2038 = vmatmul.bf16.gmra.mxu3 %v5079_v41  ;;  %v6042_v56 = vadd.f32 %v2452_v6, %v2170_v4 }
 0x1a9   : > { %1761 = vmatmul.bf16.gmra.mxu2 %v5447_v44 }
 0x1aa   : > { %v1529_v22 = vpop.f32.mrf.mxu1 }
 0x1ab   : > { %v1999_v39 = vpop.f32.mrf.mxu3  ;;  %v1530_v2 = vadd.f32 %v1529_v22, %v5859_v9  ;;  %v1843_v9 = vsel %vm1817_vm0, %v1790_v24, %v1791_v0 }
 0x1ac   : > { %v2088_v46 = vrot.slane %v1999_v39, 7  ;;  %v2301_v36 = vpop.f32.mrf.mxu0  ;;  %v6048_v34 = vpop.f32.mrf.mxu2 }
 0x1ad   : > { %v1873_v16 = vadd.f32 %v1846_v54, %v1530_v2  ;;  %v2390_v53 = vrot.slane %v2301_v36, 7  ;;  %1568 = vmatmul.bf16.gmra.mxu1 %v4971_v47 }
 0x1ae   : > { %v2150_v4 = vsel %vm2119_vm1, %v2087_v8, %v2088_v46 }
 0x1af   : > { %v2173_v10 = vadd.f32 %v2150_v4, %v1871_v5  ;;  %v2451_v61 = vsel %vm2119_vm1, %v2389_v59, %v2390_v53  ;;  %2340 = vmatmul.bf16.gmra.mxu0 %v5079_v41  ;;  %v6063_v5 = vsel %vm1817_vm0, %v1791_v0, %v1792_v51  ;;  %v1793_v0 = vrot.slane %v6004_v1, 6 }
 0x1b0   : > { %v6058_v54 = vadd.f32 %v2451_v61, %v2171_v18 }
 0x1b2   : > { %v1531_v23 = vpop.f32.mrf.mxu1 }
 0x1b3   : > { %v2001_v28 = vpop.f32.mrf.mxu3  ;;  %v1532_v6 = vadd.f32 %v1531_v23, %v5872_v27  ;;  %v4546_v27 = vld [vmem:[%s7647_s3 + $0x1b8] sm:$0xff] }
 0x1b4   : > { %v2089_v22 = vrot.slane %v2001_v28, 7  ;;  %v2303_v39 = vpop.f32.mrf.mxu0  ;;  %v6065_v2 = vpop.f32.mrf.mxu2  ;;  %2870 = vmatpush.bf16.msra.mxu2 %v4546_v27 }
 0x1b5   : > { %v1874_v8 = vadd.f32 %v1845_v43, %v1532_v6  ;;  %v2391_v59 = vrot.slane %v2303_v39, 7  ;;  %v1369_v6 = vrot.slane %v5681_v11, 5  ;;  %v7863_v11 = vrot.slane %v5674_v31, 5 }
 0x1b6   : > { %v2149_v24 = vsel %vm2119_vm1, %v2088_v46, %v2089_v22  ;;  %v4545_v46 = vld [vmem:[%s7647_s3 + $0x1b0] sm:$0xff]  ;;  %v1370_v31 = vrot.slane %v5690_v26, 5 }
 0x1b7   : > { %v2174_v21 = vadd.f32 %v2149_v24, %v1872_v42  ;;  %v2450_v18 = vsel %vm2119_vm1, %v2390_v53, %v2391_v59  ;;  %v4544_v24 = vld [vmem:[%s7647_s3 + $0x1a8] sm:$0xff] }
 0x1b8   : > { %2043 = vmatmul.bf16.gmra.mxu3 %v5238_v57  ;;  %v6075_v36 = vadd.f32 %v2450_v18, %v2172_v7  ;;  %2871 = vmatpush.bf16.msra.mxu2 %v4545_v46  ;;  %v1794_v18 = vrot.slane %v6020_v13, 6 }
 0x1b9   : > { %1766 = vmatmul.bf16.gmra.mxu2 %v5609_v60 }
 0x1ba   : > { %v1534_v43 = vpop.f32.mrf.mxu1  ;;  %v6109_v13 = vsel %vm1817_vm0, %v1793_v0, %v1794_v18 }
 0x1bb   : > { %v2004_v4 = vpop.f32.mrf.mxu3  ;;  %v1535_v42 = vadd.f32 %v1534_v43, %v5878_v40 }
 0x1bc   : > { %v2090_v53 = vrot.slane %v2004_v4, 7  ;;  %v2306_v61 = vpop.f32.mrf.mxu0  ;;  %v6084_v7 = vpop.f32.mrf.mxu2  ;;  %2872 = vmatpush.bf16.msra.mxu2 %v4544_v24 }
 0x1bd   : > { %v1875_v23 = vadd.f32 %v1844_v62, %v1535_v42  ;;  %v2392_v28 = vrot.slane %v2306_v61, 7  ;;  %1573 = vmatmul.bf16.gmra.mxu1 %v5110_v30  ;;  %v1841_v62 = vsel %vm1817_vm0, %v1792_v51, %v1793_v0  ;;  %v4543_v51 = vld [vmem:[%s7647_s3 + $0x1a0] sm:$0xff]  ;;  %v1420_v0 = vsel %vm1395_vm15, %v1369_v6, %v1370_v31 }
 0x1be   : > { %v2148_v1 = vsel %vm2119_vm1, %v2089_v22, %v2090_v53 }
 0x1bf   : > { %v2175_v39 = vadd.f32 %v2148_v1, %v1873_v16  ;;  %v2449_v40 = vsel %vm2119_vm1, %v2391_v59, %v2392_v28  ;;  %2345 = vmatmul.bf16.gmra.mxu0 %v5238_v57  ;;  %v1421_v16 = vsel %vm1395_vm15, %v7863_v11, %v1369_v6  ;;  %v4542_v11 = vld [vmem:[%s7647_s3 + $0x198] sm:$0xff]  ;;  %v1371_v6 = vrot.slane %v5698_v19, 5 }
 0x1c0   : > { %v6098_v27 = vadd.f32 %v2449_v40, %v2173_v10  ;;  %2873 = vmatpush.bf16.msra.mxu2 %v4543_v51 }
 0x1c1   : > { %v1419_v19 = vsel %vm1395_vm15, %v1370_v31, %v1371_v6  ;;  %v1372_v31 = vrot.slane %v5707_v55, 5 }
 0x1c2   : > { %v1536_v22 = vpop.f32.mrf.mxu1 }
 0x1c3   : > { %v2006_v59 = vpop.f32.mrf.mxu3  ;;  %v1537_v43 = vadd.f32 %v1536_v22, %v1421_v16 }
 0x1c4   : > { %v2091_v4 = vrot.slane %v2006_v59, 7  ;;  %v2308_v42 = vpop.f32.mrf.mxu0  ;;  %v6111_v61 = vpop.f32.mrf.mxu2  ;;  %2874 = vmatpush.bf16.msra.mxu2 %v4542_v11  ;;  %v1796_v11 = vrot.slane %v6048_v34, 6 }
 0x1c5   : > { %v1876_v10 = vadd.f32 %v1843_v9, %v1537_v43  ;;  %v2393_v46 = vrot.slane %v2308_v42, 7 }
 0x1c6   : > { %v2147_v1 = vsel %vm2119_vm1, %v2090_v53, %v2091_v4 }
 0x1c7   : > { %v2176_v40 = vadd.f32 %v2147_v1, %v1874_v8  ;;  %v2448_v24 = vsel %vm2119_vm1, %v2392_v28, %v2393_v46  ;;  %v1795_v8 = vrot.slane %v6035_v17, 6  ;;  %v4541_v28 = vld [vmem:[%s7647_s3 + $0x190] sm:$0xff] }
 0x1c8   : > { %2048 = vmatmul.bf16.gmra.mxu3 %v4971_v47  ;;  %v6122_v9 = vadd.f32 %v2448_v24, %v2174_v21  ;;  %2875 = vmatpush.bf16.msra.mxu2 %v4541_v28  ;;  %v4540_v24 = vld [vmem:[%s7647_s3 + $0x188] sm:$0xff] }
 0x1c9   : > { %1771 = vmatmul.bf16.gmra.mxu2 %v5653_v15 }
 0x1ca   : > { %v1539_v26 = vpop.f32.mrf.mxu1 }
 0x1cb   : > { %v2009_v53 = vpop.f32.mrf.mxu3  ;;  %v1540_v16 = vadd.f32 %v1539_v26, %v1420_v0  ;;  %v4539_v26 = vld [vmem:[%s7647_s3 + $0x180] sm:$0xff] }
 0x1cc   : > { %v2092_v22 = vrot.slane %v2009_v53, 7  ;;  %v2311_v59 = vpop.f32.mrf.mxu0  ;;  %v6133_v51 = vpop.f32.mrf.mxu2  ;;  %2876 = vmatpush.bf16.msra.mxu2 %v4540_v24  ;;  %v4538_v24 = vld [vmem:[%s7647_s3 + $0x178] sm:$0xff] }
 0x1cd   : > { %v1877_v21 = vadd.f32 %v6063_v5, %v1540_v16  ;;  %v2394_v43 = vrot.slane %v2311_v59, 7  ;;  %1578 = vmatmul.bf16.gmra.mxu1 %v5292_v37  ;;  %v1839_v5 = vsel %vm1817_vm0, %v1794_v18, %v1795_v8  ;;  %v6156_v16 = vsel %vm1817_vm0, %v1795_v8, %v1796_v11 }
 0x1ce   : > { %v2146_v17 = vsel %vm2119_vm1, %v2091_v4, %v2092_v22  ;;  %2568 = vmatpush.bf16.msra.mxu1 %v4538_v24  ;;  %v1418_v8 = vsel %vm1395_vm15, %v1371_v6, %v1372_v31  ;;  %v1373_v6 = vrot.slane %v5723_v48, 5  ;;  %v1798_v48 = vrot.slane %v6084_v7, 6 }
 0x1cf   : > { %v2177_v42 = vadd.f32 %v2146_v17, %v1875_v23  ;;  %v2447_v1 = vsel %vm2119_vm1, %v2393_v46, %v2394_v43  ;;  %2350 = vmatmul.bf16.gmra.mxu0 %v4971_v47 }
 0x1d0   : > { %v6147_v0 = vadd.f32 %v2447_v1, %v2175_v39  ;;  %2877 = vmatpush.bf16.msra.mxu2 %v4539_v26 }
 0x1d2   : > { %v1541_v23 = vpop.f32.mrf.mxu1 }
 0x1d3   : > { %v2011_v4 = vpop.f32.mrf.mxu3  ;;  %v1542_v46 = vadd.f32 %v1541_v23, %v1419_v19 }
 0x1d4   : > { %v2093_v18 = vrot.slane %v2011_v4, 7  ;;  %v2313_v53 = vpop.f32.mrf.mxu0  ;;  %v6158_v28 = vpop.f32.mrf.mxu2 }
 0x1d5   : > { %v1878_v34 = vadd.f32 %v1841_v62, %v1542_v46  ;;  %v2395_v39 = vrot.slane %v2313_v53, 7 }
 0x1d6   : > { %v2145_v59 = vsel %vm2119_vm1, %v2092_v22, %v2093_v18 }
 0x1d7   : > { %v2178_v17 = vadd.f32 %v2145_v59, %v1876_v10  ;;  %v2446_v1 = vsel %vm2119_vm1, %v2394_v43, %v2395_v39  ;;  %v1797_v10 = vrot.slane %v6065_v2, 6  ;;  %v4537_v43 = vld [vmem:[%s7647_s3 + $0x170] sm:$0xff] }
 0x1d8   : > { %2053 = vmatmul.bf16.gmra.mxu3 %v5110_v30  ;;  %v6169_v62 = vadd.f32 %v2446_v1, %v2176_v40  ;;  %2569 = vmatpush.bf16.msra.mxu1 %v4537_v43  ;;  %v4536_v1 = vld [vmem:[%s7647_s3 + $0x168] sm:$0xff] }
 0x1d9   : > { %2878 = vmatmul.bf16.vlgmr.msra.gmra.mxu2 %v4873_v29 }
 0x1da   : > { %v1544_v55 = vpop.f32.mrf.mxu1 }
 0x1db   : > { %v2014_v22 = vpop.f32.mrf.mxu3  ;;  %v1545_v19 = vadd.f32 %v1544_v55, %v1418_v8 }
 0x1dc   : > { %v2094_v23 = vrot.slane %v2014_v22, 7  ;;  %v2316_v4 = vpop.f32.mrf.mxu0  ;;  %v6180_v26 = vpop.f32.mrf.mxu2  ;;  %2570 = vmatpush.bf16.msra.mxu1 %v4536_v1  ;;  %v4534_v1 = vld [vmem:[%s7647_s3 + $0x158] sm:$0xff] }
 0x1dd   : > { %v1879_v40 = vadd.f32 %v6109_v13, %v1545_v19  ;;  %v2396_v46 = vrot.slane %v2316_v4, 7  ;;  %1583 = vmatmul.bf16.gmra.mxu1 %v5447_v44  ;;  %v6190_v13 = vsel %vm1817_vm0, %v1796_v11, %v1797_v10  ;;  %v4535_v11 = vld [vmem:[%s7647_s3 + $0x160] sm:$0xff]  ;;  %v6205_v19 = vsel %vm1817_vm0, %v1797_v10, %v1798_v48 }
 0x1de   : > { %v2144_v2 = vsel %vm2119_vm1, %v2093_v18, %v2094_v23 }
 0x1df   : > { %v2179_v53 = vadd.f32 %v2144_v2, %v1877_v21  ;;  %v2445_v59 = vsel %vm2119_vm1, %v2395_v39, %v2396_v46  ;;  %2355 = vmatmul.bf16.gmra.mxu0 %v5110_v30  ;;  %v1417_v21 = vsel %vm1395_vm15, %v1372_v31, %v1373_v6  ;;  %v1374_v31 = vrot.slane %v5742_v12, 5 }
 0x1e0   : > { %v6196_v24 = vadd.f32 %v2445_v59, %v2177_v42  ;;  %2571 = vmatpush.bf16.msra.mxu1 %v4535_v11 }
 0x1e1   : > { %v1416_v12 = vsel %vm1395_vm15, %v1373_v6, %v1374_v31 }
 0x1e2   : > { %7864 = vst [vmem:[#allocation76_spill] sm:$0xff] %v6196_v24  ;;  %v1546_v18 = vpop.f32.mrf.mxu1 }
 0x1e3   : > { %v2016_v39 = vpop.f32.mrf.mxu3  ;;  %v1547_v8 = vadd.f32 %v1546_v18, %v1417_v21  ;;  %v4533_v18 = vld [vmem:[%s7647_s3 + $0x150] sm:$0xff] }
 0x1e4   : > { %v2095_v55 = vrot.slane %v2016_v39, 7  ;;  %v2318_v22 = vpop.f32.mrf.mxu0  ;;  %v6207_v43 = vpop.f32.mrf.mxu2  ;;  %2572 = vmatpush.bf16.msra.mxu1 %v4534_v1 }
 0x1e5   : > { %v1880_v7 = vadd.f32 %v1839_v5, %v1547_v8  ;;  %v2397_v42 = vrot.slane %v2318_v22, 7  ;;  %v4554_v5 = vld [vmem:[%s7647_s3 + $0x1f8] sm:$0xff] }
 0x1e6   : > { %v2143_v4 = vsel %vm2119_vm1, %v2094_v23, %v2095_v55  ;;  %3171 = vmatpush.bf16.msra.mxu3 %v4554_v5  ;;  %v1799_v23 = vrot.slane %v6111_v61, 6  ;;  %v1375_v61 = vrot.slane %v5754_v20, 5  ;;  %v4532_v5 = vld [vmem:[%s7647_s3 + $0x148] sm:$0xff] }
 0x1e7   : > { %v2180_v2 = vadd.f32 %v2143_v4, %v1878_v34  ;;  %v2444_v59 = vsel %vm2119_vm1, %v2396_v46, %v2397_v42  ;;  %v4552_v20 = vld [vmem:[%s7647_s3 + $0x1e8] sm:$0xff] }
 0x1e8   : > { %2058 = vmatmul.bf16.gmra.mxu3 %v5292_v37  ;;  %v6221_v10 = vadd.f32 %v2444_v59, %v2178_v17  ;;  %v4553_v17 = vld [vmem:[%s7647_s3 + $0x1f0] sm:$0xff]  ;;  %2573 = vmatpush.bf16.msra.mxu1 %v4533_v18  ;;  %v4551_v18 = vld [vmem:[%s7647_s3 + $0x1e0] sm:$0xff] }
 0x1e9   : > { %2883 = vmatmul.bf16.gmra.mxu2 %v5016_v32 }
 0x1ea   : > { %7865 = vst [vmem:[#allocation77_spill] sm:$0xff] %v6221_v10  ;;  %v1549_v34 = vpop.f32.mrf.mxu1  ;;  %3172 = vmatpush.bf16.msra.mxu3 %v4553_v17 }
 0x1eb   : > { %v2019_v46 = vpop.f32.mrf.mxu3  ;;  %v1550_v21 = vadd.f32 %v1549_v34, %v1416_v12 }
 0x1ec   : > { %v2096_v39 = vrot.slane %v2019_v46, 7  ;;  %v2321_v8 = vpop.f32.mrf.mxu0  ;;  %v6235_v22 = vpop.f32.mrf.mxu2  ;;  %2574 = vmatpush.bf16.msra.mxu1 %v4532_v5 }
 0x1ed   : > { %v1881_v6 = vadd.f32 %v6156_v16, %v1550_v21  ;;  %v2398_v11 = vrot.slane %v2321_v8, 7  ;;  %1588 = vmatmul.bf16.gmra.mxu1 %v5609_v60  ;;  %v6245_v16 = vsel %vm1817_vm0, %v1798_v48, %v1799_v23  ;;  %v1415_v48 = vsel %vm1395_vm15, %v1374_v31, %v1375_v61  ;;  %v4531_v21 = vld [vmem:[%s7647_s3 + $0x140] sm:$0xff] }
 0x1ee   : > { %v2142_v4 = vsel %vm2119_vm1, %v2095_v55, %v2096_v39  ;;  %v1800_v55 = vrot.slane %v6133_v51, 6  ;;  %3173 = vmatpush.bf16.msra.mxu3 %v4552_v20 }
 0x1ef   : > { %v2181_v59 = vadd.f32 %v2142_v4, %v1879_v40  ;;  %v2443_v1 = vsel %vm2119_vm1, %v2397_v42, %v2398_v11  ;;  %2360 = vmatmul.bf16.gmra.mxu0 %v5292_v37  ;;  %v4562_v40 = vld [vmem:[%s7647_s3 + $0x238] sm:$0xff] }
 0x1f0   : > { %v6257_v42 = vadd.f32 %v2443_v1, %v2179_v53  ;;  %3473 = vmatpush.bf16.msra.mxu0 %v4562_v40  ;;  %v6269_v17 = vsel %vm1817_vm0, %v1799_v23, %v1800_v55  ;;  %2575 = vmatpush.bf16.msra.mxu1 %v4531_v21  ;;  %v4550_v40 = vld [vmem:[%s7647_s3 + $0x1d8] sm:$0xff] }
 0x1f2   : > { %7866 = vst [vmem:[#allocation78_spill] sm:$0xff] %v6257_v42  ;;  %v1551_v12 = vpop.f32.mrf.mxu1  ;;  %3174 = vmatpush.bf16.msra.mxu3 %v4551_v18 }
 0x1f3   : > { %v2021_v34 = vpop.f32.mrf.mxu3  ;;  %v1552_v46 = vadd.f32 %v1551_v12, %v1415_v48  ;;  %v7869_v12 = vld [vmem:[#allocation22_spill] sm:$0xff] }
 0x1f4   : > { %v2097_v51 = vrot.slane %v2021_v34, 7  ;;  %v2323_v53 = vpop.f32.mrf.mxu0  ;;  %v6272_v4 = vpop.f32.mrf.mxu2 }
 0x1f5   : > { %v1882_v31 = vadd.f32 %v6190_v13, %v1552_v46  ;;  %v2399_v8 = vrot.slane %v2323_v53, 7  ;;  %v7868_v13 = vrot.slane %v5772_v63, 5  ;;  %v4549_v46 = vld [vmem:[%s7647_s3 + $0x1d0] sm:$0xff] }
 0x1f6   : > { %v2141_v1 = vsel %vm2119_vm1, %v2096_v39, %v2097_v51  ;;  %3175 = vmatpush.bf16.msra.mxu3 %v4550_v40 }
 0x1f7   : > { %v2182_v5 = vadd.f32 %v2141_v1, %v1880_v7  ;;  %v2442_v20 = vsel %vm2119_vm1, %v2398_v11, %v2399_v8  ;;  %v1414_v48 = vsel %vm1395_vm15, %v1375_v61, %v7868_v13  ;;  %v1801_v7 = vrot.slane %v6158_v28, 6  ;;  %v4560_v13 = vld [vmem:[%s7647_s3 + $0x228] sm:$0xff] }
 0x1f8   : > { %2063 = vmatmul.bf16.gmra.mxu3 %v5447_v44  ;;  %v6282_v23 = vadd.f32 %v2442_v20, %v2180_v2  ;;  %v4561_v2 = vld [vmem:[%s7647_s3 + $0x230] sm:$0xff] }
 0x1f9   : > { %2888 = vmatmul.bf16.gmra.mxu2 %v7869_v12  ;;  %3474 = vmatpush.bf16.msra.mxu0 %v4561_v2  ;;  %v1833_v40 = vsel %vm1817_vm0, %v1800_v55, %v1801_v7  ;;  %v4547_v55 = vld [vmem:[%s7647_s3 + $0x1c0] sm:$0xff] }
 0x1fa   : > { %7867 = vst [vmem:[#allocation79_spill] sm:$0xff] %v6282_v23  ;;  %v1554_v39 = vpop.f32.mrf.mxu1  ;;  %3176 = vmatpush.bf16.msra.mxu3 %v4549_v46 }
 0x1fb   : > { %v2024_v11 = vpop.f32.mrf.mxu3  ;;  %v1555_v34 = vadd.f32 %v1554_v39, %v1414_v48  ;;  %v7871_v39 = vld [vmem:[#allocation66_spill] sm:$0xff] }
 0x1fc   : > { %v2098_v21 = vrot.slane %v2024_v11, 7  ;;  %v2326_v63 = vpop.f32.mrf.mxu0  ;;  %v6298_v53 = vpop.f32.mrf.mxu2 }
 0x1fd   : > { %v1883_v18 = vadd.f32 %v6205_v19, %v1555_v34  ;;  %v2400_v61 = vrot.slane %v2326_v63, 7  ;;  %1593 = vmatmul.bf16.gmra.mxu1 %v5653_v15  ;;  %v4548_v19 = vld [vmem:[%s7647_s3 + $0x1c8] sm:$0xff]  ;;  %3475 = vmatpush.bf16.msra.mxu0 %v4560_v13  ;;  %v4559_v34 = vld [vmem:[%s7647_s3 + $0x220] sm:$0xff] }
 0x1fe   : > { %v2140_v28 = vsel %vm2119_vm1, %v2097_v51, %v2098_v21  ;;  %v1802_v51 = vrot.slane %v6180_v26, 6  ;;  %3177 = vmatpush.bf16.msra.mxu3 %v4548_v19 }
 0x1ff   : > { %v2183_v1 = vadd.f32 %v2140_v28, %v1881_v6  ;;  %v2441_v20 = vsel %vm2119_vm1, %v2399_v8, %v2400_v61  ;;  %2365 = vmatmul.bf16.gmra.mxu0 %v5447_v44 }
 0x200   : > { %v6314_v48 = vadd.f32 %v2441_v20, %v2181_v59  ;;  %v1832_v26 = vsel %vm1817_vm0, %v1801_v7, %v1802_v51 }
 0x201   : > { %3476 = vmatpush.bf16.msra.mxu0 %v4559_v34 }
 0x202   : > { %7870 = vst [vmem:[#allocation22_spill] sm:$0xff] %v6314_v48  ;;  %v1556_v6 = vpop.f32.mrf.mxu1  ;;  %3178 = vmatpush.bf16.msra.mxu3 %v4547_v55 }
 0x203   : > { %v2026_v8 = vpop.f32.mrf.mxu3  ;;  %v1557_v11 = vadd.f32 %v1556_v6, %v7871_v39  ;;  %v4558_v6 = vld [vmem:[%s7647_s3 + $0x218] sm:$0xff]  ;;  %v1803_v39 = vrot.slane %v6207_v43, 6 }
 0x204   : > { %v2099_v46 = vrot.slane %v2026_v8, 7  ;;  %v2328_v2 = vpop.f32.mrf.mxu0  ;;  %v6326_v28 = vpop.f32.mrf.mxu2  ;;  %v7873_v8 = vld [vmem:[#allocation31_spill] sm:$0xff] }
 0x205   : > { %v1884_v59 = vadd.f32 %v6245_v16, %v1557_v11  ;;  %v2401_v63 = vrot.slane %v2328_v2, 7  ;;  %3477 = vmatpush.bf16.msra.mxu0 %v4558_v6  ;;  %v7874_v11 = vld [vmem:[#allocation67_spill] sm:$0xff] }
 0x206   : > { %v2139_v20 = vsel %vm2119_vm1, %v2098_v21, %v2099_v46 }
 0x207   : > { %v2184_v19 = vadd.f32 %v2139_v20, %v1882_v31  ;;  %v2440_v13 = vsel %vm2119_vm1, %v2400_v61, %v2401_v63  ;;  %v4557_v61 = vld [vmem:[%s7647_s3 + $0x210] sm:$0xff] }
 0x208   : > { %2068 = vmatmul.bf16.gmra.mxu3 %v5609_v60  ;;  %v6336_v7 = vadd.f32 %v2440_v13, %v2182_v5 }
 0x209   : > { %2893 = vmatmul.bf16.gmra.mxu2 %v7873_v8  ;;  %3478 = vmatpush.bf16.msra.mxu0 %v4557_v61 }
 0x20a   : > { %7872 = vst [vmem:[#allocation66_spill] sm:$0xff] %v6336_v7  ;;  %v1559_v16 = vpop.f32.mrf.mxu1 }
 0x20b   : > { %v2029_v21 = vpop.f32.mrf.mxu3  ;;  %v1560_v31 = vadd.f32 %v1559_v16, %v7874_v11  ;;  %v1831_v16 = vsel %vm1817_vm0, %v1802_v51, %v1803_v39 }
 0x20c   : > { %v2100_v55 = vrot.slane %v2029_v21, 7  ;;  %v2331_v34 = vpop.f32.mrf.mxu0  ;;  %v6346_v5 = vpop.f32.mrf.mxu2  ;;  %v1804_v21 = vrot.slane %v6235_v22, 6 }
 0x20d   : > { %v1885_v2 = vadd.f32 %v6269_v17, %v1560_v31  ;;  %v2402_v20 = vrot.slane %v2331_v34, 7  ;;  %2576 = vmatmul.bf16.vlgmr.msra.gmra.mxu1 %v4873_v29  ;;  %v4556_v17 = vld [vmem:[%s7647_s3 + $0x208] sm:$0xff] }
 0x20e   : > { %v2138_v13 = vsel %vm2119_vm1, %v2099_v46, %v2100_v55  ;;  %3479 = vmatpush.bf16.msra.mxu0 %v4556_v17  ;;  %v1830_v51 = vsel %vm1817_vm0, %v1803_v39, %v1804_v21 }
 0x20f   : > { %v2185_v43 = vadd.f32 %v2138_v13, %v1883_v18  ;;  %v2439_v6 = vsel %vm2119_vm1, %v2401_v63, %v2402_v20  ;;  %2370 = vmatmul.bf16.gmra.mxu0 %v5609_v60  ;;  %v7876_v18 = vld [vmem:[#allocation58_spill] sm:$0xff] }
 0x210   : > { %v6359_v11 = vadd.f32 %v2439_v6, %v2183_v1  ;;  %v4555_v63 = vld [vmem:[%s7647_s3 + $0x200] sm:$0xff] }
 0x212   : > { %7875 = vst [vmem:[#allocation31_spill] sm:$0xff] %v6359_v11  ;;  %v1561_v31 = vpop.f32.mrf.mxu1  ;;  %3480 = vmatpush.bf16.msra.mxu0 %v4555_v63 }
 0x213   : > { %v2031_v46 = vpop.f32.mrf.mxu3  ;;  %v1562_v61 = vadd.f32 %v1561_v31, %v7876_v18  ;;  %v7879_v18 = vld [vmem:[#allocation59_spill] sm:$0xff] }
 0x214   : > { %v2101_v34 = vrot.slane %v2031_v46, 7  ;;  %v2333_v13 = vpop.f32.mrf.mxu0  ;;  %v6367_v7 = vpop.f32.mrf.mxu2  ;;  %v7878_v46 = vld [vmem:[#allocation38_spill] sm:$0xff] }
 0x215   : > { %v1886_v10 = vadd.f32 %v1833_v40, %v1562_v61  ;;  %v2403_v24 = vrot.slane %v2333_v13, 7  ;;  %v1805_v40 = vrot.slane %v6272_v4, 6 }
 0x216   : > { %v2137_v22 = vsel %vm2119_vm1, %v2100_v55, %v2101_v34 }
 0x217   : > { %v2186_v1 = vadd.f32 %v2137_v22, %v1884_v59  ;;  %v2438_v6 = vsel %vm2119_vm1, %v2402_v20, %v2403_v24  ;;  %v1829_v4 = vsel %vm1817_vm0, %v1804_v21, %v1805_v40 }
 0x218   : > { %2073 = vmatmul.bf16.gmra.mxu3 %v5653_v15  ;;  %v6374_v17 = vadd.f32 %v2438_v6, %v2184_v19  ;;  %v1806_v6 = vrot.slane %v6298_v53, 6 }
 0x219   : > { %2898 = vmatmul.bf16.gmra.mxu2 %v7878_v46 }
 0x21a   : > { %7877 = vst [vmem:[#allocation67_spill] sm:$0xff] %v6374_v17  ;;  %v1564_v31 = vpop.f32.mrf.mxu1 }
 0x21b   : > { %v2034_v39 = vpop.f32.mrf.mxu3  ;;  %v1565_v61 = vadd.f32 %v1564_v31, %v7879_v18 }
 0x21c   : > { %v2102_v13 = vrot.slane %v2034_v39, 7  ;;  %v2336_v11 = vpop.f32.mrf.mxu0  ;;  %v6380_v59 = vpop.f32.mrf.mxu2  ;;  %v7881_v39 = vld [vmem:[#allocation62_spill] sm:$0xff] }
 0x21d   : > { %v1887_v55 = vadd.f32 %v1832_v26, %v1565_v61  ;;  %v2404_v63 = vrot.slane %v2336_v11, 7  ;;  %2581 = vmatmul.bf16.gmra.mxu1 %v5016_v32 }
 0x21e   : > { %v2136_v19 = vsel %vm2119_vm1, %v2101_v34, %v2102_v13 }
 0x21f   : > { %v2187_v20 = vadd.f32 %v2136_v19, %v1885_v2  ;;  %v2437_v22 = vsel %vm2119_vm1, %v2403_v24, %v2404_v63  ;;  %2375 = vmatmul.bf16.gmra.mxu0 %v5653_v15  ;;  %v1828_v2 = vsel %vm1817_vm0, %v1805_v40, %v1806_v6  ;;  %v1807_v40 = vrot.slane %v6326_v28, 6 }
 0x220   : > { %v6390_v26 = vadd.f32 %v2437_v22, %v2185_v43 }
 0x221   : > { %v1827_v28 = vsel %vm1817_vm0, %v1806_v6, %v1807_v40 }
 0x222   : > { %7880 = vst [vmem:[#allocation58_spill] sm:$0xff] %v6390_v26  ;;  %v1566_v11 = vpop.f32.mrf.mxu1 }
 0x223   : > { %v2036_v31 = vpop.f32.mrf.mxu3  ;;  %v1567_v18 = vadd.f32 %v1566_v11, %v7881_v39  ;;  %v7883_v11 = vld [vmem:[#allocation45_spill] sm:$0xff] }
 0x224   : > { %v2103_v61 = vrot.slane %v2036_v31, 7  ;;  %v2338_v17 = vpop.f32.mrf.mxu0  ;;  %v6395_v19 = vpop.f32.mrf.mxu2 }
 0x225   : > { %v1888_v34 = vadd.f32 %v1831_v16, %v1567_v18  ;;  %v2405_v24 = vrot.slane %v2338_v17, 7  ;;  %v7884_v17 = vld [vmem:[#allocation63_spill] sm:$0xff] }
 0x226   : > { %v2135_v21 = vsel %vm2119_vm1, %v2102_v13, %v2103_v61 }
 0x227   : > { %v2188_v48 = vadd.f32 %v2135_v21, %v1886_v10  ;;  %v2436_v53 = vsel %vm2119_vm1, %v2404_v63, %v2405_v24 }
 0x228   : > { %3179 = vmatmul.bf16.vlgmr.msra.gmra.mxu3 %v4873_v29  ;;  %v6402_v43 = vadd.f32 %v2436_v53, %v2186_v1  ;;  %v1808_v53 = vrot.slane %v6346_v5, 6 }
 0x229   : > { %2903 = vmatmul.bf16.gmra.mxu2 %v7883_v11 }
 0x22a   : > { %7882 = vst [vmem:[#allocation38_spill] sm:$0xff] %v6402_v43  ;;  %v1569_v22 = vpop.f32.mrf.mxu1 }
 0x22b   : > { %v2039_v16 = vpop.f32.mrf.mxu3  ;;  %v1570_v31 = vadd.f32 %v1569_v22, %v7884_v17  ;;  %v7886_v17 = vld [vmem:[#allocation65_spill] sm:$0xff] }
 0x22c   : > { %v2104_v39 = vrot.slane %v2039_v16, 7  ;;  %v2341_v18 = vpop.f32.mrf.mxu0  ;;  %v6408_v10 = vpop.f32.mrf.mxu2 }
 0x22d   : > { %v1889_v26 = vadd.f32 %v1830_v51, %v1570_v31  ;;  %v2406_v13 = vrot.slane %v2341_v18, 7  ;;  %2586 = vmatmul.bf16.gmra.mxu1 %v7869_v12 }
 0x22e   : > { %v2134_v1 = vsel %vm2119_vm1, %v2103_v61, %v2104_v39 }
 0x22f   : > { %v2189_v63 = vadd.f32 %v2134_v1, %v1887_v55  ;;  %v2435_v21 = vsel %vm2119_vm1, %v2405_v24, %v2406_v13  ;;  %3481 = vmatmul.bf16.vlgmr.msra.gmra.mxu0 %v4873_v29  ;;  %v1826_v55 = vsel %vm1817_vm0, %v1807_v40, %v1808_v53  ;;  %v1809_v40 = vrot.slane %v6367_v7, 6 }
 0x230   : > { %v6418_v51 = vadd.f32 %v2435_v21, %v2187_v20 }
 0x232   : > { %7885 = vst [vmem:[#allocation59_spill] sm:$0xff] %v6418_v51  ;;  %v1571_v22 = vpop.f32.mrf.mxu1 }
 0x233   : > { %v2041_v16 = vpop.f32.mrf.mxu3  ;;  %v1572_v31 = vadd.f32 %v1571_v22, %v7886_v17  ;;  %v7888_v22 = vld [vmem:[#allocation50_spill] sm:$0xff] }
 0x234   : > { %v2105_v18 = vrot.slane %v2041_v16, 7  ;;  %v2343_v43 = vpop.f32.mrf.mxu0  ;;  %v6423_v1 = vpop.f32.mrf.mxu2 }
 0x235   : > { %v1890_v61 = vadd.f32 %v1829_v4, %v1572_v31  ;;  %v2407_v24 = vrot.slane %v2343_v43, 7  ;;  %v7889_v43 = vld [vmem:[#allocation55_spill] sm:$0xff] }
 0x236   : > { %v2133_v29 = vsel %vm2119_vm1, %v2104_v39, %v2105_v18 }
 0x237   : > { %v2190_v6 = vadd.f32 %v2133_v29, %v1888_v34  ;;  %v2434_v5 = vsel %vm2119_vm1, %v2406_v13, %v2407_v24  ;;  %v7890_v13 = vld [vmem:[#allocation52_spill] sm:$0xff] }
 0x238   : > { %3184 = vmatmul.bf16.gmra.mxu3 %v5016_v32  ;;  %v6430_v20 = vadd.f32 %v2434_v5, %v2188_v48  ;;  %v1385_v29 = vrot.slane %v7890_v13, 5 }
 0x239   : > { %2908 = vmatmul.bf16.gmra.mxu2 %v7888_v22 }
 0x23a   : > { %7887 = vst [vmem:[#allocation62_spill] sm:$0xff] %v6430_v20  ;;  %v1574_v21 = vpop.f32.mrf.mxu1 }
 0x23b   : > { %v2044_v4 = vpop.f32.mrf.mxu3  ;;  %v1575_v16 = vadd.f32 %v1574_v21, %v7889_v43  ;;  %v1825_v21 = vsel %vm1817_vm0, %v1808_v53, %v1809_v40  ;;  %v7892_v43 = vld [vmem:[#allocation51_spill] sm:$0xff] }
 0x23c   : > { %v2106_v17 = vrot.slane %v2044_v4, 7  ;;  %v2346_v31 = vpop.f32.mrf.mxu0  ;;  %v6436_v34 = vpop.f32.mrf.mxu2 }
 0x23d   : > { %v1891_v51 = vadd.f32 %v1828_v2, %v1575_v16  ;;  %v2408_v39 = vrot.slane %v2346_v31, 7  ;;  %2591 = vmatmul.bf16.gmra.mxu1 %v7873_v8  ;;  %v1810_v2 = vrot.slane %v6380_v59, 6  ;;  %v7893_v16 = vrot.slane %v7892_v43, 5 }
 0x23e   : > { %v2132_v48 = vsel %vm2119_vm1, %v2105_v18, %v2106_v17 }
 0x23f   : > { %v2191_v5 = vadd.f32 %v2132_v48, %v1889_v26  ;;  %v2433_v7 = vsel %vm2119_vm1, %v2407_v24, %v2408_v39  ;;  %3486 = vmatmul.bf16.gmra.mxu0 %v5016_v32  ;;  %v1405_v31 = vsel %vm1395_vm15, %v7893_v16, %v1385_v29  ;;  %v7720_v24 = vrot.slane %v6436_v34, 6 }
 0x240   : > { %v6447_v4 = vadd.f32 %v2433_v7, %v2189_v63  ;;  %v1824_v32 = vsel %vm1817_vm0, %v1809_v40, %v1810_v2  ;;  %v7894_v63 = vld [vmem:[#allocation53_spill] sm:$0xff] }
 0x241   : > { %v1386_v7 = vrot.slane %v7894_v63, 5 }
 0x242   : > { %7891 = vst [vmem:[#allocation45_spill] sm:$0xff] %v6447_v4  ;;  %v1576_v13 = vpop.f32.mrf.mxu1 }
 0x243   : > { %v2046_v18 = vpop.f32.mrf.mxu3  ;;  %v1577_v26 = vadd.f32 %v1576_v13, %v1405_v31 }
 0x244   : > { %v2107_v48 = vrot.slane %v2046_v18, 7  ;;  %v2348_v20 = vpop.f32.mrf.mxu0  ;;  %v1769_v59 = vpop.f32.mrf.mxu2 }
 0x245   : > { %v1892_v53 = vadd.f32 %v1827_v28, %v1577_v26  ;;  %v2409_v23 = vrot.slane %v2348_v20, 7  ;;  %v1815_v4 = vrot.slane %v1769_v59, 6  ;;  %v7896_v20 = vld [vmem:[#allocation69_spill] sm:$0xff] }
 0x246   : > { %v2131_v43 = vsel %vm2119_vm1, %v2106_v17, %v2107_v48  ;;  %v1404_v17 = vsel %vm1395_vm15, %v1385_v29, %v1386_v7 }
 0x247   : > { %v2192_v16 = vadd.f32 %v2131_v43, %v1890_v61  ;;  %v2432_v31 = vsel %vm2119_vm1, %v2408_v39, %v2409_v23  ;;  %v1819_v28 = vsel %vm1817_vm0, %v7720_v24, %v1815_v4  ;;  %v7897_v61 = vld [vmem:[#allocation6_spill] sm:$0xff]  ;;  %v1811_v39 = vrot.slane %v6395_v19, 6 }
 0x248   : > { %3189 = vmatmul.bf16.gmra.mxu3 %v7869_v12  ;;  %v6462_v13 = vadd.f32 %v2432_v31, %v2190_v6  ;;  %v6469_v40 = vadd.f32 %v1819_v28, %v7896_v20 }
 0x249   : > { %2913 = vmatmul.bf16.gmra.mxu2 %v7897_v61  ;;  %v1823_v19 = vsel %vm1817_vm0, %v1810_v2, %v1811_v39 }
 0x24a   : > { %7895 = vst [vmem:[#allocation63_spill] sm:$0xff] %v6462_v13  ;;  %v1579_v18 = vpop.f32.mrf.mxu1  ;;  %v7898_v13 = vld [vmem:[#allocation54_spill] sm:$0xff] }
 0x24b   : > { %v2049_v26 = vpop.f32.mrf.mxu3  ;;  %v1580_v59 = vadd.f32 %v1579_v18, %v1404_v17  ;;  %v1387_v28 = vrot.slane %v7898_v13, 5  ;;  %v7899_v18 = vld [vmem:[#allocation57_spill] sm:$0xff] }
 0x24c   : > { %v2108_v6 = vrot.slane %v2049_v26, 7  ;;  %v2351_v63 = vpop.f32.mrf.mxu0  ;;  %v1772_v24 = vpop.f32.mrf.mxu2  ;;  %v7900_v26 = vrot.slane %v7899_v18, 6 }
 0x24d   : > { %v1893_v43 = vadd.f32 %v1826_v55, %v1580_v59  ;;  %v2410_v31 = vrot.slane %v2351_v63, 7  ;;  %2596 = vmatmul.bf16.gmra.mxu1 %v7878_v46  ;;  %v1816_v29 = vrot.slane %v1772_v24, 6  ;;  %v1812_v55 = vrot.slane %v6408_v10, 6 }
 0x24e   : > { %v2130_v20 = vsel %vm2119_vm1, %v2107_v48, %v2108_v6  ;;  %v7901_v48 = vld [vmem:[#allocation70_spill] sm:$0xff]  ;;  %v1403_v2 = vsel %vm1395_vm15, %v1386_v7, %v1387_v28 }
 0x24f   : > { %v2193_v42 = vadd.f32 %v2130_v20, %v1891_v51  ;;  %v2431_v15 = vsel %vm2119_vm1, %v2409_v23, %v2410_v31  ;;  %3491 = vmatmul.bf16.gmra.mxu0 %v7869_v12  ;;  %v1818_v13 = vsel %vm1817_vm0, %v1815_v4, %v1816_v29  ;;  %v1858_v51 = vsel %vm1817_vm0, %v1816_v29, %v7900_v26  ;;  %v7902_v23 = vld [vmem:[#allocation71_spill] sm:$0xff]  ;;  %v7903_v26 = vld [vmem:[#allocation56_spill] sm:$0xff] }
 0x250   : > { %v6485_v17 = vadd.f32 %v2431_v15, %v2191_v5  ;;  %v6494_v24 = vadd.f32 %v1818_v13, %v7901_v48  ;;  %v6497_v12 = vadd.f32 %v1858_v51, %v7902_v23  ;;  %v1822_v4 = vsel %vm1817_vm0, %v1811_v39, %v1812_v55 }
 0x251   : > { %v1388_v13 = vrot.slane %v7903_v26, 5 }
 0x252   : > { %v1581_v10 = vpop.f32.mrf.mxu1 }
 0x253   : > { %v2051_v15 = vpop.f32.mrf.mxu3  ;;  %v1582_v5 = vadd.f32 %v1581_v10, %v1403_v2  ;;  %v1402_v2 = vsel %vm1395_vm15, %v1387_v28, %v1388_v13  ;;  %v1813_v10 = vrot.slane %v6423_v1, 6 }
 0x254   : > { %v2109_v59 = vrot.slane %v2051_v15, 7  ;;  %v2353_v63 = vpop.f32.mrf.mxu0  ;;  %v1774_v29 = vpop.f32.mrf.mxu2 }
 0x255   : > { %v1894_v20 = vadd.f32 %v1825_v21, %v1582_v5  ;;  %v2411_v18 = vrot.slane %v2353_v63, 7  ;;  %v7904_v21 = vld [vmem:[#allocation15_spill] sm:$0xff]  ;;  %v1821_v1 = vsel %vm1817_vm0, %v1812_v55, %v1813_v10 }
 0x256   : > { %v2129_v51 = vsel %vm2119_vm1, %v2108_v6, %v2109_v59 }
 0x257   : > { %v2194_v48 = vadd.f32 %v2129_v51, %v1892_v53  ;;  %v2430_v7 = vsel %vm2119_vm1, %v2410_v31, %v2411_v18 }
 0x258   : > { %3194 = vmatmul.bf16.gmra.mxu3 %v7873_v8  ;;  %v6509_v23 = vadd.f32 %v2430_v7, %v2192_v16  ;;  %v7905_v16 = vld [vmem:[#allocation60_spill] sm:$0xff] }
 0x259   : > { %2918 = vmatmul.bf16.gmra.mxu2 %v7904_v21  ;;  %v1389_v26 = vrot.slane %v7905_v16, 5 }
 0x25a   : > { %v1584_v39 = vpop.f32.mrf.mxu1 }
 0x25b   : > { %v2054_v15 = vpop.f32.mrf.mxu3  ;;  %v1585_v5 = vadd.f32 %v1584_v39, %v1402_v2  ;;  %v1401_v2 = vsel %vm1395_vm15, %v1388_v13, %v1389_v26 }
 0x25c   : > { %v2110_v63 = vrot.slane %v2054_v15, 7  ;;  %v2356_v6 = vpop.f32.mrf.mxu0  ;;  %v6516_v31 = vpop.f32.mrf.mxu2 }
 0x25d   : > { %v1895_v53 = vadd.f32 %v1824_v32, %v1585_v5  ;;  %v2412_v29 = vrot.slane %v2356_v6, 7  ;;  %2601 = vmatmul.bf16.gmra.mxu1 %v7883_v11 }
 0x25e   : > { %v2128_v28 = vsel %vm2119_vm1, %v2109_v59, %v2110_v63 }
 0x25f   : > { %v2195_v51 = vadd.f32 %v2128_v28, %v1893_v43  ;;  %v2429_v7 = vsel %vm2119_vm1, %v2411_v18, %v2412_v29  ;;  %3496 = vmatmul.bf16.gmra.mxu0 %v7873_v8  ;;  %v7906_v43 = vrot.slane %v6436_v34, 6  ;;  %v7723_v28 = vrot.slane %v6516_v31, 1 }
 0x260   : > { %v6526_v32 = vadd.f32 %v2429_v7, %v2193_v42 }
 0x261   : > { %v1820_v59 = vsel %vm1817_vm0, %v1813_v10, %v7906_v43 }
 0x262   : > { %v1586_v39 = vpop.f32.mrf.mxu1 }
 0x263   : > { %v2056_v15 = vpop.f32.mrf.mxu3  ;;  %v1587_v5 = vadd.f32 %v1586_v39, %v1401_v2 }
 0x264   : > { %v2111_v6 = vrot.slane %v2056_v15, 7  ;;  %v2358_v16 = vpop.f32.mrf.mxu0  ;;  %v2881_v55 = vpop.f32.mrf.mxu2 }
 0x265   : > { %v1896_v18 = vadd.f32 %v1823_v19, %v1587_v5  ;;  %v2413_v8 = vrot.slane %v2358_v16, 7  ;;  %v2984_v2 = vrot.slane %v2881_v55, 1  ;;  %v7908_v19 = vld [vmem:[#allocation61_spill] sm:$0xff] }
 0x266   : > { %v2127_v42 = vsel %vm2119_vm1, %v2110_v63, %v2111_v6  ;;  %v7909_v10 = vrot.slane %v7908_v19, 5 }
 0x267   : > { %v2196_v7 = vadd.f32 %v2127_v42, %v1894_v20  ;;  %v2428_v13 = vsel %vm2119_vm1, %v2412_v29, %v2413_v8  ;;  %v6547_v34 = vsel %vm2722_vm2, %v7723_v28, %v2984_v2 }
 0x268   : > { %3199 = vmatmul.bf16.gmra.mxu3 %v7878_v46  ;;  %v6540_v39 = vadd.f32 %v2428_v13, %v2194_v48  ;;  %7907 = vst [vmem:[#allocation65_spill] sm:$0xff] %v6547_v34  ;;  %v1400_v20 = vsel %vm1395_vm15, %v1389_v26, %v7909_v10 }
 0x269   : > { %2923 = vmatmul.bf16.gmra.mxu2 %v5204_v58 }
 0x26a   : > { %v1589_v63 = vpop.f32.mrf.mxu1 }
 0x26b   : > { %v2059_v29 = vpop.f32.mrf.mxu3  ;;  %v1590_v15 = vadd.f32 %v1589_v63, %v1400_v20 }
 0x26c   : > { %v2112_v48 = vrot.slane %v2059_v29, 7  ;;  %v2361_v5 = vpop.f32.mrf.mxu0  ;;  %v2884_v55 = vpop.f32.mrf.mxu2  ;;  %v7911_v29 = vld [vmem:[#allocation64_spill] sm:$0xff] }
 0x26d   : > { %v1897_v16 = vadd.f32 %v1822_v4, %v1590_v15  ;;  %v2414_v43 = vrot.slane %v2361_v5, 7  ;;  %2606 = vmatmul.bf16.gmra.mxu1 %v7888_v22  ;;  %v2985_v26 = vrot.slane %v2884_v55, 1 }
 0x26e   : > { %v2126_v42 = vsel %vm2119_vm1, %v2111_v6, %v2112_v48 }
 0x26f   : > { %v2197_v13 = vadd.f32 %v2126_v42, %v1895_v53  ;;  %v2427_v19 = vsel %vm2119_vm1, %v2413_v8, %v2414_v43  ;;  %3501 = vmatmul.bf16.gmra.mxu0 %v7878_v46  ;;  %v6564_v20 = vsel %vm2722_vm2, %v2984_v2, %v2985_v26 }
 0x270   : > { %v6560_v10 = vadd.f32 %v2427_v19, %v2195_v51  ;;  %7910 = vst [vmem:[#allocation50_spill] sm:$0xff] %v6564_v20 }
 0x272   : > { %v1591_v4 = vpop.f32.mrf.mxu1 }
 0x273   : > { %v2061_v63 = vpop.f32.mrf.mxu3  ;;  %v1592_v15 = vadd.f32 %v1591_v4, %v7911_v29 }
 0x274   : > { %v2113_v5 = vrot.slane %v2061_v63, 7  ;;  %v2363_v28 = vpop.f32.mrf.mxu0  ;;  %v2886_v42 = vpop.f32.mrf.mxu2 }
 0x275   : > { %v1898_v6 = vadd.f32 %v1821_v1, %v1592_v15  ;;  %v2415_v53 = vrot.slane %v2363_v28, 7  ;;  %v2986_v55 = vrot.slane %v2886_v42, 1  ;;  %v7912_v28 = vld [vmem:[#allocation68_spill] sm:$0xff] }
 0x276   : > { %v2125_v8 = vsel %vm2119_vm1, %v2112_v48, %v2113_v5 }
 0x277   : > { %v2198_v46 = vadd.f32 %v2125_v8, %v1896_v18  ;;  %v2426_v51 = vsel %vm2119_vm1, %v2414_v43, %v2415_v53  ;;  %v6576_v19 = vsel %vm2722_vm2, %v2985_v26, %v2986_v55 }
 0x278   : > { %3204 = vmatmul.bf16.gmra.mxu3 %v7883_v11  ;;  %v6572_v2 = vadd.f32 %v2426_v51, %v2196_v7 }
 0x279   : > { %2928 = vmatmul.bf16.gmra.mxu2 %v5387_v33 }
 0x27a   : > { %v1594_v4 = vpop.f32.mrf.mxu1 }
 0x27b   : > { %v2064_v1 = vpop.f32.mrf.mxu3  ;;  %v1595_v63 = vadd.f32 %v1594_v4, %v7912_v28 }
 0x27c   : > { %v2114_v48 = vrot.slane %v2064_v1, 7  ;;  %v2366_v18 = vpop.f32.mrf.mxu0  ;;  %v2889_v43 = vpop.f32.mrf.mxu2 }
 0x27d   : > { %v1899_v29 = vadd.f32 %v1820_v59, %v1595_v63  ;;  %v2416_v15 = vrot.slane %v2366_v18, 7  ;;  %2611 = vmatmul.bf16.gmra.mxu1 %v7897_v61  ;;  %v2987_v51 = vrot.slane %v2889_v43, 1 }
 0x27e   : > { %v2124_v7 = vsel %vm2119_vm1, %v2113_v5, %v2114_v48 }
 0x27f   : > { %v2199_v42 = vadd.f32 %v2124_v7, %v1897_v16  ;;  %v2425_v26 = vsel %vm2119_vm1, %v2415_v53, %v2416_v15  ;;  %3506 = vmatmul.bf16.gmra.mxu0 %v7883_v11  ;;  %v6590_v59 = vsel %vm2722_vm2, %v2986_v55, %v2987_v51 }
 0x280   : > { %v6586_v8 = vadd.f32 %v2425_v26, %v2197_v13 }
 0x282   : > { %v1596_v4 = vpop.f32.mrf.mxu1 }
 0x283   : > { %v2066_v1 = vpop.f32.mrf.mxu3 }
 0x284   : > { %v2115_v28 = vrot.slane %v2066_v1, 7  ;;  %v2368_v63 = vpop.f32.mrf.mxu0  ;;  %v2891_v20 = vpop.f32.mrf.mxu2 }
 0x285   : > { %v2417_v18 = vrot.slane %v2368_v63, 7  ;;  %v2988_v5 = vrot.slane %v2891_v20, 1 }
 0x286   : > { %v2123_v16 = vsel %vm2119_vm1, %v2114_v48, %v2115_v28 }
 0x287   : > { %v2200_v53 = vadd.f32 %v2123_v16, %v1898_v6  ;;  %v2424_v11 = vsel %vm2119_vm1, %v2416_v15, %v2417_v18  ;;  %v6601_v55 = vsel %vm2722_vm2, %v2987_v51, %v2988_v5 }
 0x288   : > { %3209 = vmatmul.bf16.gmra.mxu3 %v7888_v22  ;;  %v6597_v13 = vadd.f32 %v2424_v11, %v2198_v46 }
 0x289   : > { %2933 = vmatmul.bf16.gmra.mxu2 %v5549_v45 }
 0x28a   : > { %7913 = vst [vmem:[#allocation55_spill] sm:$0xff] %v6597_v13  ;;  %v6603_v43 = vpop.f32.mrf.mxu1 }
 0x28b   : > { %7914 = vst [vmem:[#allocation52_spill] sm:$0xff] %v6603_v43  ;;  %v2069_v7 = vpop.f32.mrf.mxu3 }
 0x28c   : > { %v2116_v26 = vrot.slane %v2069_v7, 7  ;;  %v2371_v48 = vpop.f32.mrf.mxu0  ;;  %v2894_v6 = vpop.f32.mrf.mxu2 }
 0x28d   : > { %v2418_v20 = vrot.slane %v2371_v48, 7  ;;  %2616 = vmatmul.bf16.gmra.mxu1 %v7904_v21  ;;  %v2989_v46 = vrot.slane %v2894_v6, 1 }
 0x28e   : > { %v2122_v15 = vsel %vm2119_vm1, %v2115_v28, %v2116_v26 }
 0x28f   : > { %v2201_v4 = vadd.f32 %v2122_v15, %v1899_v29  ;;  %v2423_v51 = vsel %vm2119_vm1, %v2417_v18, %v2418_v20  ;;  %3511 = vmatmul.bf16.gmra.mxu0 %v7888_v22  ;;  %v6616_v63 = vsel %vm2722_vm2, %v2988_v5, %v2989_v46 }
 0x290   : > { %v6612_v1 = vadd.f32 %v2423_v51, %v2199_v42  ;;  %v7725_v42 = vrot.slane %v6603_v43, 1 }
 0x292   : > { %7915 = vst [vmem:[#allocation51_spill] sm:$0xff] %v6612_v1  ;;  %v2579_v16 = vpop.f32.mrf.mxu1 }
 0x293   : > { %v2071_v11 = vpop.f32.mrf.mxu3  ;;  %v2682_v15 = vrot.slane %v2579_v16, 1 }
 0x294   : > { %v2373_v7 = vpop.f32.mrf.mxu0  ;;  %v2896_v34 = vpop.f32.mrf.mxu2  ;;  %v2117_v28 = vrot.slane %v2071_v11, 7 }
 0x295   : > { %v2419_v48 = vrot.slane %v2373_v7, 7  ;;  %v2990_v13 = vrot.slane %v2896_v34, 1 }
 0x296   : > { %v2121_v34 = vsel %vm2119_vm1, %v2116_v26, %v2117_v28  ;;  %v7917_v26 = vrot.slane %v5885_v52, 7 }
 0x297   : > { %v2422_v29 = vsel %vm2119_vm1, %v2418_v20, %v2419_v48  ;;  %v6625_v22 = vsel %vm2722_vm2, %v2989_v46, %v2990_v13 }
 0x298   : > { %3214 = vmatmul.bf16.gmra.mxu3 %v7897_v61  ;;  %v6621_v18 = vadd.f32 %v2422_v29, %v2200_v53  ;;  %v2762_v53 = vsel %vm2722_vm2, %v7725_v42, %v2682_v15  ;;  %v2161_v29 = vadd.f32 %v2121_v34, %v6469_v40  ;;  %v7918_v42 = vld [vmem:[#allocation72_spill] sm:$0xff] }
 0x299   : > { %2938 = vmatmul.bf16.gmra.mxu2 %v4946_v14  ;;  %v7919_v1 = vrot.slane %v7918_v42, 7 }
 0x29a   : > { %7916 = vst [vmem:[#allocation53_spill] sm:$0xff] %v6621_v18  ;;  %v2582_v5 = vpop.f32.mrf.mxu1 }
 0x29b   : > { %v2074_v6 = vpop.f32.mrf.mxu3  ;;  %v2683_v11 = vrot.slane %v2582_v5, 1 }
 0x29c   : > { %v2118_v51 = vrot.slane %v2074_v6, 7  ;;  %v2376_v20 = vpop.f32.mrf.mxu0  ;;  %v2899_v7 = vpop.f32.mrf.mxu2 }
 0x29d   : > { %v2420_v46 = vrot.slane %v2376_v20, 7  ;;  %2621 = vmatmul.bf16.gmra.mxu1 %v5204_v58  ;;  %v2991_v5 = vrot.slane %v2899_v7, 1  ;;  %v2761_v34 = vsel %vm2722_vm2, %v2682_v15, %v2683_v11 }
 0x29e   : > { %v2120_v18 = vsel %vm2119_vm1, %v2117_v28, %v2118_v51  ;;  %v2160_v16 = vsel %vm2119_vm1, %v2118_v51, %v7917_v26 }
 0x29f   : > { %v2162_v6 = vadd.f32 %v2120_v18, %v6494_v24  ;;  %v2163_v43 = vadd.f32 %v2160_v16, %v6497_v12  ;;  %v2421_v20 = vsel %vm2119_vm1, %v2419_v48, %v2420_v46  ;;  %v2461_v40 = vsel %vm2119_vm1, %v2420_v46, %v7919_v1  ;;  %3516 = vmatmul.bf16.gmra.mxu0 %v7897_v61  ;;  %v7920_v12 = vld [vmem:[#allocation74_spill] sm:$0xff]  ;;  %v7921_v48 = vld [vmem:[#allocation73_spill] sm:$0xff] }
 0x2a0   : > { %v2462_v28 = vadd.f32 %v2461_v40, %v2161_v29  ;;  %v6652_v52 = vadd.f32 %v2421_v20, %v2201_v4  ;;  %v6658_v24 = vsel %vm2722_vm2, %v2990_v13, %v2991_v5 }
 0x2a1   : > { %v2464_v18 = vadd.f32 %v7920_v12, %v2163_v43  ;;  %v2463_v51 = vadd.f32 %v7921_v48, %v2162_v6 }
 0x2a2   : > { %v2764_v42 = vadd.f32 %v2762_v53, %v2462_v28  ;;  %v2584_v7 = vpop.f32.mrf.mxu1 }
 0x2a3   : > { %v2076_v26 = vpop.f32.mrf.mxu3  ;;  %v2765_v1 = vadd.f32 %v2761_v34, %v2463_v51  ;;  %v2684_v46 = vrot.slane %v2584_v7, 1  ;;  %v7924_v34 = vld [vmem:[#allocation75_spill] sm:$0xff] }
 0x2a4   : > { %v2378_v61 = vpop.f32.mrf.mxu0  ;;  %v6663_v4 = vadd.f32 %v6576_v19, %v2764_v42  ;;  %v2901_v29 = vpop.f32.mrf.mxu2 }
 0x2a5   : > { %v2760_v15 = vsel %vm2722_vm2, %v2683_v11, %v2684_v46  ;;  %v6668_v13 = vadd.f32 %v6590_v59, %v2765_v1  ;;  %v2992_v43 = vrot.slane %v2901_v29, 1 }
 0x2a6   : > { %v2766_v16 = vadd.f32 %v2760_v15, %v2464_v18 }
 0x2a7   : > { %v6673_v53 = vsel %vm2722_vm2, %v2991_v5, %v2992_v43 }
 0x2a8   : > { %3219 = vmatmul.bf16.gmra.mxu3 %v7904_v21  ;;  %v6676_v6 = vadd.f32 %v6601_v55, %v2766_v16 }
 0x2a9   : > { %2943 = vmatmul.bf16.gmra.mxu2 %v5079_v41 }
 0x2aa   : > { %v2587_v19 = vpop.f32.mrf.mxu1 }
 0x2ab   : > { %v6679_v20 = vpop.f32.mrf.mxu3  ;;  %v2685_v11 = vrot.slane %v2587_v19, 1 }
 0x2ac   : > { %7922 = vst [vmem:[#allocation69_spill] sm:$0xff] %v6679_v20  ;;  %v6681_v40 = vpop.f32.mrf.mxu0  ;;  %v2904_v28 = vpop.f32.mrf.mxu2  ;;  %v7727_v48 = vrot.slane %v6679_v20, 2 }
 0x2ad   : > { %7923 = vst [vmem:[#allocation6_spill] sm:$0xff] %v6681_v40  ;;  %v2759_v59 = vsel %vm2722_vm2, %v2684_v46, %v2685_v11  ;;  %2626 = vmatmul.bf16.gmra.mxu1 %v5387_v33  ;;  %v2993_v12 = vrot.slane %v2904_v28, 1 }
 0x2ae   : > { %v2767_v5 = vadd.f32 %v2759_v59, %v7924_v34 }
 0x2af   : > { %3521 = vmatmul.bf16.gmra.mxu0 %v7904_v21  ;;  %v6690_v55 = vsel %vm2722_vm2, %v2992_v43, %v2993_v12  ;;  %v7726_v21 = vrot.slane %v6681_v40, 3 }
 0x2b0   : > { %v6693_v18 = vadd.f32 %v6616_v63, %v2767_v5 }
 0x2b2   : > { %v2589_v51 = vpop.f32.mrf.mxu1 }
 0x2b3   : > { %v3182_v42 = vpop.f32.mrf.mxu3  ;;  %v2686_v7 = vrot.slane %v2589_v51, 1 }
 0x2b4   : > { %v3285_v26 = vrot.slane %v3182_v42, 2  ;;  %v3484_v1 = vpop.f32.mrf.mxu0  ;;  %v2906_v15 = vpop.f32.mrf.mxu2 }
 0x2b5   : > { %v2758_v46 = vsel %vm2722_vm2, %v2685_v11, %v2686_v7  ;;  %v3587_v61 = vrot.slane %v3484_v1, 3  ;;  %v2994_v16 = vrot.slane %v2906_v15, 1 }
 0x2b6   : > { %v6705_v63 = vsel %vm3325_vm3, %v7727_v48, %v3285_v26  ;;  %v2768_v29 = vadd.f32 %v2758_v46, %v5966_v25 }
 0x2b7   : > { %v6712_v43 = vsel %vm3627_vm4, %v7726_v21, %v3587_v61  ;;  %v6717_v19 = vsel %vm2722_vm2, %v2993_v12, %v2994_v16 }
 0x2b8   : > { %7925 = vst [vmem:[#allocation54_spill] sm:$0xff] %v6712_v43  ;;  %3224 = vmatmul.bf16.gmra.mxu3 %v5204_v58  ;;  %v6720_v11 = vadd.f32 %v6625_v22, %v2768_v29 }
 0x2b9   : > { %2948 = vmatmul.bf16.gmra.mxu2 %v5238_v57 }
 0x2ba   : > { %v2592_v59 = vpop.f32.mrf.mxu1 }
 0x2bb   : > { %v3185_v25 = vpop.f32.mrf.mxu3  ;;  %v2687_v28 = vrot.slane %v2592_v59, 1 }
 0x2bc   : > { %v3286_v34 = vrot.slane %v3185_v25, 2  ;;  %v3487_v5 = vpop.f32.mrf.mxu0  ;;  %v2909_v1 = vpop.f32.mrf.mxu2 }
 0x2bd   : > { %v2757_v51 = vsel %vm2722_vm2, %v2686_v7, %v2687_v28  ;;  %v3588_v42 = vrot.slane %v3487_v5, 3  ;;  %2631 = vmatmul.bf16.gmra.mxu1 %v5549_v45  ;;  %v2995_v46 = vrot.slane %v2909_v1, 1 }
 0x2be   : > { %v6728_v12 = vsel %vm3325_vm3, %v3285_v26, %v3286_v34  ;;  %v2769_v22 = vadd.f32 %v2757_v51, %v5980_v50 }
 0x2bf   : > { %7926 = vst [vmem:[#allocation57_spill] sm:$0xff] %v6728_v12  ;;  %v6733_v15 = vsel %vm3627_vm4, %v3587_v61, %v3588_v42  ;;  %3526 = vmatmul.bf16.gmra.mxu0 %v5204_v58  ;;  %v6738_v7 = vsel %vm2722_vm2, %v2994_v16, %v2995_v46 }
 0x2c0   : > { %7927 = vst [vmem:[#allocation70_spill] sm:$0xff] %v6733_v15  ;;  %v6741_v29 = vadd.f32 %v6658_v24, %v2769_v22 }
 0x2c2   : > { %v2594_v59 = vpop.f32.mrf.mxu1 }
 0x2c3   : > { %v3187_v25 = vpop.f32.mrf.mxu3  ;;  %v2688_v26 = vrot.slane %v2594_v59, 1 }
 0x2c4   : > { %v3287_v5 = vrot.slane %v3187_v25, 2  ;;  %v3489_v21 = vpop.f32.mrf.mxu0  ;;  %v2911_v61 = vpop.f32.mrf.mxu2 }
 0x2c5   : > { %v2756_v50 = vsel %vm2722_vm2, %v2687_v28, %v2688_v26  ;;  %v3589_v51 = vrot.slane %v3489_v21, 3  ;;  %v2996_v1 = vrot.slane %v2911_v61, 1 }
 0x2c6   : > { %v3363_v58 = vsel %vm3325_vm3, %v3286_v34, %v3287_v5  ;;  %v2770_v16 = vadd.f32 %v2756_v50, %v5998_v38 }
 0x2c7   : > { %v3367_v24 = vadd.f32 %v3363_v58, %v6663_v4  ;;  %v3665_v22 = vsel %vm3627_vm4, %v3588_v42, %v3589_v51  ;;  %v6755_v59 = vsel %vm2722_vm2, %v2995_v46, %v2996_v1  ;;  %v7928_v42 = vld [vmem:[#allocation2_spill] sm:$0xff] }
 0x2c8   : > { %3229 = vmatmul.bf16.gmra.mxu3 %v5387_v33  ;;  %v6758_v21 = vadd.f32 %v6673_v53, %v2770_v16 }
 0x2c9   : > { %v3669_v28 = vadd.f32 %v3665_v22, %v3367_v24  ;;  %2953 = vmatmul.bf16.gmra.mxu2 %v4971_v47 }
 0x2ca   : > { %v2597_v38 = vpop.f32.mrf.mxu1 }
 0x2cb   : > { %v3190_v4 = vpop.f32.mrf.mxu3  ;;  %v2689_v34 = vrot.slane %v2597_v38, 1  ;;  %v6767_v25 = vmul.f32 %v3669_v28, %v7928_v42 }
 0x2cc   : > { %v3288_v46 = vrot.slane %v3190_v4, 2  ;;  %v3492_v50 = vpop.f32.mrf.mxu0  ;;  %v2914_v58 = vpop.f32.mrf.mxu2 }
 0x2cd   : > { %v2755_v53 = vsel %vm2722_vm2, %v2688_v26, %v2689_v34  ;;  %v3590_v61 = vrot.slane %v3492_v50, 3  ;;  %2636 = vmatmul.bf16.gmra.mxu1 %v4946_v14  ;;  %3751 = vst [vmem:[%s6763_s30] sm:$0xff] %v6767_v25  ;;  %v2997_v22 = vrot.slane %v2914_v58, 1 }
 0x2ce   : > { %v3362_v16 = vsel %vm3325_vm3, %v3287_v5, %v3288_v46  ;;  %v2771_v24 = vadd.f32 %v2755_v53, %v6011_v35  ;;  %v7929_v53 = vld [vmem:[#allocation3_spill] sm:$0xff] }
 0x2cf   : > { %v3368_v28 = vadd.f32 %v3362_v16, %v6668_v13  ;;  %v3664_v38 = vsel %vm3627_vm4, %v3589_v51, %v3590_v61  ;;  %3531 = vmatmul.bf16.gmra.mxu0 %v5387_v33  ;;  %v6783_v26 = vsel %vm2722_vm2, %v2996_v1, %v2997_v22 }
 0x2d0   : > { %v6786_v4 = vadd.f32 %v6690_v55, %v2771_v24 }
 0x2d1   : > { %v3670_v42 = vadd.f32 %v3664_v38, %v3368_v28 }
 0x2d2   : > { %v2599_v5 = vpop.f32.mrf.mxu1 }
 0x2d3   : > { %v3192_v50 = vpop.f32.mrf.mxu3  ;;  %v2690_v35 = vrot.slane %v2599_v5, 1  ;;  %v6789_v58 = vmul.f32 %v3670_v42, %v7929_v53 }
 0x2d4   : > { %v3289_v13 = vrot.slane %v3192_v50, 2  ;;  %v3494_v16 = vpop.f32.mrf.mxu0  ;;  %v2916_v48 = vpop.f32.mrf.mxu2 }
 0x2d5   : > { %v2754_v51 = vsel %vm2722_vm2, %v2689_v34, %v2690_v35  ;;  %v3591_v33 = vrot.slane %v3494_v16, 3  ;;  %3752 = vst [vmem:[%s6763_s30 + $0x8] sm:$0xff] %v6789_v58  ;;  %v2998_v24 = vrot.slane %v2916_v48, 1 }
 0x2d6   : > { %v3361_v55 = vsel %vm3325_vm3, %v3288_v46, %v3289_v13  ;;  %v2772_v1 = vadd.f32 %v2754_v51, %v6030_v49 }
 0x2d7   : > { %v3369_v28 = vadd.f32 %v3361_v55, %v6676_v6  ;;  %v3663_v38 = vsel %vm3627_vm4, %v3590_v61, %v3591_v33  ;;  %v6804_v34 = vsel %vm2722_vm2, %v2997_v22, %v2998_v24  ;;  %v7930_v6 = vld [vmem:[#allocation11_spill] sm:$0xff] }
 0x2d8   : > { %3234 = vmatmul.bf16.gmra.mxu3 %v5549_v45  ;;  %v6807_v42 = vadd.f32 %v6717_v19, %v2772_v1 }
 0x2d9   : > { %v3671_v5 = vadd.f32 %v3663_v38, %v3369_v28  ;;  %2958 = vmatmul.bf16.gmra.mxu2 %v5110_v30 }
 0x2da   : > { %v2602_v46 = vpop.f32.mrf.mxu1 }
 0x2db   : > { %v3195_v49 = vpop.f32.mrf.mxu3  ;;  %v2691_v48 = vrot.slane %v2602_v46, 1  ;;  %v6811_v50 = vmul.f32 %v3671_v5, %v7930_v6  ;;  %v7931_v6 = vld [vmem:[#allocation12_spill] sm:$0xff] }
 0x2dc   : > { %v3290_v61 = vrot.slane %v3195_v49, 2  ;;  %v3497_v53 = vpop.f32.mrf.mxu0  ;;  %v2919_v22 = vpop.f32.mrf.mxu2 }
 0x2dd   : > { %v2753_v16 = vsel %vm2722_vm2, %v2690_v35, %v2691_v48  ;;  %v3592_v51 = vrot.slane %v3497_v53, 3  ;;  %2641 = vmatmul.bf16.gmra.mxu1 %v5079_v41  ;;  %3753 = vst [vmem:[%s6763_s30 + $0x10] sm:$0xff] %v6811_v50  ;;  %v2999_v1 = vrot.slane %v2919_v22, 1 }
 0x2de   : > { %v3360_v19 = vsel %vm3325_vm3, %v3289_v13, %v3290_v61  ;;  %v2773_v55 = vadd.f32 %v2753_v16, %v6042_v56 }
 0x2df   : > { %v3370_v28 = vadd.f32 %v3360_v19, %v6693_v18  ;;  %v3662_v38 = vsel %vm3627_vm4, %v3591_v33, %v3592_v51  ;;  %3536 = vmatmul.bf16.gmra.mxu0 %v5549_v45  ;;  %v6827_v35 = vsel %vm2722_vm2, %v2998_v24, %v2999_v1 }
 0x2e0   : > { %v6830_v5 = vadd.f32 %v6738_v7, %v2773_v55 }
 0x2e1   : > { %v3672_v46 = vadd.f32 %v3662_v38, %v3370_v28 }
 0x2e2   : > { %v2604_v13 = vpop.f32.mrf.mxu1 }
 0x2e3   : > { %v3197_v49 = vpop.f32.mrf.mxu3  ;;  %v2692_v56 = vrot.slane %v2604_v13, 1  ;;  %v6833_v53 = vmul.f32 %v3672_v46, %v7931_v6  ;;  %v7932_v13 = vld [vmem:[#allocation20_spill] sm:$0xff] }
 0x2e4   : > { %v3291_v18 = vrot.slane %v3197_v49, 2  ;;  %v3499_v16 = vpop.f32.mrf.mxu0  ;;  %v6837_v22 = vpop.f32.mrf.mxu2 }
 0x2e5   : > { %v2752_v33 = vsel %vm2722_vm2, %v2691_v48, %v2692_v56  ;;  %v3593_v45 = vrot.slane %v3499_v16, 3  ;;  %3754 = vst [vmem:[%s6763_s30 + $0x18] sm:$0xff] %v6833_v53  ;;  %v7728_v19 = vrot.slane %v6837_v22, 1 }
 0x2e6   : > { %v3359_v7 = vsel %vm3325_vm3, %v3290_v61, %v3291_v18  ;;  %v2774_v24 = vadd.f32 %v2752_v33, %v6058_v54 }
 0x2e7   : > { %v3371_v55 = vadd.f32 %v3359_v7, %v6720_v11  ;;  %v3661_v28 = vsel %vm3627_vm4, %v3592_v51, %v3593_v45  ;;  %v6853_v48 = vsel %vm2722_vm2, %v2999_v1, %v7728_v19 }
 0x2e8   : > { %3239 = vmatmul.bf16.gmra.mxu3 %v4946_v14  ;;  %v6856_v61 = vadd.f32 %v6755_v59, %v2774_v24 }
 0x2e9   : > { %v3673_v54 = vadd.f32 %v3661_v28, %v3371_v55  ;;  %2963 = vmatmul.bf16.gmra.mxu2 %v5292_v37 }
 0x2ea   : > { %v2607_v38 = vpop.f32.mrf.mxu1 }
 0x2eb   : > { %v3200_v11 = vpop.f32.mrf.mxu3  ;;  %v2693_v46 = vrot.slane %v2607_v38, 1  ;;  %v6860_v51 = vmul.f32 %v3673_v54, %v7932_v13  ;;  %v7933_v13 = vld [vmem:[#allocation21_spill] sm:$0xff] }
 0x2ec   : > { %v3292_v49 = vrot.slane %v3200_v11, 2  ;;  %v3502_v6 = vpop.f32.mrf.mxu0  ;;  %v6865_v1 = vpop.f32.mrf.mxu2 }
 0x2ed   : > { %v2751_v16 = vsel %vm2722_vm2, %v2692_v56, %v2693_v46  ;;  %v3594_v33 = vrot.slane %v3502_v6, 3  ;;  %2646 = vmatmul.bf16.gmra.mxu1 %v5238_v57  ;;  %3755 = vst [vmem:[%s6763_s30 + $0x20] sm:$0xff] %v6860_v51 }
 0x2ee   : > { %v3358_v59 = vsel %vm3325_vm3, %v3291_v18, %v3292_v49  ;;  %v2775_v7 = vadd.f32 %v2751_v16, %v6075_v36 }
 0x2ef   : > { %v3372_v24 = vadd.f32 %v3358_v59, %v6741_v29  ;;  %v3660_v55 = vsel %vm3627_vm4, %v3593_v45, %v3594_v33  ;;  %3541 = vmatmul.bf16.gmra.mxu0 %v4946_v14 }
 0x2f0   : > { %v6877_v56 = vadd.f32 %v6783_v26, %v2775_v7 }
 0x2f1   : > { %v3674_v28 = vadd.f32 %v3660_v55, %v3372_v24 }
 0x2f2   : > { %v2609_v54 = vpop.f32.mrf.mxu1 }
 0x2f3   : > { %v3202_v38 = vpop.f32.mrf.mxu3  ;;  %v2694_v11 = vrot.slane %v2609_v54, 1  ;;  %v6880_v6 = vmul.f32 %v3674_v28, %v7933_v13 }
 0x2f4   : > { %v3293_v18 = vrot.slane %v3202_v38, 2  ;;  %v3504_v19 = vpop.f32.mrf.mxu0  ;;  %v6884_v16 = vpop.f32.mrf.mxu2 }
 0x2f5   : > { %v2750_v36 = vsel %vm2722_vm2, %v2693_v46, %v2694_v11  ;;  %v3595_v29 = vrot.slane %v3504_v19, 3  ;;  %3756 = vst [vmem:[%s6763_s30 + $0x28] sm:$0xff] %v6880_v6 }
 0x2f6   : > { %v3357_v14 = vsel %vm3325_vm3, %v3292_v49, %v3293_v18  ;;  %v2776_v26 = vadd.f32 %v2750_v36, %v6098_v27  ;;  %v7934_v49 = vld [vmem:[#allocation29_spill] sm:$0xff] }
 0x2f7   : > { %v3373_v45 = vadd.f32 %v3357_v14, %v6758_v21  ;;  %v3659_v59 = vsel %vm3627_vm4, %v3594_v33, %v3595_v29 }
 0x2f8   : > { %3244 = vmatmul.bf16.gmra.mxu3 %v5079_v41  ;;  %v6896_v46 = vadd.f32 %v6804_v34, %v2776_v26 }
 0x2f9   : > { %v3675_v19 = vadd.f32 %v3659_v59, %v3373_v45  ;;  %2968 = vmatmul.bf16.gmra.mxu2 %v5447_v44 }
 0x2fa   : > { %v2612_v7 = vpop.f32.mrf.mxu1 }
 0x2fb   : > { %v3205_v24 = vpop.f32.mrf.mxu3  ;;  %v2695_v55 = vrot.slane %v2612_v7, 1  ;;  %v6900_v28 = vmul.f32 %v3675_v19, %v7934_v49  ;;  %v7935_v7 = vld [vmem:[#allocation30_spill] sm:$0xff] }
 0x2fc   : > { %v3294_v27 = vrot.slane %v3205_v24, 2  ;;  %v3507_v21 = vpop.f32.mrf.mxu0  ;;  %v6905_v38 = vpop.f32.mrf.mxu2 }
 0x2fd   : > { %v2749_v54 = vsel %vm2722_vm2, %v2694_v11, %v2695_v55  ;;  %v3596_v33 = vrot.slane %v3507_v21, 3  ;;  %2651 = vmatmul.bf16.gmra.mxu1 %v4971_v47  ;;  %3757 = vst [vmem:[%s6763_s30 + $0x30] sm:$0xff] %v6900_v28 }
 0x2fe   : > { %v3356_v34 = vsel %vm3325_vm3, %v3293_v18, %v3294_v27  ;;  %v2777_v13 = vadd.f32 %v2749_v54, %v6122_v9 }
 0x2ff   : > { %v3374_v36 = vadd.f32 %v3356_v34, %v6786_v4  ;;  %v3658_v14 = vsel %vm3627_vm4, %v3595_v29, %v3596_v33  ;;  %3546 = vmatmul.bf16.gmra.mxu0 %v5079_v41  ;;  %v7729_v34 = vrot.slane %v6865_v1, 1 }
 0x300   : > { %v6917_v11 = vadd.f32 %v6827_v35, %v2777_v13 }
 0x301   : > { %v3676_v26 = vadd.f32 %v3658_v14, %v3374_v36 }
 0x302   : > { %v2614_v45 = vpop.f32.mrf.mxu1 }
 0x303   : > { %v3207_v59 = vpop.f32.mrf.mxu3  ;;  %v2696_v19 = vrot.slane %v2614_v45, 1  ;;  %v6920_v24 = vmul.f32 %v3676_v26, %v7935_v7 }
 0x304   : > { %v3295_v18 = vrot.slane %v3207_v59, 2  ;;  %v3509_v49 = vpop.f32.mrf.mxu0  ;;  %v6924_v21 = vpop.f32.mrf.mxu2 }
 0x305   : > { %v2748_v9 = vsel %vm2722_vm2, %v2695_v55, %v2696_v19  ;;  %v3597_v4 = vrot.slane %v3509_v49, 3  ;;  %3758 = vst [vmem:[%s6763_s30 + $0x38] sm:$0xff] %v6920_v24 }
 0x306   : > { %v3355_v41 = vsel %vm3325_vm3, %v3294_v27, %v3295_v18  ;;  %v2778_v35 = vadd.f32 %v2748_v9, %v6147_v0 }
 0x307   : > { %v3375_v29 = vadd.f32 %v3355_v41, %v6807_v42  ;;  %v3657_v54 = vsel %vm3627_vm4, %v3596_v33, %v3597_v4  ;;  %v7936_v42 = vld [vmem:[#allocation36_spill] sm:$0xff] }
 0x308   : > { %3249 = vmatmul.bf16.gmra.mxu3 %v5238_v57  ;;  %v6936_v55 = vadd.f32 %v6853_v48, %v2778_v35  ;;  %v7937_v48 = vrot.slane %v6837_v22, 1  ;;  %v3004_v22 = vrot.slane %v6924_v21, 1 }
 0x309   : > { %v3677_v13 = vadd.f32 %v3657_v54, %v3375_v29  ;;  %2973 = vmatmul.bf16.gmra.mxu2 %v5609_v60 }
 0x30a   : > { %v6939_v36 = vpop.f32.mrf.mxu1  ;;  %v3046_v45 = vsel %vm2722_vm2, %v7937_v48, %v7729_v34  ;;  %v7941_v34 = vld [vmem:[#allocation44_spill] sm:$0xff] }
 0x30b   : > { %v3210_v27 = vpop.f32.mrf.mxu3  ;;  %v7730_v0 = vrot.slane %v6939_v36, 1  ;;  %v6944_v14 = vmul.f32 %v3677_v13, %v7936_v42  ;;  %v7938_v42 = vld [vmem:[#allocation37_spill] sm:$0xff] }
 0x30c   : > { %v3296_v33 = vrot.slane %v3210_v27, 2  ;;  %v3512_v26 = vpop.f32.mrf.mxu0  ;;  %v2934_v49 = vpop.f32.mrf.mxu2 }
 0x30d   : > { %v2747_v59 = vsel %vm2722_vm2, %v2696_v19, %v7730_v0  ;;  %v3598_v7 = vrot.slane %v3512_v26, 3  ;;  %2656 = vmatmul.bf16.gmra.mxu1 %v5110_v30  ;;  %3759 = vst [vmem:[%s6763_s30 + $0x40] sm:$0xff] %v6944_v14  ;;  %v3005_v35 = vrot.slane %v2934_v49, 1 }
 0x30e   : > { %v3354_v9 = vsel %vm3325_vm3, %v3295_v18, %v3296_v33  ;;  %v2779_v41 = vadd.f32 %v2747_v59, %v6169_v62 }
 0x30f   : > { %v3376_v29 = vadd.f32 %v3354_v9, %v6830_v5  ;;  %v3656_v19 = vsel %vm3627_vm4, %v3597_v4, %v3598_v7  ;;  %3551 = vmatmul.bf16.gmra.mxu0 %v5238_v57  ;;  %v6971_v13 = vsel %vm2722_vm2, %v3004_v22, %v3005_v35 }
 0x310   : > { %v6967_v54 = vadd.f32 %v3046_v45, %v2779_v41 }
 0x311   : > { %v3678_v18 = vadd.f32 %v3656_v19, %v3376_v29  ;;  %v7939_v19 = vld [vmem:[#allocation47_spill] sm:$0xff] }
 0x312   : > { %v6973_v27 = vpop.f32.mrf.mxu1 }
 0x313   : > { %v3212_v62 = vpop.f32.mrf.mxu3  ;;  %v6976_v21 = vmul.f32 %v3678_v18, %v7938_v42 }
 0x314   : > { %v3297_v26 = vrot.slane %v3212_v62, 2  ;;  %v3514_v5 = vpop.f32.mrf.mxu0  ;;  %v2936_v59 = vpop.f32.mrf.mxu2 }
 0x315   : > { %v3599_v48 = vrot.slane %v3514_v5, 3  ;;  %3760 = vst [vmem:[%s6763_s30 + $0x48] sm:$0xff] %v6976_v21  ;;  %v3006_v4 = vrot.slane %v2936_v59, 1 }
 0x316   : > { %v3353_v57 = vsel %vm3325_vm3, %v3296_v33, %v3297_v26  ;;  %v7940_v33 = vld [vmem:[#allocation43_spill] sm:$0xff] }
 0x317   : > { %v3377_v45 = vadd.f32 %v3353_v57, %v6856_v61  ;;  %v3655_v49 = vsel %vm3627_vm4, %v3598_v7, %v3599_v48  ;;  %v6988_v9 = vsel %vm2722_vm2, %v3005_v35, %v3006_v4 }
 0x318   : > { %3254 = vmatmul.bf16.gmra.mxu3 %v4971_v47 }
 0x319   : > { %v3679_v41 = vadd.f32 %v3655_v49, %v3377_v45  ;;  %2978 = vmatmul.bf16.gmra.mxu2 %v7939_v19 }
 0x31a   : > { %v6990_v29 = vpop.f32.mrf.mxu1 }
 0x31b   : > { %v3215_v18 = vpop.f32.mrf.mxu3  ;;  %v6994_v62 = vmul.f32 %v3679_v41, %v7940_v33  ;;  %v7731_v33 = vrot.slane %v6905_v38, 1 }
 0x31c   : > { %v3298_v42 = vrot.slane %v3215_v18, 2  ;;  %v3517_v61 = vpop.f32.mrf.mxu0  ;;  %v2939_v7 = vpop.f32.mrf.mxu2 }
 0x31d   : > { %v3600_v5 = vrot.slane %v3517_v61, 3  ;;  %2661 = vmatmul.bf16.gmra.mxu1 %v5292_v37  ;;  %3761 = vst [vmem:[%s6763_s30 + $0x50] sm:$0xff] %v6994_v62  ;;  %v3007_v59 = vrot.slane %v2939_v7, 1 }
 0x31e   : > { %v3352_v35 = vsel %vm3325_vm3, %v3297_v26, %v3298_v42  ;;  %v7732_v26 = vrot.slane %v6990_v29, 1 }
 0x31f   : > { %v3378_v57 = vadd.f32 %v3352_v35, %v6877_v56  ;;  %v3654_v45 = vsel %vm3627_vm4, %v3599_v48, %v3600_v5  ;;  %3556 = vmatmul.bf16.gmra.mxu0 %v4971_v47  ;;  %v7007_v49 = vsel %vm2722_vm2, %v3006_v4, %v3007_v59  ;;  %v3043_v47 = vsel %vm2722_vm2, %v7731_v33, %v3004_v22 }
 0x321   : > { %v3680_v41 = vadd.f32 %v3654_v45, %v3378_v57 }
 0x322   : > { %v2624_v18 = vpop.f32.mrf.mxu1 }
 0x323   : > { %v3217_v61 = vpop.f32.mrf.mxu3  ;;  %v2700_v7 = vrot.slane %v2624_v18, 1  ;;  %v7012_v56 = vmul.f32 %v3680_v41, %v7941_v34  ;;  %v7942_v41 = vld [vmem:[#allocation78_spill] sm:$0xff] }
 0x324   : > { %v3299_v35 = vrot.slane %v3217_v61, 2  ;;  %v3519_v48 = vpop.f32.mrf.mxu0  ;;  %v2941_v45 = vpop.f32.mrf.mxu2 }
 0x325   : > { %v2744_v4 = vsel %vm2722_vm2, %v7732_v26, %v2700_v7  ;;  %v3601_v57 = vrot.slane %v3519_v48, 3  ;;  %3762 = vst [vmem:[%s6763_s30 + $0x58] sm:$0xff] %v7012_v56  ;;  %v3008_v61 = vrot.slane %v2941_v45, 1 }
 0x326   : > { %v3351_v34 = vsel %vm3325_vm3, %v3298_v42, %v3299_v35  ;;  %v2782_v18 = vadd.f32 %v2744_v4, %v7942_v41  ;;  %v7943_v4 = vld [vmem:[#allocation48_spill] sm:$0xff] }
 0x327   : > { %v3379_v0 = vadd.f32 %v3351_v34, %v6896_v46  ;;  %v3653_v22 = vsel %vm3627_vm4, %v3600_v5, %v3601_v57  ;;  %v7033_v48 = vsel %vm2722_vm2, %v3007_v59, %v3008_v61  ;;  %v7944_v59 = vld [vmem:[#allocation79_spill] sm:$0xff] }
 0x328   : > { %3259 = vmatmul.bf16.gmra.mxu3 %v5110_v30  ;;  %v7035_v33 = vadd.f32 %v3043_v47, %v2782_v18 }
 0x329   : > { %v3681_v26 = vadd.f32 %v3653_v22, %v3379_v0 }
 0x32a   : > { %v2627_v40 = vpop.f32.mrf.mxu1 }
 0x32b   : > { %v3220_v42 = vpop.f32.mrf.mxu3  ;;  %v2701_v20 = vrot.slane %v2627_v40, 1  ;;  %v7038_v45 = vmul.f32 %v3681_v26, %v7943_v4 }
 0x32c   : > { %v3300_v46 = vrot.slane %v3220_v42, 2  ;;  %v3522_v34 = vpop.f32.mrf.mxu0  ;;  %v2944_v43 = vpop.f32.mrf.mxu2 }
 0x32d   : > { %v2743_v5 = vsel %vm2722_vm2, %v2700_v7, %v2701_v20  ;;  %v3602_v41 = vrot.slane %v3522_v34, 3  ;;  %2666 = vmatmul.bf16.gmra.mxu1 %v5447_v44  ;;  %3763 = vst [vmem:[%s6763_s30 + $0x60] sm:$0xff] %v7038_v45  ;;  %v3009_v40 = vrot.slane %v2944_v43, 1 }
 0x32e   : > { %v3350_v0 = vsel %vm3325_vm3, %v3299_v35, %v3300_v46  ;;  %v2783_v47 = vadd.f32 %v2743_v5, %v7944_v59  ;;  %v7945_v5 = vld [vmem:[#allocation49_spill] sm:$0xff]  ;;  %v7946_v59 = vld [vmem:[#allocation22_spill] sm:$0xff] }
 0x32f   : > { %v3380_v26 = vadd.f32 %v3350_v0, %v6917_v11  ;;  %v3652_v18 = vsel %vm3627_vm4, %v3601_v57, %v3602_v41  ;;  %3561 = vmatmul.bf16.gmra.mxu0 %v5110_v30  ;;  %v7054_v7 = vsel %vm2722_vm2, %v3008_v61, %v3009_v40 }
 0x330   : > { %v7057_v22 = vadd.f32 %v6971_v13, %v2783_v47 }
 0x331   : > { %v3682_v42 = vadd.f32 %v3652_v18, %v3380_v26 }
 0x332   : > { %v2629_v35 = vpop.f32.mrf.mxu1 }
 0x333   : > { %v3222_v4 = vpop.f32.mrf.mxu3  ;;  %v2702_v34 = vrot.slane %v2629_v35, 1  ;;  %v7060_v43 = vmul.f32 %v3682_v42, %v7945_v5 }
 0x334   : > { %v3301_v11 = vrot.slane %v3222_v4, 2  ;;  %v3524_v0 = vpop.f32.mrf.mxu0  ;;  %v2946_v61 = vpop.f32.mrf.mxu2 }
 0x335   : > { %v2742_v57 = vsel %vm2722_vm2, %v2701_v20, %v2702_v34  ;;  %v3603_v30 = vrot.slane %v3524_v0, 3  ;;  %3764 = vst [vmem:[%s6763_s30 + $0x68] sm:$0xff] %v7060_v43  ;;  %v3010_v26 = vrot.slane %v2946_v61, 1 }
 0x336   : > { %v3349_v13 = vsel %vm3325_vm3, %v3300_v46, %v3301_v11  ;;  %v2784_v47 = vadd.f32 %v2742_v57, %v7946_v59  ;;  %v2698_v46 = vrot.slane %v6973_v27, 1  ;;  %v3002_v59 = vrot.slane %v6884_v16, 1 }
 0x337   : > { %v3381_v18 = vadd.f32 %v3349_v13, %v6936_v55  ;;  %v3651_v42 = vsel %vm3627_vm4, %v3602_v41, %v3603_v30  ;;  %v7075_v20 = vsel %vm2722_vm2, %v3009_v40, %v3010_v26  ;;  %v7947_v55 = vld [vmem:[#allocation4_spill] sm:$0xff]  ;;  %v7948_v27 = vrot.slane %v6939_v36, 1 }
 0x338   : > { %3264 = vmatmul.bf16.gmra.mxu3 %v5292_v37  ;;  %v7078_v35 = vadd.f32 %v6988_v9, %v2784_v47 }
 0x339   : > { %v3683_v4 = vadd.f32 %v3651_v42, %v3381_v18  ;;  %v2746_v47 = vsel %vm2722_vm2, %v7948_v27, %v2698_v46  ;;  %v7949_v42 = vld [vmem:[#allocation66_spill] sm:$0xff] }
 0x33a   : > { %v2632_v5 = vpop.f32.mrf.mxu1 }
 0x33b   : > { %v3225_v0 = vpop.f32.mrf.mxu3  ;;  %v2703_v57 = vrot.slane %v2632_v5, 1  ;;  %v7082_v61 = vmul.f32 %v3683_v4, %v7947_v55  ;;  %v7950_v55 = vld [vmem:[#allocation76_spill] sm:$0xff] }
 0x33c   : > { %v3302_v41 = vrot.slane %v3225_v0, 2  ;;  %v3527_v13 = vpop.f32.mrf.mxu0  ;;  %v2949_v9 = vpop.f32.mrf.mxu2 }
 0x33d   : > { %v2741_v40 = vsel %vm2722_vm2, %v2702_v34, %v2703_v57  ;;  %v3604_v15 = vrot.slane %v3527_v13, 3  ;;  %2671 = vmatmul.bf16.gmra.mxu1 %v5609_v60  ;;  %3765 = vst [vmem:[%s6763_s30 + $0x70] sm:$0xff] %v7082_v61  ;;  %v3011_v16 = vrot.slane %v2949_v9, 1 }
 0x33e   : > { %v3348_v18 = vsel %vm3325_vm3, %v3301_v11, %v3302_v41  ;;  %v2785_v4 = vadd.f32 %v2741_v40, %v7949_v42  ;;  %v2780_v11 = vadd.f32 %v2746_v47, %v7950_v55  ;;  %v7951_v40 = vrot.slane %v6865_v1, 1  ;;  %v7954_v55 = vld [vmem:[#allocation31_spill] sm:$0xff] }
 0x33f   : > { %v3382_v5 = vadd.f32 %v3348_v18, %v6967_v54  ;;  %v3650_v34 = vsel %vm3627_vm4, %v3603_v30, %v3604_v15  ;;  %3566 = vmatmul.bf16.gmra.mxu0 %v5292_v37  ;;  %v7103_v36 = vsel %vm2722_vm2, %v3010_v26, %v3011_v16  ;;  %v7952_v18 = vld [vmem:[#allocation5_spill] sm:$0xff]  ;;  %v7953_v47 = vrot.slane %v6990_v29, 1 }
 0x340   : > { %v7106_v0 = vadd.f32 %v7007_v49, %v2785_v4  ;;  %v3045_v54 = vsel %vm2722_vm2, %v7951_v40, %v3002_v59 }
 0x341   : > { %v3684_v13 = vadd.f32 %v3650_v34, %v3382_v5  ;;  %v3081_v12 = vadd.f32 %v3045_v54, %v2780_v11  ;;  %v2745_v5 = vsel %vm2722_vm2, %v2698_v46, %v7953_v47  ;;  %v7955_v54 = vld [vmem:[#allocation77_spill] sm:$0xff] }
 0x342   : > { %v2634_v9 = vpop.f32.mrf.mxu1 }
 0x343   : > { %v3227_v30 = vpop.f32.mrf.mxu3  ;;  %v2704_v27 = vrot.slane %v2634_v9, 1  ;;  %v7114_v37 = vmul.f32 %v3684_v13, %v7952_v18  ;;  %v7956_v9 = vrot.slane %v6905_v38, 1 }
 0x344   : > { %v3303_v42 = vrot.slane %v3227_v30, 2  ;;  %v3529_v26 = vpop.f32.mrf.mxu0  ;;  %v2951_v1 = vpop.f32.mrf.mxu2 }
 0x345   : > { %v2740_v49 = vsel %vm2722_vm2, %v2703_v57, %v2704_v27  ;;  %v3605_v4 = vrot.slane %v3529_v26, 3  ;;  %3766 = vst [vmem:[%s6763_s30 + $0x78] sm:$0xff] %v7114_v37  ;;  %3796 = vmatpush.msrb.mxu1 %v7114_v37  ;;  %v3012_v11 = vrot.slane %v2951_v1, 1  ;;  %v7957_v26 = vld [vmem:[#allocation13_spill] sm:$0xff] }
 0x346   : > { %v3347_v34 = vsel %vm3325_vm3, %v3302_v41, %v3303_v42  ;;  %v2786_v13 = vadd.f32 %v2740_v49, %v7954_v55  ;;  %v2781_v41 = vadd.f32 %v2745_v5, %v7955_v54  ;;  %v7958_v55 = vld [vmem:[#allocation67_spill] sm:$0xff] }
 0x347   : > { %v3383_v40 = vadd.f32 %v3347_v34, %v3081_v12  ;;  %v3649_v57 = vsel %vm3627_vm4, %v3604_v15, %v3605_v4  ;;  %3797 = vmatpush.msrb.mxu1 %v7082_v61  ;;  %v7134_v29 = vsel %vm2722_vm2, %v3011_v16, %v3012_v11  ;;  %v3044_v15 = vsel %vm2722_vm2, %v3002_v59, %v7956_v9 }
 0x348   : > { %3269 = vmatmul.bf16.gmra.mxu3 %v5447_v44  ;;  %v7137_v46 = vadd.f32 %v7033_v48, %v2786_v13  ;;  %v3082_v47 = vadd.f32 %v3044_v15, %v2781_v41  ;;  %v7959_v15 = vld [vmem:[#allocation14_spill] sm:$0xff] }
 0x349   : > { %3798 = vmatpush.msrb.mxu1 %v7060_v43  ;;  %v3685_v12 = vadd.f32 %v3649_v57, %v3383_v40 }
 0x34a   : > { %v2637_v30 = vpop.f32.mrf.mxu1 }
 0x34b   : > { %v3230_v18 = vpop.f32.mrf.mxu3  ;;  %3799 = vmatpush.msrb.mxu1 %v7038_v45  ;;  %v2705_v16 = vrot.slane %v2637_v30, 1  ;;  %v7147_v49 = vmul.f32 %v3685_v12, %v7957_v26 }
 0x34c   : > { %v3304_v48 = vrot.slane %v3230_v18, 2  ;;  %v3532_v1 = vpop.f32.mrf.mxu0  ;;  %v2954_v38 = vpop.f32.mrf.mxu2 }
 0x34d   : > { %v2739_v5 = vsel %vm2722_vm2, %v2704_v27, %v2705_v16  ;;  %v3606_v34 = vrot.slane %v3532_v1, 3  ;;  %3800 = vmatpush.msrb.mxu1 %v7012_v56  ;;  %3767 = vst [vmem:[%s6763_s30 + $0x80] sm:$0xff] %v7147_v49  ;;  %v3013_v40 = vrot.slane %v2954_v38, 1 }
 0x34e   : > { %v3346_v59 = vsel %vm3325_vm3, %v3303_v42, %v3304_v48  ;;  %v2787_v13 = vadd.f32 %v2739_v5, %v7958_v55  ;;  %2676 = vmatmul.bf16.gmra.mxu1 %v7939_v19 }
 0x34f   : > { %v3384_v57 = vadd.f32 %v3346_v59, %v3082_v47  ;;  %v3648_v54 = vsel %vm3627_vm4, %v3605_v4, %v3606_v34  ;;  %3801 = vmatpush.msrb.mxu1 %v6994_v62  ;;  %3571 = vmatmul.bf16.gmra.mxu0 %v5447_v44  ;;  %v7164_v27 = vsel %vm2722_vm2, %v3012_v11, %v3013_v40  ;;  %v7960_v47 = vld [vmem:[#allocation58_spill] sm:$0xff] }
 0x350   : > { %v7167_v42 = vadd.f32 %v7054_v7, %v2787_v13 }
 0x351   : > { %3802 = vmatpush.msrb.mxu1 %v6976_v21  ;;  %v3686_v41 = vadd.f32 %v3648_v54, %v3384_v57  ;;  %v7961_v54 = vld [vmem:[#allocation23_spill] sm:$0xff] }
 0x352   : > { %v2639_v12 = vpop.f32.mrf.mxu1 }
 0x353   : > { %v3232_v9 = vpop.f32.mrf.mxu3  ;;  %3803 = vmatpush.msrb.mxu1 %v6944_v14  ;;  %v2706_v4 = vrot.slane %v2639_v12, 1  ;;  %v7172_v30 = vmul.f32 %v3686_v41, %v7959_v15 }
 0x354   : > { %v3305_v44 = vrot.slane %v3232_v9, 2  ;;  %v3534_v18 = vpop.f32.mrf.mxu0  ;;  %v2956_v7 = vpop.f32.mrf.mxu2 }
 0x355   : > { %v2738_v11 = vsel %vm2722_vm2, %v2705_v16, %v2706_v4  ;;  %v3607_v26 = vrot.slane %v3534_v18, 3  ;;  %3804 = vmatpush.msrb.mxu1 %v6920_v24  ;;  %3768 = vst [vmem:[%s6763_s30 + $0x88] sm:$0xff] %v7172_v30  ;;  %v3014_v38 = vrot.slane %v2956_v7, 1 }
 0x356   : > { %v3345_v1 = vsel %vm3325_vm3, %v3304_v48, %v3305_v44  ;;  %v2788_v5 = vadd.f32 %v2738_v11, %v7960_v47  ;;  %v7962_v11 = vld [vmem:[#allocation38_spill] sm:$0xff] }
 0x357   : > { %v3385_v59 = vadd.f32 %v3345_v1, %v7035_v33  ;;  %v3647_v55 = vsel %vm3627_vm4, %v3606_v34, %v3607_v26  ;;  %3805 = vmatpush.msrb.mxu1 %v6900_v28  ;;  %v7189_v16 = vsel %vm2722_vm2, %v3013_v40, %v3014_v38 }
 0x358   : > { %3274 = vmatmul.bf16.gmra.mxu3 %v5609_v60  ;;  %v7192_v13 = vadd.f32 %v7075_v20, %v2788_v5 }
 0x359   : > { %3806 = vmatpush.msrb.mxu1 %v6880_v6  ;;  %v3687_v48 = vadd.f32 %v3647_v55, %v3385_v59 }
 0x35a   : > { %v2642_v57 = vpop.f32.mrf.mxu1 }
 0x35b   : > { %v3235_v33 = vpop.f32.mrf.mxu3  ;;  %3807 = vmatpush.msrb.mxu1 %v6860_v51  ;;  %v2707_v34 = vrot.slane %v2642_v57, 1  ;;  %v7197_v41 = vmul.f32 %v3687_v48, %v7961_v54 }
 0x35c   : > { %v3306_v12 = vrot.slane %v3235_v33, 2  ;;  %v3537_v9 = vpop.f32.mrf.mxu0  ;;  %v2959_v20 = vpop.f32.mrf.mxu2 }
 0x35d   : > { %v2737_v40 = vsel %vm2722_vm2, %v2706_v4, %v2707_v34  ;;  %v3608_v15 = vrot.slane %v3537_v9, 3  ;;  %3808 = vmatpush.msrb.mxu1 %v6833_v53  ;;  %3769 = vst [vmem:[%s6763_s30 + $0x90] sm:$0xff] %v7197_v41  ;;  %v3015_v1 = vrot.slane %v2959_v20, 1  ;;  %v7964_v20 = vld [vmem:[#allocation59_spill] sm:$0xff] }
 0x35e   : > { %v3344_v18 = vsel %vm3325_vm3, %v3305_v44, %v3306_v12  ;;  %v2789_v7 = vadd.f32 %v2737_v40, %v7962_v11  ;;  %v3870_v11 = vmul.f32 %v7060_v43, %v7060_v43 }
 0x35f   : > { %v3386_v47 = vadd.f32 %v3344_v18, %v7057_v22  ;;  %v3646_v5 = vsel %vm3627_vm4, %v3607_v26, %v3608_v15  ;;  %3809 = vmatpush.msrb.mxu1 %v6811_v50  ;;  %3576 = vmatmul.bf16.gmra.mxu0 %v5609_v60  ;;  %v7214_v4 = vsel %vm2722_vm2, %v3014_v38, %v3015_v1  ;;  %v7963_v60 = vld [vmem:[#allocation24_spill] sm:$0xff] }
 0x360   : > { %v7217_v59 = vadd.f32 %v7103_v36, %v2789_v7  ;;  %v3872_v22 = vmul.f32 %v7114_v37, %v7114_v37  ;;  %v3871_v36 = vmul.f32 %v7082_v61, %v7082_v61 }
 0x361   : > { %3810 = vmatpush.msrb.mxu1 %v6789_v58  ;;  %v3688_v44 = vadd.f32 %v3646_v5, %v3386_v47 }
 0x362   : > { %v2644_v55 = vpop.f32.mrf.mxu1 }
 0x363   : > { %v3237_v26 = vpop.f32.mrf.mxu3  ;;  %3811 = vmatpush.msrb.mxu1 %v6767_v25  ;;  %v2708_v48 = vrot.slane %v2644_v55, 1  ;;  %v7224_v57 = vmul.f32 %v3688_v44, %v7963_v60  ;;  %v7965_v55 = vld [vmem:[#allocation32_spill] sm:$0xff] }
 0x364   : > { %v3307_v38 = vrot.slane %v3237_v26, 2  ;;  %v3539_v33 = vpop.f32.mrf.mxu0  ;;  %v2961_v40 = vpop.f32.mrf.mxu2 }
 0x365   : > { %3898 = vmatpush.msra.mxu1 %v3872_v22  ;;  %v2736_v54 = vsel %vm2722_vm2, %v2707_v34, %v2708_v48  ;;  %v3609_v9 = vrot.slane %v3539_v33, 3  ;;  %3770 = vst [vmem:[%s6763_s30 + $0x98] sm:$0xff] %v7224_v57  ;;  %v3016_v7 = vrot.slane %v2961_v40, 1  ;;  %v3869_v34 = vmul.f32 %v7038_v45, %v7038_v45 }
 0x366   : > { %v3343_v37 = vsel %vm3325_vm3, %v3306_v12, %v3307_v38  ;;  %v2790_v18 = vadd.f32 %v2736_v54, %v7964_v20  ;;  %v7966_v54 = vld [vmem:[#allocation62_spill] sm:$0xff] }
 0x367   : > { %3899 = vmatpush.msra.mxu1 %v3871_v36  ;;  %v3387_v47 = vadd.f32 %v3343_v37, %v7078_v35  ;;  %v3645_v61 = vsel %vm3627_vm4, %v3608_v15, %v3609_v9  ;;  %v7245_v12 = vsel %vm2722_vm2, %v3015_v1, %v3016_v7  ;;  %v3868_v35 = vmul.f32 %v7012_v56, %v7012_v56 }
 0x368   : > { %3279 = vmatmul.bf16.gmra.mxu3 %v7939_v19  ;;  %v7248_v5 = vadd.f32 %v7134_v29, %v2790_v18  ;;  %v3867_v1 = vmul.f32 %v6994_v62, %v6994_v62  ;;  %v3866_v37 = vmul.f32 %v6976_v21, %v6976_v21 }
 0x369   : > { %3900 = vmatpush.msra.mxu1 %v3870_v11  ;;  %v3689_v43 = vadd.f32 %v3645_v61, %v3387_v47  ;;  %v7967_v61 = vld [vmem:[#allocation33_spill] sm:$0xff] }
 0x36a   : > { %v2647_v15 = vpop.f32.mrf.mxu1 }
 0x36b   : > { %3901 = vmatpush.msra.mxu1 %v3869_v34  ;;  %v3240_v44 = vpop.f32.mrf.mxu3  ;;  %v2709_v22 = vrot.slane %v2647_v15, 1  ;;  %v7253_v26 = vmul.f32 %v3689_v43, %v7965_v55 }
 0x36c   : > { %v3308_v45 = vrot.slane %v3240_v44, 2  ;;  %v3542_v60 = vpop.f32.mrf.mxu0  ;;  %v2964_v36 = vpop.f32.mrf.mxu2  ;;  %v7968_v44 = vld [vmem:[#allocation45_spill] sm:$0xff] }
 0x36d   : > { %3902 = vmatpush.msra.mxu1 %v3868_v35  ;;  %v2735_v29 = vsel %vm2722_vm2, %v2708_v48, %v2709_v22  ;;  %v3610_v33 = vrot.slane %v3542_v60, 3  ;;  %3771 = vst [vmem:[%s6763_s30 + $0xa0] sm:$0xff] %v7253_v26  ;;  %v3017_v20 = vrot.slane %v2964_v36, 1  ;;  %v3865_v48 = vmul.f32 %v6944_v14, %v6944_v14 }
 0x36e   : > { %v3342_v56 = vsel %vm3325_vm3, %v3307_v38, %v3308_v45  ;;  %v2791_v40 = vadd.f32 %v2735_v29, %v7966_v54  ;;  %v3862_v60 = vmul.f32 %v6880_v6, %v6880_v6  ;;  %v3860_v6 = vmul.f32 %v6833_v53, %v6833_v53 }
 0x36f   : > { %3903 = vmatpush.msra.mxu1 %v3867_v1  ;;  %v3388_v18 = vadd.f32 %v3342_v56, %v7106_v0  ;;  %v3644_v62 = vsel %vm3627_vm4, %v3609_v9, %v3610_v33  ;;  %3581 = vmatmul.bf16.gmra.mxu0 %v7939_v19  ;;  %v7274_v38 = vsel %vm2722_vm2, %v3016_v7, %v3017_v20 }
 0x370   : > { %v7277_v11 = vadd.f32 %v7164_v27, %v2791_v40  ;;  %v3864_v0 = vmul.f32 %v6920_v24, %v6920_v24  ;;  %v3863_v7 = vmul.f32 %v6900_v28, %v6900_v28  ;;  %v7969_v40 = vld [vmem:[#allocation39_spill] sm:$0xff] }
 0x371   : > { %3904 = vmatpush.msra.mxu1 %v3866_v37  ;;  %v3690_v21 = vadd.f32 %v3644_v62, %v3388_v18 }
 0x372   : > { %v2649_v9 = vpop.f32.mrf.mxu1 }
 0x373   : > { %3905 = vmatpush.msra.mxu1 %v3865_v48  ;;  %v3242_v47 = vpop.f32.mrf.mxu3  ;;  %v2710_v19 = vrot.slane %v2649_v9, 1  ;;  %v7282_v34 = vmul.f32 %v3690_v21, %v7967_v61  ;;  %v7970_v21 = vld [vmem:[#allocation63_spill] sm:$0xff]  ;;  %v3858_v9 = vmul.f32 %v6789_v58, %v6789_v58 }
 0x374   : > { %v3309_v14 = vrot.slane %v3242_v47, 2  ;;  %v3544_v43 = vpop.f32.mrf.mxu0  ;;  %v2966_v15 = vpop.f32.mrf.mxu2 }
 0x375   : > { %3906 = vmatpush.msra.mxu1 %v3864_v0  ;;  %v2734_v27 = vsel %vm2722_vm2, %v2709_v22, %v2710_v19  ;;  %v3611_v35 = vrot.slane %v3544_v43, 3  ;;  %3772 = vst [vmem:[%s6763_s30 + $0xa8] sm:$0xff] %v7282_v34  ;;  %v3018_v1 = vrot.slane %v2966_v15, 1  ;;  %v3861_v22 = vmul.f32 %v6860_v51, %v6860_v51  ;;  %v7971_v15 = vld [vmem:[#allocation40_spill] sm:$0xff] }
 0x376   : > { %v3341_v24 = vsel %vm3325_vm3, %v3308_v45, %v3309_v14  ;;  %v2792_v55 = vadd.f32 %v2734_v27, %v7968_v44 }
 0x377   : > { %3907 = vmatpush.msra.mxu1 %v3863_v7  ;;  %v3389_v29 = vadd.f32 %v3341_v24, %v7137_v46  ;;  %v3643_v28 = vsel %vm3627_vm4, %v3610_v33, %v3611_v35  ;;  %v7302_v36 = vsel %vm2722_vm2, %v3017_v20, %v3018_v1  ;;  %v3859_v20 = vmul.f32 %v6811_v50, %v6811_v50 }
 0x378   : > { %v7305_v45 = vadd.f32 %v7189_v16, %v2792_v55 }
 0x379   : > { %3908 = vmatpush.msra.mxu1 %v3862_v60  ;;  %v3691_v56 = vadd.f32 %v3643_v28, %v3389_v29 }
 0x37a   : > { %v2652_v46 = vpop.f32.mrf.mxu1 }
 0x37b   : > { %3909 = vmatpush.msra.mxu1 %v3861_v22  ;;  %v3245_v54 = vpop.f32.mrf.mxu3  ;;  %v2711_v33 = vrot.slane %v2652_v46, 1  ;;  %v7310_v37 = vmul.f32 %v3691_v56, %v7969_v40 }
 0x37c   : > { %v3310_v51 = vrot.slane %v3245_v54, 2  ;;  %v3547_v18 = vpop.f32.mrf.mxu0  ;;  %v2969_v48 = vpop.f32.mrf.mxu2 }
 0x37d   : > { %3910 = vmatpush.msra.mxu1 %v3860_v6  ;;  %v2733_v16 = vsel %vm2722_vm2, %v2710_v19, %v2711_v33  ;;  %v3612_v62 = vrot.slane %v3547_v18, 3  ;;  %3773 = vst [vmem:[%s6763_s30 + $0xb0] sm:$0xff] %v7310_v37  ;;  %v3019_v47 = vrot.slane %v2969_v48, 1  ;;  %v3857_v19 = vmul.f32 %v6767_v25, %v6767_v25 }
 0x37e   : > { %v3340_v53 = vsel %vm3325_vm3, %v3309_v14, %v3310_v51  ;;  %v2793_v0 = vadd.f32 %v2733_v16, %v7970_v21 }
 0x37f   : > { %3911 = vmatpush.msra.mxu1 %v3859_v20  ;;  %v3390_v61 = vadd.f32 %v3340_v53, %v7167_v42  ;;  %v3642_v50 = vsel %vm3627_vm4, %v3611_v35, %v3612_v62  ;;  %v7330_v14 = vsel %vm2722_vm2, %v3018_v1, %v3019_v47 }
 0x380   : > { %v7333_v43 = vadd.f32 %v7214_v4, %v2793_v0 }
 0x381   : > { %3912 = vmatpush.msra.mxu1 %v3858_v9  ;;  %v3692_v7 = vadd.f32 %v3642_v50, %v3390_v61 }
 0x382   : > { %v2654_v58 = vpop.f32.mrf.mxu1 }
 0x383   : > { %3913 = vmatpush.msra.mxu1 %v3857_v19  ;;  %v3247_v27 = vpop.f32.mrf.mxu3  ;;  %v2712_v42 = vrot.slane %v2654_v58, 1  ;;  %v7336_v24 = vmul.f32 %v3692_v7, %v7971_v15  ;;  %v7973_v58 = vld [vmem:[#allocation8_spill] sm:$0xff] }
 0x384   : > { %v3311_v35 = vrot.slane %v3247_v27, 2  ;;  %v3549_v44 = vpop.f32.mrf.mxu0  ;;  %v2971_v60 = vpop.f32.mrf.mxu2 }
 0x385   : > { %v2732_v25 = vsel %vm2722_vm2, %v2711_v33, %v2712_v42  ;;  %v3613_v55 = vrot.slane %v3549_v44, 3  ;;  %3774 = vst [vmem:[%s6763_s30 + $0xb8] sm:$0xff] %v7336_v24  ;;  %v3020_v29 = vrot.slane %v2971_v60, 1 }
 0x386   : > { %v3339_v4 = vsel %vm3325_vm3, %v3310_v51, %v3311_v35  ;;  %v2794_v1 = vadd.f32 %v2732_v25, %v6485_v17  ;;  %v7972_v51 = vld [vmem:[#allocation7_spill] sm:$0xff] }
 0x387   : > { %v3391_v28 = vadd.f32 %v3339_v4, %v7192_v13  ;;  %v3641_v22 = vsel %vm3627_vm4, %v3612_v62, %v3613_v55  ;;  %v7350_v56 = vsel %vm2722_vm2, %v3019_v47, %v3020_v29 }
 0x388   : > { %v7353_v6 = vadd.f32 %v7245_v12, %v2794_v1 }
 0x389   : > { %v3693_v46 = vadd.f32 %v3641_v22, %v3391_v28 }
 0x38a   : > { %v2657_v54 = vpop.f32.mrf.mxu1 }
 0x38b   : > { %v3250_v33 = vpop.f32.mrf.mxu3  ;;  %v2713_v40 = vrot.slane %v2657_v54, 1  ;;  %v7356_v17 = vmul.f32 %v3693_v46, %v7972_v51  ;;  %v7974_v54 = vld [vmem:[#allocation16_spill] sm:$0xff] }
 0x38c   : > { %v3312_v18 = vrot.slane %v3250_v33, 2  ;;  %v3552_v20 = vpop.f32.mrf.mxu0  ;;  %v2974_v62 = vpop.f32.mrf.mxu2 }
 0x38d   : > { %v2731_v13 = vsel %vm2722_vm2, %v2712_v42, %v2713_v40  ;;  %v3614_v16 = vrot.slane %v3552_v20, 3  ;;  %3775 = vst [vmem:[%s6763_s30 + $0xc0] sm:$0xff] %v7356_v17  ;;  %v3021_v53 = vrot.slane %v2974_v62, 1 }
 0x38e   : > { %v3338_v12 = vsel %vm3325_vm3, %v3311_v35, %v3312_v18  ;;  %v2795_v48 = vadd.f32 %v2731_v13, %v6509_v23 }
 0x38f   : > { %v3392_v21 = vadd.f32 %v3338_v12, %v7217_v59  ;;  %v3640_v0 = vsel %vm3627_vm4, %v3613_v55, %v3614_v16  ;;  %v7370_v9 = vsel %vm2722_vm2, %v3020_v29, %v3021_v53 }
 0x390   : > { %v7373_v47 = vadd.f32 %v7274_v38, %v2795_v48  ;;  %v7975_v48 = vrot.slane %v6516_v31, 1 }
 0x391   : > { %v3694_v61 = vadd.f32 %v3640_v0, %v3392_v21 }
 0x392   : > { %v2659_v50 = vpop.f32.mrf.mxu1 }
 0x393   : > { %v3252_v19 = vpop.f32.mrf.mxu3  ;;  %v2714_v7 = vrot.slane %v2659_v50, 1  ;;  %v7376_v23 = vmul.f32 %v3694_v61, %v7973_v58  ;;  %v7976_v50 = vld [vmem:[#allocation17_spill] sm:$0xff] }
 0x394   : > { %v3313_v27 = vrot.slane %v3252_v19, 2  ;;  %v3554_v42 = vpop.f32.mrf.mxu0  ;;  %v2976_v35 = vpop.f32.mrf.mxu2 }
 0x395   : > { %v2730_v59 = vsel %vm2722_vm2, %v2713_v40, %v2714_v7  ;;  %v3615_v15 = vrot.slane %v3554_v42, 3  ;;  %3776 = vst [vmem:[%s6763_s30 + $0xc8] sm:$0xff] %v7376_v23  ;;  %v3022_v25 = vrot.slane %v2976_v35, 1 }
 0x396   : > { %v3337_v38 = vsel %vm3325_vm3, %v3312_v18, %v3313_v27  ;;  %v2796_v44 = vadd.f32 %v2730_v59, %v6526_v32 }
 0x397   : > { %v3393_v55 = vadd.f32 %v3337_v38, %v7248_v5  ;;  %v3639_v60 = vsel %vm3627_vm4, %v3614_v16, %v3615_v15  ;;  %v7390_v4 = vsel %vm2722_vm2, %v3021_v53, %v3022_v25 }
 0x398   : > { %v7393_v1 = vadd.f32 %v7302_v36, %v2796_v44 }
 0x399   : > { %v3695_v29 = vadd.f32 %v3639_v60, %v3393_v55 }
 0x39a   : > { %v2662_v28 = vpop.f32.mrf.mxu1 }
 0x39b   : > { %v3255_v22 = vpop.f32.mrf.mxu3  ;;  %v2715_v46 = vrot.slane %v2662_v28, 1  ;;  %v7396_v32 = vmul.f32 %v3695_v29, %v7974_v54  ;;  %v7977_v29 = vld [vmem:[#allocation25_spill] sm:$0xff] }
 0x39c   : > { %v3314_v33 = vrot.slane %v3255_v22, 2  ;;  %v3557_v40 = vpop.f32.mrf.mxu0  ;;  %v2979_v18 = vpop.f32.mrf.mxu2 }
 0x39d   : > { %v2729_v5 = vsel %vm2722_vm2, %v2714_v7, %v2715_v46  ;;  %v3616_v51 = vrot.slane %v3557_v40, 3  ;;  %3777 = vst [vmem:[%s6763_s30 + $0xd0] sm:$0xff] %v7396_v32  ;;  %v3023_v13 = vrot.slane %v2979_v18, 1 }
 0x39e   : > { %v3336_v36 = vsel %vm3325_vm3, %v3313_v27, %v3314_v33  ;;  %v2797_v20 = vadd.f32 %v2729_v5, %v6540_v39 }
 0x39f   : > { %v3394_v16 = vadd.f32 %v3336_v36, %v7277_v11  ;;  %v3638_v62 = vsel %vm3627_vm4, %v3615_v15, %v3616_v51  ;;  %v7410_v12 = vsel %vm2722_vm2, %v3022_v25, %v3023_v13  ;;  %v7416_v53 = vsel %vm2722_vm2, %v3023_v13, %v7975_v48  ;;  %v7978_v13 = vld [vmem:[#allocation26_spill] sm:$0xff] }
 0x3a0   : > { %v7419_v21 = vadd.f32 %v7330_v14, %v2797_v20 }
 0x3a1   : > { %v3696_v39 = vadd.f32 %v3638_v62, %v3394_v16 }
 0x3a2   : > { %v2664_v0 = vpop.f32.mrf.mxu1 }
 0x3a3   : > { %v3257_v61 = vpop.f32.mrf.mxu3  ;;  %v2716_v11 = vrot.slane %v2664_v0, 1  ;;  %v7422_v19 = vmul.f32 %v3696_v39, %v7976_v50 }
 0x3a4   : > { %v3315_v7 = vrot.slane %v3257_v61, 2  ;;  %v3559_v58 = vpop.f32.mrf.mxu0  ;;  %v2981_v42 = vpop.f32.mrf.mxu2 }
 0x3a5   : > { %v2728_v27 = vsel %vm2722_vm2, %v2715_v46, %v2716_v11  ;;  %v3617_v31 = vrot.slane %v3559_v58, 3  ;;  %3778 = vst [vmem:[%s6763_s30 + $0xd8] sm:$0xff] %v7422_v19 }
 0x3a6   : > { %v3335_v14 = vsel %vm3325_vm3, %v3314_v33, %v3315_v7  ;;  %v2798_v59 = vadd.f32 %v2728_v27, %v6560_v10 }
 0x3a7   : > { %v3395_v15 = vadd.f32 %v3335_v14, %v7305_v45  ;;  %v3637_v35 = vsel %vm3627_vm4, %v3616_v51, %v3617_v31 }
 0x3a8   : > { %v7435_v38 = vadd.f32 %v7350_v56, %v2798_v59 }
 0x3a9   : > { %v3697_v44 = vadd.f32 %v3637_v35, %v3395_v15 }
 0x3aa   : > { %v2667_v25 = vpop.f32.mrf.mxu1 }
 0x3ab   : > { %v3260_v55 = vpop.f32.mrf.mxu3  ;;  %v2717_v60 = vrot.slane %v2667_v25, 1  ;;  %v7438_v28 = vmul.f32 %v3697_v44, %v7977_v29 }
 0x3ac   : > { %v3316_v22 = vrot.slane %v3260_v55, 2  ;;  %v3562_v46 = vpop.f32.mrf.mxu0 }
 0x3ad   : > { %v2727_v10 = vsel %vm2722_vm2, %v2716_v11, %v2717_v60  ;;  %v3618_v54 = vrot.slane %v3562_v46, 3  ;;  %3779 = vst [vmem:[%s6763_s30 + $0xe0] sm:$0xff] %v7438_v28 }
 0x3ae   : > { %v3334_v45 = vsel %vm3325_vm3, %v3315_v7, %v3316_v22  ;;  %v2799_v56 = vadd.f32 %v2727_v10, %v6572_v2  ;;  %v7981_v10 = vld [vmem:[#allocation10_spill] sm:$0xff] }
 0x3af   : > { %v3396_v33 = vadd.f32 %v3334_v45, %v7333_v43  ;;  %v3636_v40 = vsel %vm3627_vm4, %v3617_v31, %v3618_v54  ;;  %v7979_v31 = vld [vmem:[#allocation9_spill] sm:$0xff] }
 0x3b0   : > { %v7451_v5 = vadd.f32 %v7370_v9, %v2799_v56 }
 0x3b1   : > { %v3698_v51 = vadd.f32 %v3636_v40, %v3396_v33 }
 0x3b2   : > { %v2669_v18 = vpop.f32.mrf.mxu1 }
 0x3b3   : > { %v3262_v36 = vpop.f32.mrf.mxu3  ;;  %v2718_v20 = vrot.slane %v2669_v18, 1  ;;  %v7454_v16 = vmul.f32 %v3698_v51, %v7978_v13 }
 0x3b4   : > { %v3317_v62 = vrot.slane %v3262_v36, 2  ;;  %v3564_v48 = vpop.f32.mrf.mxu0 }
 0x3b5   : > { %v2726_v2 = vsel %vm2722_vm2, %v2717_v60, %v2718_v20  ;;  %v3619_v39 = vrot.slane %v3564_v48, 3  ;;  %3780 = vst [vmem:[%s6763_s30 + $0xe8] sm:$0xff] %v7454_v16 }
 0x3b6   : > { %v3333_v43 = vsel %vm3325_vm3, %v3316_v22, %v3317_v62  ;;  %v2800_v9 = vadd.f32 %v2726_v2, %v6586_v8  ;;  %v7983_v2 = vld [vmem:[#allocation18_spill] sm:$0xff] }
 0x3b7   : > { %v3397_v0 = vadd.f32 %v3333_v43, %v7353_v6  ;;  %v3635_v61 = vsel %vm3627_vm4, %v3618_v54, %v3619_v39 }
 0x3b8   : > { %v7467_v11 = vadd.f32 %v7390_v4, %v2800_v9  ;;  %v7980_v4 = vld [vmem:[#allocation55_spill] sm:$0xff] }
 0x3b9   : > { %v3699_v50 = vadd.f32 %v3635_v61, %v3397_v0 }
 0x3ba   : > { %v2672_v7 = vpop.f32.mrf.mxu1 }
 0x3bb   : > { %v3265_v58 = vpop.f32.mrf.mxu3  ;;  %v2719_v27 = vrot.slane %v2672_v7, 1  ;;  %v7470_v42 = vmul.f32 %v3699_v50, %v7979_v31  ;;  %v7984_v50 = vld [vmem:[#allocation52_spill] sm:$0xff]  ;;  %v7986_v31 = vld [vmem:[#allocation53_spill] sm:$0xff] }
 0x3bc   : > { %v3318_v14 = vrot.slane %v3265_v58, 2  ;;  %v3567_v59 = vpop.f32.mrf.mxu0  ;;  %v7985_v7 = vrot.slane %v7984_v50, 1 }
 0x3bd   : > { %v2725_v8 = vsel %vm2722_vm2, %v2718_v20, %v2719_v27  ;;  %v3620_v15 = vrot.slane %v3567_v59, 3  ;;  %3781 = vst [vmem:[%s6763_s30 + $0xf0] sm:$0xff] %v7470_v42 }
 0x3be   : > { %v3332_v6 = vsel %vm3325_vm3, %v3317_v62, %v3318_v14  ;;  %v2801_v35 = vadd.f32 %v2725_v8, %v7980_v4  ;;  %v7988_v4 = vld [vmem:[#allocation50_spill] sm:$0xff] }
 0x3bf   : > { %v3398_v44 = vadd.f32 %v3332_v6, %v7373_v47  ;;  %v3634_v25 = vsel %vm3627_vm4, %v3619_v39, %v3620_v15 }
 0x3c0   : > { %v7483_v55 = vadd.f32 %v7410_v12, %v2801_v35  ;;  %v7982_v12 = vld [vmem:[#allocation51_spill] sm:$0xff] }
 0x3c1   : > { %v3700_v60 = vadd.f32 %v3634_v25, %v3398_v44 }
 0x3c2   : > { %v2674_v29 = vpop.f32.mrf.mxu1 }
 0x3c3   : > { %v3267_v22 = vpop.f32.mrf.mxu3  ;;  %v2720_v46 = vrot.slane %v2674_v29, 1  ;;  %v7486_v54 = vmul.f32 %v3700_v60, %v7981_v10  ;;  %v7989_v60 = vld [vmem:[#allocation57_spill] sm:$0xff] }
 0x3c4   : > { %v3319_v45 = vrot.slane %v3267_v22, 2  ;;  %v3569_v56 = vpop.f32.mrf.mxu0  ;;  %v7990_v22 = vld [vmem:[#allocation19_spill] sm:$0xff] }
 0x3c5   : > { %v2724_v33 = vsel %vm2722_vm2, %v2719_v27, %v2720_v46  ;;  %v3621_v40 = vrot.slane %v3569_v56, 3  ;;  %3782 = vst [vmem:[%s6763_s30 + $0xf8] sm:$0xff] %v7486_v54  ;;  %3816 = vmatpush.msrb.mxu2 %v7486_v54  ;;  %v7991_v56 = vld [vmem:[#allocation70_spill] sm:$0xff] }
 0x3c6   : > { %v3331_v47 = vsel %vm3325_vm3, %v3318_v14, %v3319_v45  ;;  %v2802_v51 = vadd.f32 %v2724_v33, %v7982_v12 }
 0x3c7   : > { %v3399_v18 = vadd.f32 %v3331_v47, %v7393_v1  ;;  %v3633_v36 = vsel %vm3627_vm4, %v3620_v15, %v3621_v40  ;;  %3817 = vmatpush.msrb.mxu2 %v7470_v42  ;;  %v7987_v15 = vld [vmem:[#allocation65_spill] sm:$0xff]  ;;  %v7992_v47 = vld [vmem:[#allocation54_spill] sm:$0xff] }
 0x3c8   : > { %v7501_v20 = vadd.f32 %v7416_v53, %v2802_v51 }
 0x3c9   : > { %3818 = vmatpush.msrb.mxu2 %v7454_v16  ;;  %v3701_v13 = vadd.f32 %v3633_v36, %v3399_v18  ;;  %v7993_v36 = vld [vmem:[#allocation46_spill] sm:$0xff] }
 0x3cb   : > { %v3270_v62 = vpop.f32.mrf.mxu3  ;;  %3819 = vmatpush.msrb.mxu2 %v7438_v28  ;;  %v2677_v48 = vpop.f32.mrf.mxu1  ;;  %v7506_v39 = vmul.f32 %v3701_v13, %v7983_v2 }
 0x3cc   : > { %v3320_v43 = vrot.slane %v3270_v62, 2  ;;  %v2721_v1 = vrot.slane %v2677_v48, 1  ;;  %v3572_v9 = vpop.f32.mrf.mxu0  ;;  %v7994_v62 = vld [vmem:[#allocation42_spill] sm:$0xff] }
 0x3cd   : > { %v3622_v0 = vrot.slane %v3572_v9, 3  ;;  %3820 = vmatpush.msrb.mxu2 %v7422_v19  ;;  %3783 = vst [vmem:[%s6763_s30 + $0x100] sm:$0xff] %v7506_v39 }
 0x3ce   : > { %v3330_v53 = vsel %vm3325_vm3, %v3319_v45, %v3320_v43  ;;  %v2723_v61 = vsel %vm2722_vm2, %v2720_v46, %v2721_v1  ;;  %v2763_v58 = vsel %vm2722_vm2, %v2721_v1, %v7985_v7 }
 0x3cf   : > { %v3400_v27 = vadd.f32 %v3330_v53, %v7419_v21  ;;  %v2803_v14 = vadd.f32 %v2723_v61, %v7986_v31  ;;  %v2804_v59 = vadd.f32 %v2763_v58, %v6652_v52  ;;  %v3632_v8 = vsel %vm3627_vm4, %v3621_v40, %v3622_v0  ;;  %3821 = vmatpush.msrb.mxu2 %v7396_v32 }
 0x3d1   : > { %v3104_v6 = vadd.f32 %v7987_v15, %v2803_v14  ;;  %v3105_v35 = vadd.f32 %v7988_v4, %v2804_v59  ;;  %3822 = vmatpush.msrb.mxu2 %v7376_v23  ;;  %v3702_v44 = vadd.f32 %v3632_v8, %v3400_v27  ;;  %v4711_v14 = vmov 1.0   ;;  %v7996_v8 = vld [vmem:[#allocation28_spill] sm:$0xff] }
 0x3d2   : > { %3812 = vmatmul.f32.vlgmr.msrb.gmra.mxu1 %v4711_v14 }
 0x3d3   : > { %v3272_v25 = vpop.f32.mrf.mxu3  ;;  %v3406_v21 = vadd.f32 %v6705_v63, %v3104_v6  ;;  %v3407_v29 = vadd.f32 %v7989_v60, %v3105_v35  ;;  %3823 = vmatpush.msrb.mxu2 %v7356_v17  ;;  %v2679_v52 = vpop.f32.mrf.mxu1  ;;  %v7532_v46 = vmul.f32 %v3702_v44, %v7990_v22 }
 0x3d4   : > { %v3321_v10 = vrot.slane %v3272_v25, 2  ;;  %v3574_v45 = vpop.f32.mrf.mxu0 }
 0x3d5   : > { %v3709_v33 = vadd.f32 %v7991_v56, %v3407_v29  ;;  %v3623_v40 = vrot.slane %v3574_v45, 3  ;;  %3824 = vmatpush.msrb.mxu2 %v7336_v24  ;;  %v3708_v12 = vadd.f32 %v7992_v47, %v3406_v21  ;;  %3784 = vst [vmem:[%s6763_s30 + $0x108] sm:$0xff] %v7532_v46  ;;  %v7997_v29 = vld [vmem:[#allocation34_spill] sm:$0xff] }
 0x3d6   : > { %v3329_v63 = vsel %vm3325_vm3, %v3320_v43, %v3321_v10  ;;  %v7995_v43 = vld [vmem:[#allocation27_spill] sm:$0xff] }
 0x3d7   : > { %v3401_v51 = vadd.f32 %v3329_v63, %v7435_v38  ;;  %v3631_v18 = vsel %vm3627_vm4, %v3622_v0, %v3623_v40  ;;  %3825 = vmatpush.msrb.mxu2 %v7310_v37  ;;  %v3750_v13 = vmul.f32 %v3709_v33, %v7993_v36  ;;  %v3749_v48 = vmul.f32 %v3708_v12, %v7994_v62  ;;  %v7998_v33 = vld [vmem:[#allocation69_spill] sm:$0xff] }
 0x3d9   : > { %3826 = vmatpush.msrb.mxu2 %v7282_v34  ;;  %3791 = vst [vmem:[%s6763_s30 + $0x140] sm:$0xff] %v3750_v13  ;;  %v3897_v2 = vmul.f32 %v3750_v13, %v3750_v13  ;;  %v3703_v1 = vadd.f32 %v3631_v18, %v3401_v51  ;;  %v3896_v38 = vmul.f32 %v3749_v48, %v3749_v48  ;;  %v8000_v51 = vld [vmem:[#allocation6_spill] sm:$0xff] }
 0x3da   : > { %3790 = vst [vmem:[%s6763_s30 + $0x138] sm:$0xff] %v3749_v48  ;;  %3914 = vmatmul.f32.vlgmr.msra.gmra.mxu1 %v4711_v14  ;;  %v8001_v18 = vrot.slane %v8000_v51, 3 }
 0x3db   : > { %v3275_v9 = vpop.f32.mrf.mxu3  ;;  %3827 = vmatpush.msrb.mxu2 %v7253_v26  ;;  %3945 = vmatpush.msrb.mxu3 %v3897_v2  ;;  %v3744_v0 = vmul.f32 %v3703_v1, %v7995_v43  ;;  %v8003_v1 = vld [vmem:[#allocation35_spill] sm:$0xff] }
 0x3dc   : > { %v3322_v53 = vrot.slane %v3275_v9, 2  ;;  %v3577_v61 = vpop.f32.mrf.mxu0 }
 0x3dd   : > { %v3624_v50 = vrot.slane %v3577_v61, 3  ;;  %3828 = vmatpush.msrb.mxu2 %v7224_v57  ;;  %3946 = vmatpush.msrb.mxu3 %v3896_v38  ;;  %3785 = vst [vmem:[%s6763_s30 + $0x110] sm:$0xff] %v3744_v0  ;;  %v3891_v61 = vmul.f32 %v3744_v0, %v3744_v0 }
 0x3de   : > { %v3328_v7 = vsel %vm3325_vm3, %v3321_v10, %v3322_v53 }
 0x3df   : > { %v3402_v58 = vadd.f32 %v3328_v7, %v7451_v5  ;;  %v3630_v27 = vsel %vm3627_vm4, %v3623_v40, %v3624_v50  ;;  %3829 = vmatpush.msrb.mxu2 %v7197_v41  ;;  %v3888_v7 = vmul.f32 %v7486_v54, %v7486_v54  ;;  %v3885_v54 = vmul.f32 %v7438_v28, %v7438_v28 }
 0x3e0   : > { %v3880_v28 = vmul.f32 %v7336_v24, %v7336_v24  ;;  %v3875_v24 = vmul.f32 %v7197_v41, %v7197_v41 }
 0x3e1   : > { %3830 = vmatpush.msrb.mxu2 %v7172_v30  ;;  %v3704_v31 = vadd.f32 %v3630_v27, %v3402_v58  ;;  %v3889_v58 = vmul.f32 %v7506_v39, %v7506_v39  ;;  %v3882_v27 = vmul.f32 %v7376_v23, %v7376_v23  ;;  %v3877_v23 = vmul.f32 %v7253_v26, %v7253_v26 }
 0x3e3   : > { %v3277_v59 = vpop.f32.mrf.mxu3  ;;  %3831 = vmatpush.msrb.mxu2 %v7147_v49  ;;  %v3745_v15 = vmul.f32 %v3704_v31, %v7996_v8 }
 0x3e4   : > { %v3323_v6 = vrot.slane %v3277_v59, 2  ;;  %v3579_v5 = vpop.f32.mrf.mxu0  ;;  %3832 = vmatmul.f32.vlgmr.msrb.gmra.mxu2 %v4711_v14 }
 0x3e5   : > { %3843 = vmatpush.msra.mxu2 %v3750_v13  ;;  %v3625_v4 = vrot.slane %v3579_v5, 3  ;;  %3786 = vst [vmem:[%s6763_s30 + $0x118] sm:$0xff] %v3745_v15  ;;  %v3892_v3 = vmul.f32 %v3745_v15, %v3745_v15 }
 0x3e6   : > { %v3327_v35 = vsel %vm3325_vm3, %v3322_v53, %v3323_v6 }
 0x3e7   : > { %3844 = vmatpush.msra.mxu2 %v3749_v48  ;;  %v3403_v44 = vadd.f32 %v3327_v35, %v7467_v11  ;;  %v3629_v25 = vsel %vm3627_vm4, %v3624_v50, %v3625_v4  ;;  %v7999_v11 = vrot.slane %v7998_v33, 2  ;;  %v8002_v48 = vld [vmem:[#allocation41_spill] sm:$0xff]  ;;  %v3890_v50 = vmul.f32 %v7532_v46, %v7532_v46 }
 0x3e9   : > { %v3705_v21 = vadd.f32 %v3629_v25, %v3403_v44 }
 0x3eb   : > { %v3280_v60 = vpop.f32.mrf.mxu3  ;;  %v3746_v52 = vmul.f32 %v3705_v21, %v7997_v29 }
 0x3ec   : > { %v3324_v22 = vrot.slane %v3280_v60, 2  ;;  %v3582_v10 = vpop.f32.mrf.mxu0 }
 0x3ed   : > { %v3626_v45 = vrot.slane %v3582_v10, 3  ;;  %3787 = vst [vmem:[%s6763_s30 + $0x120] sm:$0xff] %v3746_v52  ;;  %v3893_v53 = vmul.f32 %v3746_v52, %v3746_v52 }
 0x3ee   : > { %v3326_v56 = vsel %vm3325_vm3, %v3323_v6, %v3324_v22  ;;  %v3366_v40 = vsel %vm3325_vm3, %v3324_v22, %v7999_v11 }
 0x3ef   : > { %v3404_v47 = vadd.f32 %v3326_v56, %v7483_v55  ;;  %v3405_v12 = vadd.f32 %v3366_v40, %v7501_v20  ;;  %v3628_v63 = vsel %vm3627_vm4, %v3625_v4, %v3626_v45  ;;  %v3668_v36 = vsel %vm3627_vm4, %v3626_v45, %v8001_v18 }
 0x3f1   : > { %v3707_v13 = vadd.f32 %v3668_v36, %v3405_v12  ;;  %v3706_v62 = vadd.f32 %v3628_v63, %v3404_v47 }
 0x3f3   : > { %v3748_v2 = vmul.f32 %v3707_v13, %v8002_v48  ;;  %v3747_v9 = vmul.f32 %v3706_v62, %v8003_v1  ;;  %v3282_v38 = vpop.f32.mrf.mxu3 }
 0x3f4   : > { %v3584_v43 = vpop.f32.mrf.mxu0 }
 0x3f5   : > { %3789 = vst [vmem:[%s6763_s30 + $0x130] sm:$0xff] %v3748_v2  ;;  %3845 = vmatpush.msra.mxu2 %v3748_v2  ;;  %v3895_v55 = vmul.f32 %v3748_v2, %v3748_v2  ;;  %v3894_v20 = vmul.f32 %v3747_v9, %v3747_v9 }
 0x3f6   : > { %3788 = vst [vmem:[%s6763_s30 + $0x128] sm:$0xff] %v3747_v9 }
 0x3f7   : > { %3846 = vmatpush.msra.mxu2 %v3747_v9  ;;  %3947 = vmatpush.msrb.mxu3 %v3895_v55 }
 0x3f9   : > { %3847 = vmatpush.msra.mxu2 %v3746_v52  ;;  %3948 = vmatpush.msrb.mxu3 %v3894_v20 }
 0x3fb   : > { %3848 = vmatpush.msra.mxu2 %v3745_v15  ;;  %3949 = vmatpush.msrb.mxu3 %v3893_v53 }
 0x3fd   : > { %3849 = vmatpush.msra.mxu2 %v3744_v0  ;;  %3950 = vmatpush.msrb.mxu3 %v3892_v3  ;;  %v3887_v0 = vmul.f32 %v7470_v42, %v7470_v42  ;;  %v3883_v42 = vmul.f32 %v7396_v32, %v7396_v32  ;;  %v3878_v32 = vmul.f32 %v7282_v34, %v7282_v34 }
 0x3fe   : > { %v3873_v34 = vmul.f32 %v7147_v49, %v7147_v49 }
 0x3ff   : > { %3850 = vmatpush.msra.mxu2 %v7532_v46  ;;  %3951 = vmatpush.msrb.mxu3 %v3891_v61  ;;  %v3886_v46 = vmul.f32 %v7454_v16, %v7454_v16  ;;  %v3881_v16 = vmul.f32 %v7356_v17, %v7356_v17  ;;  %v3876_v17 = vmul.f32 %v7224_v57, %v7224_v57 }
 0x401   : > { %3851 = vmatpush.msra.mxu2 %v7506_v39  ;;  %3952 = vmatpush.msrb.mxu3 %v3890_v50  ;;  %v3884_v39 = vmul.f32 %v7422_v19, %v7422_v19  ;;  %v3879_v19 = vmul.f32 %v7310_v37, %v7310_v37  ;;  %v3874_v37 = vmul.f32 %v7172_v30, %v7172_v30 }
 0x402   : > { %4487 = vmatmul.msk.f32.vlgmr.msra.gmra.mxu2 %vm3792_vm6, %v4711_v14 }
 0x403   : > { %3918 = vmatpush.msrb.mxu2 %v3888_v7  ;;  %3953 = vmatpush.msrb.mxu3 %v3889_v58 }
 0x404   : > { %4488 = vmatmul.msk.f32.vlgmr.msrb.gmra.mxu3 %vm3792_vm6, %v4711_v14 }
 0x405   : > { %3919 = vmatpush.msrb.mxu2 %v3887_v0 }
 0x407   : > { %3920 = vmatpush.msrb.mxu2 %v3886_v46 }
 0x409   : > { %3921 = vmatpush.msrb.mxu2 %v3885_v54 }
 0x40b   : > { %3922 = vmatpush.msrb.mxu2 %v3884_v39 }
 0x40d   : > { %3923 = vmatpush.msrb.mxu2 %v3883_v42 }
 0x40f   : > { %3924 = vmatpush.msrb.mxu2 %v3882_v27 }
 0x411   : > { %3925 = vmatpush.msrb.mxu2 %v3881_v16 }
 0x413   : > { %3926 = vmatpush.msrb.mxu2 %v3880_v28 }
 0x415   : > { %3927 = vmatpush.msrb.mxu2 %v3879_v19 }
 0x417   : > { %3928 = vmatpush.msrb.mxu2 %v3878_v32 }
 0x419   : > { %3929 = vmatpush.msrb.mxu2 %v3877_v23 }
 0x41b   : > { %3930 = vmatpush.msrb.mxu2 %v3876_v17 }
 0x41d   : > { %3931 = vmatpush.msrb.mxu2 %v3875_v24 }
 0x41f   : > { %3932 = vmatpush.msrb.mxu2 %v3874_v37 }
 0x421   : > { %3933 = vmatpush.msrb.mxu2 %v3873_v34 }
 0x422   : > { %3934 = vmatmul.f32.vlgmr.msrb.gmra.mxu2 %v4711_v14 }
 0x44f   : > { %v3813_v31 = vpop.f32.mrf.mxu1 }
 0x457   : > { %v3915_v8 = vpop.f32.mrf.mxu1 }
 0x467   : > { %v3833_v26 = vpop.f32.mrf.mxu2 }
 0x468   : > { %v3834_v59 = vadd.f32 %v3833_v26, %v3813_v31 }
 0x485   : > { %v3853_v41 = vpop.f32.mrf.mxu2 }
 0x486   : > { %v3854_v57 = vadd.f32 %v3853_v41, %v3834_v59 }
 0x487   : > { %v3955_v15 = vpop.f32.mrf.mxu3 }
 0x488   : > { %3856 = vst [vmem:[%s265_s10] sm:$0x1] %v3854_v57 }
 0x4a5   : > { %v3935_v30 = vpop.f32.mrf.mxu2 }
 0x4a6   : > { %v3936_v6 = vadd.f32 %v3935_v30, %v3915_v8 }
 0x4a8   : > { %v3956_v49 = vadd.f32 %v3955_v15, %v3936_v6 }
 0x4aa   : > { %3958 = vst [vmem:[%s268_s13] sm:$0x1] %v3956_v49 }
 0x4ab PF: > { %s17_s21 = sadd.s32 1, %s4708_s21  }
 0x4ac   : > { %p14_p4 = scmp.ge.s32.totalorder %s17_s21, 4  }
 0x4ae   :  { %16 = sbr.rel (!%p14_p4) target bundleno = 1 (0x1), region = 98 }

</bundles_post_ra>
